<compile_context>
chip_gen: v7x
topology: tpu7x:2x2x1
jax: 0.10.0
libtpu: 0.0.40
codegen_flags: <defaults>
</compile_context>

<pallas_src>
import functools

import jax
import jax.numpy as jnp
from jax.experimental import pallas as pl
from jax.experimental.pallas import tpu as pltpu


def _feature_align_kernel(shp_ref, wc_ref, x_ref, wdef_ref, wconv_ref,
                          mask_ref, b_ref, o_ref, *,
                          H, W, KH, KW, G, CG, CIN, COUT, HWp):
    HW = H * W
    K = KH * KW
    GK = G * K
    NC = GK * HWp
    PAD_H, PAD_W = (KH - 1) // 2, (KW - 1) // 2

    # (1) all sampling-coordinate distances via one matmul; bilinear weights lane-dense.
    d = jnp.dot(shp_ref[0], wc_ref[...], preferred_element_type=jnp.float32)   # (HW, 2*NC)
    wfac = jnp.maximum(1.0 - jnp.abs(d), 0.0)
    wmat = wfac[:, :NC] * wfac[:, NC:]                                          # (HW, GK*HWp)

    # (2) stack the GK per-tap (HW, HWp) maps along rows -> single sampling matmul.
    wstack = jnp.concatenate(
        [wmat[:, t * HWp:(t + 1) * HWp] for t in range(GK)], axis=0)            # (GK*HW, HWp)
    samp = jnp.dot(wstack, x_ref[0], preferred_element_type=jnp.float32)        # (GK*HW, CIN)

    # (3) gather each tap's deform-group channel slice -> one w_def matmul, fused ReLU.
    pieces = []
    for t in range(GK):
        g = t // K
        pieces.append(samp[t * HW:(t + 1) * HW, g * CG:(g + 1) * CG])
    s_mat = jnp.concatenate(pieces, axis=1)                                     # (HW, GK*CG)
    y1 = jnp.maximum(
        jnp.dot(s_mat, wdef_ref[...], preferred_element_type=jnp.float32), 0.0)  # (HW, CIN)

    # (4) fused 3x3 conv: 9 static row rotations (wrap zeroed by the border mask),
    #     one matmul against (K*CIN, COUT) weights, plus bias.
    patches = []
    for k2 in range(K):
        di = k2 // KW - PAD_H
        dj = k2 % KW - PAD_W
        s = (di * W + dj) % HW
        if s == 0:
            patches.append(y1)
        else:
            patches.append(jnp.concatenate([y1[s:, :], y1[:s, :]], axis=0))
    p_mat = jnp.concatenate(patches, axis=1) * mask_ref[...]                    # (HW, K*CIN)
    out = jnp.dot(p_mat, wconv_ref[...], preferred_element_type=jnp.float32) + b_ref[...]
    o_ref[0] = out.astype(o_ref.dtype)


def feature_align(x, shp, w_off, w_def, w_conv, b_conv, *, ks=(3, 3), groups=4):
    """x: (B,Cin,H,W), shp: (B,4,H,W), w_off: (G*2*K,4), w_def: (Cin,Cin,kh,kw),
    w_conv: (Cout,Cin,kh,kw), b_conv: (Cout,).  Returns (B,Cout,H,W)."""
    # TODO(synk): use_pred_offset=False branch (analytic offsets from box shape) not implemented;
    #             this covers the default use_pred_offset=True path of the module.
    B, CIN, H, W = x.shape
    KH, KW = ks
    K = KH * KW
    PAD_H, PAD_W = (KH - 1) // 2, (KW - 1) // 2
    G = groups
    CG = CIN // G
    HW = H * W
    GK = G * K
    COUT = w_conv.shape[0]
    HWp = pl.cdiv(HW, 128) * 128          # pad the input-pixel axis to a full lane tile
    NC = GK * HWp
    BIG = 3.0e4                           # sentinel distance -> bilinear weight exactly 0
    f32 = jnp.float32

    # ---- layout plumbing / trace-time weight preparation (all XLA glue) ----
    x_flat = jnp.transpose(x, (0, 2, 3, 1)).reshape(B, HW, CIN).astype(f32)
    x_pad = jnp.pad(x_flat, ((0, 0), (0, HWp - HW), (0, 0)))

    q = jnp.arange(HW)
    y_out = (q // W).astype(f32)
    x_out = (q % W).astype(f32)
    aug = jnp.stack([y_out, x_out, jnp.ones((HW,), f32), jnp.zeros((HW,), f32)], axis=-1)
    shp_flat = jnp.transpose(shp, (0, 2, 3, 1)).reshape(B, HW, 4).astype(f32)
    shp_aug = jnp.concatenate(
        [shp_flat, jnp.broadcast_to(aug[None], (B, HW, 4))], axis=-1)           # (B, HW, 8)

    # per-tap dy/dx 1x1-conv weights (mmcv offset channel order: [g, k, {dy,dx}])
    w_off_r = w_off.reshape(G, K, 2, 4).astype(f32)
    w_dy = w_off_r[:, :, 0, :].reshape(GK, 4)
    w_dx = w_off_r[:, :, 1, :].reshape(GK, 4)

    kk = jnp.arange(K)
    base_y = jnp.tile((kk // KW - PAD_H).astype(f32), (G,))                     # (GK,)
    base_x = jnp.tile((kk % KW - PAD_W).astype(f32), (G,))

    p = jnp.arange(HWp)
    py = (p // W).astype(f32)
    px = (p % W).astype(f32)
    valid_p = (p < HW)[None, :]                                                 # (1, HWp)

    ones_row = jnp.ones((1, NC), f32)
    zeros_row = jnp.zeros((1, NC), f32)
    rows_dy = jnp.repeat(w_dy.T, HWp, axis=1)                                   # (4, NC)
    rows_dx = jnp.repeat(w_dx.T, HWp, axis=1)
    row6_y = jnp.where(valid_p, base_y[:, None] - py[None, :], BIG).reshape(1, NC)
    row6_x = jnp.where(valid_p, base_x[:, None] - px[None, :], BIG).reshape(1, NC)
    w_coord = jnp.concatenate([
        jnp.concatenate([rows_dy, ones_row, zeros_row, row6_y, zeros_row], axis=0),
        jnp.concatenate([rows_dx, zeros_row, ones_row, row6_x, zeros_row], axis=0)],
        axis=1)                                                                 # (8, 2*NC)

    # deform-conv weight: rows ordered (g, k, c) -> (GK*CG, CIN)
    w_def_2d = jnp.transpose(w_def.reshape(CIN, G, CG, K),
                             (1, 3, 2, 0)).reshape(GK * CG, CIN).astype(f32)
    # final conv weight:  rows ordered (k2, c)  -> (K*CIN, COUT)
    w_conv_2d = jnp.transpose(w_conv.reshape(COUT, CIN, K),
                              (2, 1, 0)).reshape(K * CIN, COUT).astype(f32)
    b_row = b_conv.reshape(1, COUT).astype(f32)

    # border-validity mask of the 3x3 conv, widened to (HW, K*CIN)
    qy, qx = q // W, q % W
    di = kk // KW - PAD_H
    dj = kk % KW - PAD_W
    valid = ((qy[:, None] + di[None, :] >= 0) & (qy[:, None] + di[None, :] < H) &
             (qx[:, None] + dj[None, :] >= 0) & (qx[:, None] + dj[None, :] < W))
    conv_mask = jnp.repeat(valid.astype(f32), CIN, axis=1)                      # (HW, K*CIN)

    kern = functools.partial(_feature_align_kernel, H=H, W=W, KH=KH, KW=KW, G=G,
                             CG=CG, CIN=CIN, COUT=COUT, HWp=HWp)
    out_flat = pl.pallas_call(
        kern,
        out_shape=jax.ShapeDtypeStruct((B, HW, COUT), jnp.float32),
        grid=(B,),
        in_specs=[
            pl.BlockSpec((1, HW, 8), lambda b: (b, 0, 0)),
            pl.BlockSpec((8, 2 * NC), lambda b: (0, 0)),
            pl.BlockSpec((1, HWp, CIN), lambda b: (b, 0, 0)),
            pl.BlockSpec((GK * CG, CIN), lambda b: (0, 0)),
            pl.BlockSpec((K * CIN, COUT), lambda b: (0, 0)),
            pl.BlockSpec((HW, K * CIN), lambda b: (0, 0)),
            pl.BlockSpec((1, COUT), lambda b: (0, 0)),
        ],
        out_specs=pl.BlockSpec((1, HW, COUT), lambda b: (b, 0, 0)),
        compiler_params=pltpu.CompilerParams(
            dimension_semantics=("parallel",),
            vmem_limit_bytes=32 * 1024 * 1024),
    )(shp_aug, w_coord, x_pad, w_def_2d, w_conv_2d, conv_mask, b_row)

    return jnp.transpose(out_flat.reshape(B, H, W, COUT), (0, 3, 1, 2))


def reference_forward(x, shp, w_off, w_def, w_conv, b_conv, *, ks=(3, 3), groups=4):
    """Pure-JAX reference.  The deformable-conv bilinear sampling (zero outside the image,
    as in mmcv DeformConv2d) is written with the equivalent dense-bilinear formulation;
    the final conv uses lax.conv as an independent check."""
    B, CIN, H, W = x.shape
    KH, KW = ks
    K = KH * KW
    PAD_H, PAD_W = (KH - 1) // 2, (KW - 1) // 2
    G = groups
    CG = CIN // G
    HW = H * W
    offs = jnp.einsum('bchw,oc->bohw', shp, w_off).reshape(B, G, K, 2, H, W)
    x_flat = jnp.transpose(x, (0, 2, 3, 1)).reshape(B, HW, CIN)
    yy = (jnp.arange(HW) // W).astype(jnp.float32)
    xx = (jnp.arange(HW) % W).astype(jnp.float32)
    acc = jnp.zeros((B, HW, CIN), jnp.float32)
    for g in range(G):
        xg = x_flat[:, :, g * CG:(g + 1) * CG]
        for k in range(K):
            ki, kj = k // KW, k % KW
            dy = offs[:, g, k, 0].reshape(B, HW)
            dx = offs[:, g, k, 1].reshape(B, HW)
            ys = yy[None, :] + float(ki - PAD_H) + dy
            xs = xx[None, :] + float(kj - PAD_W) + dx
            wy = jnp.maximum(1.0 - jnp.abs(ys[:, :, None] - yy[None, None, :]), 0.0)
            wx = jnp.maximum(1.0 - jnp.abs(xs[:, :, None] - xx[None, None, :]), 0.0)
            samp = jnp.einsum('bqp,bpc->bqc', wy * wx, xg)
            wk = w_def[:, g * CG:(g + 1) * CG, ki, kj]            # (CIN, CG)
            acc = acc + jnp.einsum('bqc,oc->bqo', samp, wk)
    y1 = jnp.maximum(acc, 0.0)
    y1_nchw = jnp.transpose(y1.reshape(B, H, W, CIN), (0, 3, 1, 2))
    out = jax.lax.conv_general_dilated(
        y1_nchw, w_conv, window_strides=(1, 1),
        padding=((PAD_H, PAD_H), (PAD_W, PAD_W)),
        dimension_numbers=('NCHW', 'OIHW', 'NCHW'))
    return out + b_conv[None, :, None, None]


if __name__ == "__main__":
    B, CIN, COUT, H, W, G = 2, 16, 32, 8, 8, 4
    KH = KW = 3
    K = KH * KW

    key = jax.random.PRNGKey(0)
    k0, k1, k2, k3, k4, k5 = jax.random.split(key, 6)
    x = jax.random.normal(k0, (B, CIN, H, W), jnp.float32)
    shp = jax.random.normal(k1, (B, 4, H, W), jnp.float32)
    # Synthetic parameters (shapes from __init__).  conv_offset weight gets a non-zero std
    # so the deformable sampling path is actually exercised.
    w_off = 0.3 * jax.random.normal(k2, (G * 2 * K, 4), jnp.float32)        # Conv2d(4, G*18, 1)
    w_def = 0.1 * jax.random.normal(k3, (CIN, CIN, KH, KW), jnp.float32)    # DeformConv2d weight
    w_conv = 0.1 * jax.random.normal(k4, (COUT, CIN, KH, KW), jnp.float32)  # Conv2d(Cin, Cout, 3)
    b_conv = 0.1 * jax.random.normal(k5, (COUT,), jnp.float32)

    out = feature_align(x, shp, w_off, w_def, w_conv, b_conv, ks=(KH, KW), groups=G)
    out = jax.block_until_ready(out)

    ref = reference_forward(x, shp, w_off, w_def, w_conv, b_conv, ks=(KH, KW), groups=G)
    assert out.shape == (B, COUT, H, W), out.shape
    max_err = float(jnp.max(jnp.abs(out - ref)))
    assert jnp.allclose(out, ref, atol=2e-2, rtol=2e-2), max_err
    print("KERNEL_OK")
</pallas_src>

<mosaic_0001>
module attributes {stable_mosaic.version = 11 : i64} {
  func.func @_feature_align_kernel(%arg0: i32, %arg1: memref<1x64x8xf32, #tpu.memory_space<vmem>>, %arg2: memref<8x9216xf32, #tpu.memory_space<vmem>>, %arg3: memref<1x128x16xf32, #tpu.memory_space<vmem>>, %arg4: memref<144x16xf32, #tpu.memory_space<vmem>>, %arg5: memref<144x32xf32, #tpu.memory_space<vmem>>, %arg6: memref<64x144xf32, #tpu.memory_space<vmem>>, %arg7: memref<1x32xf32, #tpu.memory_space<vmem>>, %arg8: memref<1x64x32xf32, #tpu.memory_space<vmem>>) attributes {dimension_semantics = [#tpu.dimension_semantics<parallel>], iteration_bounds = array<i64: 2>, scalar_prefetch = 0 : i64, scratch_operands = 0 : i64, tpu.core_type = #tpu.core_type<tc>, window_params = [{transform_indices = @transform_0, window_bounds = array<i64: 1, 64, 8>}, {pipeline_mode = #tpu.pipeline_mode<synchronous>, transform_indices = @transform_1, window_bounds = array<i64: 8, 9216>}, {transform_indices = @transform_2, window_bounds = array<i64: 1, 128, 16>}, {pipeline_mode = #tpu.pipeline_mode<synchronous>, transform_indices = @transform_3, window_bounds = array<i64: 144, 16>}, {pipeline_mode = #tpu.pipeline_mode<synchronous>, transform_indices = @transform_4, window_bounds = array<i64: 144, 32>}, {pipeline_mode = #tpu.pipeline_mode<synchronous>, transform_indices = @transform_5, window_bounds = array<i64: 64, 144>}, {pipeline_mode = #tpu.pipeline_mode<synchronous>, transform_indices = @transform_6, window_bounds = array<i64: 1, 32>}, {transform_indices = @transform_7, window_bounds = array<i64: 1, 64, 32>}]} {
    %c0 = arith.constant 0 : index
    %c0_0 = arith.constant 0 : index
    %c0_1 = arith.constant 0 : index
    %0 = vector.load %arg1[%c0, %c0_0, %c0_1] : memref<1x64x8xf32, #tpu.memory_space<vmem>>, vector<1x64x8xf32>
    %1 = vector.shape_cast %0 : vector<1x64x8xf32> to vector<64x8xf32>
    %c0_2 = arith.constant 0 : index
    %c0_3 = arith.constant 0 : index
    %2 = vector.load %arg2[%c0_2, %c0_3] : memref<8x9216xf32, #tpu.memory_space<vmem>>, vector<8x9216xf32>
    %cst = arith.constant dense<0.000000e+00> : vector<64x9216xf32>
    %3 = tpu.matmul %1, %2, %cst {dimension_numbers = #tpu.dot_dimension_numbers<[1], [0], [0], [1], [0, 0, 1, 1], [], []>} : vector<64x8xf32>, vector<8x9216xf32>, vector<64x9216xf32> -> vector<64x9216xf32>
    %4 = math.absf %3 : vector<64x9216xf32>
    %cst_4 = arith.constant 1.000000e+00 : f32
    %5 = vector.broadcast %cst_4 : f32 to vector<64x9216xf32>
    %6 = arith.subf %5, %4 : vector<64x9216xf32>
    %cst_5 = arith.constant 0.000000e+00 : f32
    %7 = vector.broadcast %cst_5 : f32 to vector<64x9216xf32>
    %8 = arith.maximumf %6, %7 : vector<64x9216xf32>
    %9 = vector.extract_strided_slice %8 {offsets = [0, 0], sizes = [64, 4608], strides = [1, 1]} : vector<64x9216xf32> to vector<64x4608xf32>
    %10 = vector.extract_strided_slice %8 {offsets = [0, 4608], sizes = [64, 4608], strides = [1, 1]} : vector<64x9216xf32> to vector<64x4608xf32>
    %11 = arith.mulf %9, %10 : vector<64x4608xf32>
    %12 = vector.extract_strided_slice %11 {offsets = [0, 0], sizes = [64, 128], strides = [1, 1]} : vector<64x4608xf32> to vector<64x128xf32>
    %13 = vector.extract_strided_slice %11 {offsets = [0, 128], sizes = [64, 128], strides = [1, 1]} : vector<64x4608xf32> to vector<64x128xf32>
    %14 = vector.extract_strided_slice %11 {offsets = [0, 256], sizes = [64, 128], strides = [1, 1]} : vector<64x4608xf32> to vector<64x128xf32>
    %15 = vector.extract_strided_slice %11 {offsets = [0, 384], sizes = [64, 128], strides = [1, 1]} : vector<64x4608xf32> to vector<64x128xf32>
    %16 = vector.extract_strided_slice %11 {offsets = [0, 512], sizes = [64, 128], strides = [1, 1]} : vector<64x4608xf32> to vector<64x128xf32>
    %17 = vector.extract_strided_slice %11 {offsets = [0, 640], sizes = [64, 128], strides = [1, 1]} : vector<64x4608xf32> to vector<64x128xf32>
    %18 = vector.extract_strided_slice %11 {offsets = [0, 768], sizes = [64, 128], strides = [1, 1]} : vector<64x4608xf32> to vector<64x128xf32>
    %19 = vector.extract_strided_slice %11 {offsets = [0, 896], sizes = [64, 128], strides = [1, 1]} : vector<64x4608xf32> to vector<64x128xf32>
    %20 = vector.extract_strided_slice %11 {offsets = [0, 1024], sizes = [64, 128], strides = [1, 1]} : vector<64x4608xf32> to vector<64x128xf32>
    %21 = vector.extract_strided_slice %11 {offsets = [0, 1152], sizes = [64, 128], strides = [1, 1]} : vector<64x4608xf32> to vector<64x128xf32>
    %22 = vector.extract_strided_slice %11 {offsets = [0, 1280], sizes = [64, 128], strides = [1, 1]} : vector<64x4608xf32> to vector<64x128xf32>
    %23 = vector.extract_strided_slice %11 {offsets = [0, 1408], sizes = [64, 128], strides = [1, 1]} : vector<64x4608xf32> to vector<64x128xf32>
    %24 = vector.extract_strided_slice %11 {offsets = [0, 1536], sizes = [64, 128], strides = [1, 1]} : vector<64x4608xf32> to vector<64x128xf32>
    %25 = vector.extract_strided_slice %11 {offsets = [0, 1664], sizes = [64, 128], strides = [1, 1]} : vector<64x4608xf32> to vector<64x128xf32>
    %26 = vector.extract_strided_slice %11 {offsets = [0, 1792], sizes = [64, 128], strides = [1, 1]} : vector<64x4608xf32> to vector<64x128xf32>
    %27 = vector.extract_strided_slice %11 {offsets = [0, 1920], sizes = [64, 128], strides = [1, 1]} : vector<64x4608xf32> to vector<64x128xf32>
    %28 = vector.extract_strided_slice %11 {offsets = [0, 2048], sizes = [64, 128], strides = [1, 1]} : vector<64x4608xf32> to vector<64x128xf32>
    %29 = vector.extract_strided_slice %11 {offsets = [0, 2176], sizes = [64, 128], strides = [1, 1]} : vector<64x4608xf32> to vector<64x128xf32>
    %30 = vector.extract_strided_slice %11 {offsets = [0, 2304], sizes = [64, 128], strides = [1, 1]} : vector<64x4608xf32> to vector<64x128xf32>
    %31 = vector.extract_strided_slice %11 {offsets = [0, 2432], sizes = [64, 128], strides = [1, 1]} : vector<64x4608xf32> to vector<64x128xf32>
    %32 = vector.extract_strided_slice %11 {offsets = [0, 2560], sizes = [64, 128], strides = [1, 1]} : vector<64x4608xf32> to vector<64x128xf32>
    %33 = vector.extract_strided_slice %11 {offsets = [0, 2688], sizes = [64, 128], strides = [1, 1]} : vector<64x4608xf32> to vector<64x128xf32>
    %34 = vector.extract_strided_slice %11 {offsets = [0, 2816], sizes = [64, 128], strides = [1, 1]} : vector<64x4608xf32> to vector<64x128xf32>
    %35 = vector.extract_strided_slice %11 {offsets = [0, 2944], sizes = [64, 128], strides = [1, 1]} : vector<64x4608xf32> to vector<64x128xf32>
    %36 = vector.extract_strided_slice %11 {offsets = [0, 3072], sizes = [64, 128], strides = [1, 1]} : vector<64x4608xf32> to vector<64x128xf32>
    %37 = vector.extract_strided_slice %11 {offsets = [0, 3200], sizes = [64, 128], strides = [1, 1]} : vector<64x4608xf32> to vector<64x128xf32>
    %38 = vector.extract_strided_slice %11 {offsets = [0, 3328], sizes = [64, 128], strides = [1, 1]} : vector<64x4608xf32> to vector<64x128xf32>
    %39 = vector.extract_strided_slice %11 {offsets = [0, 3456], sizes = [64, 128], strides = [1, 1]} : vector<64x4608xf32> to vector<64x128xf32>
    %40 = vector.extract_strided_slice %11 {offsets = [0, 3584], sizes = [64, 128], strides = [1, 1]} : vector<64x4608xf32> to vector<64x128xf32>
    %41 = vector.extract_strided_slice %11 {offsets = [0, 3712], sizes = [64, 128], strides = [1, 1]} : vector<64x4608xf32> to vector<64x128xf32>
    %42 = vector.extract_strided_slice %11 {offsets = [0, 3840], sizes = [64, 128], strides = [1, 1]} : vector<64x4608xf32> to vector<64x128xf32>
    %43 = vector.extract_strided_slice %11 {offsets = [0, 3968], sizes = [64, 128], strides = [1, 1]} : vector<64x4608xf32> to vector<64x128xf32>
    %44 = vector.extract_strided_slice %11 {offsets = [0, 4096], sizes = [64, 128], strides = [1, 1]} : vector<64x4608xf32> to vector<64x128xf32>
    %45 = vector.extract_strided_slice %11 {offsets = [0, 4224], sizes = [64, 128], strides = [1, 1]} : vector<64x4608xf32> to vector<64x128xf32>
    %46 = vector.extract_strided_slice %11 {offsets = [0, 4352], sizes = [64, 128], strides = [1, 1]} : vector<64x4608xf32> to vector<64x128xf32>
    %47 = vector.extract_strided_slice %11 {offsets = [0, 4480], sizes = [64, 128], strides = [1, 1]} : vector<64x4608xf32> to vector<64x128xf32>
    %48 = tpu.concatenate %12, %13, %14, %15, %16, %17, %18, %19, %20, %21, %22, %23, %24, %25, %26, %27 in 0 : vector<64x128xf32>, vector<64x128xf32>, vector<64x128xf32>, vector<64x128xf32>, vector<64x128xf32>, vector<64x128xf32>, vector<64x128xf32>, vector<64x128xf32>, vector<64x128xf32>, vector<64x128xf32>, vector<64x128xf32>, vector<64x128xf32>, vector<64x128xf32>, vector<64x128xf32>, vector<64x128xf32>, vector<64x128xf32> -> vector<1024x128xf32>
    %49 = tpu.concatenate %28, %29, %30, %31, %32, %33, %34, %35, %36, %37, %38, %39, %40, %41, %42, %43 in 0 : vector<64x128xf32>, vector<64x128xf32>, vector<64x128xf32>, vector<64x128xf32>, vector<64x128xf32>, vector<64x128xf32>, vector<64x128xf32>, vector<64x128xf32>, vector<64x128xf32>, vector<64x128xf32>, vector<64x128xf32>, vector<64x128xf32>, vector<64x128xf32>, vector<64x128xf32>, vector<64x128xf32>, vector<64x128xf32> -> vector<1024x128xf32>
    %50 = tpu.concatenate %44, %45, %46, %47 in 0 : vector<64x128xf32>, vector<64x128xf32>, vector<64x128xf32>, vector<64x128xf32> -> vector<256x128xf32>
    %51 = tpu.concatenate %48, %49, %50 in 0 : vector<1024x128xf32>, vector<1024x128xf32>, vector<256x128xf32> -> vector<2304x128xf32>
    %c0_6 = arith.constant 0 : index
    %c0_7 = arith.constant 0 : index
    %c0_8 = arith.constant 0 : index
    %52 = vector.load %arg3[%c0_6, %c0_7, %c0_8] : memref<1x128x16xf32, #tpu.memory_space<vmem>>, vector<1x128x16xf32>
    %53 = vector.shape_cast %52 : vector<1x128x16xf32> to vector<128x16xf32>
    %cst_9 = arith.constant dense<0.000000e+00> : vector<2304x16xf32>
    %54 = tpu.matmul %51, %53, %cst_9 {dimension_numbers = #tpu.dot_dimension_numbers<[1], [0], [0], [1], [0, 0, 1, 1], [], []>} : vector<2304x128xf32>, vector<128x16xf32>, vector<2304x16xf32> -> vector<2304x16xf32>
    %55 = vector.extract_strided_slice %54 {offsets = [0, 0], sizes = [64, 4], strides = [1, 1]} : vector<2304x16xf32> to vector<64x4xf32>
    %56 = vector.extract_strided_slice %54 {offsets = [64, 0], sizes = [64, 4], strides = [1, 1]} : vector<2304x16xf32> to vector<64x4xf32>
    %57 = vector.extract_strided_slice %54 {offsets = [128, 0], sizes = [64, 4], strides = [1, 1]} : vector<2304x16xf32> to vector<64x4xf32>
    %58 = vector.extract_strided_slice %54 {offsets = [192, 0], sizes = [64, 4], strides = [1, 1]} : vector<2304x16xf32> to vector<64x4xf32>
    %59 = vector.extract_strided_slice %54 {offsets = [256, 0], sizes = [64, 4], strides = [1, 1]} : vector<2304x16xf32> to vector<64x4xf32>
    %60 = vector.extract_strided_slice %54 {offsets = [320, 0], sizes = [64, 4], strides = [1, 1]} : vector<2304x16xf32> to vector<64x4xf32>
    %61 = vector.extract_strided_slice %54 {offsets = [384, 0], sizes = [64, 4], strides = [1, 1]} : vector<2304x16xf32> to vector<64x4xf32>
    %62 = vector.extract_strided_slice %54 {offsets = [448, 0], sizes = [64, 4], strides = [1, 1]} : vector<2304x16xf32> to vector<64x4xf32>
    %63 = vector.extract_strided_slice %54 {offsets = [512, 0], sizes = [64, 4], strides = [1, 1]} : vector<2304x16xf32> to vector<64x4xf32>
    %64 = vector.extract_strided_slice %54 {offsets = [576, 4], sizes = [64, 4], strides = [1, 1]} : vector<2304x16xf32> to vector<64x4xf32>
    %65 = vector.extract_strided_slice %54 {offsets = [640, 4], sizes = [64, 4], strides = [1, 1]} : vector<2304x16xf32> to vector<64x4xf32>
    %66 = vector.extract_strided_slice %54 {offsets = [704, 4], sizes = [64, 4], strides = [1, 1]} : vector<2304x16xf32> to vector<64x4xf32>
    %67 = vector.extract_strided_slice %54 {offsets = [768, 4], sizes = [64, 4], strides = [1, 1]} : vector<2304x16xf32> to vector<64x4xf32>
    %68 = vector.extract_strided_slice %54 {offsets = [832, 4], sizes = [64, 4], strides = [1, 1]} : vector<2304x16xf32> to vector<64x4xf32>
    %69 = vector.extract_strided_slice %54 {offsets = [896, 4], sizes = [64, 4], strides = [1, 1]} : vector<2304x16xf32> to vector<64x4xf32>
    %70 = vector.extract_strided_slice %54 {offsets = [960, 4], sizes = [64, 4], strides = [1, 1]} : vector<2304x16xf32> to vector<64x4xf32>
    %71 = vector.extract_strided_slice %54 {offsets = [1024, 4], sizes = [64, 4], strides = [1, 1]} : vector<2304x16xf32> to vector<64x4xf32>
    %72 = vector.extract_strided_slice %54 {offsets = [1088, 4], sizes = [64, 4], strides = [1, 1]} : vector<2304x16xf32> to vector<64x4xf32>
    %73 = vector.extract_strided_slice %54 {offsets = [1152, 8], sizes = [64, 4], strides = [1, 1]} : vector<2304x16xf32> to vector<64x4xf32>
    %74 = vector.extract_strided_slice %54 {offsets = [1216, 8], sizes = [64, 4], strides = [1, 1]} : vector<2304x16xf32> to vector<64x4xf32>
    %75 = vector.extract_strided_slice %54 {offsets = [1280, 8], sizes = [64, 4], strides = [1, 1]} : vector<2304x16xf32> to vector<64x4xf32>
    %76 = vector.extract_strided_slice %54 {offsets = [1344, 8], sizes = [64, 4], strides = [1, 1]} : vector<2304x16xf32> to vector<64x4xf32>
    %77 = vector.extract_strided_slice %54 {offsets = [1408, 8], sizes = [64, 4], strides = [1, 1]} : vector<2304x16xf32> to vector<64x4xf32>
    %78 = vector.extract_strided_slice %54 {offsets = [1472, 8], sizes = [64, 4], strides = [1, 1]} : vector<2304x16xf32> to vector<64x4xf32>
    %79 = vector.extract_strided_slice %54 {offsets = [1536, 8], sizes = [64, 4], strides = [1, 1]} : vector<2304x16xf32> to vector<64x4xf32>
    %80 = vector.extract_strided_slice %54 {offsets = [1600, 8], sizes = [64, 4], strides = [1, 1]} : vector<2304x16xf32> to vector<64x4xf32>
    %81 = vector.extract_strided_slice %54 {offsets = [1664, 8], sizes = [64, 4], strides = [1, 1]} : vector<2304x16xf32> to vector<64x4xf32>
    %82 = vector.extract_strided_slice %54 {offsets = [1728, 12], sizes = [64, 4], strides = [1, 1]} : vector<2304x16xf32> to vector<64x4xf32>
    %83 = vector.extract_strided_slice %54 {offsets = [1792, 12], sizes = [64, 4], strides = [1, 1]} : vector<2304x16xf32> to vector<64x4xf32>
    %84 = vector.extract_strided_slice %54 {offsets = [1856, 12], sizes = [64, 4], strides = [1, 1]} : vector<2304x16xf32> to vector<64x4xf32>
    %85 = vector.extract_strided_slice %54 {offsets = [1920, 12], sizes = [64, 4], strides = [1, 1]} : vector<2304x16xf32> to vector<64x4xf32>
    %86 = vector.extract_strided_slice %54 {offsets = [1984, 12], sizes = [64, 4], strides = [1, 1]} : vector<2304x16xf32> to vector<64x4xf32>
    %87 = vector.extract_strided_slice %54 {offsets = [2048, 12], sizes = [64, 4], strides = [1, 1]} : vector<2304x16xf32> to vector<64x4xf32>
    %88 = vector.extract_strided_slice %54 {offsets = [2112, 12], sizes = [64, 4], strides = [1, 1]} : vector<2304x16xf32> to vector<64x4xf32>
    %89 = vector.extract_strided_slice %54 {offsets = [2176, 12], sizes = [64, 4], strides = [1, 1]} : vector<2304x16xf32> to vector<64x4xf32>
    %90 = vector.extract_strided_slice %54 {offsets = [2240, 12], sizes = [64, 4], strides = [1, 1]} : vector<2304x16xf32> to vector<64x4xf32>
    %91 = tpu.concatenate %55, %56, %57, %58, %59, %60, %61, %62, %63, %64, %65, %66, %67, %68, %69, %70 in 1 : vector<64x4xf32>, vector<64x4xf32>, vector<64x4xf32>, vector<64x4xf32>, vector<64x4xf32>, vector<64x4xf32>, vector<64x4xf32>, vector<64x4xf32>, vector<64x4xf32>, vector<64x4xf32>, vector<64x4xf32>, vector<64x4xf32>, vector<64x4xf32>, vector<64x4xf32>, vector<64x4xf32>, vector<64x4xf32> -> vector<64x64xf32>
    %92 = tpu.concatenate %71, %72, %73, %74, %75, %76, %77, %78, %79, %80, %81, %82, %83, %84, %85, %86 in 1 : vector<64x4xf32>, vector<64x4xf32>, vector<64x4xf32>, vector<64x4xf32>, vector<64x4xf32>, vector<64x4xf32>, vector<64x4xf32>, vector<64x4xf32>, vector<64x4xf32>, vector<64x4xf32>, vector<64x4xf32>, vector<64x4xf32>, vector<64x4xf32>, vector<64x4xf32>, vector<64x4xf32>, vector<64x4xf32> -> vector<64x64xf32>
    %93 = tpu.concatenate %87, %88, %89, %90 in 1 : vector<64x4xf32>, vector<64x4xf32>, vector<64x4xf32>, vector<64x4xf32> -> vector<64x16xf32>
    %94 = tpu.concatenate %91, %92, %93 in 1 : vector<64x64xf32>, vector<64x64xf32>, vector<64x16xf32> -> vector<64x144xf32>
    %c0_10 = arith.constant 0 : index
    %c0_11 = arith.constant 0 : index
    %95 = vector.load %arg4[%c0_10, %c0_11] : memref<144x16xf32, #tpu.memory_space<vmem>>, vector<144x16xf32>
    %cst_12 = arith.constant dense<0.000000e+00> : vector<64x16xf32>
    %96 = tpu.matmul %94, %95, %cst_12 {dimension_numbers = #tpu.dot_dimension_numbers<[1], [0], [0], [1], [0, 0, 1, 1], [], []>} : vector<64x144xf32>, vector<144x16xf32>, vector<64x16xf32> -> vector<64x16xf32>
    %cst_13 = arith.constant 0.000000e+00 : f32
    %97 = vector.broadcast %cst_13 : f32 to vector<64x16xf32>
    %98 = arith.maximumf %96, %97 : vector<64x16xf32>
    %99 = vector.extract_strided_slice %98 {offsets = [55, 0], sizes = [9, 16], strides = [1, 1]} : vector<64x16xf32> to vector<9x16xf32>
    %100 = vector.extract_strided_slice %98 {offsets = [0, 0], sizes = [55, 16], strides = [1, 1]} : vector<64x16xf32> to vector<55x16xf32>
    %101 = tpu.concatenate %99, %100 in 0 : vector<9x16xf32>, vector<55x16xf32> -> vector<64x16xf32>
    %102 = vector.extract_strided_slice %98 {offsets = [56, 0], sizes = [8, 16], strides = [1, 1]} : vector<64x16xf32> to vector<8x16xf32>
    %103 = vector.extract_strided_slice %98 {offsets = [0, 0], sizes = [56, 16], strides = [1, 1]} : vector<64x16xf32> to vector<56x16xf32>
    %104 = tpu.concatenate %102, %103 in 0 : vector<8x16xf32>, vector<56x16xf32> -> vector<64x16xf32>
    %105 = vector.extract_strided_slice %98 {offsets = [57, 0], sizes = [7, 16], strides = [1, 1]} : vector<64x16xf32> to vector<7x16xf32>
    %106 = vector.extract_strided_slice %98 {offsets = [0, 0], sizes = [57, 16], strides = [1, 1]} : vector<64x16xf32> to vector<57x16xf32>
    %107 = tpu.concatenate %105, %106 in 0 : vector<7x16xf32>, vector<57x16xf32> -> vector<64x16xf32>
    %108 = vector.extract_strided_slice %98 {offsets = [63, 0], sizes = [1, 16], strides = [1, 1]} : vector<64x16xf32> to vector<1x16xf32>
    %109 = vector.extract_strided_slice %98 {offsets = [0, 0], sizes = [63, 16], strides = [1, 1]} : vector<64x16xf32> to vector<63x16xf32>
    %110 = tpu.concatenate %108, %109 in 0 : vector<1x16xf32>, vector<63x16xf32> -> vector<64x16xf32>
    %111 = vector.extract_strided_slice %98 {offsets = [1, 0], sizes = [63, 16], strides = [1, 1]} : vector<64x16xf32> to vector<63x16xf32>
    %112 = vector.extract_strided_slice %98 {offsets = [0, 0], sizes = [1, 16], strides = [1, 1]} : vector<64x16xf32> to vector<1x16xf32>
    %113 = tpu.concatenate %111, %112 in 0 : vector<63x16xf32>, vector<1x16xf32> -> vector<64x16xf32>
    %114 = vector.extract_strided_slice %98 {offsets = [7, 0], sizes = [57, 16], strides = [1, 1]} : vector<64x16xf32> to vector<57x16xf32>
    %115 = vector.extract_strided_slice %98 {offsets = [0, 0], sizes = [7, 16], strides = [1, 1]} : vector<64x16xf32> to vector<7x16xf32>
    %116 = tpu.concatenate %114, %115 in 0 : vector<57x16xf32>, vector<7x16xf32> -> vector<64x16xf32>
    %117 = vector.extract_strided_slice %98 {offsets = [8, 0], sizes = [56, 16], strides = [1, 1]} : vector<64x16xf32> to vector<56x16xf32>
    %118 = vector.extract_strided_slice %98 {offsets = [0, 0], sizes = [8, 16], strides = [1, 1]} : vector<64x16xf32> to vector<8x16xf32>
    %119 = tpu.concatenate %117, %118 in 0 : vector<56x16xf32>, vector<8x16xf32> -> vector<64x16xf32>
    %120 = vector.extract_strided_slice %98 {offsets = [9, 0], sizes = [55, 16], strides = [1, 1]} : vector<64x16xf32> to vector<55x16xf32>
    %121 = vector.extract_strided_slice %98 {offsets = [0, 0], sizes = [9, 16], strides = [1, 1]} : vector<64x16xf32> to vector<9x16xf32>
    %122 = tpu.concatenate %120, %121 in 0 : vector<55x16xf32>, vector<9x16xf32> -> vector<64x16xf32>
    %123 = tpu.concatenate %101, %104, %107, %110, %98, %113, %116, %119, %122 in 1 : vector<64x16xf32>, vector<64x16xf32>, vector<64x16xf32>, vector<64x16xf32>, vector<64x16xf32>, vector<64x16xf32>, vector<64x16xf32>, vector<64x16xf32>, vector<64x16xf32> -> vector<64x144xf32>
    %c0_14 = arith.constant 0 : index
    %c0_15 = arith.constant 0 : index
    %124 = vector.load %arg6[%c0_14, %c0_15] : memref<64x144xf32, #tpu.memory_space<vmem>>, vector<64x144xf32>
    %125 = arith.mulf %123, %124 : vector<64x144xf32>
    %c0_16 = arith.constant 0 : index
    %c0_17 = arith.constant 0 : index
    %126 = vector.load %arg5[%c0_16, %c0_17] : memref<144x32xf32, #tpu.memory_space<vmem>>, vector<144x32xf32>
    %cst_18 = arith.constant dense<0.000000e+00> : vector<64x32xf32>
    %127 = tpu.matmul %125, %126, %cst_18 {dimension_numbers = #tpu.dot_dimension_numbers<[1], [0], [0], [1], [0, 0, 1, 1], [], []>} : vector<64x144xf32>, vector<144x32xf32>, vector<64x32xf32> -> vector<64x32xf32>
    %c0_19 = arith.constant 0 : index
    %c0_20 = arith.constant 0 : index
    %128 = vector.load %arg7[%c0_19, %c0_20] : memref<1x32xf32, #tpu.memory_space<vmem>>, vector<1x32xf32>
    %129 = vector.broadcast %128 : vector<1x32xf32> to vector<64x32xf32>
    %130 = arith.addf %127, %129 : vector<64x32xf32>
    %c0_21 = arith.constant 0 : index
    %c0_22 = arith.constant 0 : index
    %c0_23 = arith.constant 0 : index
    %131 = vector.load %arg8[%c0_21, %c0_22, %c0_23] : memref<1x64x32xf32, #tpu.memory_space<vmem>>, vector<1x64x32xf32>
    %132 = vector.shape_cast %131 : vector<1x64x32xf32> to vector<64x32xf32>
    %133 = vector.shape_cast %130 : vector<64x32xf32> to vector<1x64x32xf32>
    tpu.vector_store %arg8[%c0_21, %c0_22, %c0_23], %133 {strides = array<i32>} : memref<1x64x32xf32, #tpu.memory_space<vmem>>, vector<1x64x32xf32>,
    return
  }
  func.func @transform_0(%arg0: i32) -> (i32, i32, i32) {
    %c0_i32 = arith.constant 0 : i32
    %c0_i32_0 = arith.constant 0 : i32
    %c0_i32_1 = arith.constant 0 : i32
    return %arg0, %c0_i32, %c0_i32_0 : i32, i32, i32
  }
  func.func @transform_1(%arg0: i32) -> (i32, i32) {
    %c0_i32 = arith.constant 0 : i32
    %c0_i32_0 = arith.constant 0 : i32
    %c0_i32_1 = arith.constant 0 : i32
    return %c0_i32, %c0_i32_0 : i32, i32
  }
  func.func @transform_2(%arg0: i32) -> (i32, i32, i32) {
    %c0_i32 = arith.constant 0 : i32
    %c0_i32_0 = arith.constant 0 : i32
    %c0_i32_1 = arith.constant 0 : i32
    return %arg0, %c0_i32, %c0_i32_0 : i32, i32, i32
  }
  func.func @transform_3(%arg0: i32) -> (i32, i32) {
    %c0_i32 = arith.constant 0 : i32
    %c0_i32_0 = arith.constant 0 : i32
    %c0_i32_1 = arith.constant 0 : i32
    return %c0_i32, %c0_i32_0 : i32, i32
  }
  func.func @transform_4(%arg0: i32) -> (i32, i32) {
    %c0_i32 = arith.constant 0 : i32
    %c0_i32_0 = arith.constant 0 : i32
    %c0_i32_1 = arith.constant 0 : i32
    return %c0_i32, %c0_i32_0 : i32, i32
  }
  func.func @transform_5(%arg0: i32) -> (i32, i32) {
    %c0_i32 = arith.constant 0 : i32
    %c0_i32_0 = arith.constant 0 : i32
    %c0_i32_1 = arith.constant 0 : i32
    return %c0_i32, %c0_i32_0 : i32, i32
  }
  func.func @transform_6(%arg0: i32) -> (i32, i32) {
    %c0_i32 = arith.constant 0 : i32
    %c0_i32_0 = arith.constant 0 : i32
    %c0_i32_1 = arith.constant 0 : i32
    return %c0_i32, %c0_i32_0 : i32, i32
  }
  func.func @transform_7(%arg0: i32) -> (i32, i32, i32) {
    %c0_i32 = arith.constant 0 : i32
    %c0_i32_0 = arith.constant 0 : i32
    %c0_i32_1 = arith.constant 0 : i32
    return %arg0, %c0_i32, %c0_i32_0 : i32, i32, i32
  }
}

</mosaic_0001>

<bundles_post_ra>
// kernel: tpu_custom_call.1
= control target key start
LH: loop header
LB: loop body
LE: loop exit
PB: predicated region body
PF: predicated region fallthrough
CT: control target
= control target key end

     0   :  { %s11965_s24 = smov 0   ;;  %s18147_s0 = inlined_call_operand.vmem [shape: f32[2,64,8], index: 0, kind: input, shape index: {}]   ;;  %s18148_s1 = inlined_call_operand.vmem [shape: f32[8,9216], index: 1, kind: input, shape index: {}]   ;;  %s18149_s2 = inlined_call_operand.vmem [shape: f32[2,128,16], index: 2, kind: input, shape index: {}]   ;;  %s18150_s3 = inlined_call_operand.vmem [shape: f32[144,16], index: 3, kind: input, shape index: {}]   ;;  %s18151_s4 = inlined_call_operand.vmem [shape: f32[144,32], index: 4, kind: input, shape index: {}]   ;;  %s18152_s5 = inlined_call_operand.vmem [shape: f32[64,144], index: 5, kind: input, shape index: {}]   ;;  %s18153_s6 = inlined_call_operand.vmem [shape: f32[1,32], index: 6, kind: input, shape index: {}]   ;;  %s18154_s7 = inlined_call_operand.vmem [shape: f32[2,64,32], index: 7, kind: output, shape index: {}]  }
   0x1 LB: > { %s10057_s25 = sadd.s32 4294967295, %s11900_s24   ;;  %p10061_p0 = scmp.ge.s32.totalorder %s11900_s24, 1  ;;  %s11900_s24 = sphi %s11965_s24, %s17_s24  }
   0x2   : > { %p247_p1 = scmp.lt.s32.totalorder %s11900_s24, 3 }
   0x4   : > { %p248_p2 = pnand %p10061_p0, %p247_p1 }
   0x6   : > { %251 = sbr.rel (%p248_p2) target bundleno = 2155 (0x86b), region = 48 }
   0xd   : > { %v308_v0 = vld [vmem:[%s18148_s1 + $0x8] sm:$0xff]  ;;  %v307_v1 = vld [vmem:[%s18148_s1] sm:$0xff]  ;;  %v310_v2 = vld [vmem:[%s18148_s1 + $0x18] sm:$0xff]  ;;  %p284_p3 = scmp.lt.s32.totalorder %s10057_s25, 1  ;;  %v18155_v5 = vmov 0.0   ;;  %vm379_vm0 = vcmask 64512  }
   0xe   : > { %404 = vmatprep.subr.mxu0 %v308_v0  ;;  %517 = vmatprep.subr.mxu1 %v310_v2  ;;  %v309_v3 = vld [vmem:[%s18148_s1 + $0x10] sm:$0xff]  ;;  %v312_v4 = vld [vmem:[%s18148_s1 + $0x28] sm:$0xff]  ;;  %v314_v6 = vld [vmem:[%s18148_s1 + $0x38] sm:$0xff]  ;;  %s11904_s22 = smov 8   ;;  %s11905_s23 = smov 12   ;;  %vm8489_vm1 = vcmask 31744  }
   0xf   : > { %405 = vmatpush1.msra.mxu0 %v307_v1  ;;  %468 = vmatprep.mubr.f32.mxu0 %v18155_v5  ;;  %s19956_s25 = smov (!%p284_p3, %s10057_s25), 1  ;;  %v311_v7 = vld [vmem:[%s18148_s1 + $0x20] sm:$0xff]  ;;  %v313_v9 = vld [vmem:[%s18148_s1 + $0x30] sm:$0xff]  ;;  %v316_v10 = vld [vmem:[%s18148_s1 + $0x48] sm:$0xff]  ;;  %s11906_s26 = smov 16   ;;  %vm8506_vm2 = vcmask 97280  }
  0x10   : > { %518 = vmatpush1.msra.mxu1 %v309_v3  ;;  %581 = vmatprep.mubr.f32.mxu1 %v18155_v5  ;;  %s10375_s15 = sshll.u32 %s19956_s25, 6  ;;  %v318_v11 = vld [vmem:[%s18148_s1 + $0x58] sm:$0xff]  ;;  %v315_v19 = vld [vmem:[%s18148_s1 + $0x40] sm:$0xff]  ;;  %v317_v20 = vld [vmem:[%s18148_s1 + $0x50] sm:$0xff]  ;;  %s10376_s8 = sshll.u32 %s19956_s25, 7  ;;  %vm8515_vm3 = vcmask 130048  }
  0x11   : > { %630 = vmatprep.subr.mxu0 %v312_v4  ;;  %743 = vmatprep.subr.mxu1 %v314_v6  ;;  %s12001_s18 = scalar_lea.vmem %s18147_s0, %s10375_s15  ;;  %v320_v21 = vld [vmem:[%s18148_s1 + $0x68] sm:$0xff]  ;;  %v322_v22 = vld [vmem:[%s18148_s1 + $0x78] sm:$0xff]  ;;  %v319_v23 = vld [vmem:[%s18148_s1 + $0x60] sm:$0xff]  ;;  %s14518_s16 = scalar_lea.vmem %s18149_s2, %s10376_s8  ;;  %vm8524_vm4 = vcmask 162816   ;;  %vm8533_vm5 = vcmask 195584   ;;  %vm8542_vm6 = vcmask 228352  }
  0x12   : > { %v12007_v8 = vld [vmem:[%s12001_s18] sm:$0xff]  ;;  %v12024_v12 = vld [vmem:[%s12001_s18 + $0x8] sm:$0xff]  ;;  %v12034_v13 = vld [vmem:[%s12001_s18 + $0x10] sm:$0xff]  ;;  %s11907_s27 = smov 20   ;;  %s11908_s28 = smov 24   ;;  %vm8551_vm7 = vcmask 261120  }
  0x13   : > { %10068 = vmatmul.mubr.msk.f32.vlgmr.msra.gmra.mrb[0].mxu0 %vm379_vm0, %v12007_v8  ;;  %10076 = vmatmul.mubr.msk.f32.vlgmr.msra.gmra.mrb[0].mxu1 %vm379_vm0, %v12007_v8  ;;  %v12043_v14 = vld [vmem:[%s12001_s18 + $0x18] sm:$0xff]  ;;  %v12052_v15 = vld [vmem:[%s12001_s18 + $0x20] sm:$0xff]  ;;  %v12061_v16 = vld [vmem:[%s12001_s18 + $0x28] sm:$0xff]  ;;  %s11909_s29 = smov 28   ;;  %s11910_s30 = smov 32   ;;  %vm8560_vm8 = vcmask 293888  }
  0x14   : > { %631 = vmatpush1.msra.mxu0 %v311_v7  ;;  %474 = vmatprep.mubr.f32.mxu0 %v18155_v5  ;;  %v12070_v17 = vld [vmem:[%s12001_s18 + $0x30] sm:$0xff]  ;;  %v12079_v18 = vld [vmem:[%s12001_s18 + $0x38] sm:$0xff]  ;;  %v324_v25 = vld [vmem:[%s18148_s1 + $0x88] sm:$0xff]  ;;  %s11911_s8 = smov 36   ;;  %s11912_s9 = smov 40   ;;  %vm8569_vm9 = vcmask 326656  }
  0x15   : > { %587 = vmatprep.mubr.f32.mxu1 %v18155_v5  ;;  %744 = vmatpush1.msra.mxu1 %v313_v9  ;;  %v321_v24 = vld [vmem:[%s18148_s1 + $0x70] sm:$0xff]  ;;  %v326_v26 = vld [vmem:[%s18148_s1 + $0x98] sm:$0xff]  ;;  %v323_v27 = vld [vmem:[%s18148_s1 + $0x80] sm:$0xff]  ;;  %s11914_s14 = smov 44   ;;  %s11916_s10 = smov 52   ;;  %vm8578_vm10 = vcmask 359424  }
  0x16   : > { %856 = vmatprep.subr.mxu0 %v316_v10  ;;  %969 = vmatprep.subr.mxu1 %v318_v11  ;;  %v325_v28 = vld [vmem:[%s18148_s1 + $0x90] sm:$0xff]  ;;  %v328_v29 = vld [vmem:[%s18148_s1 + $0xa8] sm:$0xff]  ;;  %v330_v30 = vld [vmem:[%s18148_s1 + $0xb8] sm:$0xff]  ;;  %s11917_s11 = smov 56   ;;  %s11918_s20 = smov 124   ;;  %vm8587_vm11 = vcmask 392192  }
  0x17   : > { %10069 = vmatmul.mubr.msk.f32.gmra.mrb[2].mxu0 %vm379_vm0, %v12024_v12  ;;  %10077 = vmatmul.mubr.msk.f32.gmra.mrb[2].mxu1 %vm379_vm0, %v12024_v12  ;;  %v327_v31 = vld [vmem:[%s18148_s1 + $0xa0] sm:$0xff]  ;;  %v329_v32 = vld [vmem:[%s18148_s1 + $0xb0] sm:$0xff]  ;;  %v332_v33 = vld [vmem:[%s18148_s1 + $0xc8] sm:$0xff]  ;;  %s11919_s19 = smov 116   ;;  %s11920_s21 = smov 120   ;;  %vm8596_vm12 = vcmask 424960  }
  0x18   : > { %480 = vmatprep.mubr.f32.mxu0 %v18155_v5  ;;  %593 = vmatprep.mubr.f32.mxu1 %v18155_v5  ;;  %v334_v34 = vld [vmem:[%s18148_s1 + $0xd8] sm:$0xff]  ;;  %v331_v35 = vld [vmem:[%s18148_s1 + $0xc0] sm:$0xff]  ;;  %v333_v36 = vld [vmem:[%s18148_s1 + $0xd0] sm:$0xff]  ;;  %vm8605_vm13 = vcmask 457728   ;;  %vm8614_vm14 = vcmask 490496   ;;  %vm9343_vm15 = vcmask 523264  }
  0x19   : > { %v336_v37 = vld [vmem:[%s18148_s1 + $0xe8] sm:$0xff]  ;;  %v338_v38 = vld [vmem:[%s18148_s1 + $0xf8] sm:$0xff]  ;;  %v335_v39 = vld [vmem:[%s18148_s1 + $0xe0] sm:$0xff] }
  0x1a   : > { %v337_v40 = vld [vmem:[%s18148_s1 + $0xf0] sm:$0xff]  ;;  %v340_v41 = vld [vmem:[%s18148_s1 + $0x108] sm:$0xff]  ;;  %v342_v42 = vld [vmem:[%s18148_s1 + $0x118] sm:$0xff] }
  0x1b   : > { %10070 = vmatmul.mubr.msk.f32.gmra.mrb[4].mxu0 %vm379_vm0, %v12034_v13  ;;  %10078 = vmatmul.mubr.msk.f32.gmra.mrb[4].mxu1 %vm379_vm0, %v12034_v13  ;;  %v339_v55 = vld [vmem:[%s18148_s1 + $0x100] sm:$0xff]  ;;  %v341_v58 = vld [vmem:[%s18148_s1 + $0x110] sm:$0xff]  ;;  %v344_v61 = vld [vmem:[%s18148_s1 + $0x128] sm:$0xff] }
  0x1c   : > { %486 = vmatprep.mubr.f32.mxu0 %v18155_v5  ;;  %599 = vmatprep.mubr.f32.mxu1 %v18155_v5  ;;  %v346_v62 = vld [vmem:[%s18148_s1 + $0x138] sm:$0xff] }
  0x1f   : > { %10071 = vmatmul.mubr.msk.f32.gmra.mrb[6].mxu0 %vm379_vm0, %v12043_v14  ;;  %10079 = vmatmul.mubr.msk.f32.gmra.mrb[6].mxu1 %vm379_vm0, %v12043_v14 }
  0x20   : > { %492 = vmatprep.mubr.f32.mxu0 %v18155_v5  ;;  %605 = vmatprep.mubr.f32.mxu1 %v18155_v5 }
  0x23   : > { %10072 = vmatmul.mubr.msk.f32.gmra.mrb[8].mxu0 %vm379_vm0, %v12052_v15  ;;  %10080 = vmatmul.mubr.msk.f32.gmra.mrb[8].mxu1 %vm379_vm0, %v12052_v15 }
  0x24   : > { %498 = vmatprep.mubr.f32.mxu0 %v18155_v5  ;;  %611 = vmatprep.mubr.f32.mxu1 %v18155_v5 }
  0x27   : > { %10073 = vmatmul.mubr.msk.f32.gmra.mrb[10].mxu0 %vm379_vm0, %v12061_v16  ;;  %10081 = vmatmul.mubr.msk.f32.gmra.mrb[10].mxu1 %vm379_vm0, %v12061_v16 }
  0x28   : > { %504 = vmatprep.mubr.f32.mxu0 %v18155_v5  ;;  %617 = vmatprep.mubr.f32.mxu1 %v18155_v5 }
  0x2b   : > { %10074 = vmatmul.mubr.msk.f32.gmra.mrb[12].mxu0 %vm379_vm0, %v12070_v17  ;;  %10082 = vmatmul.mubr.msk.f32.gmra.mrb[12].mxu1 %vm379_vm0, %v12070_v17 }
  0x2c   : > { %510 = vmatprep.mubr.f32.mxu0 %v18155_v5  ;;  %623 = vmatprep.mubr.f32.mxu1 %v18155_v5 }
  0x2f   : > { %10075 = vmatmul.mubr.msk.f32.gmra.mrb[14].mxu0 %vm379_vm0, %v12079_v18  ;;  %10083 = vmatmul.mubr.msk.f32.gmra.mrb[14].mxu1 %vm379_vm0, %v12079_v18 }
  0x30   : > { %694 = vmatprep.mubr.f32.mxu0 %v18155_v5  ;;  %807 = vmatprep.mubr.f32.mxu1 %v18155_v5 }
  0x33   : > { %10084 = vmatmul.mubr.msk.f32.vlgmr.msra.gmra.mrb[16].mxu0 %vm379_vm0, %v12007_v8  ;;  %10092 = vmatmul.mubr.msk.f32.vlgmr.msra.gmra.mrb[16].mxu1 %vm379_vm0, %v12007_v8 }
  0x34   : > { %857 = vmatpush1.msra.mxu0 %v315_v19  ;;  %700 = vmatprep.mubr.f32.mxu0 %v18155_v5 }
  0x35   : > { %813 = vmatprep.mubr.f32.mxu1 %v18155_v5  ;;  %970 = vmatpush1.msra.mxu1 %v317_v20 }
  0x36   : > { %1082 = vmatprep.subr.mxu0 %v320_v21  ;;  %1195 = vmatprep.subr.mxu1 %v322_v22 }
  0x37   : > { %10085 = vmatmul.mubr.msk.f32.gmra.mrb[18].mxu0 %vm379_vm0, %v12024_v12  ;;  %10093 = vmatmul.mubr.msk.f32.gmra.mrb[18].mxu1 %vm379_vm0, %v12024_v12 }
  0x38   : > { %706 = vmatprep.mubr.f32.mxu0 %v18155_v5  ;;  %819 = vmatprep.mubr.f32.mxu1 %v18155_v5 }
  0x3b   : > { %10086 = vmatmul.mubr.msk.f32.gmra.mrb[20].mxu0 %vm379_vm0, %v12034_v13  ;;  %10094 = vmatmul.mubr.msk.f32.gmra.mrb[20].mxu1 %vm379_vm0, %v12034_v13 }
  0x3c   : > { %712 = vmatprep.mubr.f32.mxu0 %v18155_v5  ;;  %825 = vmatprep.mubr.f32.mxu1 %v18155_v5 }
  0x3f   : > { %10087 = vmatmul.mubr.msk.f32.gmra.mrb[22].mxu0 %vm379_vm0, %v12043_v14  ;;  %10095 = vmatmul.mubr.msk.f32.gmra.mrb[22].mxu1 %vm379_vm0, %v12043_v14 }
  0x40   : > { %718 = vmatprep.mubr.f32.mxu0 %v18155_v5  ;;  %831 = vmatprep.mubr.f32.mxu1 %v18155_v5 }
  0x43   : > { %10088 = vmatmul.mubr.msk.f32.gmra.mrb[24].mxu0 %vm379_vm0, %v12052_v15  ;;  %10096 = vmatmul.mubr.msk.f32.gmra.mrb[24].mxu1 %vm379_vm0, %v12052_v15 }
  0x44   : > { %724 = vmatprep.mubr.f32.mxu0 %v18155_v5  ;;  %837 = vmatprep.mubr.f32.mxu1 %v18155_v5 }
  0x47   : > { %10089 = vmatmul.mubr.msk.f32.gmra.mrb[26].mxu0 %vm379_vm0, %v12061_v16  ;;  %10097 = vmatmul.mubr.msk.f32.gmra.mrb[26].mxu1 %vm379_vm0, %v12061_v16 }
  0x48   : > { %730 = vmatprep.mubr.f32.mxu0 %v18155_v5  ;;  %843 = vmatprep.mubr.f32.mxu1 %v18155_v5 }
  0x4b   : > { %10090 = vmatmul.mubr.msk.f32.gmra.mrb[28].mxu0 %vm379_vm0, %v12070_v17  ;;  %10098 = vmatmul.mubr.msk.f32.gmra.mrb[28].mxu1 %vm379_vm0, %v12070_v17 }
  0x4c   : > { %736 = vmatprep.mubr.f32.mxu0 %v18155_v5  ;;  %849 = vmatprep.mubr.f32.mxu1 %v18155_v5 }
  0x4f   : > { %10091 = vmatmul.mubr.msk.f32.gmra.mrb[30].mxu0 %vm379_vm0, %v12079_v18  ;;  %10099 = vmatmul.mubr.msk.f32.gmra.mrb[30].mxu1 %vm379_vm0, %v12079_v18 }
  0x50   : > { %920 = vmatprep.mubr.f32.mxu0 %v18155_v5  ;;  %1033 = vmatprep.mubr.f32.mxu1 %v18155_v5 }
  0x53   : > { %10100 = vmatmul.mubr.msk.f32.vlgmr.msra.gmra.mrb[32].mxu0 %vm379_vm0, %v12007_v8  ;;  %10108 = vmatmul.mubr.msk.f32.vlgmr.msra.gmra.mrb[32].mxu1 %vm379_vm0, %v12007_v8 }
  0x54   : > { %1083 = vmatpush1.msra.mxu0 %v319_v23  ;;  %926 = vmatprep.mubr.f32.mxu0 %v18155_v5 }
  0x55   : > { %1039 = vmatprep.mubr.f32.mxu1 %v18155_v5  ;;  %1196 = vmatpush1.msra.mxu1 %v321_v24 }
  0x56   : > { %1308 = vmatprep.subr.mxu0 %v324_v25  ;;  %1421 = vmatprep.subr.mxu1 %v326_v26 }
  0x57   : > { %10101 = vmatmul.mubr.msk.f32.gmra.mrb[34].mxu0 %vm379_vm0, %v12024_v12  ;;  %10109 = vmatmul.mubr.msk.f32.gmra.mrb[34].mxu1 %vm379_vm0, %v12024_v12 }
  0x58   : > { %932 = vmatprep.mubr.f32.mxu0 %v18155_v5  ;;  %1045 = vmatprep.mubr.f32.mxu1 %v18155_v5 }
  0x5b   : > { %10102 = vmatmul.mubr.msk.f32.gmra.mrb[36].mxu0 %vm379_vm0, %v12034_v13  ;;  %10110 = vmatmul.mubr.msk.f32.gmra.mrb[36].mxu1 %vm379_vm0, %v12034_v13 }
  0x5c   : > { %938 = vmatprep.mubr.f32.mxu0 %v18155_v5  ;;  %1051 = vmatprep.mubr.f32.mxu1 %v18155_v5 }
  0x5f   : > { %10103 = vmatmul.mubr.msk.f32.gmra.mrb[38].mxu0 %vm379_vm0, %v12043_v14  ;;  %10111 = vmatmul.mubr.msk.f32.gmra.mrb[38].mxu1 %vm379_vm0, %v12043_v14 }
  0x60   : > { %944 = vmatprep.mubr.f32.mxu0 %v18155_v5  ;;  %1057 = vmatprep.mubr.f32.mxu1 %v18155_v5 }
  0x63   : > { %10104 = vmatmul.mubr.msk.f32.gmra.mrb[40].mxu0 %vm379_vm0, %v12052_v15  ;;  %10112 = vmatmul.mubr.msk.f32.gmra.mrb[40].mxu1 %vm379_vm0, %v12052_v15 }
  0x64   : > { %950 = vmatprep.mubr.f32.mxu0 %v18155_v5  ;;  %1063 = vmatprep.mubr.f32.mxu1 %v18155_v5 }
  0x67   : > { %10105 = vmatmul.mubr.msk.f32.gmra.mrb[42].mxu0 %vm379_vm0, %v12061_v16  ;;  %10113 = vmatmul.mubr.msk.f32.gmra.mrb[42].mxu1 %vm379_vm0, %v12061_v16 }
  0x68   : > { %956 = vmatprep.mubr.f32.mxu0 %v18155_v5  ;;  %1069 = vmatprep.mubr.f32.mxu1 %v18155_v5 }
  0x6b   : > { %10106 = vmatmul.mubr.msk.f32.gmra.mrb[44].mxu0 %vm379_vm0, %v12070_v17  ;;  %10114 = vmatmul.mubr.msk.f32.gmra.mrb[44].mxu1 %vm379_vm0, %v12070_v17 }
  0x6c   : > { %962 = vmatprep.mubr.f32.mxu0 %v18155_v5  ;;  %1075 = vmatprep.mubr.f32.mxu1 %v18155_v5 }
  0x6f   : > { %10107 = vmatmul.mubr.msk.f32.gmra.mrb[46].mxu0 %vm379_vm0, %v12079_v18  ;;  %10115 = vmatmul.mubr.msk.f32.gmra.mrb[46].mxu1 %vm379_vm0, %v12079_v18 }
  0x70   : > { %1146 = vmatprep.mubr.f32.mxu0 %v18155_v5  ;;  %1259 = vmatprep.mubr.f32.mxu1 %v18155_v5 }
  0x73   : > { %10116 = vmatmul.mubr.msk.f32.vlgmr.msra.gmra.mrb[48].mxu0 %vm379_vm0, %v12007_v8  ;;  %10124 = vmatmul.mubr.msk.f32.vlgmr.msra.gmra.mrb[48].mxu1 %vm379_vm0, %v12007_v8 }
  0x74   : > { %1309 = vmatpush1.msra.mxu0 %v323_v27  ;;  %1152 = vmatprep.mubr.f32.mxu0 %v18155_v5 }
  0x75   : > { %1265 = vmatprep.mubr.f32.mxu1 %v18155_v5  ;;  %1422 = vmatpush1.msra.mxu1 %v325_v28 }
  0x76   : > { %1534 = vmatprep.subr.mxu0 %v328_v29  ;;  %1647 = vmatprep.subr.mxu1 %v330_v30 }
  0x77   : > { %10117 = vmatmul.mubr.msk.f32.gmra.mrb[50].mxu0 %vm379_vm0, %v12024_v12  ;;  %10125 = vmatmul.mubr.msk.f32.gmra.mrb[50].mxu1 %vm379_vm0, %v12024_v12 }
  0x78   : > { %1158 = vmatprep.mubr.f32.mxu0 %v18155_v5  ;;  %1271 = vmatprep.mubr.f32.mxu1 %v18155_v5 }
  0x7b   : > { %10118 = vmatmul.mubr.msk.f32.gmra.mrb[52].mxu0 %vm379_vm0, %v12034_v13  ;;  %10126 = vmatmul.mubr.msk.f32.gmra.mrb[52].mxu1 %vm379_vm0, %v12034_v13 }
  0x7c   : > { %1164 = vmatprep.mubr.f32.mxu0 %v18155_v5  ;;  %1277 = vmatprep.mubr.f32.mxu1 %v18155_v5 }
  0x7f   : > { %10119 = vmatmul.mubr.msk.f32.gmra.mrb[54].mxu0 %vm379_vm0, %v12043_v14  ;;  %10127 = vmatmul.mubr.msk.f32.gmra.mrb[54].mxu1 %vm379_vm0, %v12043_v14 }
  0x80   : > { %1170 = vmatprep.mubr.f32.mxu0 %v18155_v5  ;;  %1283 = vmatprep.mubr.f32.mxu1 %v18155_v5 }
  0x83   : > { %10120 = vmatmul.mubr.msk.f32.gmra.mrb[56].mxu0 %vm379_vm0, %v12052_v15  ;;  %10128 = vmatmul.mubr.msk.f32.gmra.mrb[56].mxu1 %vm379_vm0, %v12052_v15 }
  0x84   : > { %1176 = vmatprep.mubr.f32.mxu0 %v18155_v5  ;;  %1289 = vmatprep.mubr.f32.mxu1 %v18155_v5 }
  0x87   : > { %10121 = vmatmul.mubr.msk.f32.gmra.mrb[58].mxu0 %vm379_vm0, %v12061_v16  ;;  %10129 = vmatmul.mubr.msk.f32.gmra.mrb[58].mxu1 %vm379_vm0, %v12061_v16 }
  0x88   : > { %1182 = vmatprep.mubr.f32.mxu0 %v18155_v5  ;;  %1295 = vmatprep.mubr.f32.mxu1 %v18155_v5 }
  0x8b   : > { %10122 = vmatmul.mubr.msk.f32.gmra.mrb[60].mxu0 %vm379_vm0, %v12070_v17  ;;  %10130 = vmatmul.mubr.msk.f32.gmra.mrb[60].mxu1 %vm379_vm0, %v12070_v17 }
  0x8c   : > { %1188 = vmatprep.mubr.f32.mxu0 %v18155_v5  ;;  %1301 = vmatprep.mubr.f32.mxu1 %v18155_v5 }
  0x8f   : > { %10123 = vmatmul.mubr.msk.f32.gmra.mrb[62].mxu0 %vm379_vm0, %v12079_v18  ;;  %10131 = vmatmul.mubr.msk.f32.gmra.mrb[62].mxu1 %vm379_vm0, %v12079_v18 }
  0x90   : > { %1372 = vmatprep.mubr.f32.mxu0 %v18155_v5  ;;  %1485 = vmatprep.mubr.f32.mxu1 %v18155_v5 }
  0x93   : > { %10132 = vmatmul.mubr.msk.f32.vlgmr.msra.gmra.mrb[64].mxu0 %vm379_vm0, %v12007_v8  ;;  %10140 = vmatmul.mubr.msk.f32.vlgmr.msra.gmra.mrb[64].mxu1 %vm379_vm0, %v12007_v8 }
  0x94   : > { %1535 = vmatpush1.msra.mxu0 %v327_v31  ;;  %1378 = vmatprep.mubr.f32.mxu0 %v18155_v5 }
  0x95   : > { %1491 = vmatprep.mubr.f32.mxu1 %v18155_v5  ;;  %1648 = vmatpush1.msra.mxu1 %v329_v32 }
  0x96   : > { %1760 = vmatprep.subr.mxu0 %v332_v33  ;;  %1873 = vmatprep.subr.mxu1 %v334_v34 }
  0x97   : > { %10133 = vmatmul.mubr.msk.f32.gmra.mrb[66].mxu0 %vm379_vm0, %v12024_v12  ;;  %10141 = vmatmul.mubr.msk.f32.gmra.mrb[66].mxu1 %vm379_vm0, %v12024_v12 }
  0x98   : > { %1384 = vmatprep.mubr.f32.mxu0 %v18155_v5  ;;  %1497 = vmatprep.mubr.f32.mxu1 %v18155_v5 }
  0x9b   : > { %10134 = vmatmul.mubr.msk.f32.gmra.mrb[68].mxu0 %vm379_vm0, %v12034_v13  ;;  %10142 = vmatmul.mubr.msk.f32.gmra.mrb[68].mxu1 %vm379_vm0, %v12034_v13 }
  0x9c   : > { %1390 = vmatprep.mubr.f32.mxu0 %v18155_v5  ;;  %1503 = vmatprep.mubr.f32.mxu1 %v18155_v5 }
  0x9f   : > { %10135 = vmatmul.mubr.msk.f32.gmra.mrb[70].mxu0 %vm379_vm0, %v12043_v14  ;;  %10143 = vmatmul.mubr.msk.f32.gmra.mrb[70].mxu1 %vm379_vm0, %v12043_v14 }
  0xa0   : > { %1396 = vmatprep.mubr.f32.mxu0 %v18155_v5  ;;  %1509 = vmatprep.mubr.f32.mxu1 %v18155_v5 }
  0xa3   : > { %10136 = vmatmul.mubr.msk.f32.gmra.mrb[72].mxu0 %vm379_vm0, %v12052_v15  ;;  %10144 = vmatmul.mubr.msk.f32.gmra.mrb[72].mxu1 %vm379_vm0, %v12052_v15 }
  0xa4   : > { %1402 = vmatprep.mubr.f32.mxu0 %v18155_v5  ;;  %1515 = vmatprep.mubr.f32.mxu1 %v18155_v5 }
  0xa7   : > { %10137 = vmatmul.mubr.msk.f32.gmra.mrb[74].mxu0 %vm379_vm0, %v12061_v16  ;;  %10145 = vmatmul.mubr.msk.f32.gmra.mrb[74].mxu1 %vm379_vm0, %v12061_v16 }
  0xa8   : > { %1408 = vmatprep.mubr.f32.mxu0 %v18155_v5  ;;  %1521 = vmatprep.mubr.f32.mxu1 %v18155_v5 }
  0xab   : > { %10138 = vmatmul.mubr.msk.f32.gmra.mrb[76].mxu0 %vm379_vm0, %v12070_v17  ;;  %10146 = vmatmul.mubr.msk.f32.gmra.mrb[76].mxu1 %vm379_vm0, %v12070_v17 }
  0xac   : > { %1414 = vmatprep.mubr.f32.mxu0 %v18155_v5  ;;  %1527 = vmatprep.mubr.f32.mxu1 %v18155_v5 }
  0xaf   : > { %10139 = vmatmul.mubr.msk.f32.gmra.mrb[78].mxu0 %vm379_vm0, %v12079_v18  ;;  %10147 = vmatmul.mubr.msk.f32.gmra.mrb[78].mxu1 %vm379_vm0, %v12079_v18 }
  0xb0   : > { %1598 = vmatprep.mubr.f32.mxu0 %v18155_v5  ;;  %1711 = vmatprep.mubr.f32.mxu1 %v18155_v5 }
  0xb3   : > { %10148 = vmatmul.mubr.msk.f32.vlgmr.msra.gmra.mrb[80].mxu0 %vm379_vm0, %v12007_v8  ;;  %10156 = vmatmul.mubr.msk.f32.vlgmr.msra.gmra.mrb[80].mxu1 %vm379_vm0, %v12007_v8 }
  0xb4   : > { %1761 = vmatpush1.msra.mxu0 %v331_v35  ;;  %1604 = vmatprep.mubr.f32.mxu0 %v18155_v5 }
  0xb5   : > { %1717 = vmatprep.mubr.f32.mxu1 %v18155_v5  ;;  %1874 = vmatpush1.msra.mxu1 %v333_v36 }
  0xb6   : > { %1986 = vmatprep.subr.mxu0 %v336_v37  ;;  %2099 = vmatprep.subr.mxu1 %v338_v38 }
  0xb7   : > { %10149 = vmatmul.mubr.msk.f32.gmra.mrb[82].mxu0 %vm379_vm0, %v12024_v12  ;;  %10157 = vmatmul.mubr.msk.f32.gmra.mrb[82].mxu1 %vm379_vm0, %v12024_v12 }
  0xb8   : > { %1610 = vmatprep.mubr.f32.mxu0 %v18155_v5  ;;  %1723 = vmatprep.mubr.f32.mxu1 %v18155_v5 }
  0xbb   : > { %10150 = vmatmul.mubr.msk.f32.gmra.mrb[84].mxu0 %vm379_vm0, %v12034_v13  ;;  %10158 = vmatmul.mubr.msk.f32.gmra.mrb[84].mxu1 %vm379_vm0, %v12034_v13 }
  0xbc   : > { %1616 = vmatprep.mubr.f32.mxu0 %v18155_v5  ;;  %1729 = vmatprep.mubr.f32.mxu1 %v18155_v5 }
  0xbf   : > { %10151 = vmatmul.mubr.msk.f32.gmra.mrb[86].mxu0 %vm379_vm0, %v12043_v14  ;;  %10159 = vmatmul.mubr.msk.f32.gmra.mrb[86].mxu1 %vm379_vm0, %v12043_v14 }
  0xc0   : > { %1622 = vmatprep.mubr.f32.mxu0 %v18155_v5  ;;  %1735 = vmatprep.mubr.f32.mxu1 %v18155_v5 }
  0xc3   : > { %10152 = vmatmul.mubr.msk.f32.gmra.mrb[88].mxu0 %vm379_vm0, %v12052_v15  ;;  %10160 = vmatmul.mubr.msk.f32.gmra.mrb[88].mxu1 %vm379_vm0, %v12052_v15 }
  0xc4   : > { %1628 = vmatprep.mubr.f32.mxu0 %v18155_v5  ;;  %1741 = vmatprep.mubr.f32.mxu1 %v18155_v5 }
  0xc7   : > { %10153 = vmatmul.mubr.msk.f32.gmra.mrb[90].mxu0 %vm379_vm0, %v12061_v16  ;;  %10161 = vmatmul.mubr.msk.f32.gmra.mrb[90].mxu1 %vm379_vm0, %v12061_v16 }
  0xc8   : > { %1634 = vmatprep.mubr.f32.mxu0 %v18155_v5  ;;  %1747 = vmatprep.mubr.f32.mxu1 %v18155_v5 }
  0xcb   : > { %10154 = vmatmul.mubr.msk.f32.gmra.mrb[92].mxu0 %vm379_vm0, %v12070_v17  ;;  %10162 = vmatmul.mubr.msk.f32.gmra.mrb[92].mxu1 %vm379_vm0, %v12070_v17 }
  0xcc   : > { %1640 = vmatprep.mubr.f32.mxu0 %v18155_v5  ;;  %1753 = vmatprep.mubr.f32.mxu1 %v18155_v5 }
  0xcf   : > { %10155 = vmatmul.mubr.msk.f32.gmra.mrb[94].mxu0 %vm379_vm0, %v12079_v18  ;;  %10163 = vmatmul.mubr.msk.f32.gmra.mrb[94].mxu1 %vm379_vm0, %v12079_v18 }
  0xd0   : > { %1824 = vmatprep.mubr.f32.mxu0 %v18155_v5  ;;  %1937 = vmatprep.mubr.f32.mxu1 %v18155_v5 }
  0xd3   : > { %10164 = vmatmul.mubr.msk.f32.vlgmr.msra.gmra.mrb[96].mxu0 %vm379_vm0, %v12007_v8  ;;  %10172 = vmatmul.mubr.msk.f32.vlgmr.msra.gmra.mrb[96].mxu1 %vm379_vm0, %v12007_v8 }
  0xd4   : > { %1987 = vmatpush1.msra.mxu0 %v335_v39  ;;  %1830 = vmatprep.mubr.f32.mxu0 %v18155_v5 }
  0xd5   : > { %1943 = vmatprep.mubr.f32.mxu1 %v18155_v5  ;;  %2100 = vmatpush1.msra.mxu1 %v337_v40 }
  0xd6   : > { %2212 = vmatprep.subr.mxu0 %v340_v41  ;;  %2325 = vmatprep.subr.mxu1 %v342_v42 }
  0xd7   : > { %10165 = vmatmul.mubr.msk.f32.gmra.mrb[98].mxu0 %vm379_vm0, %v12024_v12  ;;  %10173 = vmatmul.mubr.msk.f32.gmra.mrb[98].mxu1 %vm379_vm0, %v12024_v12 }
  0xd8   : > { %1836 = vmatprep.mubr.f32.mxu0 %v18155_v5  ;;  %1949 = vmatprep.mubr.f32.mxu1 %v18155_v5 }
  0xdb   : > { %10166 = vmatmul.mubr.msk.f32.gmra.mrb[100].mxu0 %vm379_vm0, %v12034_v13  ;;  %10174 = vmatmul.mubr.msk.f32.gmra.mrb[100].mxu1 %vm379_vm0, %v12034_v13 }
  0xdc   : > { %1842 = vmatprep.mubr.f32.mxu0 %v18155_v5  ;;  %1955 = vmatprep.mubr.f32.mxu1 %v18155_v5 }
  0xdf   : > { %10167 = vmatmul.mubr.msk.f32.gmra.mrb[102].mxu0 %vm379_vm0, %v12043_v14  ;;  %10175 = vmatmul.mubr.msk.f32.gmra.mrb[102].mxu1 %vm379_vm0, %v12043_v14 }
  0xe0   : > { %1848 = vmatprep.mubr.f32.mxu0 %v18155_v5  ;;  %1961 = vmatprep.mubr.f32.mxu1 %v18155_v5 }
  0xe3   : > { %10168 = vmatmul.mubr.msk.f32.gmra.mrb[104].mxu0 %vm379_vm0, %v12052_v15  ;;  %10176 = vmatmul.mubr.msk.f32.gmra.mrb[104].mxu1 %vm379_vm0, %v12052_v15 }
  0xe4   : > { %1854 = vmatprep.mubr.f32.mxu0 %v18155_v5  ;;  %1967 = vmatprep.mubr.f32.mxu1 %v18155_v5 }
  0xe6   : > { %v12429_v43 = vpop.f32.mrb[0].mxu0  ;;  %v12431_v44 = vpop.f32.mrb[0].mxu1 }
  0xe7   : > { %v12433_v45 = vpop.f32.mrb[1].mxu0  ;;  %10169 = vmatmul.mubr.msk.f32.gmra.mrb[106].mxu0 %vm379_vm0, %v12061_v16  ;;  %10177 = vmatmul.mubr.msk.f32.gmra.mrb[106].mxu1 %vm379_vm0, %v12061_v16  ;;  %v12439_v46 = vpop.f32.mrb[1].mxu1  ;;  %v4472_v24 = vand.u32 2147483647, %v12429_v43  ;;  %v4474_v29 = vand.u32 2147483647, %v12431_v44 }
  0xe8   : > { %1860 = vmatprep.mubr.f32.mxu0 %v18155_v5  ;;  %1973 = vmatprep.mubr.f32.mxu1 %v18155_v5  ;;  %v4473_v30 = vand.u32 2147483647, %v12433_v45  ;;  %v4475_v32 = vand.u32 2147483647, %v12439_v46 }
  0xe9   : > { %v12570_v31 = vsub.f32 1.0, %v4472_v24  ;;  %v12586_v38 = vsub.f32 1.0, %v4474_v29 }
  0xea   : > { %v12443_v47 = vpop.f32.mrb[2].mxu0  ;;  %v12445_v48 = vpop.f32.mrb[2].mxu1  ;;  %v12591_v40 = vsub.f32 1.0, %v4473_v30  ;;  %v12593_v41 = vsub.f32 1.0, %v4475_v32 }
  0xeb   : > { %v12447_v49 = vpop.f32.mrb[3].mxu0  ;;  %10170 = vmatmul.mubr.msk.f32.gmra.mrb[108].mxu0 %vm379_vm0, %v12070_v17  ;;  %10178 = vmatmul.mubr.msk.f32.gmra.mrb[108].mxu1 %vm379_vm0, %v12070_v17  ;;  %v12453_v50 = vpop.f32.mrb[3].mxu1  ;;  %18504 = vst [vmem:[#allocation2_spill] sm:$0xff] %v12570_v31  ;;  %v4544_v37 = vand.u32 2147483647, %v12443_v47  ;;  %18505 = vst [vmem:[#allocation3_spill] sm:$0xff] %v12586_v38 }
  0xec   : > { %1866 = vmatprep.mubr.f32.mxu0 %v18155_v5  ;;  %1979 = vmatprep.mubr.f32.mxu1 %v18155_v5  ;;  %v4545_v44 = vand.u32 2147483647, %v12447_v49  ;;  %v4546_v45 = vand.u32 2147483647, %v12445_v48  ;;  %v343_v47 = vld [vmem:[%s18148_s1 + $0x120] sm:$0xff] }
  0xee   : > { %v12457_v51 = vpop.f32.mrb[4].mxu0  ;;  %v12459_v52 = vpop.f32.mrb[4].mxu1 }
  0xef   : > { %v12461_v53 = vpop.f32.mrb[5].mxu0  ;;  %10171 = vmatmul.mubr.msk.f32.gmra.mrb[110].mxu0 %vm379_vm0, %v12079_v18  ;;  %10179 = vmatmul.mubr.msk.f32.gmra.mrb[110].mxu1 %vm379_vm0, %v12079_v18  ;;  %v12467_v54 = vpop.f32.mrb[5].mxu1  ;;  %v4616_v49 = vand.u32 2147483647, %v12457_v51  ;;  %v4618_v24 = vand.u32 2147483647, %v12459_v52 }
  0xf0   : > { %2050 = vmatprep.mubr.f32.mxu0 %v18155_v5  ;;  %2163 = vmatprep.mubr.f32.mxu1 %v18155_v5  ;;  %v4619_v29 = vand.u32 2147483647, %v12467_v54  ;;  %v348_v51 = vld [vmem:[%s18148_s1 + $0x148] sm:$0xff] }
  0xf2   : > { %v12474_v56 = vpop.f32.mrb[6].mxu0  ;;  %v12476_v57 = vpop.f32.mrb[6].mxu1 }
  0xf3   : > { %v12481_v59 = vpop.f32.mrb[7].mxu0  ;;  %10180 = vmatmul.mubr.msk.f32.vlgmr.msra.gmra.mrb[112].mxu0 %vm379_vm0, %v12007_v8  ;;  %10188 = vmatmul.mubr.msk.f32.vlgmr.msra.gmra.mrb[112].mxu1 %vm379_vm0, %v12007_v8  ;;  %v12487_v60 = vpop.f32.mrb[7].mxu1  ;;  %v4688_v30 = vand.u32 2147483647, %v12474_v56  ;;  %v4690_v52 = vand.u32 2147483647, %v12476_v57 }
  0xf4   : > { %2213 = vmatpush1.msra.mxu0 %v339_v55  ;;  %2056 = vmatprep.mubr.f32.mxu0 %v18155_v5  ;;  %v4689_v32 = vand.u32 2147483647, %v12481_v59  ;;  %v12648_v59 = vsub.f32 1.0, %v4545_v44  ;;  %v12660_v44 = vsub.f32 1.0, %v4616_v49 }
  0xf5   : > { %2169 = vmatprep.mubr.f32.mxu1 %v18155_v5  ;;  %2326 = vmatpush1.msra.mxu1 %v341_v58  ;;  %v12612_v58 = vsub.f32 1.0, %v4544_v37 }
  0xf6   : > { %v12497_v63 = vpop.f32.mrb[8].mxu0  ;;  %2438 = vmatprep.subr.mxu0 %v344_v61  ;;  %v12499_v0 = vpop.f32.mrb[8].mxu1  ;;  %2551 = vmatprep.subr.mxu1 %v346_v62  ;;  %v4547_v61 = vand.u32 2147483647, %v12453_v50  ;;  %v4617_v62 = vand.u32 2147483647, %v12461_v53 }
  0xf7   : > { %v12501_v1 = vpop.f32.mrb[9].mxu0  ;;  %10181 = vmatmul.mubr.msk.f32.gmra.mrb[114].mxu0 %vm379_vm0, %v12024_v12  ;;  %10189 = vmatmul.mubr.msk.f32.gmra.mrb[114].mxu1 %vm379_vm0, %v12024_v12  ;;  %v12507_v2 = vpop.f32.mrb[9].mxu1  ;;  %v350_v50 = vld [vmem:[%s18148_s1 + $0x158] sm:$0xff]  ;;  %v4691_v53 = vand.u32 2147483647, %v12487_v60  ;;  %18507 = vst [vmem:[#allocation5_spill] sm:$0xff] %v12648_v59 }
  0xf8   : > { %2062 = vmatprep.mubr.f32.mxu0 %v18155_v5  ;;  %2175 = vmatprep.mubr.f32.mxu1 %v18155_v5  ;;  %v18508_v60 = vmov 0.0   ;;  %v4761_v31 = vand.u32 2147483647, %v12501_v1  ;;  %v12662_v56 = vsub.f32 1.0, %v4617_v62  ;;  %v12672_v1 = vsub.f32 1.0, %v4688_v30 }
  0xf9   : > { %v12678_v49 = vsub.f32 1.0, %v4691_v53 }
  0xfa   : > { %v12511_v3 = vpop.f32.mrb[10].mxu0  ;;  %v12513_v4 = vpop.f32.mrb[10].mxu1  ;;  %18510 = vst [vmem:[#allocation7_spill] sm:$0xff] %v12662_v56  ;;  %18513 = vst [vmem:[#allocation10_spill] sm:$0xff] %v12672_v1  ;;  %v12695_v30 = vsub.f32 1.0, %v4761_v31 }
  0xfb   : > { %v12515_v6 = vpop.f32.mrb[11].mxu0  ;;  %10182 = vmatmul.mubr.msk.f32.gmra.mrb[116].mxu0 %vm379_vm0, %v12034_v13  ;;  %10190 = vmatmul.mubr.msk.f32.gmra.mrb[116].mxu1 %vm379_vm0, %v12034_v13  ;;  %v12521_v7 = vpop.f32.mrb[11].mxu1  ;;  %18516 = vst [vmem:[#allocation13_spill] sm:$0xff] %v12678_v49 }
  0xfc   : > { %2068 = vmatprep.mubr.f32.mxu0 %v18155_v5  ;;  %2181 = vmatprep.mubr.f32.mxu1 %v18155_v5  ;;  %18518 = vst [vmem:[#allocation15_spill] sm:$0xff] %v12695_v30  ;;  %v4833_v31 = vand.u32 2147483647, %v12515_v6  ;;  %v4835_v53 = vand.u32 2147483647, %v12521_v7 }
  0xfe   : > { %v12525_v9 = vpop.f32.mrb[12].mxu0  ;;  %v12527_v10 = vpop.f32.mrb[12].mxu1  ;;  %v12771_v1 = vsub.f32 1.0, %v4835_v53 }
  0xff   : > { %v12529_v11 = vpop.f32.mrb[13].mxu0  ;;  %10183 = vmatmul.mubr.msk.f32.gmra.mrb[118].mxu0 %vm379_vm0, %v12043_v14  ;;  %10191 = vmatmul.mubr.msk.f32.gmra.mrb[118].mxu1 %vm379_vm0, %v12043_v14  ;;  %v12535_v19 = vpop.f32.mrb[13].mxu1 }
 0x100   : > { %2074 = vmatprep.mubr.f32.mxu0 %v18155_v5  ;;  %2187 = vmatprep.mubr.f32.mxu1 %v18155_v5  ;;  %v4905_v6 = vand.u32 2147483647, %v12529_v11  ;;  %v4907_v49 = vand.u32 2147483647, %v12535_v19  ;;  %18526 = vst [vmem:[#allocation23_spill] sm:$0xff] %v12771_v1 }
 0x102   : > { %v12539_v20 = vpop.f32.mrb[14].mxu0  ;;  %v12541_v21 = vpop.f32.mrb[14].mxu1 }
 0x103   : > { %v12543_v22 = vpop.f32.mrb[15].mxu0  ;;  %10184 = vmatmul.mubr.msk.f32.gmra.mrb[120].mxu0 %vm379_vm0, %v12052_v15  ;;  %10192 = vmatmul.mubr.msk.f32.gmra.mrb[120].mxu1 %vm379_vm0, %v12052_v15  ;;  %v12549_v23 = vpop.f32.mrb[15].mxu1  ;;  %v4976_v7 = vand.u32 2147483647, %v12539_v20  ;;  %v4978_v11 = vand.u32 2147483647, %v12541_v21 }
 0x104   : > { %2080 = vmatprep.mubr.f32.mxu0 %v18155_v5  ;;  %2193 = vmatprep.mubr.f32.mxu1 %v18155_v5 }
 0x105   : > { %v12789_v53 = vsub.f32 1.0, %v4978_v11 }
 0x106   : > { %v12554_v25 = vpop.f32.mrb[16].mxu0  ;;  %v12556_v26 = vpop.f32.mrb[16].mxu1 }
 0x107   : > { %v12558_v27 = vpop.f32.mrb[17].mxu0  ;;  %10185 = vmatmul.mubr.msk.f32.gmra.mrb[122].mxu0 %vm379_vm0, %v12061_v16  ;;  %10193 = vmatmul.mubr.msk.f32.gmra.mrb[122].mxu1 %vm379_vm0, %v12061_v16  ;;  %v12564_v28 = vpop.f32.mrb[17].mxu1  ;;  %v4476_v20 = vand.u32 2147483647, %v12554_v25  ;;  %v12783_v25 = vsub.f32 1.0, %v4976_v7  ;;  %18531 = vst [vmem:[#allocation28_spill] sm:$0xff] %v12789_v53 }
 0x108   : > { %2086 = vmatprep.mubr.f32.mxu0 %v18155_v5  ;;  %2199 = vmatprep.mubr.f32.mxu1 %v18155_v5 }
 0x109   : > { %18528 = vst [vmem:[#allocation25_spill] sm:$0xff] %v12783_v25  ;;  %v12798_v7 = vsub.f32 1.0, %v4476_v20 }
 0x10a   : > { %v12573_v33 = vpop.f32.mrb[18].mxu0  ;;  %v12575_v34 = vpop.f32.mrb[18].mxu1 }
 0x10b   : > { %v12577_v35 = vpop.f32.mrb[19].mxu0  ;;  %10186 = vmatmul.mubr.msk.f32.gmra.mrb[124].mxu0 %vm379_vm0, %v12070_v17  ;;  %10194 = vmatmul.mubr.msk.f32.gmra.mrb[124].mxu1 %vm379_vm0, %v12070_v17  ;;  %v12583_v36 = vpop.f32.mrb[19].mxu1  ;;  %18533 = vst [vmem:[#allocation30_spill] sm:$0xff] %v12798_v7  ;;  %v4550_v53 = vand.u32 2147483647, %v12575_v34 }
 0x10c   : > { %2092 = vmatprep.mubr.f32.mxu0 %v18155_v5  ;;  %2205 = vmatprep.mubr.f32.mxu1 %v18155_v5  ;;  %v4549_v20 = vand.u32 2147483647, %v12577_v35 }
 0x10e   : > { %v12595_v42 = vpop.f32.mrb[20].mxu0  ;;  %v12597_v43 = vpop.f32.mrb[20].mxu1 }
 0x10f   : > { %v12601_v46 = vpop.f32.mrb[21].mxu0  ;;  %10187 = vmatmul.mubr.msk.f32.gmra.mrb[126].mxu0 %vm379_vm0, %v12079_v18  ;;  %10195 = vmatmul.mubr.msk.f32.gmra.mrb[126].mxu1 %vm379_vm0, %v12079_v18  ;;  %v12610_v55 = vpop.f32.mrb[21].mxu1  ;;  %v345_v18 = vld [vmem:[%s18148_s1 + $0x130] sm:$0xff]  ;;  %v4620_v35 = vand.u32 2147483647, %v12595_v42 }
 0x110   : > { %2276 = vmatprep.mubr.f32.mxu0 %v18155_v5  ;;  %2389 = vmatprep.mubr.f32.mxu1 %v18155_v5  ;;  %v4760_v5 = vand.u32 2147483647, %v12497_v63  ;;  %v12664_v63 = vsub.f32 1.0, %v4618_v24 }
 0x112   : > { %v12633_v37 = vpop.f32.mrb[22].mxu0  ;;  %v12635_v48 = vpop.f32.mrb[22].mxu1  ;;  %18511 = vst [vmem:[#allocation8_spill] sm:$0xff] %v12664_v63 }
 0x113   : > { %18506 = vst [vmem:[#allocation4_spill] sm:$0xff] %v12635_v48  ;;  %v12639_v54 = vpop.f32.mrb[23].mxu0  ;;  %10196 = vmatmul.mubr.msk.f32.vlgmr.msra.gmra.mrb[128].mxu0 %vm379_vm0, %v12007_v8  ;;  %10204 = vmatmul.mubr.msk.f32.vlgmr.msra.gmra.mrb[128].mxu1 %vm379_vm0, %v12007_v8  ;;  %v12645_v39 = vpop.f32.mrb[23].mxu1  ;;  %v12655_v48 = vsub.f32 1.0, %v4546_v45  ;;  %v12657_v8 = vsub.f32 1.0, %v4547_v61  ;;  %v12674_v45 = vsub.f32 1.0, %v4689_v32 }
 0x114   : > { %2439 = vmatpush1.msra.mxu0 %v343_v47  ;;  %2282 = vmatprep.mubr.f32.mxu0 %v18508_v60  ;;  %v12666_v47 = vsub.f32 1.0, %v4619_v29  ;;  %v12676_v61 = vsub.f32 1.0, %v4690_v52  ;;  %v12689_v29 = vsub.f32 1.0, %v4760_v5  ;;  %v4832_v32 = vand.u32 2147483647, %v12511_v3 }
 0x115   : > { %18509 = vst [vmem:[#allocation6_spill] sm:$0xff] %v12657_v8  ;;  %2395 = vmatprep.mubr.f32.mxu1 %v18508_v60  ;;  %2552 = vmatpush1.msra.mxu1 %v345_v18  ;;  %18514 = vst [vmem:[#allocation11_spill] sm:$0xff] %v12674_v45  ;;  %v4904_v5 = vand.u32 2147483647, %v12525_v9  ;;  %v4977_v9 = vand.u32 2147483647, %v12543_v22 }
 0x116   : > { %18512 = vst [vmem:[#allocation9_spill] sm:$0xff] %v12666_v47  ;;  %v12668_v57 = vpop.f32.mrb[24].mxu0  ;;  %2664 = vmatprep.subr.mxu0 %v348_v51  ;;  %v12670_v38 = vpop.f32.mrb[24].mxu1  ;;  %2777 = vmatprep.subr.mxu1 %v350_v50  ;;  %18515 = vst [vmem:[#allocation12_spill] sm:$0xff] %v12676_v61  ;;  %v4762_v51 = vand.u32 2147483647, %v12499_v0 }
 0x117   : > { %v12680_v18 = vpop.f32.mrb[25].mxu0  ;;  %10197 = vmatmul.mubr.msk.f32.gmra.mrb[130].mxu0 %vm379_vm0, %v12024_v12  ;;  %10205 = vmatmul.mubr.msk.f32.gmra.mrb[130].mxu1 %vm379_vm0, %v12024_v12  ;;  %v12686_v62 = vpop.f32.mrb[25].mxu1  ;;  %18517 = vst [vmem:[#allocation14_spill] sm:$0xff] %v12689_v29  ;;  %v4763_v50 = vand.u32 2147483647, %v12507_v2  ;;  %v12729_v12 = vsub.f32 1.0, %v4832_v32 }
 0x118   : > { %2288 = vmatprep.mubr.f32.mxu0 %v18508_v60  ;;  %2401 = vmatprep.mubr.f32.mxu1 %v18508_v60  ;;  %v12722_v0 = vsub.f32 1.0, %v4762_v51  ;;  %v4906_v29 = vand.u32 2147483647, %v12527_v10  ;;  %v12754_v10 = vsub.f32 1.0, %v4833_v31  ;;  %v12767_v61 = vsub.f32 1.0, %v4904_v5 }
 0x119   : > { %v12724_v3 = vsub.f32 1.0, %v4763_v50  ;;  %18521 = vst [vmem:[#allocation18_spill] sm:$0xff] %v12729_v12  ;;  %v12769_v31 = vsub.f32 1.0, %v4905_v6  ;;  %v12785_v5 = vsub.f32 1.0, %v4977_v9  ;;  %v4477_v6 = vand.u32 2147483647, %v12558_v27 }
 0x11a   : > { %v12704_v24 = vpop.f32.mrb[26].mxu0  ;;  %v12706_v59 = vpop.f32.mrb[26].mxu1  ;;  %18519 = vst [vmem:[#allocation16_spill] sm:$0xff] %v12722_v0  ;;  %18522 = vst [vmem:[#allocation19_spill] sm:$0xff] %v12754_v10  ;;  %v12773_v19 = vsub.f32 1.0, %v4906_v29 }
 0x11b   : > { %v12712_v8 = vpop.f32.mrb[27].mxu0  ;;  %10198 = vmatmul.mubr.msk.f32.gmra.mrb[132].mxu0 %vm379_vm0, %v12034_v13  ;;  %10206 = vmatmul.mubr.msk.f32.gmra.mrb[132].mxu1 %vm379_vm0, %v12034_v13  ;;  %v12718_v2 = vpop.f32.mrb[27].mxu1  ;;  %18520 = vst [vmem:[#allocation17_spill] sm:$0xff] %v12724_v3  ;;  %v4834_v13 = vand.u32 2147483647, %v12513_v4  ;;  %18524 = vst [vmem:[#allocation21_spill] sm:$0xff] %v12767_v61 }
 0x11c   : > { %2294 = vmatprep.mubr.f32.mxu0 %v18508_v60  ;;  %2407 = vmatprep.mubr.f32.mxu1 %v18508_v60  ;;  %18525 = vst [vmem:[#allocation22_spill] sm:$0xff] %v12769_v31  ;;  %18527 = vst [vmem:[#allocation24_spill] sm:$0xff] %v12773_v19  ;;  %v4548_v27 = vand.u32 2147483647, %v12573_v33  ;;  %v4692_v34 = vand.u32 2147483647, %v12633_v37 }
 0x11d   : > { %v12761_v30 = vsub.f32 1.0, %v4834_v13  ;;  %18529 = vst [vmem:[#allocation26_spill] sm:$0xff] %v12785_v5  ;;  %v12787_v13 = vsub.f32 1.0, %v4907_v49  ;;  %v4479_v49 = vand.u32 2147483647, %v12564_v28  ;;  %v12884_v37 = vsub.f32 1.0, %v4550_v53 }
 0x11e   : > { %v12735_v51 = vpop.f32.mrb[28].mxu0  ;;  %v12737_v50 = vpop.f32.mrb[28].mxu1  ;;  %v4623_v28 = vand.u32 2147483647, %v12610_v55  ;;  %v4695_v42 = vand.u32 2147483647, %v12645_v39 }
 0x11f   : > { %v12741_v45 = vpop.f32.mrb[29].mxu0  ;;  %10199 = vmatmul.mubr.msk.f32.gmra.mrb[134].mxu0 %vm379_vm0, %v12043_v14  ;;  %10207 = vmatmul.mubr.msk.f32.gmra.mrb[134].mxu1 %vm379_vm0, %v12043_v14  ;;  %v12747_v4 = vpop.f32.mrb[29].mxu1  ;;  %v4979_v14 = vand.u32 2147483647, %v12549_v23  ;;  %18523 = vst [vmem:[#allocation20_spill] sm:$0xff] %v12761_v30  ;;  %18530 = vst [vmem:[#allocation27_spill] sm:$0xff] %v12787_v13 }
 0x120   : > { %2300 = vmatprep.mubr.f32.mxu0 %v18508_v60  ;;  %2413 = vmatprep.mubr.f32.mxu1 %v18508_v60  ;;  %v12832_v5 = vsub.f32 1.0, %v4479_v49  ;;  %v4622_v49 = vand.u32 2147483647, %v12597_v43  ;;  %v347_v39 = vld [vmem:[%s18148_s1 + $0x140] sm:$0xff]  ;;  %v349_v13 = vld [vmem:[%s18148_s1 + $0x150] sm:$0xff]  ;;  %v352_v53 = vld [vmem:[%s18148_s1 + $0x168] sm:$0xff] }
 0x121   : > { %v12795_v52 = vsub.f32 1.0, %v4979_v14  ;;  %v12824_v14 = vsub.f32 1.0, %v4477_v6  ;;  %v4551_v6 = vand.u32 2147483647, %v12583_v36  ;;  %v4693_v36 = vand.u32 2147483647, %v12639_v54 }
 0x122   : > { %v12763_v22 = vpop.f32.mrb[30].mxu0  ;;  %v12765_v21 = vpop.f32.mrb[30].mxu1  ;;  %18536 = vst [vmem:[#allocation33_spill] sm:$0xff] %v12832_v5  ;;  %v12870_v54 = vld [vmem:[%s12001_s18 + $0x38] sm:$0xff]  ;;  %v12893_v5 = vsub.f32 1.0, %v4620_v35  ;;  %v12923_v30 = vld [vmem:[%s12001_s18] sm:$0xff] }
 0x123   : > { %v12775_v32 = vpop.f32.mrb[31].mxu0  ;;  %10200 = vmatmul.mubr.msk.f32.gmra.mrb[136].mxu0 %vm379_vm0, %v12052_v15  ;;  %10208 = vmatmul.mubr.msk.f32.gmra.mrb[136].mxu1 %vm379_vm0, %v12052_v15  ;;  %v12781_v23 = vpop.f32.mrb[31].mxu1  ;;  %18532 = vst [vmem:[#allocation29_spill] sm:$0xff] %v12795_v52  ;;  %v4478_v15 = vand.u32 2147483647, %v12556_v26  ;;  %18534 = vst [vmem:[#allocation31_spill] sm:$0xff] %v12824_v14 }
 0x124   : > { %2306 = vmatprep.mubr.f32.mxu0 %v18508_v60  ;;  %2419 = vmatprep.mubr.f32.mxu1 %v18508_v60  ;;  %v12863_v52 = vsub.f32 1.0, %v4548_v27  ;;  %v12881_v27 = vsub.f32 1.0, %v4549_v20  ;;  %v12886_v43 = vsub.f32 1.0, %v4551_v6  ;;  %18540 = vst [vmem:[#allocation35_spill] sm:$0xff] %v12893_v5  ;;  %v12897_v20 = vsub.f32 1.0, %v4622_v49  ;;  %v354_v6 = vld [vmem:[%s18148_s1 + $0x178] sm:$0xff] }
 0x125   : > { %v12828_v9 = vsub.f32 1.0, %v4478_v15  ;;  %v4621_v15 = vand.u32 2147483647, %v12601_v46  ;;  %v12909_v19 = vsub.f32 1.0, %v4693_v36  ;;  %v4765_v61 = vand.u32 2147483647, %v12680_v18 }
 0x126   : > { %v12802_v11 = vpop.f32.mrb[32].mxu0  ;;  %v12804_v12 = vpop.f32.mrb[32].mxu1  ;;  %18539 = vst [vmem:[#allocation34_spill] sm:$0xff] %v12886_v43  ;;  %18542 = vst [vmem:[#allocation37_spill] sm:$0xff] %v12897_v20  ;;  %v4767_v18 = vand.u32 2147483647, %v12686_v62 }
 0x127   : > { %v12810_v10 = vpop.f32.mrb[33].mxu0  ;;  %10201 = vmatmul.mubr.msk.f32.gmra.mrb[138].mxu0 %vm379_vm0, %v12061_v16  ;;  %10209 = vmatmul.mubr.msk.f32.gmra.mrb[138].mxu1 %vm379_vm0, %v12061_v16  ;;  %v12816_v26 = vpop.f32.mrb[33].mxu1  ;;  %18535 = vst [vmem:[#allocation32_spill] sm:$0xff] %v12828_v9  ;;  %v18537_v16 = vld [vmem:[#allocation4_spill] sm:$0xff]  ;;  %v12895_v14 = vsub.f32 1.0, %v4621_v15  ;;  %v12907_v9 = vsub.f32 1.0, %v4692_v34 }
 0x128   : > { %2312 = vmatprep.mubr.f32.mxu0 %v18508_v60  ;;  %2425 = vmatprep.mubr.f32.mxu1 %v18508_v60  ;;  %v4694_v7 = vand.u32 2147483647, %v18537_v16  ;;  %18538 = vst [vmem:[#allocation4_spill] sm:$0xff] %v12881_v27  ;;  %v4764_v16 = vand.u32 2147483647, %v12668_v57  ;;  %v12899_v57 = vsub.f32 1.0, %v4623_v28 }
 0x129   : > { %18541 = vst [vmem:[#allocation36_spill] sm:$0xff] %v12895_v14  ;;  %18544 = vst [vmem:[#allocation39_spill] sm:$0xff] %v12907_v9  ;;  %v12913_v15 = vsub.f32 1.0, %v4695_v42  ;;  %v12951_v47 = vsub.f32 1.0, %v4765_v61  ;;  %v4838_v42 = vand.u32 2147483647, %v12706_v59 }
 0x12a   : > { %v12834_v29 = vpop.f32.mrb[34].mxu0  ;;  %v12836_v3 = vpop.f32.mrb[34].mxu1  ;;  %18543 = vst [vmem:[#allocation38_spill] sm:$0xff] %v12899_v57  ;;  %18545 = vst [vmem:[#allocation40_spill] sm:$0xff] %v12909_v19  ;;  %v12911_v35 = vsub.f32 1.0, %v4694_v7  ;;  %v12934_v0 = vsub.f32 1.0, %v4764_v16 }
 0x12b   : > { %v12840_v25 = vpop.f32.mrb[35].mxu0  ;;  %10202 = vmatmul.mubr.msk.f32.gmra.mrb[140].mxu0 %vm379_vm0, %v12070_v17  ;;  %10210 = vmatmul.mubr.msk.f32.gmra.mrb[140].mxu1 %vm379_vm0, %v12070_v17  ;;  %v12846_v33 = vpop.f32.mrb[35].mxu1  ;;  %18547 = vst [vmem:[#allocation42_spill] sm:$0xff] %v12913_v15  ;;  %v4766_v7 = vand.u32 2147483647, %v12670_v38  ;;  %18549 = vst [vmem:[#allocation44_spill] sm:$0xff] %v12951_v47 }
 0x12c   : > { %2318 = vmatprep.mubr.f32.mxu0 %v18508_v60  ;;  %2431 = vmatprep.mubr.f32.mxu1 %v18508_v60  ;;  %18546 = vst [vmem:[#allocation41_spill] sm:$0xff] %v12911_v35  ;;  %18548 = vst [vmem:[#allocation43_spill] sm:$0xff] %v12934_v0  ;;  %v4908_v38 = vand.u32 2147483647, %v12735_v51  ;;  %v4839_v62 = vand.u32 2147483647, %v12718_v2 }
 0x12d   : > { %v12955_v63 = vsub.f32 1.0, %v4766_v7  ;;  %v4837_v7 = vand.u32 2147483647, %v12712_v8  ;;  %v4909_v15 = vand.u32 2147483647, %v12741_v45  ;;  %v12988_v0 = vld [vmem:[%s12001_s18 + $0x10] sm:$0xff] }
 0x12e   : > { %v12856_v17 = vpop.f32.mrb[36].mxu0  ;;  %v12860_v46 = vpop.f32.mrb[36].mxu1  ;;  %v4980_v8 = vand.u32 2147483647, %v12763_v22  ;;  %v4911_v59 = vand.u32 2147483647, %v12747_v4 }
 0x12f   : > { %v12867_v31 = vpop.f32.mrb[37].mxu0  ;;  %10203 = vmatmul.mubr.msk.f32.gmra.mrb[142].mxu0 %vm379_vm0, %v12870_v54  ;;  %10211 = vmatmul.mubr.msk.f32.gmra.mrb[142].mxu1 %vm379_vm0, %v12870_v54  ;;  %v12879_v55 = vpop.f32.mrb[37].mxu1  ;;  %18550 = vst [vmem:[#allocation45_spill] sm:$0xff] %v12955_v63  ;;  %v4981_v2 = vand.u32 2147483647, %v12775_v32  ;;  %v13007_v57 = vsub.f32 1.0, %v4837_v7 }
 0x130   : > { %2502 = vmatprep.mubr.f32.mxu0 %v18508_v60  ;;  %2615 = vmatprep.mubr.f32.mxu1 %v18508_v60  ;;  %v4982_v51 = vand.u32 2147483647, %v12765_v21  ;;  %v4480_v9 = vand.u32 2147483647, %v12802_v11  ;;  %v13009_v32 = vsub.f32 1.0, %v4908_v38  ;;  %v13011_v14 = vsub.f32 1.0, %v4838_v42 }
 0x131   : > { %18553 = vst [vmem:[#allocation48_spill] sm:$0xff] %v13007_v57  ;;  %v13013_v20 = vsub.f32 1.0, %v4839_v62  ;;  %v13019_v5 = vsub.f32 1.0, %v4909_v15  ;;  %v13025_v11 = vsub.f32 1.0, %v4911_v59  ;;  %v13030_v38 = vld [vmem:[%s12001_s18 + $0x18] sm:$0xff]  ;;  %v13038_v15 = vsub.f32 1.0, %v4981_v2 }
 0x132   : > { %v12915_v49 = vpop.f32.mrb[38].mxu0  ;;  %v12917_v28 = vpop.f32.mrb[38].mxu1  ;;  %18554 = vst [vmem:[#allocation49_spill] sm:$0xff] %v13009_v32  ;;  %18555 = vst [vmem:[#allocation50_spill] sm:$0xff] %v13011_v14  ;;  %v13048_v4 = vsub.f32 1.0, %v4480_v9  ;;  %v13067_v63 = vld [vmem:[%s12001_s18 + $0x20] sm:$0xff] }
 0x133   : > { %v12920_v1 = vpop.f32.mrb[39].mxu0  ;;  %10212 = vmatmul.mubr.msk.f32.vlgmr.msra.gmra.mrb[144].mxu0 %vm379_vm0, %v12923_v30  ;;  %10220 = vmatmul.mubr.msk.f32.vlgmr.msra.gmra.mrb[144].mxu1 %vm379_vm0, %v12923_v30  ;;  %v12930_v34 = vpop.f32.mrb[39].mxu1  ;;  %18556 = vst [vmem:[#allocation51_spill] sm:$0xff] %v13013_v20  ;;  %18557 = vst [vmem:[#allocation52_spill] sm:$0xff] %v13019_v5  ;;  %v4481_v47 = vand.u32 2147483647, %v12810_v10 }
 0x134   : > { %2665 = vmatpush1.msra.mxu0 %v347_v39  ;;  %2508 = vmatprep.mubr.f32.mxu0 %v18508_v60  ;;  %v12960_v39 = vld [vmem:[%s12001_s18 + $0x8] sm:$0xff]  ;;  %18560 = vst [vmem:[#allocation55_spill] sm:$0xff] %v13025_v11  ;;  %18561 = vst [vmem:[#allocation56_spill] sm:$0xff] %v13038_v15  ;;  %v4482_v2 = vand.u32 2147483647, %v12804_v12 }
 0x135   : > { %2621 = vmatprep.mubr.f32.mxu1 %v18508_v60  ;;  %2778 = vmatpush1.msra.mxu1 %v349_v13  ;;  %v12971_v13 = vsub.f32 1.0, %v4767_v18  ;;  %18564 = vst [vmem:[#allocation59_spill] sm:$0xff] %v13048_v4  ;;  %v4483_v12 = vand.u32 2147483647, %v12816_v26  ;;  %v4553_v59 = vand.u32 2147483647, %v12840_v25 }
 0x136   : > { %v12947_v36 = vpop.f32.mrb[40].mxu0  ;;  %2890 = vmatprep.subr.mxu0 %v352_v53  ;;  %v12949_v56 = vpop.f32.mrb[40].mxu1  ;;  %3003 = vmatprep.subr.mxu1 %v354_v6  ;;  %v4836_v6 = vand.u32 2147483647, %v12704_v24  ;;  %v4910_v24 = vand.u32 2147483647, %v12737_v50 }
 0x137   : > { %v12957_v16 = vpop.f32.mrb[41].mxu0  ;;  %10213 = vmatmul.mubr.msk.f32.gmra.mrb[146].mxu0 %vm379_vm0, %v12960_v39  ;;  %10221 = vmatmul.mubr.msk.f32.gmra.mrb[146].mxu1 %vm379_vm0, %v12960_v39  ;;  %v12966_v53 = vpop.f32.mrb[41].mxu1  ;;  %18551 = vst [vmem:[#allocation46_spill] sm:$0xff] %v12971_v13  ;;  %v4983_v50 = vand.u32 2147483647, %v12781_v23  ;;  %v13085_v11 = vsub.f32 1.0, %v4482_v2 }
 0x138   : > { %2514 = vmatprep.mubr.f32.mxu0 %v18508_v60  ;;  %2627 = vmatprep.mubr.f32.mxu1 %v18508_v60  ;;  %v13003_v35 = vsub.f32 1.0, %v4836_v6  ;;  %v13021_v6 = vsub.f32 1.0, %v4980_v8  ;;  %v13023_v22 = vsub.f32 1.0, %v4910_v24  ;;  %v13041_v24 = vsub.f32 1.0, %v4982_v51 }
 0x139   : > { %v13043_v8 = vsub.f32 1.0, %v4983_v50  ;;  %v13082_v50 = vsub.f32 1.0, %v4481_v47  ;;  %v4554_v10 = vand.u32 2147483647, %v12836_v3  ;;  %v4624_v26 = vand.u32 2147483647, %v12856_v17 }
 0x13a   : > { %v12979_v19 = vpop.f32.mrb[42].mxu0  ;;  %v12982_v61 = vpop.f32.mrb[42].mxu1  ;;  %18552 = vst [vmem:[#allocation47_spill] sm:$0xff] %v13003_v35  ;;  %18558 = vst [vmem:[#allocation53_spill] sm:$0xff] %v13021_v6  ;;  %v4552_v6 = vand.u32 2147483647, %v12834_v29 }
 0x13b   : > { %v12985_v18 = vpop.f32.mrb[43].mxu0  ;;  %10214 = vmatmul.mubr.msk.f32.gmra.mrb[148].mxu0 %vm379_vm0, %v12988_v0  ;;  %10222 = vmatmul.mubr.msk.f32.gmra.mrb[148].mxu1 %vm379_vm0, %v12988_v0  ;;  %v12995_v45 = vpop.f32.mrb[43].mxu1  ;;  %18559 = vst [vmem:[#allocation54_spill] sm:$0xff] %v13023_v22  ;;  %18562 = vst [vmem:[#allocation57_spill] sm:$0xff] %v13041_v24  ;;  %v13097_v24 = vld [vmem:[%s12001_s18 + $0x28] sm:$0xff]  ;;  %v13115_v5 = vsub.f32 1.0, %v4483_v12 }
 0x13c   : > { %2520 = vmatprep.mubr.f32.mxu0 %v18508_v60  ;;  %2633 = vmatprep.mubr.f32.mxu1 %v18508_v60  ;;  %18563 = vst [vmem:[#allocation58_spill] sm:$0xff] %v13043_v8  ;;  %18565 = vst [vmem:[#allocation60_spill] sm:$0xff] %v13082_v50  ;;  %v4555_v47 = vand.u32 2147483647, %v12846_v33  ;;  %v4625_v3 = vand.u32 2147483647, %v12867_v31 }
 0x13d   : > { %v4626_v29 = vand.u32 2147483647, %v12860_v46  ;;  %v4627_v17 = vand.u32 2147483647, %v12879_v55  ;;  %v4696_v2 = vand.u32 2147483647, %v12915_v49 }
 0x13e   : > { %v13015_v21 = vpop.f32.mrb[44].mxu0  ;;  %v13017_v23 = vpop.f32.mrb[44].mxu1  ;;  %v4697_v62 = vand.u32 2147483647, %v12920_v1  ;;  %v4698_v4 = vand.u32 2147483647, %v12917_v28 }
 0x13f   : > { %v13027_v7 = vpop.f32.mrb[45].mxu0  ;;  %10215 = vmatmul.mubr.msk.f32.gmra.mrb[150].mxu0 %vm379_vm0, %v13030_v38  ;;  %10223 = vmatmul.mubr.msk.f32.gmra.mrb[150].mxu1 %vm379_vm0, %v13030_v38  ;;  %v13036_v42 = vpop.f32.mrb[45].mxu1  ;;  %v4699_v22 = vand.u32 2147483647, %v12930_v34  ;;  %v13122_v20 = vsub.f32 1.0, %v4552_v6  ;;  %v13124_v46 = vsub.f32 1.0, %v4553_v59 }
 0x140   : > { %2526 = vmatprep.mubr.f32.mxu0 %v18508_v60  ;;  %2639 = vmatprep.mubr.f32.mxu1 %v18508_v60  ;;  %v13126_v55 = vsub.f32 1.0, %v4554_v10  ;;  %v13128_v49 = vsub.f32 1.0, %v4555_v47  ;;  %v13133_v28 = vld [vmem:[%s12001_s18 + $0x30] sm:$0xff]  ;;  %v13141_v6 = vsub.f32 1.0, %v4624_v26  ;;  %v13143_v59 = vsub.f32 1.0, %v4625_v3  ;;  %v351_v50 = vld [vmem:[%s18148_s1 + $0x160] sm:$0xff] }
 0x141   : > { %18566 = vst [vmem:[#allocation61_spill] sm:$0xff] %v13124_v46  ;;  %v13145_v10 = vsub.f32 1.0, %v4626_v29  ;;  %v13147_v12 = vsub.f32 1.0, %v4627_v17  ;;  %v13151_v47 = vsub.f32 1.0, %v4696_v2  ;;  %v13153_v33 = vsub.f32 1.0, %v4697_v62  ;;  %v353_v3 = vld [vmem:[%s18148_s1 + $0x170] sm:$0xff] }
 0x142   : > { %v13056_v13 = vpop.f32.mrb[46].mxu0  ;;  %v13058_v43 = vpop.f32.mrb[46].mxu1  ;;  %18567 = vst [vmem:[#allocation62_spill] sm:$0xff] %v13126_v55  ;;  %18568 = vst [vmem:[#allocation63_spill] sm:$0xff] %v13128_v49  ;;  %v13156_v57 = vsub.f32 1.0, %v4698_v4  ;;  %v13162_v17 = vsub.f32 1.0, %v4699_v22 }
 0x143   : > { %v13064_v35 = vpop.f32.mrb[47].mxu0  ;;  %10216 = vmatmul.mubr.msk.f32.gmra.mrb[152].mxu0 %vm379_vm0, %v13067_v63  ;;  %10224 = vmatmul.mubr.msk.f32.gmra.mrb[152].mxu1 %vm379_vm0, %v13067_v63  ;;  %v13073_v51 = vpop.f32.mrb[47].mxu1  ;;  %18569 = vst [vmem:[#allocation64_spill] sm:$0xff] %v13141_v6  ;;  %18570 = vst [vmem:[#allocation65_spill] sm:$0xff] %v13143_v59  ;;  %v4768_v26 = vand.u32 2147483647, %v12947_v36 }
 0x144   : > { %2532 = vmatprep.mubr.f32.mxu0 %v18508_v60  ;;  %2645 = vmatprep.mubr.f32.mxu1 %v18508_v60  ;;  %18571 = vst [vmem:[#allocation66_spill] sm:$0xff] %v13145_v10  ;;  %18572 = vst [vmem:[#allocation67_spill] sm:$0xff] %v13147_v12  ;;  %v4769_v2 = vand.u32 2147483647, %v12957_v16  ;;  %v356_v12 = vld [vmem:[%s18148_s1 + $0x188] sm:$0xff]  ;;  %v358_v59 = vld [vmem:[%s18148_s1 + $0x198] sm:$0xff] }
 0x145   : > { %18573 = vst [vmem:[#allocation68_spill] sm:$0xff] %v13151_v47  ;;  %18574 = vst [vmem:[#allocation69_spill] sm:$0xff] %v13153_v33  ;;  %v13200_v10 = vsub.f32 1.0, %v4768_v26  ;;  %v4770_v27 = vand.u32 2147483647, %v12949_v56 }
 0x146   : > { %v13088_v15 = vpop.f32.mrb[48].mxu0  ;;  %v13091_v9 = vpop.f32.mrb[48].mxu1  ;;  %18575 = vst [vmem:[#allocation70_spill] sm:$0xff] %v13156_v57  ;;  %18576 = vst [vmem:[#allocation71_spill] sm:$0xff] %v13162_v17  ;;  %v4840_v16 = vand.u32 2147483647, %v12979_v19 }
 0x147   : > { %v13094_v8 = vpop.f32.mrb[49].mxu0  ;;  %10217 = vmatmul.mubr.msk.f32.gmra.mrb[154].mxu0 %vm379_vm0, %v13097_v24  ;;  %10225 = vmatmul.mubr.msk.f32.gmra.mrb[154].mxu1 %vm379_vm0, %v13097_v24  ;;  %v13104_v25 = vpop.f32.mrb[49].mxu1  ;;  %18577 = vst [vmem:[#allocation72_spill] sm:$0xff] %v13200_v10  ;;  %v4771_v26 = vand.u32 2147483647, %v12966_v53 }
 0x148   : > { %2538 = vmatprep.mubr.f32.mxu0 %v18508_v60  ;;  %2651 = vmatprep.mubr.f32.mxu1 %v18508_v60  ;;  %v4841_v6 = vand.u32 2147483647, %v12985_v18  ;;  %v4842_v56 = vand.u32 2147483647, %v12982_v61  ;;  %v4843_v19 = vand.u32 2147483647, %v12995_v45 }
 0x149   : > { %v4912_v17 = vand.u32 2147483647, %v13015_v21  ;;  %v4913_v57 = vand.u32 2147483647, %v13027_v7  ;;  %v4914_v47 = vand.u32 2147483647, %v13017_v23 }
 0x14a   : > { %v13117_v31 = vpop.f32.mrb[50].mxu0  ;;  %v13120_v32 = vpop.f32.mrb[50].mxu1  ;;  %v4984_v53 = vand.u32 2147483647, %v13056_v13  ;;  %v4915_v18 = vand.u32 2147483647, %v13036_v42 }
 0x14b   : > { %v13130_v1 = vpop.f32.mrb[51].mxu0  ;;  %10218 = vmatmul.mubr.msk.f32.gmra.mrb[156].mxu0 %vm379_vm0, %v13133_v28  ;;  %10226 = vmatmul.mubr.msk.f32.gmra.mrb[156].mxu1 %vm379_vm0, %v13133_v28  ;;  %v13139_v34 = vpop.f32.mrb[51].mxu1  ;;  %v13232_v61 = vsub.f32 1.0, %v4769_v2  ;;  %v13234_v45 = vsub.f32 1.0, %v4840_v16  ;;  %v13236_v21 = vsub.f32 1.0, %v4770_v27  ;;  %v13238_v7 = vsub.f32 1.0, %v4771_v26 }
 0x14c   : > { %2544 = vmatprep.mubr.f32.mxu0 %v18508_v60  ;;  %2657 = vmatprep.mubr.f32.mxu1 %v18508_v60  ;;  %v13253_v27 = vsub.f32 1.0, %v4843_v19  ;;  %v13259_v2 = vsub.f32 1.0, %v4913_v57  ;;  %v4985_v16 = vand.u32 2147483647, %v13064_v35  ;;  %v13262_v26 = vsub.f32 1.0, %v4914_v47 }
 0x14d   : > { %18578 = vst [vmem:[#allocation73_spill] sm:$0xff] %v13232_v61  ;;  %18579 = vst [vmem:[#allocation74_spill] sm:$0xff] %v13234_v45  ;;  %v13264_v55 = vsub.f32 1.0, %v4984_v53  ;;  %v4986_v19 = vand.u32 2147483647, %v13058_v43 }
 0x14e   : > { %v13160_v29 = vpop.f32.mrb[52].mxu0  ;;  %v13164_v14 = vpop.f32.mrb[52].mxu1  ;;  %18580 = vst [vmem:[#allocation75_spill] sm:$0xff] %v13238_v7  ;;  %18583 = vst [vmem:[#allocation78_spill] sm:$0xff] %v13253_v27  ;;  %v4987_v35 = vand.u32 2147483647, %v13073_v51 }
 0x14f   : > { %v13170_v4 = vpop.f32.mrb[53].mxu0  ;;  %10219 = vmatmul.mubr.msk.f32.gmra.mrb[158].mxu0 %vm379_vm0, %v12870_v54  ;;  %10227 = vmatmul.mubr.msk.f32.gmra.mrb[158].mxu1 %vm379_vm0, %v12870_v54  ;;  %v13176_v36 = vpop.f32.mrb[53].mxu1  ;;  %18585 = vst [vmem:[#allocation80_spill] sm:$0xff] %v13259_v2  ;;  %18586 = vst [vmem:[#allocation81_spill] sm:$0xff] %v13262_v26  ;;  %v4485_v51 = vand.u32 2147483647, %v13094_v8 }
 0x150   : > { %2728 = vmatprep.mubr.f32.mxu0 %v18508_v60  ;;  %2841 = vmatprep.mubr.f32.mxu1 %v18508_v60  ;;  %18587 = vst [vmem:[#allocation82_spill] sm:$0xff] %v13264_v55  ;;  %v13318_v57 = vsub.f32 1.0, %v4987_v35  ;;  %v4487_v8 = vand.u32 2147483647, %v13104_v25  ;;  %v4557_v7 = vand.u32 2147483647, %v13130_v1 }
 0x151   : > { %v4558_v45 = vand.u32 2147483647, %v13120_v32  ;;  %v4628_v55 = vand.u32 2147483647, %v13160_v29  ;;  %v13333_v2 = vsub.f32 1.0, %v4485_v51 }
 0x152   : > { %v13203_v49 = vpop.f32.mrb[54].mxu0  ;;  %v13206_v22 = vpop.f32.mrb[54].mxu1  ;;  %18592 = vst [vmem:[#allocation87_spill] sm:$0xff] %v13318_v57  ;;  %v4630_v32 = vand.u32 2147483647, %v13164_v14  ;;  %v13347_v29 = vsub.f32 1.0, %v4487_v8 }
 0x153   : > { %v13209_v62 = vpop.f32.mrb[55].mxu0  ;;  %10228 = vmatmul.mubr.msk.f32.vlgmr.msra.gmra.mrb[160].mxu0 %vm379_vm0, %v12923_v30  ;;  %10236 = vmatmul.mubr.msk.f32.vlgmr.msra.gmra.mrb[160].mxu1 %vm379_vm0, %v12923_v30  ;;  %v13216_v33 = vpop.f32.mrb[55].mxu1  ;;  %18593 = vst [vmem:[#allocation88_spill] sm:$0xff] %v13333_v2  ;;  %v13354_v35 = vsub.f32 1.0, %v4557_v7  ;;  %v4700_v7 = vand.u32 2147483647, %v13203_v49 }
 0x154   : > { %2891 = vmatpush1.msra.mxu0 %v351_v50  ;;  %2734 = vmatprep.mubr.f32.mxu0 %v18508_v60  ;;  %18595 = vst [vmem:[#allocation90_spill] sm:$0xff] %v13347_v29 }
 0x155   : > { %2847 = vmatprep.mubr.f32.mxu1 %v18508_v60  ;;  %3004 = vmatpush1.msra.mxu1 %v353_v3  ;;  %v13257_v3 = vsub.f32 1.0, %v4912_v17  ;;  %18597 = vst [vmem:[#allocation92_spill] sm:$0xff] %v13354_v35 }
 0x156   : > { %v13227_v46 = vpop.f32.mrb[56].mxu0  ;;  %3116 = vmatprep.subr.mxu0 %v356_v12  ;;  %v13230_v50 = vpop.f32.mrb[56].mxu1  ;;  %3229 = vmatprep.subr.mxu1 %v358_v59  ;;  %v13249_v59 = vsub.f32 1.0, %v4841_v6  ;;  %v13251_v12 = vsub.f32 1.0, %v4842_v56  ;;  %v13268_v56 = vsub.f32 1.0, %v4915_v18 }
 0x157   : > { %v13240_v23 = vpop.f32.mrb[57].mxu0  ;;  %10229 = vmatmul.mubr.msk.f32.gmra.mrb[162].mxu0 %vm379_vm0, %v12960_v39  ;;  %10237 = vmatmul.mubr.msk.f32.gmra.mrb[162].mxu1 %vm379_vm0, %v12960_v39  ;;  %v13246_v13 = vpop.f32.mrb[57].mxu1  ;;  %18584 = vst [vmem:[#allocation79_spill] sm:$0xff] %v13257_v3  ;;  %v4484_v18 = vand.u32 2147483647, %v13088_v15 }
 0x158   : > { %18581 = vst [vmem:[#allocation76_spill] sm:$0xff] %v13249_v59  ;;  %18582 = vst [vmem:[#allocation77_spill] sm:$0xff] %v13251_v12  ;;  %2740 = vmatprep.mubr.f32.mxu0 %v18508_v60  ;;  %2853 = vmatprep.mubr.f32.mxu1 %v18508_v60  ;;  %v13296_v59 = vsub.f32 1.0, %v4985_v16  ;;  %v13301_v12 = vsub.f32 1.0, %v4986_v19  ;;  %v4486_v16 = vand.u32 2147483647, %v13091_v9 }
 0x159   : > { %18588 = vst [vmem:[#allocation83_spill] sm:$0xff] %v13268_v56  ;;  %v13315_v15 = vsub.f32 1.0, %v4484_v18  ;;  %v4556_v19 = vand.u32 2147483647, %v13117_v31  ;;  %v4559_v9 = vand.u32 2147483647, %v13139_v34 }
 0x15a   : > { %v13266_v6 = vpop.f32.mrb[58].mxu0  ;;  %v13271_v42 = vpop.f32.mrb[58].mxu1  ;;  %18589 = vst [vmem:[#allocation84_spill] sm:$0xff] %v13296_v59  ;;  %18590 = vst [vmem:[#allocation85_spill] sm:$0xff] %v13301_v12  ;;  %v4629_v18 = vand.u32 2147483647, %v13170_v4 }
 0x15b   : > { %v13277_v47 = vpop.f32.mrb[59].mxu0  ;;  %10230 = vmatmul.mubr.msk.f32.gmra.mrb[164].mxu0 %vm379_vm0, %v12988_v0  ;;  %10238 = vmatmul.mubr.msk.f32.gmra.mrb[164].mxu1 %vm379_vm0, %v12988_v0  ;;  %v13283_v53 = vpop.f32.mrb[59].mxu1  ;;  %18591 = vst [vmem:[#allocation86_spill] sm:$0xff] %v13315_v15  ;;  %v13345_v34 = vsub.f32 1.0, %v4486_v16  ;;  %v4631_v4 = vand.u32 2147483647, %v13176_v36 }
 0x15c   : > { %2746 = vmatprep.mubr.f32.mxu0 %v18508_v60  ;;  %2859 = vmatprep.mubr.f32.mxu1 %v18508_v60  ;;  %v13352_v51 = vsub.f32 1.0, %v4556_v19  ;;  %v13356_v59 = vsub.f32 1.0, %v4558_v45  ;;  %v13358_v14 = vsub.f32 1.0, %v4559_v9  ;;  %v13361_v16 = vsub.f32 1.0, %v4628_v55 }
 0x15d   : > { %18594 = vst [vmem:[#allocation89_spill] sm:$0xff] %v13345_v34  ;;  %v13363_v8 = vsub.f32 1.0, %v4629_v18  ;;  %v13378_v55 = vsub.f32 1.0, %v4630_v32  ;;  %v4701_v9 = vand.u32 2147483647, %v13209_v62  ;;  %v13387_v49 = vsub.f32 1.0, %v4631_v4 }
 0x15e   : > { %v13299_v17 = vpop.f32.mrb[60].mxu0  ;;  %v13303_v61 = vpop.f32.mrb[60].mxu1  ;;  %18596 = vst [vmem:[#allocation91_spill] sm:$0xff] %v13352_v51  ;;  %18598 = vst [vmem:[#allocation93_spill] sm:$0xff] %v13356_v59  ;;  %v4702_v36 = vand.u32 2147483647, %v13206_v22 }
 0x15f   : > { %v13306_v10 = vpop.f32.mrb[61].mxu0  ;;  %10231 = vmatmul.mubr.msk.f32.gmra.mrb[166].mxu0 %vm379_vm0, %v13030_v38  ;;  %10239 = vmatmul.mubr.msk.f32.gmra.mrb[166].mxu1 %vm379_vm0, %v13030_v38  ;;  %v13313_v43 = vpop.f32.mrb[61].mxu1  ;;  %18599 = vst [vmem:[#allocation94_spill] sm:$0xff] %v13358_v14  ;;  %18600 = vst [vmem:[#allocation95_spill] sm:$0xff] %v13361_v16  ;;  %v13400_v4 = vsub.f32 1.0, %v4700_v7  ;;  %v13412_v12 = vsub.f32 1.0, %v4701_v9 }
 0x160   : > { %2752 = vmatprep.mubr.f32.mxu0 %v18508_v60  ;;  %2865 = vmatprep.mubr.f32.mxu1 %v18508_v60  ;;  %18601 = vst [vmem:[#allocation96_spill] sm:$0xff] %v13363_v8  ;;  %18602 = vst [vmem:[#allocation97_spill] sm:$0xff] %v13378_v55  ;;  %v4703_v18 = vand.u32 2147483647, %v13216_v33  ;;  %v4772_v22 = vand.u32 2147483647, %v13227_v46 }
 0x161   : > { %18603 = vst [vmem:[#allocation98_spill] sm:$0xff] %v13387_v49  ;;  %18604 = vst [vmem:[#allocation99_spill] sm:$0xff] %v13400_v4  ;;  %v4773_v7 = vand.u32 2147483647, %v13240_v23  ;;  %v4844_v1 = vand.u32 2147483647, %v13266_v6 }
 0x162   : > { %v13328_v56 = vpop.f32.mrb[62].mxu0  ;;  %v13330_v31 = vpop.f32.mrb[62].mxu1  ;;  %18605 = vst [vmem:[#allocation100_spill] sm:$0xff] %v13412_v12  ;;  %v4774_v62 = vand.u32 2147483647, %v13230_v50  ;;  %v355_v50 = vld [vmem:[%s18148_s1 + $0x180] sm:$0xff] }
 0x163   : > { %v13335_v26 = vpop.f32.mrb[63].mxu0  ;;  %10232 = vmatmul.mubr.msk.f32.gmra.mrb[168].mxu0 %vm379_vm0, %v13067_v63  ;;  %10240 = vmatmul.mubr.msk.f32.gmra.mrb[168].mxu1 %vm379_vm0, %v13067_v63  ;;  %v13342_v25 = vpop.f32.mrb[63].mxu1  ;;  %v4775_v33 = vand.u32 2147483647, %v13246_v13  ;;  %v4845_v8 = vand.u32 2147483647, %v13277_v47 }
 0x164   : > { %2758 = vmatprep.mubr.f32.mxu0 %v18508_v60  ;;  %2871 = vmatprep.mubr.f32.mxu1 %v18508_v60  ;;  %v4846_v46 = vand.u32 2147483647, %v13271_v42  ;;  %v4916_v23 = vand.u32 2147483647, %v13299_v17  ;;  %v4847_v13 = vand.u32 2147483647, %v13283_v53 }
 0x165   : > { %v4917_v17 = vand.u32 2147483647, %v13306_v10  ;;  %v13443_v47 = vsub.f32 1.0, %v4702_v36  ;;  %v357_v49 = vld [vmem:[%s18148_s1 + $0x190] sm:$0xff]  ;;  %v13452_v16 = vsub.f32 1.0, %v4772_v22  ;;  %v13454_v14 = vsub.f32 1.0, %v4703_v18 }
 0x166   : > { %v13366_v3 = vpop.f32.mrb[64].mxu0  ;;  %v13368_v27 = vpop.f32.mrb[64].mxu1  ;;  %v4919_v10 = vand.u32 2147483647, %v13313_v43  ;;  %v360_v36 = vld [vmem:[%s18148_s1 + $0x1a8] sm:$0xff]  ;;  %v13463_v42 = vsub.f32 1.0, %v4773_v7 }
 0x167   : > { %v13372_v45 = vpop.f32.mrb[65].mxu0  ;;  %10233 = vmatmul.mubr.msk.f32.gmra.mrb[170].mxu0 %vm379_vm0, %v13097_v24  ;;  %10241 = vmatmul.mubr.msk.f32.gmra.mrb[170].mxu1 %vm379_vm0, %v13097_v24  ;;  %v13380_v19 = vpop.f32.mrb[65].mxu1  ;;  %18606 = vst [vmem:[#allocation101_spill] sm:$0xff] %v13443_v47  ;;  %18607 = vst [vmem:[#allocation102_spill] sm:$0xff] %v13452_v16  ;;  %v13465_v4 = vsub.f32 1.0, %v4844_v1  ;;  %v13469_v22 = vsub.f32 1.0, %v4774_v62 }
 0x168   : > { %2764 = vmatprep.mubr.f32.mxu0 %v18508_v60  ;;  %2877 = vmatprep.mubr.f32.mxu1 %v18508_v60  ;;  %18608 = vst [vmem:[#allocation103_spill] sm:$0xff] %v13454_v14  ;;  %18609 = vst [vmem:[#allocation104_spill] sm:$0xff] %v13463_v42  ;;  %v13471_v18 = vsub.f32 1.0, %v4775_v33  ;;  %v13475_v43 = vsub.f32 1.0, %v4845_v8  ;;  %v13477_v12 = vsub.f32 1.0, %v4916_v23  ;;  %v13485_v1 = vsub.f32 1.0, %v4846_v46 }
 0x169   : > { %18610 = vst [vmem:[#allocation105_spill] sm:$0xff] %v13465_v4  ;;  %18611 = vst [vmem:[#allocation106_spill] sm:$0xff] %v13469_v22  ;;  %v13487_v62 = vsub.f32 1.0, %v4847_v13  ;;  %v13491_v33 = vsub.f32 1.0, %v4917_v17  ;;  %v4988_v8 = vand.u32 2147483647, %v13328_v56 }
 0x16a   : > { %v13395_v15 = vpop.f32.mrb[66].mxu0  ;;  %v13398_v29 = vpop.f32.mrb[66].mxu1  ;;  %18612 = vst [vmem:[#allocation107_spill] sm:$0xff] %v13471_v18  ;;  %18613 = vst [vmem:[#allocation108_spill] sm:$0xff] %v13475_v43  ;;  %v13502_v13 = vsub.f32 1.0, %v4919_v10  ;;  %v18814_v4 = vld [vmem:[#allocation11_spill] sm:$0xff] }
 0x16b   : > { %v13402_v34 = vpop.f32.mrb[67].mxu0  ;;  %10234 = vmatmul.mubr.msk.f32.gmra.mrb[172].mxu0 %vm379_vm0, %v13133_v28  ;;  %10242 = vmatmul.mubr.msk.f32.gmra.mrb[172].mxu1 %vm379_vm0, %v13133_v28  ;;  %v13410_v2 = vpop.f32.mrb[67].mxu1  ;;  %18614 = vst [vmem:[#allocation109_spill] sm:$0xff] %v13477_v12  ;;  %18615 = vst [vmem:[#allocation110_spill] sm:$0xff] %v13485_v1  ;;  %v4560_v10 = vand.u32 2147483647, %v13395_v15 }
 0x16c   : > { %2770 = vmatprep.mubr.f32.mxu0 %v18508_v60  ;;  %2883 = vmatprep.mubr.f32.mxu1 %v18508_v60  ;;  %18616 = vst [vmem:[#allocation111_spill] sm:$0xff] %v13487_v62  ;;  %18617 = vst [vmem:[#allocation112_spill] sm:$0xff] %v13491_v33  ;;  %v4563_v15 = vand.u32 2147483647, %v13410_v2  ;;  %v18834_v14 = vld [vmem:[#allocation19_spill] sm:$0xff] }
 0x16d   : > { %18619 = vst [vmem:[#allocation114_spill] sm:$0xff] %v13502_v13  ;;  %v18835_v47 = vmax.f32 %v18834_v14, 0.0 }
 0x16e   : > { %v13423_v9 = vpop.f32.mrb[68].mxu0  ;;  %v13426_v55 = vpop.f32.mrb[68].mxu1 }
 0x16f   : > { %v13429_v32 = vpop.f32.mrb[69].mxu0  ;;  %10235 = vmatmul.mubr.msk.f32.gmra.mrb[174].mxu0 %vm379_vm0, %v12870_v54  ;;  %10243 = vmatmul.mubr.msk.f32.gmra.mrb[174].mxu1 %vm379_vm0, %v12870_v54  ;;  %v13439_v6 = vpop.f32.mrb[69].mxu1  ;;  %v4918_v54 = vand.u32 2147483647, %v13303_v61  ;;  %v362_v61 = vld [vmem:[%s18148_s1 + $0x1b8] sm:$0xff] }
 0x170   : > { %2954 = vmatprep.mubr.f32.mxu0 %v18508_v60  ;;  %3067 = vmatprep.mubr.f32.mxu1 %v18508_v60  ;;  %v4634_v12 = vand.u32 2147483647, %v13426_v55  ;;  %v13586_v55 = vsub.f32 1.0, %v4560_v10 }
 0x171   : > { %v13496_v51 = vsub.f32 1.0, %v4918_v54  ;;  %v13525_v54 = vsub.f32 1.0, %v4988_v8 }
 0x172   : > { %v13467_v35 = vpop.f32.mrb[70].mxu0  ;;  %v13473_v53 = vpop.f32.mrb[70].mxu1  ;;  %18628 = vst [vmem:[#allocation123_spill] sm:$0xff] %v13586_v55 }
 0x173   : > { %v13479_v59 = vpop.f32.mrb[71].mxu0  ;;  %10244 = vmatmul.mubr.msk.f32.vlgmr.msra.gmra.mrb[176].mxu0 %vm379_vm0, %v12923_v30  ;;  %10252 = vmatmul.mubr.msk.f32.vlgmr.msra.gmra.mrb[176].mxu1 %vm379_vm0, %v12923_v30  ;;  %v13489_v7 = vpop.f32.mrb[71].mxu1  ;;  %18618 = vst [vmem:[#allocation113_spill] sm:$0xff] %v13496_v51  ;;  %v4989_v30 = vand.u32 2147483647, %v13335_v26  ;;  %18620 = vst [vmem:[#allocation115_spill] sm:$0xff] %v13525_v54 }
 0x174   : > { %3117 = vmatpush1.msra.mxu0 %v355_v50  ;;  %2960 = vmatprep.mubr.f32.mxu0 %v18508_v60  ;;  %v4990_v26 = vand.u32 2147483647, %v13330_v31  ;;  %v4490_v50 = vand.u32 2147483647, %v13368_v27  ;;  %v4562_v27 = vand.u32 2147483647, %v13398_v29 }
 0x175   : > { %3073 = vmatprep.mubr.f32.mxu1 %v18508_v60  ;;  %3230 = vmatpush1.msra.mxu1 %v357_v49  ;;  %v13531_v56 = vsub.f32 1.0, %v4989_v30  ;;  %v4991_v49 = vand.u32 2147483647, %v13342_v25  ;;  %v4561_v25 = vand.u32 2147483647, %v13402_v34  ;;  %v13606_v54 = vsub.f32 1.0, %v4634_v12 }
 0x176   : > { %v13508_v23 = vpop.f32.mrb[72].mxu0  ;;  %3342 = vmatprep.subr.mxu0 %v360_v36  ;;  %v13510_v57 = vpop.f32.mrb[72].mxu1  ;;  %3455 = vmatprep.subr.mxu1 %v362_v61  ;;  %v4489_v61 = vand.u32 2147483647, %v13372_v45  ;;  %v4632_v30 = vand.u32 2147483647, %v13423_v9 }
 0x177   : > { %v13514_v46 = vpop.f32.mrb[73].mxu0  ;;  %10245 = vmatmul.mubr.msk.f32.gmra.mrb[178].mxu0 %vm379_vm0, %v12960_v39  ;;  %10253 = vmatmul.mubr.msk.f32.gmra.mrb[178].mxu1 %vm379_vm0, %v12960_v39  ;;  %v13522_v36 = vpop.f32.mrb[73].mxu1  ;;  %18621 = vst [vmem:[#allocation116_spill] sm:$0xff] %v13531_v56  ;;  %v4488_v39 = vand.u32 2147483647, %v13366_v3  ;;  %v13560_v17 = vsub.f32 1.0, %v4990_v26 }
 0x178   : > { %2966 = vmatprep.mubr.f32.mxu0 %v18508_v60  ;;  %3079 = vmatprep.mubr.f32.mxu1 %v18508_v60  ;;  %v4491_v3 = vand.u32 2147483647, %v13380_v19  ;;  %v13565_v34 = vsub.f32 1.0, %v4991_v49  ;;  %v13572_v2 = vsub.f32 1.0, %v4489_v61  ;;  %v13588_v49 = vsub.f32 1.0, %v4561_v25  ;;  %18634 = vst [vmem:[#allocation129_spill] sm:$0xff] %v13606_v54 }
 0x179   : > { %18622 = vst [vmem:[#allocation117_spill] sm:$0xff] %v13560_v17  ;;  %v13570_v29 = vsub.f32 1.0, %v4488_v39  ;;  %v13592_v61 = vsub.f32 1.0, %v4562_v27  ;;  %v13594_v39 = vsub.f32 1.0, %v4563_v15  ;;  %v13596_v19 = vsub.f32 1.0, %v4632_v30 }
 0x17a   : > { %v13537_v8 = vpop.f32.mrb[74].mxu0  ;;  %v13540_v33 = vpop.f32.mrb[74].mxu1  ;;  %18623 = vst [vmem:[#allocation118_spill] sm:$0xff] %v13565_v34  ;;  %18625 = vst [vmem:[#allocation120_spill] sm:$0xff] %v13572_v2  ;;  %v13582_v9 = vsub.f32 1.0, %v4491_v3 }
 0x17b   : > { %v13543_v51 = vpop.f32.mrb[75].mxu0  ;;  %10246 = vmatmul.mubr.msk.f32.gmra.mrb[180].mxu0 %vm379_vm0, %v12988_v0  ;;  %10254 = vmatmul.mubr.msk.f32.gmra.mrb[180].mxu1 %vm379_vm0, %v12988_v0  ;;  %v13550_v31 = vpop.f32.mrb[75].mxu1  ;;  %v4633_v0 = vand.u32 2147483647, %v13429_v32  ;;  %18624 = vst [vmem:[#allocation119_spill] sm:$0xff] %v13570_v29  ;;  %v13580_v32 = vsub.f32 1.0, %v4490_v50 }
 0x17c   : > { %2972 = vmatprep.mubr.f32.mxu0 %v18508_v60  ;;  %3085 = vmatprep.mubr.f32.mxu1 %v18508_v60  ;;  %18627 = vst [vmem:[#allocation122_spill] sm:$0xff] %v13582_v9  ;;  %18629 = vst [vmem:[#allocation124_spill] sm:$0xff] %v13588_v49  ;;  %v4635_v3 = vand.u32 2147483647, %v13439_v6  ;;  %v4704_v10 = vand.u32 2147483647, %v13467_v35 }
 0x17d   : > { %18626 = vst [vmem:[#allocation121_spill] sm:$0xff] %v13580_v32  ;;  %18630 = vst [vmem:[#allocation125_spill] sm:$0xff] %v13592_v61  ;;  %v4705_v6 = vand.u32 2147483647, %v13479_v59  ;;  %v4706_v49 = vand.u32 2147483647, %v13473_v53 }
 0x17e   : > { %v13563_v13 = vpop.f32.mrb[76].mxu0  ;;  %v13568_v62 = vpop.f32.mrb[76].mxu1  ;;  %18631 = vst [vmem:[#allocation126_spill] sm:$0xff] %v13594_v39  ;;  %18632 = vst [vmem:[#allocation127_spill] sm:$0xff] %v13596_v19  ;;  %v13631_v9 = vsub.f32 1.0, %v4635_v3  ;;  %v13633_v2 = vsub.f32 1.0, %v4704_v10 }
 0x17f   : > { %v13574_v45 = vpop.f32.mrb[77].mxu0  ;;  %10247 = vmatmul.mubr.msk.f32.gmra.mrb[182].mxu0 %vm379_vm0, %v13030_v38  ;;  %10255 = vmatmul.mubr.msk.f32.gmra.mrb[182].mxu1 %vm379_vm0, %v13030_v38  ;;  %v13584_v26 = vpop.f32.mrb[77].mxu1  ;;  %v13598_v38 = vsub.f32 1.0, %v4633_v0  ;;  %v4776_v50 = vand.u32 2147483647, %v13508_v23 }
 0x180   : > { %2978 = vmatprep.mubr.f32.mxu0 %v18508_v60  ;;  %3091 = vmatprep.mubr.f32.mxu1 %v18508_v60  ;;  %18635 = vst [vmem:[#allocation130_spill] sm:$0xff] %v13631_v9  ;;  %18636 = vst [vmem:[#allocation131_spill] sm:$0xff] %v13633_v2  ;;  %v4707_v59 = vand.u32 2147483647, %v13489_v7  ;;  %v4777_v10 = vand.u32 2147483647, %v13514_v46 }
 0x181   : > { %18633 = vst [vmem:[#allocation128_spill] sm:$0xff] %v13598_v38  ;;  %v4778_v53 = vand.u32 2147483647, %v13510_v57  ;;  %v4779_v23 = vand.u32 2147483647, %v13522_v36 }
 0x182   : > { %v13604_v56 = vpop.f32.mrb[78].mxu0  ;;  %v13608_v27 = vpop.f32.mrb[78].mxu1  ;;  %v4848_v35 = vand.u32 2147483647, %v13537_v8  ;;  %v4849_v15 = vand.u32 2147483647, %v13543_v51 }
 0x183   : > { %v13612_v0 = vpop.f32.mrb[79].mxu0  ;;  %10248 = vmatmul.mubr.msk.f32.gmra.mrb[184].mxu0 %vm379_vm0, %v13067_v63  ;;  %10256 = vmatmul.mubr.msk.f32.gmra.mrb[184].mxu1 %vm379_vm0, %v13067_v63  ;;  %v13620_v12 = vpop.f32.mrb[79].mxu1  ;;  %v13659_v63 = vsub.f32 1.0, %v4705_v6  ;;  %v4851_v38 = vand.u32 2147483647, %v13550_v31  ;;  %v13675_v51 = vsub.f32 1.0, %v4706_v49 }
 0x184   : > { %2984 = vmatprep.mubr.f32.mxu0 %v18508_v60  ;;  %3097 = vmatprep.mubr.f32.mxu1 %v18508_v60  ;;  %v4920_v36 = vand.u32 2147483647, %v13563_v13  ;;  %v13679_v8 = vsub.f32 1.0, %v4776_v50  ;;  %v13681_v31 = vsub.f32 1.0, %v4777_v10  ;;  %v13685_v13 = vsub.f32 1.0, %v4707_v59 }
 0x185   : > { %18637 = vst [vmem:[#allocation132_spill] sm:$0xff] %v13659_v63  ;;  %18638 = vst [vmem:[#allocation133_spill] sm:$0xff] %v13675_v51  ;;  %v13687_v6 = vsub.f32 1.0, %v4778_v53  ;;  %v13689_v57 = vsub.f32 1.0, %v4848_v35  ;;  %v13693_v49 = vsub.f32 1.0, %v4779_v23  ;;  %v13701_v9 = vsub.f32 1.0, %v4851_v38 }
 0x186   : > { %v13635_v25 = vpop.f32.mrb[80].mxu0  ;;  %v13639_v55 = vpop.f32.mrb[80].mxu1  ;;  %18639 = vst [vmem:[#allocation134_spill] sm:$0xff] %v13679_v8  ;;  %18640 = vst [vmem:[#allocation135_spill] sm:$0xff] %v13681_v31  ;;  %v4921_v10 = vand.u32 2147483647, %v13574_v45 }
 0x187   : > { %v13642_v30 = vpop.f32.mrb[81].mxu0  ;;  %10249 = vmatmul.mubr.msk.f32.gmra.mrb[186].mxu0 %vm379_vm0, %v13097_v24  ;;  %10257 = vmatmul.mubr.msk.f32.gmra.mrb[186].mxu1 %vm379_vm0, %v13097_v24  ;;  %v13649_v3 = vpop.f32.mrb[81].mxu1  ;;  %v4850_v24 = vand.u32 2147483647, %v13540_v33  ;;  %18641 = vst [vmem:[#allocation136_spill] sm:$0xff] %v13685_v13  ;;  %18642 = vst [vmem:[#allocation137_spill] sm:$0xff] %v13687_v6 }
 0x188   : > { %2990 = vmatprep.mubr.f32.mxu0 %v18508_v60  ;;  %3103 = vmatprep.mubr.f32.mxu1 %v18508_v60  ;;  %18643 = vst [vmem:[#allocation138_spill] sm:$0xff] %v13689_v57  ;;  %18645 = vst [vmem:[#allocation140_spill] sm:$0xff] %v13693_v49  ;;  %v13705_v53 = vsub.f32 1.0, %v4920_v36  ;;  %v4922_v23 = vand.u32 2147483647, %v13568_v62  ;;  %v359_v63 = vld [vmem:[%s18148_s1 + $0x1a0] sm:$0xff] }
 0x189   : > { %v13695_v46 = vsub.f32 1.0, %v4850_v24  ;;  %18647 = vst [vmem:[#allocation142_spill] sm:$0xff] %v13701_v9  ;;  %v361_v62 = vld [vmem:[%s18148_s1 + $0x1b0] sm:$0xff]  ;;  %v364_v8 = vld [vmem:[%s18148_s1 + $0x1c8] sm:$0xff]  ;;  %v366_v45 = vld [vmem:[%s18148_s1 + $0x1d8] sm:$0xff]  ;;  %v13742_v6 = vsub.f32 1.0, %v4921_v10 }
 0x18a   : > { %v13661_v7 = vpop.f32.mrb[82].mxu0  ;;  %v13665_v54 = vpop.f32.mrb[82].mxu1  ;;  %18648 = vst [vmem:[#allocation143_spill] sm:$0xff] %v13705_v53  ;;  %v4923_v36 = vand.u32 2147483647, %v13584_v26  ;;  %v13755_v57 = vld [vmem:[%s12001_s18] sm:$0xff] }
 0x18b   : > { %v13669_v19 = vpop.f32.mrb[83].mxu0  ;;  %10250 = vmatmul.mubr.msk.f32.gmra.mrb[188].mxu0 %vm379_vm0, %v13133_v28  ;;  %10258 = vmatmul.mubr.msk.f32.gmra.mrb[188].mxu1 %vm379_vm0, %v13133_v28  ;;  %v13677_v33 = vpop.f32.mrb[83].mxu1  ;;  %v13691_v28 = vsub.f32 1.0, %v4849_v15  ;;  %18646 = vst [vmem:[#allocation141_spill] sm:$0xff] %v13695_v46  ;;  %v13710_v15 = vld [vmem:[%s12001_s18 + $0x38] sm:$0xff]  ;;  %18649 = vst [vmem:[#allocation144_spill] sm:$0xff] %v13742_v6 }
 0x18c   : > { %2996 = vmatprep.mubr.f32.mxu0 %v18508_v60  ;;  %3109 = vmatprep.mubr.f32.mxu1 %v18508_v60  ;;  %v4992_v50 = vand.u32 2147483647, %v13604_v56  ;;  %v13761_v10 = vsub.f32 1.0, %v4922_v23  ;;  %v4993_v26 = vand.u32 2147483647, %v13612_v0  ;;  %v13784_v51 = vld [vmem:[%s12001_s18 + $0x8] sm:$0xff] }
 0x18d   : > { %18644 = vst [vmem:[#allocation139_spill] sm:$0xff] %v13691_v28  ;;  %v4994_v56 = vand.u32 2147483647, %v13608_v27  ;;  %v4995_v31 = vand.u32 2147483647, %v13620_v12 }
 0x18e   : > { %v13699_v2 = vpop.f32.mrb[84].mxu0  ;;  %v13703_v59 = vpop.f32.mrb[84].mxu1  ;;  %18650 = vst [vmem:[#allocation145_spill] sm:$0xff] %v13761_v10  ;;  %v4492_v53 = vand.u32 2147483647, %v13635_v25 }
 0x18f   : > { %v13707_v35 = vpop.f32.mrb[85].mxu0  ;;  %10251 = vmatmul.mubr.msk.f32.gmra.mrb[190].mxu0 %vm379_vm0, %v13710_v15  ;;  %10259 = vmatmul.mubr.msk.f32.gmra.mrb[190].mxu1 %vm379_vm0, %v13710_v15  ;;  %v13718_v38 = vpop.f32.mrb[85].mxu1  ;;  %v4493_v9 = vand.u32 2147483647, %v13642_v30  ;;  %v4494_v23 = vand.u32 2147483647, %v13639_v55 }
 0x190   : > { %3180 = vmatprep.mubr.f32.mxu0 %v18508_v60  ;;  %3293 = vmatprep.mubr.f32.mxu1 %v18508_v60  ;;  %v4564_v49 = vand.u32 2147483647, %v13661_v7  ;;  %v4565_v25 = vand.u32 2147483647, %v13669_v19  ;;  %v13790_v55 = vsub.f32 1.0, %v4923_v36  ;;  %v13794_v7 = vsub.f32 1.0, %v4992_v50 }
 0x191   : > { %v13805_v12 = vsub.f32 1.0, %v4493_v9  ;;  %v13807_v36 = vsub.f32 1.0, %v4995_v31  ;;  %v13809_v6 = vsub.f32 1.0, %v4494_v23  ;;  %v4566_v61 = vand.u32 2147483647, %v13665_v54  ;;  %v13825_v9 = vld [vmem:[%s12001_s18 + $0x10] sm:$0xff] }
 0x192   : > { %v13744_v13 = vpop.f32.mrb[86].mxu0  ;;  %v13748_v28 = vpop.f32.mrb[86].mxu1  ;;  %18651 = vst [vmem:[#allocation146_spill] sm:$0xff] %v13790_v55  ;;  %18652 = vst [vmem:[#allocation147_spill] sm:$0xff] %v13794_v7  ;;  %v13811_v50 = vsub.f32 1.0, %v4564_v49  ;;  %v13858_v31 = vld [vmem:[%s12001_s18 + $0x18] sm:$0xff] }
 0x193   : > { %v13752_v46 = vpop.f32.mrb[87].mxu0  ;;  %10260 = vmatmul.mubr.msk.f32.vlgmr.msra.gmra.mrb[192].mxu0 %vm379_vm0, %v13755_v57  ;;  %10268 = vmatmul.mubr.msk.f32.vlgmr.msra.gmra.mrb[192].mxu1 %vm379_vm0, %v13755_v57  ;;  %v13763_v24 = vpop.f32.mrb[87].mxu1  ;;  %18656 = vst [vmem:[#allocation151_spill] sm:$0xff] %v13805_v12  ;;  %18657 = vst [vmem:[#allocation152_spill] sm:$0xff] %v13807_v36  ;;  %v4567_v49 = vand.u32 2147483647, %v13677_v33 }
 0x194   : > { %3343 = vmatpush1.msra.mxu0 %v359_v63  ;;  %3186 = vmatprep.mubr.f32.mxu0 %v18508_v60  ;;  %v4495_v63 = vand.u32 2147483647, %v13649_v3  ;;  %18658 = vst [vmem:[#allocation153_spill] sm:$0xff] %v13809_v6  ;;  %18659 = vst [vmem:[#allocation154_spill] sm:$0xff] %v13811_v50  ;;  %v4637_v19 = vand.u32 2147483647, %v13707_v35 }
 0x195   : > { %3299 = vmatprep.mubr.f32.mxu1 %v18508_v60  ;;  %3456 = vmatpush1.msra.mxu1 %v361_v62  ;;  %v13803_v62 = vsub.f32 1.0, %v4492_v53  ;;  %v13864_v54 = vsub.f32 1.0, %v4567_v49  ;;  %v4638_v35 = vand.u32 2147483647, %v13703_v59  ;;  %v4708_v55 = vand.u32 2147483647, %v13744_v13 }
 0x196   : > { %v13774_v0 = vpop.f32.mrb[88].mxu0  ;;  %3568 = vmatprep.subr.mxu0 %v364_v8  ;;  %v13777_v27 = vpop.f32.mrb[88].mxu1  ;;  %3681 = vmatprep.subr.mxu1 %v366_v45  ;;  %v13796_v8 = vsub.f32 1.0, %v4993_v26  ;;  %v13801_v45 = vsub.f32 1.0, %v4994_v56  ;;  %v13815_v39 = vsub.f32 1.0, %v4495_v63  ;;  %v13820_v56 = vsub.f32 1.0, %v4565_v25 }
 0x197   : > { %v13781_v30 = vpop.f32.mrb[89].mxu0  ;;  %10261 = vmatmul.mubr.msk.f32.gmra.mrb[194].mxu0 %vm379_vm0, %v13784_v51  ;;  %10269 = vmatmul.mubr.msk.f32.gmra.mrb[194].mxu1 %vm379_vm0, %v13784_v51  ;;  %v13792_v3 = vpop.f32.mrb[89].mxu1  ;;  %18655 = vst [vmem:[#allocation150_spill] sm:$0xff] %v13803_v62  ;;  %v4636_v25 = vand.u32 2147483647, %v13699_v2  ;;  %18663 = vst [vmem:[#allocation158_spill] sm:$0xff] %v13864_v54 }
 0x198   : > { %18653 = vst [vmem:[#allocation148_spill] sm:$0xff] %v13796_v8  ;;  %3192 = vmatprep.mubr.f32.mxu0 %v18508_v60  ;;  %3305 = vmatprep.mubr.f32.mxu1 %v18508_v60  ;;  %18654 = vst [vmem:[#allocation149_spill] sm:$0xff] %v13801_v45  ;;  %v13850_v8 = vsub.f32 1.0, %v4566_v61  ;;  %v13871_v10 = vsub.f32 1.0, %v4637_v19  ;;  %v4639_v33 = vand.u32 2147483647, %v13718_v38 }
 0x199   : > { %18660 = vst [vmem:[#allocation155_spill] sm:$0xff] %v13815_v39  ;;  %18661 = vst [vmem:[#allocation156_spill] sm:$0xff] %v13820_v56  ;;  %v13869_v2 = vsub.f32 1.0, %v4636_v25  ;;  %v4709_v49 = vand.u32 2147483647, %v13752_v46  ;;  %v13889_v12 = vld [vmem:[%s12001_s18 + $0x20] sm:$0xff] }
 0x19a   : > { %v13813_v26 = vpop.f32.mrb[90].mxu0  ;;  %v13818_v32 = vpop.f32.mrb[90].mxu1  ;;  %18662 = vst [vmem:[#allocation157_spill] sm:$0xff] %v13850_v8  ;;  %18665 = vst [vmem:[#allocation160_spill] sm:$0xff] %v13871_v10  ;;  %v4710_v56 = vand.u32 2147483647, %v13748_v28 }
 0x19b   : > { %v13822_v53 = vpop.f32.mrb[91].mxu0  ;;  %10262 = vmatmul.mubr.msk.f32.gmra.mrb[196].mxu0 %vm379_vm0, %v13825_v9  ;;  %10270 = vmatmul.mubr.msk.f32.gmra.mrb[196].mxu1 %vm379_vm0, %v13825_v9  ;;  %v13833_v23 = vpop.f32.mrb[91].mxu1  ;;  %18664 = vst [vmem:[#allocation159_spill] sm:$0xff] %v13869_v2  ;;  %v4711_v59 = vand.u32 2147483647, %v13763_v24  ;;  %v13896_v28 = vsub.f32 1.0, %v4638_v35 }
 0x19c   : > { %3198 = vmatprep.mubr.f32.mxu0 %v18508_v60  ;;  %3311 = vmatprep.mubr.f32.mxu1 %v18508_v60  ;;  %v4780_v50 = vand.u32 2147483647, %v13774_v0  ;;  %v4781_v25 = vand.u32 2147483647, %v13781_v30  ;;  %v4782_v38 = vand.u32 2147483647, %v13777_v27 }
 0x19d   : > { %18666 = vst [vmem:[#allocation161_spill] sm:$0xff] %v13896_v28  ;;  %v13906_v36 = vsub.f32 1.0, %v4639_v33  ;;  %v13908_v46 = vsub.f32 1.0, %v4708_v55  ;;  %v13910_v35 = vsub.f32 1.0, %v4709_v49  ;;  %v13912_v27 = vsub.f32 1.0, %v4710_v56  ;;  %v13929_v49 = vld [vmem:[%s12001_s18 + $0x28] sm:$0xff] }
 0x19e   : > { %v13846_v63 = vpop.f32.mrb[92].mxu0  ;;  %v13852_v7 = vpop.f32.mrb[92].mxu1  ;;  %v13914_v8 = vsub.f32 1.0, %v4711_v59  ;;  %v13916_v0 = vsub.f32 1.0, %v4780_v50  ;;  %v13918_v30 = vsub.f32 1.0, %v4781_v25  ;;  %v13936_v56 = vsub.f32 1.0, %v4782_v38 }
 0x19f   : > { %v13855_v62 = vpop.f32.mrb[93].mxu0  ;;  %10263 = vmatmul.mubr.msk.f32.gmra.mrb[198].mxu0 %vm379_vm0, %v13858_v31  ;;  %10271 = vmatmul.mubr.msk.f32.gmra.mrb[198].mxu1 %vm379_vm0, %v13858_v31  ;;  %v13867_v61 = vpop.f32.mrb[93].mxu1  ;;  %18667 = vst [vmem:[#allocation162_spill] sm:$0xff] %v13906_v36  ;;  %18668 = vst [vmem:[#allocation163_spill] sm:$0xff] %v13908_v46  ;;  %v4783_v2 = vand.u32 2147483647, %v13792_v3 }
 0x1a0   : > { %3204 = vmatprep.mubr.f32.mxu0 %v18508_v60  ;;  %3317 = vmatprep.mubr.f32.mxu1 %v18508_v60  ;;  %18669 = vst [vmem:[#allocation164_spill] sm:$0xff] %v13910_v35  ;;  %18670 = vst [vmem:[#allocation165_spill] sm:$0xff] %v13912_v27  ;;  %v4852_v33 = vand.u32 2147483647, %v13813_v26  ;;  %v4853_v3 = vand.u32 2147483647, %v13822_v53 }
 0x1a1   : > { %18671 = vst [vmem:[#allocation166_spill] sm:$0xff] %v13914_v8  ;;  %18672 = vst [vmem:[#allocation167_spill] sm:$0xff] %v13916_v0  ;;  %v4854_v26 = vand.u32 2147483647, %v13818_v32  ;;  %v4855_v25 = vand.u32 2147483647, %v13833_v23 }
 0x1a2   : > { %v13882_v19 = vpop.f32.mrb[94].mxu0  ;;  %v13884_v39 = vpop.f32.mrb[94].mxu1  ;;  %18673 = vst [vmem:[#allocation168_spill] sm:$0xff] %v13918_v30  ;;  %18674 = vst [vmem:[#allocation169_spill] sm:$0xff] %v13936_v56  ;;  %v13954_v17 = vsub.f32 1.0, %v4783_v2  ;;  %v13958_v23 = vsub.f32 1.0, %v4852_v33 }
 0x1a3   : > { %v13886_v13 = vpop.f32.mrb[95].mxu0  ;;  %10264 = vmatmul.mubr.msk.f32.gmra.mrb[200].mxu0 %vm379_vm0, %v13889_v12  ;;  %10272 = vmatmul.mubr.msk.f32.gmra.mrb[200].mxu1 %vm379_vm0, %v13889_v12  ;;  %v13899_v24 = vpop.f32.mrb[95].mxu1  ;;  %v4924_v54 = vand.u32 2147483647, %v13846_v63  ;;  %v13964_v38 = vld [vmem:[%s12001_s18 + $0x30] sm:$0xff]  ;;  %v13973_v28 = vsub.f32 1.0, %v4853_v3 }
 0x1a4   : > { %3210 = vmatprep.mubr.f32.mxu0 %v18508_v60  ;;  %3323 = vmatprep.mubr.f32.mxu1 %v18508_v60  ;;  %18675 = vst [vmem:[#allocation170_spill] sm:$0xff] %v13954_v17  ;;  %18676 = vst [vmem:[#allocation171_spill] sm:$0xff] %v13958_v23  ;;  %v4925_v33 = vand.u32 2147483647, %v13855_v62  ;;  %v13978_v63 = vsub.f32 1.0, %v4854_v26  ;;  %v13980_v34 = vsub.f32 1.0, %v4855_v25 }
 0x1a5   : > { %18677 = vst [vmem:[#allocation172_spill] sm:$0xff] %v13973_v28  ;;  %v4996_v50 = vand.u32 2147483647, %v13882_v19  ;;  %v4926_v30 = vand.u32 2147483647, %v13852_v7  ;;  %v13991_v8 = vsub.f32 1.0, %v4924_v54 }
 0x1a6   : > { %v13920_v10 = vpop.f32.mrb[96].mxu0  ;;  %v13923_v45 = vpop.f32.mrb[96].mxu1  ;;  %18678 = vst [vmem:[#allocation173_spill] sm:$0xff] %v13978_v63  ;;  %18679 = vst [vmem:[#allocation174_spill] sm:$0xff] %v13980_v34  ;;  %v4927_v53 = vand.u32 2147483647, %v13867_v61 }
 0x1a7   : > { %v13926_v55 = vpop.f32.mrb[97].mxu0  ;;  %10265 = vmatmul.mubr.msk.f32.gmra.mrb[202].mxu0 %vm379_vm0, %v13929_v49  ;;  %10273 = vmatmul.mubr.msk.f32.gmra.mrb[202].mxu1 %vm379_vm0, %v13929_v49  ;;  %v13938_v59 = vpop.f32.mrb[97].mxu1  ;;  %v4997_v56 = vand.u32 2147483647, %v13886_v13  ;;  %v4998_v62 = vand.u32 2147483647, %v13884_v39 }
 0x1a8   : > { %3216 = vmatprep.mubr.f32.mxu0 %v18508_v60  ;;  %3329 = vmatprep.mubr.f32.mxu1 %v18508_v60  ;;  %18680 = vst [vmem:[#allocation175_spill] sm:$0xff] %v13991_v8  ;;  %v4999_v61 = vand.u32 2147483647, %v13899_v24  ;;  %v363_v54 = vld [vmem:[%s18148_s1 + $0x1c0] sm:$0xff]  ;;  %v365_v24 = vld [vmem:[%s18148_s1 + $0x1d0] sm:$0xff]  ;;  %v14015_v17 = vsub.f32 1.0, %v4925_v33 }
 0x1a9   : > { %v14017_v39 = vsub.f32 1.0, %v4996_v50  ;;  %v14019_v13 = vsub.f32 1.0, %v4926_v30  ;;  %v14021_v28 = vsub.f32 1.0, %v4927_v53  ;;  %v368_v23 = vld [vmem:[%s18148_s1 + $0x1e8] sm:$0xff]  ;;  %v370_v7 = vld [vmem:[%s18148_s1 + $0x1f8] sm:$0xff]  ;;  %v14029_v25 = vsub.f32 1.0, %v4997_v56 }
 0x1aa   : > { %v13951_v29 = vpop.f32.mrb[98].mxu0  ;;  %v13956_v32 = vpop.f32.mrb[98].mxu1  ;;  %18681 = vst [vmem:[#allocation176_spill] sm:$0xff] %v14015_v17  ;;  %v4496_v34 = vand.u32 2147483647, %v13920_v10  ;;  %v14034_v50 = vsub.f32 1.0, %v4998_v62 }
 0x1ab   : > { %v13961_v6 = vpop.f32.mrb[99].mxu0  ;;  %10266 = vmatmul.mubr.msk.f32.gmra.mrb[204].mxu0 %vm379_vm0, %v13964_v38  ;;  %10274 = vmatmul.mubr.msk.f32.gmra.mrb[204].mxu1 %vm379_vm0, %v13964_v38  ;;  %v13971_v2 = vpop.f32.mrb[99].mxu1  ;;  %18682 = vst [vmem:[#allocation177_spill] sm:$0xff] %v14017_v39  ;;  %18683 = vst [vmem:[#allocation178_spill] sm:$0xff] %v14019_v13  ;;  %v4497_v63 = vand.u32 2147483647, %v13926_v55 }
 0x1ac   : > { %3222 = vmatprep.mubr.f32.mxu0 %v18508_v60  ;;  %3335 = vmatprep.mubr.f32.mxu1 %v18508_v60  ;;  %18684 = vst [vmem:[#allocation179_spill] sm:$0xff] %v14021_v28  ;;  %18685 = vst [vmem:[#allocation180_spill] sm:$0xff] %v14029_v25  ;;  %v14046_v56 = vsub.f32 1.0, %v4999_v61  ;;  %v4568_v62 = vand.u32 2147483647, %v13951_v29 }
 0x1ad   : > { %18686 = vst [vmem:[#allocation181_spill] sm:$0xff] %v14034_v50  ;;  %v4498_v53 = vand.u32 2147483647, %v13923_v45  ;;  %v4499_v55 = vand.u32 2147483647, %v13938_v59 }
 0x1ae   : > { %v13986_v3 = vpop.f32.mrb[100].mxu0  ;;  %v13989_v0 = vpop.f32.mrb[100].mxu1  ;;  %18687 = vst [vmem:[#allocation182_spill] sm:$0xff] %v14046_v56  ;;  %v4569_v27 = vand.u32 2147483647, %v13961_v6  ;;  %v14067_v6 = vsub.f32 1.0, %v4496_v34 }
 0x1af   : > { %v13993_v26 = vpop.f32.mrb[101].mxu0  ;;  %10267 = vmatmul.mubr.msk.f32.gmra.mrb[206].mxu0 %vm379_vm0, %v13710_v15  ;;  %10275 = vmatmul.mubr.msk.f32.gmra.mrb[206].mxu1 %vm379_vm0, %v13710_v15  ;;  %v14001_v19 = vpop.f32.mrb[101].mxu1  ;;  %v4570_v46 = vand.u32 2147483647, %v13956_v32  ;;  %v14081_v59 = vsub.f32 1.0, %v4568_v62  ;;  %v14085_v34 = vsub.f32 1.0, %v4498_v53 }
 0x1b0   : > { %3406 = vmatprep.mubr.f32.mxu0 %v18508_v60  ;;  %3519 = vmatprep.mubr.f32.mxu1 %v18508_v60  ;;  %18688 = vst [vmem:[#allocation183_spill] sm:$0xff] %v14067_v6  ;;  %v14089_v29 = vsub.f32 1.0, %v4569_v27  ;;  %v4640_v32 = vand.u32 2147483647, %v13986_v3  ;;  %v4642_v62 = vand.u32 2147483647, %v13989_v0 }
 0x1b1   : > { %18690 = vst [vmem:[#allocation185_spill] sm:$0xff] %v14081_v59  ;;  %18691 = vst [vmem:[#allocation186_spill] sm:$0xff] %v14085_v34  ;;  %v14093_v45 = vsub.f32 1.0, %v4570_v46  ;;  %v4643_v56 = vand.u32 2147483647, %v14001_v19 }
 0x1b2   : > { %v14032_v33 = vpop.f32.mrb[102].mxu0  ;;  %v14036_v30 = vpop.f32.mrb[102].mxu1  ;;  %18693 = vst [vmem:[#allocation188_spill] sm:$0xff] %v14089_v29  ;;  %v14118_v53 = vsub.f32 1.0, %v4640_v32  ;;  %v14126_v3 = vsub.f32 1.0, %v4642_v62 }
 0x1b3   : > { %v14040_v35 = vpop.f32.mrb[103].mxu0  ;;  %10276 = vmatmul.mubr.msk.f32.vlgmr.msra.gmra.mrb[208].mxu0 %vm379_vm0, %v13755_v57  ;;  %10284 = vmatmul.mubr.msk.f32.vlgmr.msra.gmra.mrb[208].mxu1 %vm379_vm0, %v13755_v57  ;;  %v14048_v10 = vpop.f32.mrb[103].mxu1  ;;  %18694 = vst [vmem:[#allocation189_spill] sm:$0xff] %v14093_v45  ;;  %v14128_v59 = vsub.f32 1.0, %v4643_v56  ;;  %v4714_v32 = vand.u32 2147483647, %v14036_v30 }
 0x1b4   : > { %3569 = vmatpush1.msra.mxu0 %v363_v54  ;;  %3412 = vmatprep.mubr.f32.mxu0 %v18508_v60  ;;  %18696 = vst [vmem:[#allocation191_spill] sm:$0xff] %v14118_v53  ;;  %v4713_v0 = vand.u32 2147483647, %v14040_v35  ;;  %18698 = vst [vmem:[#allocation193_spill] sm:$0xff] %v14126_v3 }
 0x1b5   : > { %3525 = vmatprep.mubr.f32.mxu1 %v18508_v60  ;;  %3682 = vmatpush1.msra.mxu1 %v365_v24  ;;  %v4571_v24 = vand.u32 2147483647, %v13971_v2  ;;  %v4641_v2 = vand.u32 2147483647, %v13993_v26  ;;  %18699 = vst [vmem:[#allocation194_spill] sm:$0xff] %v14128_v59 }
 0x1b6   : > { %v14061_v36 = vpop.f32.mrb[104].mxu0  ;;  %3794 = vmatprep.subr.mxu0 %v368_v23  ;;  %v14065_v8 = vpop.f32.mrb[104].mxu1  ;;  %3907 = vmatprep.subr.mxu1 %v370_v7  ;;  %v14079_v23 = vsub.f32 1.0, %v4497_v63  ;;  %v14087_v7 = vsub.f32 1.0, %v4499_v55  ;;  %v4712_v55 = vand.u32 2147483647, %v14032_v33 }
 0x1b7   : > { %v14069_v61 = vpop.f32.mrb[105].mxu0  ;;  %10277 = vmatmul.mubr.msk.f32.gmra.mrb[210].mxu0 %vm379_vm0, %v13784_v51  ;;  %10285 = vmatmul.mubr.msk.f32.gmra.mrb[210].mxu1 %vm379_vm0, %v13784_v51  ;;  %v14077_v54 = vpop.f32.mrb[105].mxu1  ;;  %v14107_v46 = vsub.f32 1.0, %v4571_v24  ;;  %v14120_v24 = vsub.f32 1.0, %v4641_v2  ;;  %v4784_v56 = vand.u32 2147483647, %v14061_v36 }
 0x1b8   : > { %18689 = vst [vmem:[#allocation184_spill] sm:$0xff] %v14079_v23  ;;  %3418 = vmatprep.mubr.f32.mxu0 %v18508_v60  ;;  %3531 = vmatprep.mubr.f32.mxu1 %v18508_v60  ;;  %18692 = vst [vmem:[#allocation187_spill] sm:$0xff] %v14087_v7  ;;  %v14132_v26 = vsub.f32 1.0, %v4712_v55  ;;  %v4785_v62 = vand.u32 2147483647, %v14069_v61  ;;  %v14159_v7 = vsub.f32 1.0, %v4713_v0 }
 0x1b9   : > { %18695 = vst [vmem:[#allocation190_spill] sm:$0xff] %v14107_v46  ;;  %18697 = vst [vmem:[#allocation192_spill] sm:$0xff] %v14120_v24  ;;  %v4715_v55 = vand.u32 2147483647, %v14048_v10  ;;  %v4786_v6 = vand.u32 2147483647, %v14065_v8 }
 0x1ba   : > { %v1856_v63 = vpop.f32.mrb[106].mxu0  ;;  %v14097_v25 = vpop.f32.mrb[106].mxu1  ;;  %18700 = vst [vmem:[#allocation195_spill] sm:$0xff] %v14132_v26  ;;  %v4787_v29 = vand.u32 2147483647, %v14077_v54  ;;  %18701 = vst [vmem:[#allocation196_spill] sm:$0xff] %v14159_v7 }
 0x1bb   : > { %v14101_v50 = vpop.f32.mrb[107].mxu0  ;;  %10278 = vmatmul.mubr.msk.f32.gmra.mrb[212].mxu0 %vm379_vm0, %v13825_v9  ;;  %10286 = vmatmul.mubr.msk.f32.gmra.mrb[212].mxu1 %vm379_vm0, %v13825_v9  ;;  %v14109_v27 = vpop.f32.mrb[107].mxu1  ;;  %v4856_v33 = vand.u32 2147483647, %v1856_v63  ;;  %v14168_v8 = vsub.f32 1.0, %v4714_v32  ;;  %v14173_v30 = vsub.f32 1.0, %v4784_v56 }
 0x1bc   : > { %3424 = vmatprep.mubr.f32.mxu0 %v18508_v60  ;;  %3537 = vmatprep.mubr.f32.mxu1 %v18508_v60  ;;  %v4857_v10 = vand.u32 2147483647, %v14101_v50  ;;  %v14175_v0 = vsub.f32 1.0, %v4785_v62  ;;  %v14179_v50 = vsub.f32 1.0, %v4715_v55  ;;  %v14183_v35 = vsub.f32 1.0, %v4786_v6 }
 0x1bd   : > { %18702 = vst [vmem:[#allocation197_spill] sm:$0xff] %v14168_v8  ;;  %18703 = vst [vmem:[#allocation198_spill] sm:$0xff] %v14173_v30  ;;  %v14181_v36 = vsub.f32 1.0, %v4856_v33  ;;  %v14185_v32 = vsub.f32 1.0, %v4787_v29  ;;  %v4858_v59 = vand.u32 2147483647, %v14097_v25 }
 0x1be   : > { %v14124_v23 = vpop.f32.mrb[108].mxu0  ;;  %v14130_v39 = vpop.f32.mrb[108].mxu1  ;;  %18704 = vst [vmem:[#allocation199_spill] sm:$0xff] %v14175_v0  ;;  %18705 = vst [vmem:[#allocation200_spill] sm:$0xff] %v14179_v50  ;;  %v4859_v62 = vand.u32 2147483647, %v14109_v27 }
 0x1bf   : > { %v14134_v19 = vpop.f32.mrb[109].mxu0  ;;  %10279 = vmatmul.mubr.msk.f32.gmra.mrb[214].mxu0 %vm379_vm0, %v13858_v31  ;;  %10287 = vmatmul.mubr.msk.f32.gmra.mrb[214].mxu1 %vm379_vm0, %v13858_v31  ;;  %v14142_v2 = vpop.f32.mrb[109].mxu1  ;;  %18706 = vst [vmem:[#allocation201_spill] sm:$0xff] %v14181_v36  ;;  %18707 = vst [vmem:[#allocation202_spill] sm:$0xff] %v14183_v35  ;;  %v4928_v61 = vand.u32 2147483647, %v14124_v23 }
 0x1c0   : > { %3430 = vmatprep.mubr.f32.mxu0 %v18508_v60  ;;  %3543 = vmatprep.mubr.f32.mxu1 %v18508_v60  ;;  %18708 = vst [vmem:[#allocation203_spill] sm:$0xff] %v14185_v32  ;;  %v14193_v3 = vsub.f32 1.0, %v4857_v10  ;;  %v4929_v33 = vand.u32 2147483647, %v14134_v19  ;;  %v14211_v7 = vsub.f32 1.0, %v4858_v59  ;;  %v14217_v6 = vsub.f32 1.0, %v4859_v62 }
 0x1c1   : > { %v14213_v53 = vsub.f32 1.0, %v4928_v61  ;;  %v4930_v0 = vand.u32 2147483647, %v14130_v39  ;;  %v4931_v59 = vand.u32 2147483647, %v14142_v2  ;;  %v372_v2 = vld [vmem:[%s18148_s1 + $0x208] sm:$0xff] }
 0x1c2   : > { %v14153_v46 = vpop.f32.mrb[110].mxu0  ;;  %v14157_v45 = vpop.f32.mrb[110].mxu1  ;;  %18709 = vst [vmem:[#allocation204_spill] sm:$0xff] %v14193_v3  ;;  %18710 = vst [vmem:[#allocation205_spill] sm:$0xff] %v14211_v7  ;;  %v14223_v23 = vsub.f32 1.0, %v4929_v33 }
 0x1c3   : > { %v14162_v63 = vpop.f32.mrb[111].mxu0  ;;  %10280 = vmatmul.mubr.msk.f32.gmra.mrb[216].mxu0 %vm379_vm0, %v13889_v12  ;;  %10288 = vmatmul.mubr.msk.f32.gmra.mrb[216].mxu1 %vm379_vm0, %v13889_v12  ;;  %v14170_v54 = vpop.f32.mrb[111].mxu1  ;;  %18711 = vst [vmem:[#allocation206_spill] sm:$0xff] %v14213_v53  ;;  %18712 = vst [vmem:[#allocation207_spill] sm:$0xff] %v14217_v6  ;;  %v5000_v39 = vand.u32 2147483647, %v14153_v46 }
 0x1c4   : > { %3436 = vmatprep.mubr.f32.mxu0 %v18508_v60  ;;  %3549 = vmatprep.mubr.f32.mxu1 %v18508_v60  ;;  %18713 = vst [vmem:[#allocation208_spill] sm:$0xff] %v14223_v23  ;;  %v5001_v62 = vand.u32 2147483647, %v14162_v63  ;;  %v5002_v33 = vand.u32 2147483647, %v14157_v45  ;;  %v14245_v32 = vsub.f32 1.0, %v4930_v0 }
 0x1c5   : > { %v5003_v10 = vand.u32 2147483647, %v14170_v54  ;;  %v14260_v0 = vsub.f32 1.0, %v5000_v39  ;;  %v14269_v46 = vsub.f32 1.0, %v4931_v59  ;;  %v374_v59 = vld [vmem:[%s18148_s1 + $0x218] sm:$0xff] }
 0x1c6   : > { %v2052_v56 = vpop.f32.mrb[112].mxu0  ;;  %v14190_v26 = vpop.f32.mrb[112].mxu1  ;;  %18714 = vst [vmem:[#allocation209_spill] sm:$0xff] %v14245_v32  ;;  %v14262_v3 = vsub.f32 1.0, %v5001_v62  ;;  %v14278_v62 = vsub.f32 1.0, %v5002_v33 }
 0x1c7   : > { %v2054_v55 = vpop.f32.mrb[113].mxu0  ;;  %10281 = vmatmul.mubr.msk.f32.gmra.mrb[218].mxu0 %vm379_vm0, %v13929_v49  ;;  %10289 = vmatmul.mubr.msk.f32.gmra.mrb[218].mxu1 %vm379_vm0, %v13929_v49  ;;  %v14200_v25 = vpop.f32.mrb[113].mxu1  ;;  %v4500_v27 = vand.u32 2147483647, %v2052_v56  ;;  %v4502_v45 = vand.u32 2147483647, %v14190_v26 }
 0x1c8   : > { %3442 = vmatprep.mubr.f32.mxu0 %v18508_v60  ;;  %3555 = vmatprep.mubr.f32.mxu1 %v18508_v60  ;;  %v4501_v24 = vand.u32 2147483647, %v2054_v55  ;;  %v4503_v54 = vand.u32 2147483647, %v14200_v25  ;;  %18715 = vst [vmem:[#allocation210_spill] sm:$0xff] %v14260_v0  ;;  %18716 = vst [vmem:[#allocation211_spill] sm:$0xff] %v14262_v3 }
 0x1c9   : > { %18717 = vst [vmem:[#allocation212_spill] sm:$0xff] %v14269_v46  ;;  %v369_v26 = vld [vmem:[%s18148_s1 + $0x1f0] sm:$0xff]  ;;  %v14274_v25 = vsub.f32 1.0, %v4500_v27  ;;  %18720 = vst [vmem:[#allocation215_spill] sm:$0xff] %v14278_v62  ;;  %v14280_v55 = vsub.f32 1.0, %v5003_v10  ;;  %v14296_v10 = vsub.f32 1.0, %v4502_v45 }
 0x1ca   : > { %v14215_v29 = vpop.f32.mrb[114].mxu0  ;;  %v14220_v30 = vpop.f32.mrb[114].mxu1  ;;  %v14276_v39 = vsub.f32 1.0, %v4501_v24  ;;  %v14298_v33 = vsub.f32 1.0, %v4503_v54  ;;  %v14589_v62 = vld [vmem:[%s12001_s18 + $0x18] sm:$0xff] }
 0x1cb   : > { %v14225_v19 = vpop.f32.mrb[115].mxu0  ;;  %10282 = vmatmul.mubr.msk.f32.gmra.mrb[220].mxu0 %vm379_vm0, %v13964_v38  ;;  %10290 = vmatmul.mubr.msk.f32.gmra.mrb[220].mxu1 %vm379_vm0, %v13964_v38  ;;  %v14232_v61 = vpop.f32.mrb[115].mxu1  ;;  %18718 = vst [vmem:[#allocation213_spill] sm:$0xff] %v14274_v25  ;;  %18721 = vst [vmem:[#allocation216_spill] sm:$0xff] %v14280_v55  ;;  %v4572_v23 = vand.u32 2147483647, %v14215_v29 }
 0x1cc   : > { %3448 = vmatprep.mubr.f32.mxu0 %v18508_v60  ;;  %3561 = vmatprep.mubr.f32.mxu1 %v18508_v60  ;;  %18719 = vst [vmem:[#allocation214_spill] sm:$0xff] %v14276_v39  ;;  %v4573_v53 = vand.u32 2147483647, %v14225_v19  ;;  %18722 = vst [vmem:[#allocation217_spill] sm:$0xff] %v14296_v10  ;;  %v4574_v7 = vand.u32 2147483647, %v14220_v30 }
 0x1cd   : > { %18723 = vst [vmem:[#allocation218_spill] sm:$0xff] %v14298_v33  ;;  %v4575_v54 = vand.u32 2147483647, %v14232_v61  ;;  %v14313_v29 = vsub.f32 1.0, %v4572_v23 }
 0x1ce   : > { %v14241_v36 = vpop.f32.mrb[116].mxu0  ;;  %v14247_v63 = vpop.f32.mrb[116].mxu1  ;;  %v14327_v61 = vsub.f32 1.0, %v4574_v7 }
 0x1cf   : > { %v14249_v35 = vpop.f32.mrb[117].mxu0  ;;  %10283 = vmatmul.mubr.msk.f32.gmra.mrb[222].mxu0 %vm379_vm0, %v13710_v15  ;;  %10291 = vmatmul.mubr.msk.f32.gmra.mrb[222].mxu1 %vm379_vm0, %v13710_v15  ;;  %v14257_v56 = vpop.f32.mrb[117].mxu1  ;;  %v367_v15 = vld [vmem:[%s18148_s1 + $0x1e0] sm:$0xff]  ;;  %18724 = vst [vmem:[#allocation219_spill] sm:$0xff] %v14313_v29  ;;  %v4644_v19 = vand.u32 2147483647, %v14241_v36 }
 0x1d0   : > { %3632 = vmatprep.mubr.f32.mxu0 %v18508_v60  ;;  %3745 = vmatprep.mubr.f32.mxu1 %v18508_v60  ;;  %18726 = vst [vmem:[#allocation221_spill] sm:$0xff] %v14327_v61  ;;  %v6497_v61 = vld [vmem:[%s14518_s16 + $0x48] sm:$0xff] }
 0x1d1   : > { %v14339_v30 = vsub.f32 1.0, %v4644_v19 }
 0x1d2   : > { %v2070_v27 = vpop.f32.mrb[118].mxu0  ;;  %v14290_v6 = vpop.f32.mrb[118].mxu1 }
 0x1d3   : > { %v2072_v24 = vpop.f32.mrb[119].mxu0  ;;  %10292 = vmatmul.mubr.msk.f32.vlgmr.msra.gmra.mrb[224].mxu0 %vm379_vm0, %v13755_v57  ;;  %10300 = vmatmul.mubr.msk.f32.vlgmr.msra.gmra.mrb[224].mxu1 %vm379_vm0, %v13755_v57  ;;  %v14301_v50 = vpop.f32.mrb[119].mxu1  ;;  %v4716_v57 = vand.u32 2147483647, %v2070_v27  ;;  %v4718_v23 = vand.u32 2147483647, %v14290_v6 }
 0x1d4   : > { %3795 = vmatpush1.msra.mxu0 %v367_v15  ;;  %3638 = vmatprep.mubr.f32.mxu0 %v18508_v60  ;;  %v14315_v15 = vsub.f32 1.0, %v4573_v53  ;;  %18727 = vst [vmem:[#allocation222_spill] sm:$0xff] %v14339_v30  ;;  %v4719_v6 = vand.u32 2147483647, %v14301_v50 }
 0x1d5   : > { %3751 = vmatprep.mubr.f32.mxu1 %v18508_v60  ;;  %3908 = vmatpush1.msra.mxu1 %v369_v26  ;;  %v4646_v26 = vand.u32 2147483647, %v14247_v63  ;;  %v14359_v19 = vsub.f32 1.0, %v4716_v57  ;;  %v14365_v50 = vsub.f32 1.0, %v4718_v23 }
 0x1d6   : > { %18725 = vst [vmem:[#allocation220_spill] sm:$0xff] %v14315_v15  ;;  %v2076_v8 = vpop.f32.mrb[120].mxu0  ;;  %v14318_v3 = vpop.f32.mrb[120].mxu1  ;;  %4020 = vmatprep.subr.mxu0 %v372_v2  ;;  %4133 = vmatprep.subr.mxu1 %v374_v59  ;;  %v4645_v2 = vand.u32 2147483647, %v14249_v35  ;;  %v14341_v35 = vsub.f32 1.0, %v4575_v54 }
 0x1d7   : > { %v2078_v34 = vpop.f32.mrb[121].mxu0  ;;  %10293 = vmatmul.mubr.msk.f32.gmra.mrb[226].mxu0 %vm379_vm0, %v13784_v51  ;;  %10301 = vmatmul.mubr.msk.f32.gmra.mrb[226].mxu1 %vm379_vm0, %v13784_v51  ;;  %v14329_v36 = vpop.f32.mrb[121].mxu1  ;;  %v4647_v59 = vand.u32 2147483647, %v14257_v56  ;;  %v4717_v51 = vand.u32 2147483647, %v2072_v24 }
 0x1d8   : > { %3644 = vmatprep.mubr.f32.mxu0 %v18508_v60  ;;  %3757 = vmatprep.mubr.f32.mxu1 %v18508_v60  ;;  %18728 = vst [vmem:[#allocation223_spill] sm:$0xff] %v14341_v35  ;;  %v4788_v39 = vand.u32 2147483647, %v2076_v8  ;;  %v14352_v56 = vsub.f32 1.0, %v4645_v2  ;;  %v4789_v27 = vand.u32 2147483647, %v2078_v34 }
 0x1d9   : > { %v14357_v24 = vsub.f32 1.0, %v4646_v26  ;;  %18731 = vst [vmem:[#allocation226_spill] sm:$0xff] %v14359_v19  ;;  %v14361_v54 = vsub.f32 1.0, %v4717_v51  ;;  %18734 = vst [vmem:[#allocation229_spill] sm:$0xff] %v14365_v50  ;;  %v4790_v53 = vand.u32 2147483647, %v14318_v3 }
 0x1da   : > { %v2082_v45 = vpop.f32.mrb[122].mxu0  ;;  %v14343_v33 = vpop.f32.mrb[122].mxu1  ;;  %18729 = vst [vmem:[#allocation224_spill] sm:$0xff] %v14352_v56  ;;  %v14370_v29 = vsub.f32 1.0, %v4788_v39  ;;  %v14376_v57 = vsub.f32 1.0, %v4719_v6  ;;  %v14380_v2 = vsub.f32 1.0, %v4789_v27 }
 0x1db   : > { %v2084_v10 = vpop.f32.mrb[123].mxu0  ;;  %10294 = vmatmul.mubr.msk.f32.gmra.mrb[228].mxu0 %vm379_vm0, %v13825_v9  ;;  %10302 = vmatmul.mubr.msk.f32.gmra.mrb[228].mxu1 %vm379_vm0, %v13825_v9  ;;  %v14350_v63 = vpop.f32.mrb[123].mxu1  ;;  %18730 = vst [vmem:[#allocation225_spill] sm:$0xff] %v14357_v24  ;;  %18732 = vst [vmem:[#allocation227_spill] sm:$0xff] %v14361_v54  ;;  %v14363_v9 = vsub.f32 1.0, %v4647_v59  ;;  %v14396_v34 = vsub.f32 1.0, %v4790_v53 }
 0x1dc   : > { %3650 = vmatprep.mubr.f32.mxu0 %v18508_v60  ;;  %3763 = vmatprep.mubr.f32.mxu1 %v18508_v60  ;;  %18735 = vst [vmem:[#allocation230_spill] sm:$0xff] %v14370_v29  ;;  %18736 = vst [vmem:[#allocation231_spill] sm:$0xff] %v14376_v57  ;;  %v4791_v23 = vand.u32 2147483647, %v14329_v36  ;;  %v4860_v3 = vand.u32 2147483647, %v2082_v45 }
 0x1dd   : > { %18733 = vst [vmem:[#allocation228_spill] sm:$0xff] %v14363_v9  ;;  %18737 = vst [vmem:[#allocation232_spill] sm:$0xff] %v14380_v2  ;;  %v4861_v8 = vand.u32 2147483647, %v2084_v10  ;;  %v4862_v27 = vand.u32 2147483647, %v14343_v33 }
 0x1de   : > { %v2088_v7 = vpop.f32.mrb[124].mxu0  ;;  %v2201_v15 = vpop.f32.mrb[124].mxu1  ;;  %18738 = vst [vmem:[#allocation233_spill] sm:$0xff] %v14396_v34  ;;  %v14398_v6 = vsub.f32 1.0, %v4791_v23  ;;  %v14401_v33 = vsub.f32 1.0, %v4860_v3  ;;  %v6492_v24 = vld [vmem:[%s14518_s16 + $0x20] sm:$0xff] }
 0x1df   : > { %v2090_v26 = vpop.f32.mrb[125].mxu0  ;;  %10295 = vmatmul.mubr.msk.f32.gmra.mrb[230].mxu0 %vm379_vm0, %v13858_v31  ;;  %10303 = vmatmul.mubr.msk.f32.gmra.mrb[230].mxu1 %vm379_vm0, %v13858_v31  ;;  %v2203_v59 = vpop.f32.mrb[125].mxu1  ;;  %v4932_v39 = vand.u32 2147483647, %v2088_v7  ;;  %v4863_v45 = vand.u32 2147483647, %v14350_v63 }
 0x1e0   : > { %3656 = vmatprep.mubr.f32.mxu0 %v18508_v60  ;;  %3769 = vmatprep.mubr.f32.mxu1 %v18508_v60  ;;  %18739 = vst [vmem:[#allocation234_spill] sm:$0xff] %v14398_v6  ;;  %18740 = vst [vmem:[#allocation235_spill] sm:$0xff] %v14401_v33  ;;  %v4933_v29 = vand.u32 2147483647, %v2090_v26  ;;  %v4935_v54 = vand.u32 2147483647, %v2203_v59 }
 0x1e1   : > { %v14406_v31 = vsub.f32 1.0, %v4861_v8  ;;  %v14408_v57 = vsub.f32 1.0, %v4862_v27  ;;  %v14420_v8 = vsub.f32 1.0, %v4863_v45  ;;  %v14422_v26 = vsub.f32 1.0, %v4932_v39  ;;  %v6493_v35 = vld [vmem:[%s14518_s16 + $0x28] sm:$0xff] }
 0x1e2   : > { %v2094_v30 = vpop.f32.mrb[126].mxu0  ;;  %v2207_v51 = vpop.f32.mrb[126].mxu1  ;;  %v14424_v59 = vsub.f32 1.0, %v4933_v29 }
 0x1e3   : > { %v2096_v56 = vpop.f32.mrb[127].mxu0  ;;  %10296 = vmatmul.mubr.msk.f32.gmra.mrb[232].mxu0 %vm379_vm0, %v13889_v12  ;;  %10304 = vmatmul.mubr.msk.f32.gmra.mrb[232].mxu1 %vm379_vm0, %v13889_v12  ;;  %v2209_v10 = vpop.f32.mrb[127].mxu1  ;;  %v4934_v12 = vand.u32 2147483647, %v2201_v15  ;;  %18741 = vst [vmem:[#allocation236_spill] sm:$0xff] %v14406_v31  ;;  %18742 = vst [vmem:[#allocation237_spill] sm:$0xff] %v14408_v57 }
 0x1e4   : > { %3662 = vmatprep.mubr.f32.mxu0 %v18508_v60  ;;  %3775 = vmatprep.mubr.f32.mxu1 %v18508_v60  ;;  %v5004_v53 = vand.u32 2147483647, %v2094_v30  ;;  %v5005_v36 = vand.u32 2147483647, %v2096_v56  ;;  %v5006_v7 = vand.u32 2147483647, %v2207_v51 }
 0x1e5   : > { %18743 = vst [vmem:[#allocation238_spill] sm:$0xff] %v14420_v8  ;;  %v5007_v56 = vand.u32 2147483647, %v2209_v10  ;;  %18744 = vst [vmem:[#allocation239_spill] sm:$0xff] %v14422_v26  ;;  %v14426_v27 = vsub.f32 1.0, %v4934_v12  ;;  %v14460_v15 = vld [vmem:[%s12001_s18 + $0x38] sm:$0xff] }
 0x1e6   : > { %v2278_v23 = vpop.f32.mrb[128].mxu0  ;;  %v2391_v50 = vpop.f32.mrb[128].mxu1  ;;  %18745 = vst [vmem:[#allocation240_spill] sm:$0xff] %v14424_v59  ;;  %v14432_v19 = vsub.f32 1.0, %v5004_v53  ;;  %v14437_v10 = vsub.f32 1.0, %v5005_v36  ;;  %v14495_v59 = vld [vmem:[%s12001_s18] sm:$0xff] }
 0x1e7   : > { %v2280_v3 = vpop.f32.mrb[129].mxu0  ;;  %10297 = vmatmul.mubr.msk.f32.gmra.mrb[234].mxu0 %vm379_vm0, %v13929_v49  ;;  %10305 = vmatmul.mubr.msk.f32.gmra.mrb[234].mxu1 %vm379_vm0, %v13929_v49  ;;  %v14414_v63 = vpop.f32.mrb[129].mxu1  ;;  %18746 = vst [vmem:[#allocation241_spill] sm:$0xff] %v14426_v27  ;;  %v14428_v49 = vsub.f32 1.0, %v4935_v54  ;;  %v4504_v39 = vand.u32 2147483647, %v2278_v23 }
 0x1e8   : > { %3668 = vmatprep.mubr.f32.mxu0 %v18508_v60  ;;  %3781 = vmatprep.mubr.f32.mxu1 %v18508_v60  ;;  %18748 = vst [vmem:[#allocation243_spill] sm:$0xff] %v14432_v19  ;;  %18749 = vst [vmem:[#allocation244_spill] sm:$0xff] %v14437_v10  ;;  %v14443_v54 = vsub.f32 1.0, %v5006_v7  ;;  %v4505_v53 = vand.u32 2147483647, %v2280_v3  ;;  %v14448_v2 = vsub.f32 1.0, %v5007_v56 }
 0x1e9   : > { %18747 = vst [vmem:[#allocation242_spill] sm:$0xff] %v14428_v49  ;;  %v4506_v23 = vand.u32 2147483647, %v2391_v50  ;;  %v4507_v57 = vand.u32 2147483647, %v14414_v63  ;;  %v14457_v56 = vsub.f32 1.0, %v4504_v39 }
 0x1ea   : > { %v2284_v30 = vpop.f32.mrb[130].mxu0  ;;  %v14435_v45 = vpop.f32.mrb[130].mxu1  ;;  %18750 = vst [vmem:[#allocation245_spill] sm:$0xff] %v14443_v54  ;;  %18751 = vst [vmem:[#allocation246_spill] sm:$0xff] %v14448_v2  ;;  %v371_v63 = vld [vmem:[%s18148_s1 + $0x200] sm:$0xff]  ;;  %v14470_v36 = vsub.f32 1.0, %v4505_v53 }
 0x1eb   : > { %v2286_v29 = vpop.f32.mrb[131].mxu0  ;;  %10298 = vmatmul.mubr.msk.f32.gmra.mrb[236].mxu0 %vm379_vm0, %v13964_v38  ;;  %10306 = vmatmul.mubr.msk.f32.gmra.mrb[236].mxu1 %vm379_vm0, %v13964_v38  ;;  %v2399_v12 = vpop.f32.mrb[131].mxu1  ;;  %v4576_v31 = vand.u32 2147483647, %v2284_v30  ;;  %18752 = vst [vmem:[#allocation247_spill] sm:$0xff] %v14457_v56  ;;  %v14475_v51 = vsub.f32 1.0, %v4506_v23 }
 0x1ec   : > { %3674 = vmatprep.mubr.f32.mxu0 %v18508_v60  ;;  %3787 = vmatprep.mubr.f32.mxu1 %v18508_v60  ;;  %18753 = vst [vmem:[#allocation248_spill] sm:$0xff] %v14470_v36  ;;  %v4577_v39 = vand.u32 2147483647, %v2286_v29  ;;  %v373_v30 = vld [vmem:[%s18148_s1 + $0x210] sm:$0xff]  ;;  %v4578_v10 = vand.u32 2147483647, %v14435_v45 }
 0x1ed   : > { %18754 = vst [vmem:[#allocation249_spill] sm:$0xff] %v14475_v51  ;;  %v4579_v53 = vand.u32 2147483647, %v2399_v12  ;;  %v376_v29 = vld [vmem:[%s18148_s1 + $0x228] sm:$0xff]  ;;  %v378_v54 = vld [vmem:[%s18148_s1 + $0x238] sm:$0xff]  ;;  %v14488_v7 = vsub.f32 1.0, %v4576_v31 }
 0x1ee   : > { %v2290_v3 = vpop.f32.mrb[132].mxu0  ;;  %v2403_v33 = vpop.f32.mrb[132].mxu1  ;;  %v14490_v19 = vsub.f32 1.0, %v4507_v57  ;;  %v14504_v8 = vsub.f32 1.0, %v4577_v39  ;;  %v14509_v9 = vsub.f32 1.0, %v4578_v10 }
 0x1ef   : > { %v2292_v50 = vpop.f32.mrb[133].mxu0  ;;  %10299 = vmatmul.mubr.msk.f32.gmra.mrb[238].mxu0 %vm379_vm0, %v14460_v15  ;;  %10307 = vmatmul.mubr.msk.f32.gmra.mrb[238].mxu1 %vm379_vm0, %v14460_v15  ;;  %v2405_v6 = vpop.f32.mrb[133].mxu1  ;;  %v4648_v38 = vand.u32 2147483647, %v2290_v3  ;;  %18755 = vst [vmem:[#allocation250_spill] sm:$0xff] %v14488_v7  ;;  %v6490_v7 = vld [vmem:[%s14518_s16 + $0x10] sm:$0xff] }
 0x1f0   : > { %3858 = vmatprep.mubr.f32.mxu0 %v18508_v60  ;;  %3971 = vmatprep.mubr.f32.mxu1 %v18508_v60  ;;  %v4649_v23 = vand.u32 2147483647, %v2292_v50  ;;  %18756 = vst [vmem:[#allocation251_spill] sm:$0xff] %v14490_v19  ;;  %v4650_v45 = vand.u32 2147483647, %v2403_v33  ;;  %18757 = vst [vmem:[#allocation252_spill] sm:$0xff] %v14504_v8 }
 0x1f1   : > { %v4651_v12 = vand.u32 2147483647, %v2405_v6  ;;  %v14506_v34 = vsub.f32 1.0, %v4648_v38  ;;  %18759 = vst [vmem:[#allocation254_spill] sm:$0xff] %v14509_v9  ;;  %v14511_v6 = vsub.f32 1.0, %v4579_v53  ;;  %v14526_v53 = vld [vmem:[%s12001_s18 + $0x8] sm:$0xff] }
 0x1f2   : > { %v2296_v2 = vpop.f32.mrb[134].mxu0  ;;  %v14492_v49 = vpop.f32.mrb[134].mxu1  ;;  %v14521_v33 = vsub.f32 1.0, %v4649_v23  ;;  %v14532_v23 = vsub.f32 1.0, %v4650_v45  ;;  %v6488_v38 = vld [vmem:[%s14518_s16] sm:$0xff] }
 0x1f3   : > { %v2298_v3 = vpop.f32.mrb[135].mxu0  ;;  %10308 = vmatmul.mubr.msk.f32.vlgmr.msra.gmra.mrb[240].mxu0 %vm379_vm0, %v14495_v59  ;;  %10316 = vmatmul.mubr.msk.f32.vlgmr.msra.gmra.mrb[240].mxu1 %vm379_vm0, %v14495_v59  ;;  %v2411_v31 = vpop.f32.mrb[135].mxu1  ;;  %v4720_v27 = vand.u32 2147483647, %v2296_v2  ;;  %18758 = vst [vmem:[#allocation253_spill] sm:$0xff] %v14506_v34  ;;  %18760 = vst [vmem:[#allocation255_spill] sm:$0xff] %v14511_v6 }
 0x1f4   : > { %v4721_v26 = vand.u32 2147483647, %v2298_v3  ;;  %4021 = vmatpush1.msra.mxu0 %v371_v63  ;;  %3864 = vmatprep.mubr.f32.mxu0 %v18508_v60  ;;  %18761 = vst [vmem:[#allocation256_spill] sm:$0xff] %v14521_v33  ;;  %18762 = vst [vmem:[#allocation257_spill] sm:$0xff] %v14532_v23  ;;  %v14534_v3 = vsub.f32 1.0, %v4651_v12  ;;  %v6489_v12 = vld [vmem:[%s14518_s16 + $0x8] sm:$0xff] }
 0x1f5   : > { %3977 = vmatprep.mubr.f32.mxu1 %v18508_v60  ;;  %4134 = vmatpush1.msra.mxu1 %v373_v30  ;;  %v4723_v45 = vand.u32 2147483647, %v2411_v31  ;;  %v6496_v9 = vld [vmem:[%s14518_s16 + $0x40] sm:$0xff] }
 0x1f6   : > { %v2302_v63 = vpop.f32.mrb[136].mxu0  ;;  %v2415_v10 = vpop.f32.mrb[136].mxu1  ;;  %4246 = vmatprep.subr.mxu0 %v376_v29  ;;  %4359 = vmatprep.subr.mxu1 %v378_v54  ;;  %18763 = vst [vmem:[#allocation258_spill] sm:$0xff] %v14534_v3  ;;  %v4722_v29 = vand.u32 2147483647, %v14492_v49  ;;  %v14539_v54 = vsub.f32 1.0, %v4720_v27 }
 0x1f7   : > { %v2304_v30 = vpop.f32.mrb[137].mxu0  ;;  %10309 = vmatmul.mubr.msk.f32.gmra.mrb[242].mxu0 %vm379_vm0, %v14526_v53  ;;  %10317 = vmatmul.mubr.msk.f32.gmra.mrb[242].mxu1 %vm379_vm0, %v14526_v53  ;;  %v14537_v2 = vpop.f32.mrb[137].mxu1  ;;  %v14541_v39 = vsub.f32 1.0, %v4721_v26  ;;  %v4792_v57 = vand.u32 2147483647, %v2302_v63  ;;  %v6491_v63 = vld [vmem:[%s14518_s16 + $0x18] sm:$0xff]  ;;  %v14578_v26 = vpack.c.bf16 %v6489_v12, %v6488_v38 }
 0x1f8   : > { %18764 = vst [vmem:[#allocation259_spill] sm:$0xff] %v14539_v54  ;;  %3870 = vmatprep.mubr.f32.mxu0 %v18508_v60  ;;  %3983 = vmatprep.mubr.f32.mxu1 %v18508_v60  ;;  %v4793_v19 = vand.u32 2147483647, %v2304_v30  ;;  %v4794_v51 = vand.u32 2147483647, %v2415_v10  ;;  %v14559_v27 = vld [vmem:[%s12001_s18 + $0x10] sm:$0xff]  ;;  %v14584_v6 = vpack.c.bf16 %v6491_v63, %v6490_v7 }
 0x1f9   : > { %18765 = vst [vmem:[#allocation260_spill] sm:$0xff] %v14541_v39  ;;  %v14565_v10 = vsub.f32 1.0, %v4722_v29  ;;  %v14569_v33 = vsub.f32 1.0, %v4792_v57  ;;  %v14571_v50 = vsub.f32 1.0, %v4723_v45  ;;  %v6494_v49 = vld [vmem:[%s14518_s16 + $0x30] sm:$0xff]  ;;  %v6495_v3 = vld [vmem:[%s14518_s16 + $0x38] sm:$0xff] }
 0x1fa   : > { %v2308_v36 = vpop.f32.mrb[138].mxu0  ;;  %v2421_v56 = vpop.f32.mrb[138].mxu1  ;;  %v4795_v34 = vand.u32 2147483647, %v14537_v2  ;;  %v14580_v31 = vsub.f32 1.0, %v4793_v19  ;;  %v14582_v39 = vsub.f32 1.0, %v4794_v51  ;;  %v14595_v51 = vpack.c.bf16 %v6493_v35, %v6492_v24 }
 0x1fb   : > { %v2310_v8 = vpop.f32.mrb[139].mxu0  ;;  %10310 = vmatmul.mubr.msk.f32.gmra.mrb[244].mxu0 %vm379_vm0, %v14559_v27  ;;  %10318 = vmatmul.mubr.msk.f32.gmra.mrb[244].mxu1 %vm379_vm0, %v14559_v27  ;;  %18766 = vst [vmem:[#allocation261_spill] sm:$0xff] %v14565_v10  ;;  %v2423_v30 = vpop.f32.mrb[139].mxu1  ;;  %18767 = vst [vmem:[#allocation262_spill] sm:$0xff] %v14569_v33  ;;  %v4864_v29 = vand.u32 2147483647, %v2308_v36  ;;  %v14597_v36 = vpack.c.bf16 %v6495_v3, %v6494_v49 }
 0x1fc   : > { %18768 = vst [vmem:[#allocation263_spill] sm:$0xff] %v14571_v50  ;;  %3876 = vmatprep.mubr.f32.mxu0 %v18508_v60  ;;  %3989 = vmatprep.mubr.f32.mxu1 %v18508_v60  ;;  %v4865_v23 = vand.u32 2147483647, %v2310_v8  ;;  %18769 = vst [vmem:[#allocation264_spill] sm:$0xff] %v14580_v31  ;;  %v4866_v45 = vand.u32 2147483647, %v2421_v56 }
 0x1fd   : > { %18770 = vst [vmem:[#allocation265_spill] sm:$0xff] %v14582_v39  ;;  %v4867_v19 = vand.u32 2147483647, %v2423_v30  ;;  %v14603_v12 = vsub.f32 1.0, %v4864_v29  ;;  %v14607_v30 = vsub.f32 1.0, %v4795_v34  ;;  %v6498_v24 = vld [vmem:[%s14518_s16 + $0x50] sm:$0xff] }
 0x1fe   : > { %v2314_v57 = vpop.f32.mrb[140].mxu0  ;;  %v2427_v54 = vpop.f32.mrb[140].mxu1  ;;  %v14605_v63 = vsub.f32 1.0, %v4865_v23  ;;  %v6499_v3 = vld [vmem:[%s14518_s16 + $0x58] sm:$0xff]  ;;  %v14650_v39 = vld [vmem:[%s12001_s18 + $0x28] sm:$0xff] }
 0x1ff   : > { %v4936_v25 = vand.u32 2147483647, %v2314_v57  ;;  %v2316_v55 = vpop.f32.mrb[141].mxu0  ;;  %10311 = vmatmul.mubr.msk.f32.gmra.mrb[246].mxu0 %vm379_vm0, %v14589_v62  ;;  %10319 = vmatmul.mubr.msk.f32.gmra.mrb[246].mxu1 %vm379_vm0, %v14589_v62  ;;  %v2429_v8 = vpop.f32.mrb[141].mxu1  ;;  %v4938_v38 = vand.u32 2147483647, %v2427_v54  ;;  %v14627_v57 = vpack.c.bf16 %v6497_v61, %v6496_v9  ;;  %v14645_v0 = vpack.c.bf16 %v6499_v3, %v6498_v24 }
 0x200   : > { %v4937_v2 = vand.u32 2147483647, %v2316_v55  ;;  %3882 = vmatprep.mubr.f32.mxu0 %v18508_v60  ;;  %3995 = vmatprep.mubr.f32.mxu1 %v18508_v60  ;;  %18771 = vst [vmem:[#allocation266_spill] sm:$0xff] %v14603_v12  ;;  %18772 = vst [vmem:[#allocation267_spill] sm:$0xff] %v14605_v63  ;;  %v4939_v35 = vand.u32 2147483647, %v2429_v8 }
 0x201   : > { %18773 = vst [vmem:[#allocation268_spill] sm:$0xff] %v14607_v30  ;;  %v14614_v54 = vsub.f32 1.0, %v4866_v45  ;;  %v14616_v29 = vsub.f32 1.0, %v4936_v25  ;;  %v14618_v50 = vsub.f32 1.0, %v4867_v19  ;;  %v14621_v8 = vld [vmem:[%s12001_s18 + $0x20] sm:$0xff]  ;;  %v14631_v25 = vsub.f32 1.0, %v4938_v38 }
 0x202   : > { %v2320_v56 = vpop.f32.mrb[142].mxu0  ;;  %v2433_v7 = vpop.f32.mrb[142].mxu1  ;;  %v14629_v55 = vsub.f32 1.0, %v4937_v2  ;;  %v6500_v9 = vld [vmem:[%s14518_s16 + $0x60] sm:$0xff]  ;;  %v6501_v2 = vld [vmem:[%s14518_s16 + $0x68] sm:$0xff] }
 0x203   : > { %18774 = vst [vmem:[#allocation269_spill] sm:$0xff] %v14614_v54  ;;  %18775 = vst [vmem:[#allocation270_spill] sm:$0xff] %v14616_v29  ;;  %v5008_v23 = vand.u32 2147483647, %v2320_v56  ;;  %v2322_v34 = vpop.f32.mrb[143].mxu0  ;;  %10312 = vmatmul.mubr.msk.f32.gmra.mrb[248].mxu0 %vm379_vm0, %v14621_v8  ;;  %10320 = vmatmul.mubr.msk.f32.gmra.mrb[248].mxu1 %vm379_vm0, %v14621_v8  ;;  %v2435_v45 = vpop.f32.mrb[143].mxu1 }
 0x204   : > { %18776 = vst [vmem:[#allocation271_spill] sm:$0xff] %v14618_v50  ;;  %18777 = vst [vmem:[#allocation272_spill] sm:$0xff] %v14629_v55  ;;  %v5009_v19 = vand.u32 2147483647, %v2322_v34  ;;  %v14633_v56 = vsub.f32 1.0, %v4939_v35  ;;  %3888 = vmatprep.mubr.f32.mxu0 %v18508_v60  ;;  %4001 = vmatprep.mubr.f32.mxu1 %v18508_v60  ;;  %v6503_v50 = vld [vmem:[%s14518_s16 + $0x78] sm:$0xff] }
 0x205   : > { %18778 = vst [vmem:[#allocation273_spill] sm:$0xff] %v14631_v25  ;;  %v5010_v61 = vand.u32 2147483647, %v2433_v7  ;;  %v14643_v34 = vsub.f32 1.0, %v5008_v23  ;;  %v5011_v35 = vand.u32 2147483647, %v2435_v45 }
 0x206   : > { %18779 = vst [vmem:[#allocation274_spill] sm:$0xff] %v14633_v56  ;;  %v2504_v33 = vpop.f32.mrb[144].mxu0  ;;  %v2617_v10 = vpop.f32.mrb[144].mxu1  ;;  %v6502_v7 = vld [vmem:[%s14518_s16 + $0x70] sm:$0xff]  ;;  %v14659_v3 = vsub.f32 1.0, %v5009_v19  ;;  %v14670_v56 = vpack.c.bf16 %v6501_v2, %v6500_v9  ;;  %s11915_s16 = smov 48  }
 0x207   : > { %18780 = vst [vmem:[#allocation275_spill] sm:$0xff] %v14643_v34  ;;  %v4508_v31 = vand.u32 2147483647, %v2504_v33  ;;  %v4510_v63 = vand.u32 2147483647, %v2617_v10  ;;  %10313 = vmatmul.mubr.msk.f32.gmra.mrb[250].mxu0 %vm379_vm0, %v14650_v39  ;;  %10321 = vmatmul.mubr.msk.f32.gmra.mrb[250].mxu1 %vm379_vm0, %v14650_v39  ;;  %v2506_v33 = vpop.f32.mrb[145].mxu0 }
 0x208   : > { %18781 = vst [vmem:[#allocation276_spill] sm:$0xff] %v14659_v3  ;;  %v2619_v10 = vpop.f32.mrb[145].mxu1  ;;  %3894 = vmatprep.mubr.f32.mxu0 %v18508_v60  ;;  %4007 = vmatprep.mubr.f32.mxu1 %v18508_v60  ;;  %v14664_v49 = vsub.f32 1.0, %v5010_v61  ;;  %v4509_v29 = vand.u32 2147483647, %v2506_v33  ;;  %v14668_v24 = vsub.f32 1.0, %v5011_v35 }
 0x209   : > { %v5084_v12 = vsub.f32 1.0, %v4508_v31  ;;  %v5086_v38 = vsub.f32 1.0, %v4510_v63  ;;  %v4511_v19 = vand.u32 2147483647, %v2619_v10  ;;  %v18784_v2 = vld [vmem:[#allocation2_spill] sm:$0xff] }
 0x20a   : > { %18782 = vst [vmem:[#allocation277_spill] sm:$0xff] %v14664_v49  ;;  %18783 = vst [vmem:[#allocation278_spill] sm:$0xff] %v14668_v24  ;;  %v2510_v55 = vpop.f32.mrb[146].mxu0  ;;  %v2623_v45 = vpop.f32.mrb[146].mxu1  ;;  %v5085_v54 = vsub.f32 1.0, %v4509_v29  ;;  %v14673_v49 = vld [vmem:[%s12001_s18 + $0x30] sm:$0xff] }
 0x20b   : > { %v5660_v3 = vmax.f32 %v5084_v12, 0.0  ;;  %v5662_v25 = vmax.f32 %v5086_v38, 0.0  ;;  %v4580_v30 = vand.u32 2147483647, %v2510_v55  ;;  %v2512_v61 = vpop.f32.mrb[147].mxu0  ;;  %10314 = vmatmul.mubr.msk.f32.gmra.mrb[252].mxu0 %vm379_vm0, %v14673_v49  ;;  %10322 = vmatmul.mubr.msk.f32.gmra.mrb[252].mxu1 %vm379_vm0, %v14673_v49  ;;  %v5087_v31 = vsub.f32 1.0, %v4511_v19 }
 0x20c   : > { %v4582_v63 = vand.u32 2147483647, %v2623_v45  ;;  %v4581_v35 = vand.u32 2147483647, %v2512_v61  ;;  %v2625_v33 = vpop.f32.mrb[147].mxu1  ;;  %3900 = vmatprep.mubr.f32.mxu0 %v18508_v60  ;;  %4013 = vmatprep.mubr.f32.mxu1 %v18508_v60  ;;  %v14681_v12 = vpack.c.bf16 %v6503_v50, %v6502_v7  ;;  %v5661_v55 = vmax.f32 %v5085_v54, 0.0 }
 0x20d   : > { %v5156_v29 = vsub.f32 1.0, %v4580_v30  ;;  %v4583_v9 = vand.u32 2147483647, %v2625_v33  ;;  %v18785_v38 = vmax.f32 %v18784_v2, 0.0  ;;  %v5663_v23 = vmax.f32 %v5087_v31, 0.0  ;;  %v18786_v61 = vld [vmem:[#allocation3_spill] sm:$0xff] }
 0x20e   : > { %v5158_v34 = vsub.f32 1.0, %v4582_v63  ;;  %v5157_v24 = vsub.f32 1.0, %v4581_v35  ;;  %v2516_v19 = vpop.f32.mrb[148].mxu0  ;;  %v2629_v45 = vpop.f32.mrb[148].mxu1  ;;  %v18787_v46 = vmax.f32 %v18786_v61, 0.0  ;;  %v18790_v63 = vmax.f32 %v12593_v41, 0.0 }
 0x20f   : > { %v14685_v10 = vmul.f32 %v5660_v3, %v18785_v38  ;;  %v5732_v28 = vmax.f32 %v5156_v29, 0.0  ;;  %v5159_v17 = vsub.f32 1.0, %v4583_v9  ;;  %v4652_v50 = vand.u32 2147483647, %v2516_v19  ;;  %10315 = vmatmul.mubr.msk.f32.gmra.mrb[254].mxu0 %vm379_vm0, %v14460_v15  ;;  %10323 = vmatmul.mubr.msk.f32.gmra.mrb[254].mxu1 %vm379_vm0, %v14460_v15  ;;  %v2518_v3 = vpop.f32.mrb[149].mxu0  ;;  %v2631_v31 = vpop.f32.mrb[149].mxu1 }
 0x210   : > { %v14689_v32 = vmul.f32 %v5662_v25, %v18787_v46  ;;  %v4654_v7 = vand.u32 2147483647, %v2629_v45  ;;  %v5734_v30 = vmax.f32 %v5158_v34, 0.0  ;;  %v5733_v54 = vmax.f32 %v5157_v24, 0.0  ;;  %4084 = vmatprep.mubr.f32.mxu0 %v18508_v60  ;;  %4197 = vmatprep.mubr.f32.mxu1 %v18508_v60  ;;  %v375_v2 = vld [vmem:[%s18148_s1 + $0x220] sm:$0xff]  ;;  %v18797_v61 = vld [vmem:[#allocation6_spill] sm:$0xff] }
 0x211   : > { %v18789_v46 = vmax.f32 %v12591_v40, 0.0  ;;  %v14703_v35 = vmul.f32 %v5663_v23, %v18790_v63  ;;  %v18792_v33 = vmax.f32 %v12612_v58, 0.0  ;;  %v5735_v34 = vmax.f32 %v5159_v17, 0.0  ;;  %v377_v40 = vld [vmem:[%s18148_s1 + $0x230] sm:$0xff]  ;;  %v18795_v23 = vld [vmem:[#allocation5_spill] sm:$0xff] }
 0x212   : > { %18788 = vst [vmem:[#allocation2_spill] sm:$0xff] %v14689_v32  ;;  %v5228_v24 = vsub.f32 1.0, %v4652_v50  ;;  %v5230_v9 = vsub.f32 1.0, %v4654_v7  ;;  %v18796_v38 = vmax.f32 %v18795_v23, 0.0  ;;  %v4655_v17 = vand.u32 2147483647, %v2631_v31 }
 0x213   : > { %v14699_v25 = vmul.f32 %v5661_v55, %v18789_v46  ;;  %18791 = vst [vmem:[#allocation3_spill] sm:$0xff] %v14703_v35  ;;  %v14707_v29 = vmul.f32 %v5732_v28, %v18792_v33  ;;  %v18793_v55 = vmax.f32 %v12655_v48, 0.0  ;;  %v4653_v28 = vand.u32 2147483647, %v2518_v3  ;;  %v2522_v19 = vpop.f32.mrb[150].mxu0  ;;  %v2635_v45 = vpop.f32.mrb[150].mxu1  ;;  %10324 = vmatmul.mubr.msk.f32.vlgmr.msra.gmra.mrb[0].mxu0 %vm379_vm0, %v14495_v59  ;;  %10332 = vmatmul.mubr.msk.f32.vlgmr.msra.gmra.mrb[0].mxu1 %vm379_vm0, %v14495_v59 }
 0x214   : > { %v14721_v58 = vmul.f32 %v5733_v54, %v18796_v38  ;;  %v18798_v50 = vmax.f32 %v18797_v61, 0.0  ;;  %v5804_v46 = vmax.f32 %v5228_v24, 0.0  ;;  %v5806_v63 = vmax.f32 %v5230_v9, 0.0  ;;  %v2524_v13 = vpop.f32.mrb[151].mxu0  ;;  %v2637_v43 = vpop.f32.mrb[151].mxu1  ;;  %4247 = vmatpush1.msra.mxu0 %v375_v2  ;;  %4090 = vmatprep.mubr.f32.mxu0 %v18508_v60 }
 0x215   : > { %v14717_v41 = vmul.f32 %v5734_v30, %v18793_v55  ;;  %v4724_v33 = vand.u32 2147483647, %v2522_v19  ;;  %v5229_v48 = vsub.f32 1.0, %v4653_v28  ;;  %v5231_v30 = vsub.f32 1.0, %v4655_v17  ;;  %4203 = vmatprep.mubr.f32.mxu1 %v18508_v60  ;;  %4360 = vmatpush1.msra.mxu1 %v377_v40  ;;  %v18801_v55 = vld [vmem:[#allocation8_spill] sm:$0xff] }
 0x216   : > { %v14725_v7 = vmul.f32 %v5735_v34, %v18798_v50  ;;  %v4726_v54 = vand.u32 2147483647, %v2635_v45  ;;  %v4725_v3 = vand.u32 2147483647, %v2524_v13  ;;  %v4727_v34 = vand.u32 2147483647, %v2637_v43  ;;  %11147 = vmatprep.subr.bf16.mxu0 %v14578_v26  ;;  %11232 = vmatprep.subr.bf16.mxu1 %v14578_v26 }
 0x217   : > { %18794 = vst [vmem:[#allocation279_spill] sm:$0xff] %v14717_v41  ;;  %v5300_v31 = vsub.f32 1.0, %v4724_v33  ;;  %v18800_v24 = vmax.f32 %v12660_v44, 0.0  ;;  %v18802_v23 = vmax.f32 %v18801_v55, 0.0  ;;  %v5805_v28 = vmax.f32 %v5229_v48, 0.0  ;;  %v2528_v2 = vpop.f32.mrb[152].mxu0  ;;  %10325 = vmatmul.mubr.msk.f32.gmra.mrb[2].mxu0 %vm379_vm0, %v14526_v53  ;;  %10333 = vmatmul.mubr.msk.f32.gmra.mrb[2].mxu1 %vm379_vm0, %v14526_v53 }
 0x218   : > { %18799 = vst [vmem:[#allocation5_spill] sm:$0xff] %v14725_v7  ;;  %v5807_v17 = vmax.f32 %v5231_v30, 0.0  ;;  %v5302_v19 = vsub.f32 1.0, %v4726_v54  ;;  %v5301_v13 = vsub.f32 1.0, %v4725_v3  ;;  %v2641_v45 = vpop.f32.mrb[152].mxu1  ;;  %v5303_v40 = vsub.f32 1.0, %v4727_v34  ;;  %4096 = vmatprep.mubr.f32.mxu0 %v18508_v60  ;;  %4209 = vmatprep.mubr.f32.mxu1 %v18508_v60 }
 0x219   : > { %v14735_v9 = vmul.f32 %v5804_v46, %v18800_v24  ;;  %v14739_v38 = vmul.f32 %v5806_v63, %v18802_v23  ;;  %v5876_v43 = vmax.f32 %v5300_v31, 0.0  ;;  %v4796_v61 = vand.u32 2147483647, %v2528_v2  ;;  %v2530_v63 = vpop.f32.mrb[153].mxu0  ;;  %v2643_v33 = vpop.f32.mrb[153].mxu1  ;;  %v18804_v48 = vld [vmem:[#allocation7_spill] sm:$0xff] }
 0x21a   : > { %v4798_v44 = vand.u32 2147483647, %v2641_v45  ;;  %v5878_v50 = vmax.f32 %v5302_v19, 0.0  ;;  %v5877_v46 = vmax.f32 %v5301_v13, 0.0  ;;  %v18805_v30 = vmax.f32 %v18804_v48, 0.0  ;;  %v18806_v3 = vld [vmem:[#allocation9_spill] sm:$0xff] }
 0x21b   : > { %18803 = vst [vmem:[#allocation6_spill] sm:$0xff] %v14739_v38  ;;  %v18807_v31 = vmax.f32 %v18806_v3, 0.0  ;;  %v18809_v24 = vld [vmem:[#allocation10_spill] sm:$0xff]  ;;  %v5879_v19 = vmax.f32 %v5303_v40, 0.0  ;;  %v5372_v13 = vsub.f32 1.0, %v4796_v61  ;;  %v18811_v45 = vld [vmem:[#allocation12_spill] sm:$0xff]  ;;  %10326 = vmatmul.mubr.msk.f32.gmra.mrb[4].mxu0 %vm379_vm0, %v14559_v27  ;;  %10334 = vmatmul.mubr.msk.f32.gmra.mrb[4].mxu1 %vm379_vm0, %v14559_v27 }
 0x21c   : > { %v14751_v54 = vmul.f32 %v5805_v28, %v18805_v30  ;;  %v18810_v55 = vmax.f32 %v18809_v24, 0.0  ;;  %v5374_v2 = vsub.f32 1.0, %v4798_v44  ;;  %v18812_v7 = vmax.f32 %v18811_v45, 0.0  ;;  %v2534_v3 = vpop.f32.mrb[154].mxu0  ;;  %4102 = vmatprep.mubr.f32.mxu0 %v18508_v60  ;;  %4215 = vmatprep.mubr.f32.mxu1 %v18508_v60  ;;  %v18854_v38 = vld [vmem:[#allocation26_spill] sm:$0xff] }
 0x21d   : > { %v14755_v34 = vmul.f32 %v5807_v17, %v18807_v31  ;;  %v18815_v35 = vmax.f32 %v18814_v4, 0.0  ;;  %v4797_v28 = vand.u32 2147483647, %v2530_v63  ;;  %v4799_v30 = vand.u32 2147483647, %v2643_v33  ;;  %v2647_v17 = vpop.f32.mrb[154].mxu1 }
 0x21e   : > { %v14759_v23 = vmul.f32 %v5876_v43, %v18810_v55  ;;  %v14763_v1 = vmul.f32 %v5878_v50, %v18812_v7  ;;  %v18816_v31 = vld [vmem:[#allocation13_spill] sm:$0xff]  ;;  %v5948_v43 = vmax.f32 %v5372_v13, 0.0  ;;  %v5950_v40 = vmax.f32 %v5374_v2, 0.0  ;;  %v2536_v44 = vpop.f32.mrb[155].mxu0  ;;  %v2649_v55 = vpop.f32.mrb[155].mxu1  ;;  %v18819_v33 = vld [vmem:[#allocation14_spill] sm:$0xff] }
 0x21f   : > { %18808 = vst [vmem:[#allocation8_spill] sm:$0xff] %v14755_v34  ;;  %v14767_v48 = vmul.f32 %v5877_v46, %v18815_v35  ;;  %v18817_v34 = vmax.f32 %v18816_v31, 0.0  ;;  %v4868_v61 = vand.u32 2147483647, %v2534_v3  ;;  %v5373_v4 = vsub.f32 1.0, %v4797_v28  ;;  %v18821_v13 = vld [vmem:[#allocation16_spill] sm:$0xff]  ;;  %10327 = vmatmul.mubr.msk.f32.gmra.mrb[6].mxu0 %vm379_vm0, %v14589_v62  ;;  %10335 = vmatmul.mubr.msk.f32.gmra.mrb[6].mxu1 %vm379_vm0, %v14589_v62 }
 0x220   : > { %18813 = vst [vmem:[#allocation7_spill] sm:$0xff] %v14763_v1  ;;  %v5375_v35 = vsub.f32 1.0, %v4799_v30  ;;  %v4870_v7 = vand.u32 2147483647, %v2647_v17  ;;  %v4869_v50 = vand.u32 2147483647, %v2536_v44  ;;  %4108 = vmatprep.mubr.f32.mxu0 %v18508_v60  ;;  %4221 = vmatprep.mubr.f32.mxu1 %v18508_v60 }
 0x221   : > { %v14771_v24 = vmul.f32 %v5879_v19, %v18817_v34  ;;  %v5444_v46 = vsub.f32 1.0, %v4868_v61  ;;  %v4871_v63 = vand.u32 2147483647, %v2649_v55  ;;  %v18820_v34 = vmax.f32 %v18819_v33, 0.0  ;;  %v2540_v17 = vpop.f32.mrb[156].mxu0  ;;  %v2653_v44 = vpop.f32.mrb[156].mxu1 }
 0x222   : > { %v18822_v2 = vmax.f32 %v18821_v13, 0.0  ;;  %v5949_v3 = vmax.f32 %v5373_v4, 0.0  ;;  %v5951_v31 = vmax.f32 %v5375_v35, 0.0  ;;  %v5446_v28 = vsub.f32 1.0, %v4870_v7  ;;  %v2655_v55 = vpop.f32.mrb[157].mxu1  ;;  %v18824_v4 = vld [vmem:[#allocation15_spill] sm:$0xff] }
 0x223   : > { %18818 = vst [vmem:[#allocation9_spill] sm:$0xff] %v14771_v24  ;;  %v14781_v19 = vmul.f32 %v5948_v43, %v18820_v34  ;;  %v5445_v30 = vsub.f32 1.0, %v4869_v50  ;;  %v6020_v24 = vmax.f32 %v5444_v46, 0.0  ;;  %v5447_v18 = vsub.f32 1.0, %v4871_v63  ;;  %v18826_v50 = vld [vmem:[#allocation17_spill] sm:$0xff]  ;;  %v18829_v33 = vld [vmem:[#allocation18_spill] sm:$0xff]  ;;  %10328 = vmatmul.mubr.msk.f32.gmra.mrb[8].mxu0 %vm379_vm0, %v14621_v8  ;;  %10336 = vmatmul.mubr.msk.f32.gmra.mrb[8].mxu1 %vm379_vm0, %v14621_v8 }
 0x224   : > { %v14785_v45 = vmul.f32 %v5950_v40, %v18822_v2  ;;  %v4940_v42 = vand.u32 2147483647, %v2540_v17  ;;  %v4942_v22 = vand.u32 2147483647, %v2653_v44  ;;  %v6022_v43 = vmax.f32 %v5446_v28, 0.0  ;;  %v2542_v40 = vpop.f32.mrb[157].mxu0  ;;  %4114 = vmatprep.mubr.f32.mxu0 %v18508_v60  ;;  %4227 = vmatprep.mubr.f32.mxu1 %v18508_v60 }
 0x225   : > { %v6021_v61 = vmax.f32 %v5445_v30, 0.0  ;;  %v18825_v35 = vmax.f32 %v18824_v4, 0.0  ;;  %v18827_v46 = vmax.f32 %v18826_v50, 0.0  ;;  %v18830_v34 = vmax.f32 %v18829_v33, 0.0  ;;  %v18831_v17 = vld [vmem:[#allocation20_spill] sm:$0xff]  ;;  %v2546_v50 = vpop.f32.mrb[158].mxu0 }
 0x226   : > { %18823 = vst [vmem:[#allocation10_spill] sm:$0xff] %v14785_v45  ;;  %v6023_v2 = vmax.f32 %v5447_v18, 0.0  ;;  %v5516_v28 = vsub.f32 1.0, %v4940_v42  ;;  %v5518_v30 = vsub.f32 1.0, %v4942_v22  ;;  %v18832_v44 = vmax.f32 %v18831_v17, 0.0  ;;  %v2548_v22 = vpop.f32.mrb[159].mxu0 }
 0x227   : > { %v14795_v7 = vmul.f32 %v5949_v3, %v18825_v35  ;;  %v14799_v63 = vmul.f32 %v5951_v31, %v18827_v46  ;;  %v14803_v13 = vmul.f32 %v6020_v24, %v18830_v34  ;;  %v14811_v4 = vmul.f32 %v6021_v61, %v18835_v47  ;;  %v2659_v31 = vpop.f32.mrb[158].mxu1  ;;  %v18836_v46 = vld [vmem:[#allocation23_spill] sm:$0xff]  ;;  %10329 = vmatmul.mubr.msk.f32.gmra.mrb[10].mxu0 %vm379_vm0, %v14650_v39 }
 0x228   : > { %v14807_v16 = vmul.f32 %v6022_v43, %v18832_v44  ;;  %v4941_v3 = vand.u32 2147483647, %v2542_v40  ;;  %v4943_v35 = vand.u32 2147483647, %v2655_v55  ;;  %v6092_v24 = vmax.f32 %v5516_v28, 0.0  ;;  %v2661_v34 = vpop.f32.mrb[159].mxu1  ;;  %10337 = vmatmul.mubr.msk.f32.gmra.mrb[10].mxu1 %vm379_vm0, %v14650_v39  ;;  %4120 = vmatprep.mubr.f32.mxu0 %v18508_v60 }
 0x229   : > { %18828 = vst [vmem:[#allocation12_spill] sm:$0xff] %v14799_v63  ;;  %v18837_v63 = vmax.f32 %v18836_v46, 0.0  ;;  %v6094_v18 = vmax.f32 %v5518_v30, 0.0  ;;  %v5012_v42 = vand.u32 2147483647, %v2546_v50  ;;  %v18841_v30 = vld [vmem:[#allocation24_spill] sm:$0xff]  ;;  %4233 = vmatprep.mubr.f32.mxu1 %v18508_v60 }
 0x22a   : > { %18833 = vst [vmem:[#allocation11_spill] sm:$0xff] %v14807_v16  ;;  %v5517_v14 = vsub.f32 1.0, %v4941_v3  ;;  %v5519_v47 = vsub.f32 1.0, %v4943_v35  ;;  %v5014_v43 = vand.u32 2147483647, %v2659_v31  ;;  %v18842_v17 = vmax.f32 %v18841_v30, 0.0 }
 0x22b   : > { %v14815_v33 = vmul.f32 %v6023_v2, %v18837_v63  ;;  %v5013_v61 = vand.u32 2147483647, %v2548_v22  ;;  %v5588_v40 = vsub.f32 1.0, %v5012_v42  ;;  %v5015_v55 = vand.u32 2147483647, %v2661_v34  ;;  %v18839_v63 = vld [vmem:[#allocation21_spill] sm:$0xff]  ;;  %10330 = vmatmul.mubr.msk.f32.gmra.mrb[12].mxu0 %vm379_vm0, %v14673_v49 }
 0x22c   : > { %v18840_v2 = vmax.f32 %v18839_v63, 0.0  ;;  %v14829_v44 = vmul.f32 %v6094_v18, %v18842_v17  ;;  %v6093_v50 = vmax.f32 %v5517_v14, 0.0  ;;  %v6095_v46 = vmax.f32 %v5519_v47, 0.0  ;;  %v2730_v31 = vpop.f32.mrb[160].mxu0  ;;  %v2843_v22 = vpop.f32.mrb[160].mxu1  ;;  %v18844_v14 = vld [vmem:[#allocation22_spill] sm:$0xff]  ;;  %10338 = vmatmul.mubr.msk.f32.gmra.mrb[12].mxu1 %vm379_vm0, %v14673_v49  ;;  %4126 = vmatprep.mubr.f32.mxu0 %v18508_v60 }
 0x22d   : > { %18838 = vst [vmem:[#allocation13_spill] sm:$0xff] %v14815_v33  ;;  %v5590_v3 = vsub.f32 1.0, %v5014_v43  ;;  %v5589_v35 = vsub.f32 1.0, %v5013_v61  ;;  %v6164_v33 = vmax.f32 %v5588_v40, 0.0  ;;  %v5591_v16 = vsub.f32 1.0, %v5015_v55  ;;  %v2732_v18 = vpop.f32.mrb[161].mxu0  ;;  %4239 = vmatprep.mubr.f32.mxu1 %v18508_v60 }
 0x22e   : > { %v14825_v28 = vmul.f32 %v6092_v24, %v18840_v2  ;;  %18843 = vst [vmem:[#allocation14_spill] sm:$0xff] %v14829_v44  ;;  %v4512_v45 = vand.u32 2147483647, %v2730_v31  ;;  %v4514_v1 = vand.u32 2147483647, %v2843_v22  ;;  %v2845_v34 = vpop.f32.mrb[161].mxu1 }
 0x22f   : > { %v6166_v24 = vmax.f32 %v5590_v3, 0.0  ;;  %v6165_v42 = vmax.f32 %v5589_v35, 0.0  ;;  %v18845_v47 = vmax.f32 %v18844_v14, 0.0  ;;  %v18846_v61 = vld [vmem:[#allocation27_spill] sm:$0xff]  ;;  %v18849_v63 = vld [vmem:[#allocation25_spill] sm:$0xff]  ;;  %v6167_v17 = vmax.f32 %v5591_v16, 0.0  ;;  %10331 = vmatmul.mubr.msk.f32.gmra.mrb[14].mxu0 %vm379_vm0, %v14460_v15 }
 0x230   : > { %v18847_v40 = vmax.f32 %v18846_v61, 0.0  ;;  %v18850_v2 = vmax.f32 %v18849_v63, 0.0  ;;  %v5088_v3 = vsub.f32 1.0, %v4512_v45  ;;  %v5090_v35 = vsub.f32 1.0, %v4514_v1  ;;  %v18851_v31 = vld [vmem:[#allocation28_spill] sm:$0xff]  ;;  %v2736_v61 = vpop.f32.mrb[162].mxu0  ;;  %10339 = vmatmul.mubr.msk.f32.gmra.mrb[14].mxu1 %vm379_vm0, %v14460_v15  ;;  %4310 = vmatprep.mubr.f32.mxu0 %v18508_v60 }
 0x231   : > { %v14839_v43 = vmul.f32 %v6093_v50, %v18845_v47  ;;  %v18852_v22 = vmax.f32 %v18851_v31, 0.0  ;;  %v18855_v41 = vmax.f32 %v18854_v38, 0.0  ;;  %v4513_v50 = vand.u32 2147483647, %v2732_v18  ;;  %v2738_v1 = vpop.f32.mrb[163].mxu0  ;;  %4423 = vmatprep.mubr.f32.mxu1 %v18508_v60 }
 0x232   : > { %v14843_v55 = vmul.f32 %v6095_v46, %v18847_v40  ;;  %v14847_v30 = vmul.f32 %v6164_v33, %v18850_v2  ;;  %v4515_v47 = vand.u32 2147483647, %v2845_v34  ;;  %v2849_v46 = vpop.f32.mrb[162].mxu1  ;;  %v18857_v40 = vld [vmem:[#allocation29_spill] sm:$0xff]  ;;  %v5664_v33 = vmax.f32 %v5088_v3, 0.0 }
 0x233   : > { %v14851_v44 = vmul.f32 %v6166_v24, %v18852_v22  ;;  %v14855_v14 = vmul.f32 %v6165_v42, %v18855_v41  ;;  %v5666_v16 = vmax.f32 %v5090_v35, 0.0  ;;  %v4584_v45 = vand.u32 2147483647, %v2736_v61  ;;  %v2851_v2 = vpop.f32.mrb[163].mxu1  ;;  %v18862_v35 = vld [vmem:[#allocation32_spill] sm:$0xff]  ;;  %10340 = vmatmul.mubr.msk.f32.vlgmr.msra.gmra.mrb[16].mxu0 %vm379_vm0, %v14495_v59 }
 0x234   : > { %18848 = vst [vmem:[#allocation16_spill] sm:$0xff] %v14843_v55  ;;  %v18858_v55 = vmax.f32 %v18857_v40, 0.0  ;;  %v5089_v41 = vsub.f32 1.0, %v4513_v50  ;;  %v5091_v38 = vsub.f32 1.0, %v4515_v47  ;;  %v4586_v24 = vand.u32 2147483647, %v2849_v46  ;;  %10348 = vmatmul.mubr.msk.f32.vlgmr.msra.gmra.mrb[16].mxu1 %vm379_vm0, %v14495_v59  ;;  %11149 = vmatpush3.bf16.msra.mxu0 %v14578_v26 }
 0x235   : > { %18853 = vst [vmem:[#allocation15_spill] sm:$0xff] %v14851_v44  ;;  %18856 = vst [vmem:[#allocation17_spill] sm:$0xff] %v14855_v14  ;;  %v4585_v42 = vand.u32 2147483647, %v2738_v1  ;;  %v5160_v18 = vsub.f32 1.0, %v4584_v45  ;;  %v18863_v31 = vmax.f32 %v18862_v35, 0.0  ;;  %4316 = vmatprep.mubr.f32.mxu0 %v18508_v60  ;;  %4429 = vmatprep.mubr.f32.mxu1 %v18508_v60 }
 0x236   : > { %v14859_v63 = vmul.f32 %v6167_v17, %v18858_v55  ;;  %v4587_v34 = vand.u32 2147483647, %v2851_v2  ;;  %v18860_v55 = vld [vmem:[#allocation30_spill] sm:$0xff]  ;;  %v5665_v61 = vmax.f32 %v5089_v41, 0.0  ;;  %v5667_v40 = vmax.f32 %v5091_v38, 0.0  ;;  %v2742_v46 = vpop.f32.mrb[164].mxu0  ;;  %11151 = vmatprep.subr.bf16.mxu0 %v14584_v6  ;;  %11240 = vmatpush3.bf16.msra.mxu1 %v14578_v26 }
 0x237   : > { %v18861_v17 = vmax.f32 %v18860_v55, 0.0  ;;  %v14873_v22 = vmul.f32 %v5666_v16, %v18863_v31  ;;  %v5162_v50 = vsub.f32 1.0, %v4586_v24  ;;  %v5161_v47 = vsub.f32 1.0, %v4585_v42  ;;  %v2855_v1 = vpop.f32.mrb[164].mxu1  ;;  %v2744_v16 = vpop.f32.mrb[165].mxu0  ;;  %v18865_v41 = vld [vmem:[#allocation31_spill] sm:$0xff]  ;;  %10341 = vmatmul.mubr.msk.f32.gmra.mrb[18].mxu0 %vm379_vm0, %v14526_v53  ;;  %11233 = vmatprep.subr.bf16.mxu1 %v14584_v6 }
 0x238   : > { %18859 = vst [vmem:[#allocation18_spill] sm:$0xff] %v14859_v63  ;;  %v5736_v63 = vmax.f32 %v5160_v18, 0.0  ;;  %v5163_v44 = vsub.f32 1.0, %v4587_v34  ;;  %v4656_v32 = vand.u32 2147483647, %v2742_v46  ;;  %v2857_v2 = vpop.f32.mrb[165].mxu1  ;;  %10349 = vmatmul.mubr.msk.f32.gmra.mrb[18].mxu1 %vm379_vm0, %v14526_v53  ;;  %11153 = vmatpush3.bf16.msra.mxu0 %v14584_v6 }
 0x239   : > { %v14869_v3 = vmul.f32 %v5664_v33, %v18861_v17  ;;  %18864 = vst [vmem:[#allocation20_spill] sm:$0xff] %v14873_v22  ;;  %v4658_v14 = vand.u32 2147483647, %v2855_v1  ;;  %v5738_v33 = vmax.f32 %v5162_v50, 0.0  ;;  %v5737_v45 = vmax.f32 %v5161_v47, 0.0  ;;  %v18867_v42 = vld [vmem:[#allocation33_spill] sm:$0xff]  ;;  %4322 = vmatprep.mubr.f32.mxu0 %v18508_v60  ;;  %4435 = vmatprep.mubr.f32.mxu1 %v18508_v60 }
 0x23a   : > { %v18866_v38 = vmax.f32 %v18865_v41, 0.0  ;;  %v18868_v18 = vmax.f32 %v18867_v42, 0.0  ;;  %v18870_v55 = vmax.f32 %v12863_v52, 0.0  ;;  %v5739_v15 = vmax.f32 %v5163_v44, 0.0  ;;  %v18873_v46 = vld [vmem:[#allocation4_spill] sm:$0xff]  ;;  %v2748_v42 = vpop.f32.mrb[166].mxu0  ;;  %11155 = vmatprep.subr.bf16.mxu0 %v14595_v51  ;;  %11241 = vmatpush3.bf16.msra.mxu1 %v14584_v6 }
 0x23b   : > { %v5232_v35 = vsub.f32 1.0, %v4656_v32  ;;  %v5234_v31 = vsub.f32 1.0, %v4658_v14  ;;  %v18871_v50 = vmax.f32 %v12884_v37, 0.0  ;;  %v18874_v1 = vmax.f32 %v18873_v46, 0.0  ;;  %v2750_v14 = vpop.f32.mrb[167].mxu0  ;;  %10342 = vmatmul.mubr.msk.f32.gmra.mrb[20].mxu0 %vm379_vm0, %v14559_v27  ;;  %11234 = vmatprep.subr.bf16.mxu1 %v14595_v51 }
 0x23c   : > { %v14883_v24 = vmul.f32 %v5665_v61, %v18866_v38  ;;  %v14887_v34 = vmul.f32 %v5667_v40, %v18868_v18  ;;  %v14891_v17 = vmul.f32 %v5736_v63, %v18870_v55  ;;  %v4657_v61 = vand.u32 2147483647, %v2744_v16  ;;  %v2861_v40 = vpop.f32.mrb[166].mxu1  ;;  %v18875_v18 = vld [vmem:[#allocation34_spill] sm:$0xff]  ;;  %10350 = vmatmul.mubr.msk.f32.gmra.mrb[20].mxu1 %vm379_vm0, %v14559_v27  ;;  %11157 = vmatpush3.bf16.msra.mxu0 %v14595_v51 }
 0x23d   : > { %v14895_v47 = vmul.f32 %v5738_v33, %v18871_v50  ;;  %v14899_v41 = vmul.f32 %v5737_v45, %v18874_v1  ;;  %v4659_v38 = vand.u32 2147483647, %v2857_v2  ;;  %v5808_v63 = vmax.f32 %v5232_v35, 0.0  ;;  %v2863_v55 = vpop.f32.mrb[167].mxu1  ;;  %v18880_v50 = vld [vmem:[#allocation37_spill] sm:$0xff]  ;;  %4328 = vmatprep.mubr.f32.mxu0 %v18508_v60  ;;  %4441 = vmatprep.mubr.f32.mxu1 %v18508_v60 }
 0x23e   : > { %18869 = vst [vmem:[#allocation19_spill] sm:$0xff] %v14887_v34  ;;  %v18876_v34 = vmax.f32 %v18875_v18, 0.0  ;;  %v5810_v44 = vmax.f32 %v5234_v31, 0.0  ;;  %v4728_v32 = vand.u32 2147483647, %v2748_v42  ;;  %v5233_v37 = vsub.f32 1.0, %v4657_v61  ;;  %11159 = vmatprep.subr.bf16.mxu0 %v14597_v36  ;;  %11242 = vmatpush3.bf16.msra.mxu1 %v14595_v51 }
 0x23f   : > { %18872 = vst [vmem:[#allocation23_spill] sm:$0xff] %v14895_v47  ;;  %v5235_v33 = vsub.f32 1.0, %v4659_v38  ;;  %v4730_v45 = vand.u32 2147483647, %v2861_v40  ;;  %v4729_v16 = vand.u32 2147483647, %v2750_v14  ;;  %10343 = vmatmul.mubr.msk.f32.gmra.mrb[22].mxu0 %vm379_vm0, %v14589_v62  ;;  %11235 = vmatprep.subr.bf16.mxu1 %v14597_v36 }
 0x240   : > { %v14903_v52 = vmul.f32 %v5739_v15, %v18876_v34  ;;  %v5304_v2 = vsub.f32 1.0, %v4728_v32  ;;  %v4731_v34 = vand.u32 2147483647, %v2863_v55  ;;  %v18878_v15 = vld [vmem:[#allocation35_spill] sm:$0xff]  ;;  %v18881_v59 = vmax.f32 %v18880_v50, 0.0  ;;  %v2754_v40 = vpop.f32.mrb[168].mxu0  ;;  %10351 = vmatmul.mubr.msk.f32.gmra.mrb[22].mxu1 %vm379_vm0, %v14589_v62  ;;  %11161 = vmatpush3.bf16.msra.mxu0 %v14597_v36 }
 0x241   : > { %v18879_v35 = vmax.f32 %v18878_v15, 0.0  ;;  %v5809_v1 = vmax.f32 %v5233_v37, 0.0  ;;  %v5811_v61 = vmax.f32 %v5235_v33, 0.0  ;;  %v5306_v38 = vsub.f32 1.0, %v4730_v45  ;;  %v2867_v18 = vpop.f32.mrb[168].mxu1  ;;  %v2756_v37 = vpop.f32.mrb[169].mxu0  ;;  %4334 = vmatprep.mubr.f32.mxu0 %v18508_v60  ;;  %4447 = vmatprep.mubr.f32.mxu1 %v18508_v60 }
 0x242   : > { %18877 = vst [vmem:[#allocation21_spill] sm:$0xff] %v14903_v52  ;;  %v14919_v46 = vmul.f32 %v5810_v44, %v18881_v59  ;;  %v5305_v42 = vsub.f32 1.0, %v4729_v16  ;;  %v5880_v32 = vmax.f32 %v5304_v2, 0.0  ;;  %v5307_v14 = vsub.f32 1.0, %v4731_v34  ;;  %v2869_v33 = vpop.f32.mrb[169].mxu1  ;;  %v18883_v45 = vld [vmem:[#allocation36_spill] sm:$0xff]  ;;  %11163 = vmatprep.subr.bf16.mxu0 %v14627_v57  ;;  %11243 = vmatpush3.bf16.msra.mxu1 %v14597_v36 }
 0x243   : > { %v14915_v31 = vmul.f32 %v5808_v63, %v18879_v35  ;;  %v4800_v55 = vand.u32 2147483647, %v2754_v40  ;;  %v4802_v52 = vand.u32 2147483647, %v2867_v18  ;;  %v5882_v63 = vmax.f32 %v5306_v38, 0.0  ;;  %v18885_v2 = vld [vmem:[#allocation38_spill] sm:$0xff]  ;;  %10344 = vmatmul.mubr.msk.f32.gmra.mrb[24].mxu0 %vm379_vm0, %v14621_v8  ;;  %11236 = vmatprep.subr.bf16.mxu1 %v14627_v57 }
 0x244   : > { %18882 = vst [vmem:[#allocation24_spill] sm:$0xff] %v14919_v46  ;;  %v5881_v44 = vmax.f32 %v5305_v42, 0.0  ;;  %v18884_v26 = vmax.f32 %v18883_v45, 0.0  ;;  %v18886_v34 = vmax.f32 %v18885_v2, 0.0  ;;  %v18888_v35 = vld [vmem:[#allocation39_spill] sm:$0xff]  ;;  %v5883_v53 = vmax.f32 %v5307_v14, 0.0  ;;  %10352 = vmatmul.mubr.msk.f32.gmra.mrb[24].mxu1 %vm379_vm0, %v14621_v8  ;;  %11165 = vmatpush3.bf16.msra.mxu0 %v14627_v57 }
 0x245   : > { %v18889_v50 = vmax.f32 %v18888_v35, 0.0  ;;  %v5376_v38 = vsub.f32 1.0, %v4800_v55  ;;  %v5378_v42 = vsub.f32 1.0, %v4802_v52  ;;  %v18890_v40 = vld [vmem:[#allocation41_spill] sm:$0xff]  ;;  %v2760_v35 = vpop.f32.mrb[170].mxu0  ;;  %v18895_v14 = vld [vmem:[#allocation42_spill] sm:$0xff]  ;;  %4340 = vmatprep.mubr.f32.mxu0 %v18508_v60  ;;  %4453 = vmatprep.mubr.f32.mxu1 %v18508_v60 }
 0x246   : > { %v14930_v16 = vmul.f32 %v5809_v1, %v18884_v26  ;;  %v14934_v15 = vmul.f32 %v5811_v61, %v18886_v34  ;;  %v18891_v18 = vmax.f32 %v18890_v40, 0.0  ;;  %v18893_v1 = vld [vmem:[#allocation40_spill] sm:$0xff]  ;;  %v4801_v61 = vand.u32 2147483647, %v2756_v37  ;;  %v2762_v40 = vpop.f32.mrb[171].mxu0  ;;  %11167 = vmatprep.subr.bf16.mxu0 %v14645_v0  ;;  %11244 = vmatpush3.bf16.msra.mxu1 %v14627_v57 }
 0x247   : > { %v14938_v59 = vmul.f32 %v5880_v32, %v18889_v50  ;;  %v18894_v26 = vmax.f32 %v18893_v1, 0.0  ;;  %v4803_v34 = vand.u32 2147483647, %v2869_v33  ;;  %v2873_v32 = vpop.f32.mrb[170].mxu1  ;;  %v18896_v52 = vmax.f32 %v18895_v14, 0.0  ;;  %10345 = vmatmul.mubr.msk.f32.gmra.mrb[26].mxu0 %vm379_vm0, %v14650_v39  ;;  %11237 = vmatprep.subr.bf16.mxu1 %v14645_v0 }
 0x248   : > { %18887 = vst [vmem:[#allocation22_spill] sm:$0xff] %v14934_v15  ;;  %v14944_v45 = vmul.f32 %v5882_v63, %v18891_v18  ;;  %v5952_v50 = vmax.f32 %v5376_v38, 0.0  ;;  %v5954_v15 = vmax.f32 %v5378_v42, 0.0  ;;  %v4872_v46 = vand.u32 2147483647, %v2760_v35  ;;  %v2875_v63 = vpop.f32.mrb[171].mxu1  ;;  %10353 = vmatmul.mubr.msk.f32.gmra.mrb[26].mxu1 %vm379_vm0, %v14650_v39  ;;  %11169 = vmatpush3.bf16.msra.mxu0 %v14645_v0 }
 0x249   : > { %v14948_v2 = vmul.f32 %v5881_v44, %v18894_v26  ;;  %v14953_v55 = vmul.f32 %v5883_v53, %v18896_v52  ;;  %v5377_v44 = vsub.f32 1.0, %v4801_v61  ;;  %v5379_v37 = vsub.f32 1.0, %v4803_v34  ;;  %v18898_v42 = vld [vmem:[#allocation43_spill] sm:$0xff]  ;;  %v18900_v35 = vld [vmem:[#allocation45_spill] sm:$0xff]  ;;  %4346 = vmatprep.mubr.f32.mxu0 %v18508_v60  ;;  %4459 = vmatprep.mubr.f32.mxu1 %v18508_v60 }
 0x24a   : > { %18892 = vst [vmem:[#allocation27_spill] sm:$0xff] %v14944_v45  ;;  %v4874_v33 = vand.u32 2147483647, %v2873_v32  ;;  %v4873_v18 = vand.u32 2147483647, %v2762_v40  ;;  %v5448_v53 = vsub.f32 1.0, %v4872_v46  ;;  %11171 = vmatprep.subr.bf16.mxu0 %v14670_v56  ;;  %11245 = vmatpush3.bf16.msra.mxu1 %v14645_v0 }
 0x24b   : > { %18897 = vst [vmem:[#allocation25_spill] sm:$0xff] %v14953_v55  ;;  %v4875_v38 = vand.u32 2147483647, %v2875_v63  ;;  %v18899_v1 = vmax.f32 %v18898_v42, 0.0  ;;  %v18901_v27 = vmax.f32 %v18900_v35, 0.0  ;;  %v5953_v34 = vmax.f32 %v5377_v44, 0.0  ;;  %10346 = vmatmul.mubr.msk.f32.gmra.mrb[28].mxu0 %vm379_vm0, %v14673_v49  ;;  %11238 = vmatprep.subr.bf16.mxu1 %v14670_v56 }
 0x24c   : > { %v5955_v32 = vmax.f32 %v5379_v37, 0.0  ;;  %v5450_v14 = vsub.f32 1.0, %v4874_v33  ;;  %v5449_v52 = vsub.f32 1.0, %v4873_v18  ;;  %v2766_v40 = vpop.f32.mrb[172].mxu0  ;;  %v2879_v55 = vpop.f32.mrb[172].mxu1  ;;  %v6024_v46 = vmax.f32 %v5448_v53, 0.0  ;;  %10354 = vmatmul.mubr.msk.f32.gmra.mrb[28].mxu1 %vm379_vm0, %v14673_v49  ;;  %11173 = vmatpush3.bf16.msra.mxu0 %v14670_v56 }
 0x24d   : > { %v14965_v26 = vmul.f32 %v5952_v50, %v18899_v1  ;;  %v14969_v61 = vmul.f32 %v5954_v15, %v18901_v27  ;;  %v5451_v63 = vsub.f32 1.0, %v4875_v38  ;;  %v4944_v45 = vand.u32 2147483647, %v2766_v40  ;;  %v2768_v44 = vpop.f32.mrb[173].mxu0  ;;  %v2881_v37 = vpop.f32.mrb[173].mxu1  ;;  %v18903_v33 = vld [vmem:[#allocation44_spill] sm:$0xff]  ;;  %4352 = vmatprep.mubr.f32.mxu0 %v18508_v60  ;;  %4465 = vmatprep.mubr.f32.mxu1 %v18508_v60 }
 0x24e   : > { %v4946_v47 = vand.u32 2147483647, %v2879_v55  ;;  %v6026_v15 = vmax.f32 %v5450_v14, 0.0  ;;  %v6025_v50 = vmax.f32 %v5449_v52, 0.0  ;;  %v18904_v6 = vmax.f32 %v18903_v33, 0.0  ;;  %v18905_v53 = vld [vmem:[#allocation46_spill] sm:$0xff]  ;;  %11175 = vmatprep.subr.bf16.mxu0 %v14681_v12  ;;  %11246 = vmatpush3.bf16.msra.mxu1 %v14670_v56 }
 0x24f   : > { %18902 = vst [vmem:[#allocation28_spill] sm:$0xff] %v14969_v61  ;;  %v18906_v55 = vmax.f32 %v18905_v53, 0.0  ;;  %v18908_v42 = vld [vmem:[#allocation47_spill] sm:$0xff]  ;;  %v6027_v62 = vmax.f32 %v5451_v63, 0.0  ;;  %v5520_v27 = vsub.f32 1.0, %v4944_v45  ;;  %v18910_v52 = vld [vmem:[#allocation50_spill] sm:$0xff]  ;;  %11239 = vmatprep.subr.bf16.mxu1 %v14681_v12 }
 0x250   : > { %v14980_v18 = vmul.f32 %v5953_v34, %v18904_v6  ;;  %v18909_v1 = vmax.f32 %v18908_v42, 0.0  ;;  %v5522_v14 = vsub.f32 1.0, %v4946_v47  ;;  %v18911_v40 = vmax.f32 %v18910_v52, 0.0  ;;  %v18913_v34 = vld [vmem:[#allocation48_spill] sm:$0xff]  ;;  %v2772_v42 = vpop.f32.mrb[174].mxu0  ;;  %v18915_v45 = vld [vmem:[#allocation51_spill] sm:$0xff]  ;;  %11177 = vmatpush3.bf16.msra.mxu0 %v14681_v12 }
 0x251   : > { %v14984_v38 = vmul.f32 %v5955_v32, %v18906_v55  ;;  %v18914_v6 = vmax.f32 %v18913_v34, 0.0  ;;  %v4945_v32 = vand.u32 2147483647, %v2768_v44  ;;  %v4947_v55 = vand.u32 2147483647, %v2881_v37  ;;  %v2774_v52 = vpop.f32.mrb[175].mxu0 }
 0x252   : > { %v14988_v35 = vmul.f32 %v6024_v46, %v18909_v1  ;;  %v14994_v33 = vmul.f32 %v6026_v15, %v18911_v40  ;;  %v2885_v46 = vpop.f32.mrb[174].mxu1  ;;  %v18916_v47 = vmax.f32 %v18915_v45, 0.0  ;;  %v6096_v1 = vmax.f32 %v5520_v27, 0.0  ;;  %11247 = vmatpush3.bf16.msra.mxu1 %v14681_v12  ;;  %v18982_v12 = vld [vmem:[#allocation74_spill] sm:$0xff] }
 0x253   : > { %18907 = vst [vmem:[#allocation26_spill] sm:$0xff] %v14984_v38  ;;  %v14998_v53 = vmul.f32 %v6025_v50, %v18914_v6  ;;  %v6098_v38 = vmax.f32 %v5522_v14, 0.0  ;;  %v5016_v61 = vand.u32 2147483647, %v2772_v42  ;;  %v2887_v15 = vpop.f32.mrb[175].mxu1  ;;  %v5521_v50 = vsub.f32 1.0, %v4945_v32 }
 0x254   : > { %18912 = vst [vmem:[#allocation29_spill] sm:$0xff] %v14994_v33  ;;  %v15003_v63 = vmul.f32 %v6027_v62, %v18916_v47  ;;  %v5523_v44 = vsub.f32 1.0, %v4947_v55  ;;  %v5018_v37 = vand.u32 2147483647, %v2885_v46  ;;  %v5017_v40 = vand.u32 2147483647, %v2774_v52 }
 0x255   : > { %v5592_v62 = vsub.f32 1.0, %v5016_v61  ;;  %v5019_v27 = vand.u32 2147483647, %v2887_v15  ;;  %v18918_v14 = vld [vmem:[#allocation49_spill] sm:$0xff]  ;;  %v18920_v42 = vld [vmem:[#allocation54_spill] sm:$0xff]  ;;  %v6097_v55 = vmax.f32 %v5521_v50, 0.0 }
 0x256   : > { %18917 = vst [vmem:[#allocation30_spill] sm:$0xff] %v15003_v63  ;;  %v18919_v34 = vmax.f32 %v18918_v14, 0.0  ;;  %v18921_v8 = vmax.f32 %v18920_v42, 0.0  ;;  %v6099_v46 = vmax.f32 %v5523_v44, 0.0  ;;  %v5594_v45 = vsub.f32 1.0, %v5018_v37  ;;  %v2956_v52 = vpop.f32.mrb[176].mxu0 }
 0x257   : > { %v5593_v47 = vsub.f32 1.0, %v5017_v40  ;;  %v3069_v63 = vpop.f32.mrb[176].mxu1  ;;  %v6168_v61 = vmax.f32 %v5592_v62, 0.0  ;;  %v5595_v15 = vsub.f32 1.0, %v5019_v27  ;;  %v4516_v33 = vand.u32 2147483647, %v2956_v52 }
 0x258   : > { %v15015_v6 = vmul.f32 %v6096_v1, %v18919_v34  ;;  %v15019_v32 = vmul.f32 %v6098_v38, %v18921_v8  ;;  %v4518_v22 = vand.u32 2147483647, %v3069_v63  ;;  %v6170_v38 = vmax.f32 %v5594_v45, 0.0  ;;  %v2958_v50 = vpop.f32.mrb[177].mxu0  ;;  %v3071_v44 = vpop.f32.mrb[177].mxu1  ;;  %v18923_v37 = vld [vmem:[#allocation52_spill] sm:$0xff] }
 0x259   : > { %v6169_v1 = vmax.f32 %v5593_v47, 0.0  ;;  %v18924_v51 = vmax.f32 %v18923_v37, 0.0  ;;  %v18925_v62 = vld [vmem:[#allocation55_spill] sm:$0xff]  ;;  %v18928_v14 = vld [vmem:[#allocation53_spill] sm:$0xff]  ;;  %v6171_v39 = vmax.f32 %v5595_v15, 0.0  ;;  %v5092_v8 = vsub.f32 1.0, %v4516_v33 }
 0x25a   : > { %18922 = vst [vmem:[#allocation32_spill] sm:$0xff] %v15019_v32  ;;  %v18926_v63 = vmax.f32 %v18925_v62, 0.0  ;;  %v18929_v34 = vmax.f32 %v18928_v14, 0.0  ;;  %v5094_v45 = vsub.f32 1.0, %v4518_v22  ;;  %v18930_v47 = vld [vmem:[#allocation57_spill] sm:$0xff]  ;;  %v2962_v14 = vpop.f32.mrb[178].mxu0 }
 0x25b   : > { %v15030_v40 = vmul.f32 %v6097_v55, %v18924_v51  ;;  %v18931_v52 = vmax.f32 %v18930_v47, 0.0  ;;  %v18933_v55 = vld [vmem:[#allocation56_spill] sm:$0xff]  ;;  %v18935_v33 = vld [vmem:[#allocation58_spill] sm:$0xff]  ;;  %v4588_v32 = vand.u32 2147483647, %v2962_v14  ;;  %v2964_v47 = vpop.f32.mrb[179].mxu0 }
 0x25c   : > { %v15034_v27 = vmul.f32 %v6099_v46, %v18926_v63  ;;  %v15038_v42 = vmul.f32 %v6168_v61, %v18929_v34  ;;  %v18934_v51 = vmax.f32 %v18933_v55, 0.0  ;;  %v4517_v46 = vand.u32 2147483647, %v2958_v50  ;;  %v3075_v61 = vpop.f32.mrb[178].mxu1 }
 0x25d   : > { %v15044_v37 = vmul.f32 %v6170_v38, %v18931_v52  ;;  %v4519_v63 = vand.u32 2147483647, %v3071_v44  ;;  %v18936_v22 = vmax.f32 %v18935_v33, 0.0  ;;  %v5668_v34 = vmax.f32 %v5092_v8, 0.0  ;;  %v3077_v38 = vpop.f32.mrb[179].mxu1 }
 0x25e   : > { %18927 = vst [vmem:[#allocation31_spill] sm:$0xff] %v15034_v27  ;;  %v15048_v62 = vmul.f32 %v6169_v1, %v18934_v51  ;;  %v5670_v27 = vmax.f32 %v5094_v45, 0.0  ;;  %v5093_v1 = vsub.f32 1.0, %v4517_v46  ;;  %v4590_v44 = vand.u32 2147483647, %v3075_v61  ;;  %v18938_v45 = vld [vmem:[#allocation59_spill] sm:$0xff] }
 0x25f   : > { %18932 = vst [vmem:[#allocation33_spill] sm:$0xff] %v15044_v37  ;;  %v15053_v15 = vmul.f32 %v6171_v39, %v18936_v22  ;;  %v5095_v50 = vsub.f32 1.0, %v4519_v63  ;;  %v4589_v52 = vand.u32 2147483647, %v2964_v47  ;;  %v5164_v39 = vsub.f32 1.0, %v4588_v32  ;;  %v2968_v22 = vpop.f32.mrb[180].mxu0 }
 0x260   : > { %v4591_v8 = vand.u32 2147483647, %v3077_v38  ;;  %v18939_v55 = vmax.f32 %v18938_v45, 0.0  ;;  %v18940_v49 = vmax.f32 %v13085_v11, 0.0  ;;  %v5669_v63 = vmax.f32 %v5093_v1, 0.0  ;;  %v3081_v32 = vpop.f32.mrb[180].mxu1 }
 0x261   : > { %18937 = vst [vmem:[#allocation4_spill] sm:$0xff] %v15053_v15  ;;  %v5671_v14 = vmax.f32 %v5095_v50, 0.0  ;;  %v5166_v61 = vsub.f32 1.0, %v4590_v44  ;;  %v5165_v33 = vsub.f32 1.0, %v4589_v52  ;;  %v5740_v47 = vmax.f32 %v5164_v39, 0.0  ;;  %v11893_v37 = vld [vmem:[%s12001_s18 + $0x38] sm:$0xff] }
 0x262   : > { %v15065_v51 = vmul.f32 %v5668_v34, %v18939_v55  ;;  %v15069_v46 = vmul.f32 %v5670_v27, %v18940_v49  ;;  %v5167_v60 = vsub.f32 1.0, %v4591_v8  ;;  %v4660_v38 = vand.u32 2147483647, %v2968_v22  ;;  %10347 = vmatmul.mubr.msk.f32.gmra.mrb[30].mxu0 %vm379_vm0, %v11893_v37  ;;  %10355 = vmatmul.mubr.msk.f32.gmra.mrb[30].mxu1 %vm379_vm0, %v11893_v37  ;;  %v2970_v34 = vpop.f32.mrb[181].mxu0  ;;  %v3083_v1 = vpop.f32.mrb[181].mxu1  ;;  %v18941_v50 = vld [vmem:[#allocation60_spill] sm:$0xff] }
 0x263   : > { %v4662_v15 = vand.u32 2147483647, %v3081_v32  ;;  %v5742_v11 = vmax.f32 %v5166_v61, 0.0  ;;  %v5741_v27 = vmax.f32 %v5165_v33, 0.0  ;;  %10714 = vmatprep.mubr.f32.mxu0 %v14685_v10  ;;  %v18942_v44 = vmax.f32 %v18941_v50, 0.0  ;;  %v18946_v61 = vld [vmem:[#allocation62_spill] sm:$0xff] }
 0x264   : > { %v18943_v52 = vmax.f32 %v13115_v5, 0.0  ;;  %v18945_v8 = vmax.f32 %v13122_v20, 0.0  ;;  %v5743_v37 = vmax.f32 %v5167_v60, 0.0  ;;  %v5236_v55 = vsub.f32 1.0, %v4660_v38  ;;  %v18948_v22 = vld [vmem:[#allocation61_spill] sm:$0xff]  ;;  %v2974_v50 = vpop.f32.mrb[182].mxu0 }
 0x265   : > { %v15079_v36 = vmul.f32 %v5669_v63, %v18942_v44  ;;  %v5238_v49 = vsub.f32 1.0, %v4662_v15  ;;  %v18947_v33 = vmax.f32 %v18946_v61, 0.0  ;;  %v18949_v63 = vmax.f32 %v18948_v22, 0.0  ;;  %v3087_v44 = vpop.f32.mrb[182].mxu1  ;;  %v18950_v20 = vld [vmem:[#allocation63_spill] sm:$0xff]  ;;  %v18953_v22 = vld [vmem:[#allocation64_spill] sm:$0xff] }
 0x266   : > { %v15083_v39 = vmul.f32 %v5671_v14, %v18943_v52  ;;  %v15087_v45 = vmul.f32 %v5740_v47, %v18945_v8  ;;  %v4661_v5 = vand.u32 2147483647, %v2970_v34  ;;  %v4663_v14 = vand.u32 2147483647, %v3083_v1  ;;  %v2976_v8 = vpop.f32.mrb[183].mxu0  ;;  %10715 = vmatmul.mubr.f32.vlgmr.msra.gmra.mrb[32].mxu0 %v14707_v29  ;;  %s11903_s18 = smov 4  }
 0x267   : > { %v15092_v10 = vmul.f32 %v5742_v11, %v18947_v33  ;;  %v15096_v32 = vmul.f32 %v5741_v27, %v18949_v63  ;;  %v18951_v47 = vmax.f32 %v18950_v20, 0.0  ;;  %v5812_v15 = vmax.f32 %v5236_v55, 0.0  ;;  %v3089_v11 = vpop.f32.mrb[183].mxu1  ;;  %10717 = vmatprep.mubr.f32.mxu0 %v14735_v9  ;;  %v18955_v55 = vld [vmem:[#allocation66_spill] sm:$0xff] }
 0x268   : > { %18944 = vst [vmem:[#allocation34_spill] sm:$0xff] %v15083_v39  ;;  %v5814_v38 = vmax.f32 %v5238_v49, 0.0  ;;  %v4732_v52 = vand.u32 2147483647, %v2974_v50  ;;  %v5237_v27 = vsub.f32 1.0, %v4661_v5  ;;  %v5239_v34 = vsub.f32 1.0, %v4663_v14 }
 0x269   : > { %v15101_v60 = vmul.f32 %v5743_v37, %v18951_v47  ;;  %v4734_v1 = vand.u32 2147483647, %v3087_v44  ;;  %v4733_v61 = vand.u32 2147483647, %v2976_v8  ;;  %v4735_v33 = vand.u32 2147483647, %v3089_v11 }
 0x26a   : > { %v5308_v57 = vsub.f32 1.0, %v4732_v52  ;;  %v18954_v37 = vmax.f32 %v18953_v22, 0.0  ;;  %v18956_v49 = vmax.f32 %v18955_v55, 0.0  ;;  %v5813_v20 = vmax.f32 %v5237_v27, 0.0  ;;  %v2980_v5 = vpop.f32.mrb[184].mxu0  ;;  %v3093_v14 = vpop.f32.mrb[184].mxu1  ;;  %10718 = vmatmul.mubr.f32.gmra.mrb[34].mxu0 %v14759_v23 }
 0x26b   : > { %18952 = vst [vmem:[#allocation35_spill] sm:$0xff] %v15101_v60  ;;  %v5815_v29 = vmax.f32 %v5239_v34, 0.0  ;;  %v5310_v47 = vsub.f32 1.0, %v4734_v1  ;;  %v5309_v60 = vsub.f32 1.0, %v4733_v61  ;;  %v5311_v9 = vsub.f32 1.0, %v4735_v33  ;;  %v3095_v22 = vpop.f32.mrb[185].mxu1  ;;  %10720 = vmatprep.mubr.f32.mxu0 %v14781_v19 }
 0x26c   : > { %v15108_v63 = vmul.f32 %v5812_v15, %v18954_v37  ;;  %v15112_v50 = vmul.f32 %v5814_v38, %v18956_v49  ;;  %v5884_v44 = vmax.f32 %v5308_v57, 0.0  ;;  %v4804_v52 = vand.u32 2147483647, %v2980_v5  ;;  %v2982_v38 = vpop.f32.mrb[185].mxu0  ;;  %v18958_v27 = vld [vmem:[#allocation65_spill] sm:$0xff]  ;;  %v18960_v61 = vld [vmem:[#allocation67_spill] sm:$0xff] }
 0x26d   : > { %v4806_v8 = vand.u32 2147483647, %v3093_v14  ;;  %v5886_v15 = vmax.f32 %v5310_v47, 0.0  ;;  %v5885_v11 = vmax.f32 %v5309_v60, 0.0  ;;  %v18959_v34 = vmax.f32 %v18958_v27, 0.0  ;;  %v18963_v33 = vld [vmem:[#allocation68_spill] sm:$0xff] }
 0x26e   : > { %18957 = vst [vmem:[#allocation37_spill] sm:$0xff] %v15112_v50  ;;  %v18961_v0 = vmax.f32 %v18960_v61, 0.0  ;;  %v18964_v37 = vmax.f32 %v18963_v33, 0.0  ;;  %v5887_v23 = vmax.f32 %v5311_v9, 0.0  ;;  %v5380_v49 = vsub.f32 1.0, %v4804_v52  ;;  %v18965_v60 = vld [vmem:[#allocation70_spill] sm:$0xff]  ;;  %10721 = vmatmul.mubr.f32.gmra.mrb[36].mxu0 %v14803_v13 }
 0x26f   : > { %v15120_v1 = vmul.f32 %v5813_v20, %v18959_v34  ;;  %v5382_v47 = vsub.f32 1.0, %v4806_v8  ;;  %v18966_v5 = vmax.f32 %v18965_v60, 0.0  ;;  %v18968_v19 = vld [vmem:[#allocation69_spill] sm:$0xff]  ;;  %v4805_v20 = vand.u32 2147483647, %v2982_v38  ;;  %v2986_v61 = vpop.f32.mrb[186].mxu0  ;;  %10723 = vmatprep.mubr.f32.mxu0 %v14825_v28 }
 0x270   : > { %v15124_v57 = vmul.f32 %v5815_v29, %v18961_v0  ;;  %v15128_v55 = vmul.f32 %v5884_v44, %v18964_v37  ;;  %v18969_v39 = vmax.f32 %v18968_v19, 0.0  ;;  %v4807_v34 = vand.u32 2147483647, %v3095_v22  ;;  %v3099_v29 = vpop.f32.mrb[186].mxu1  ;;  %v18970_v0 = vld [vmem:[#allocation71_spill] sm:$0xff]  ;;  %v2988_v37 = vpop.f32.mrb[187].mxu0 }
 0x271   : > { %v15132_v14 = vmul.f32 %v5886_v15, %v18966_v5  ;;  %v18971_v44 = vmax.f32 %v18970_v0, 0.0  ;;  %v5956_v9 = vmax.f32 %v5380_v49, 0.0  ;;  %v5958_v52 = vmax.f32 %v5382_v47, 0.0  ;;  %v3101_v15 = vpop.f32.mrb[187].mxu1  ;;  %v18973_v5 = vld [vmem:[#allocation72_spill] sm:$0xff] }
 0x272   : > { %18962 = vst [vmem:[#allocation36_spill] sm:$0xff] %v15124_v57  ;;  %v15136_v27 = vmul.f32 %v5885_v11, %v18969_v39  ;;  %v4876_v8 = vand.u32 2147483647, %v2986_v61  ;;  %v5381_v39 = vsub.f32 1.0, %v4805_v20  ;;  %v5383_v11 = vsub.f32 1.0, %v4807_v34  ;;  %v2992_v20 = vpop.f32.mrb[188].mxu0  ;;  %10724 = vmatmul.mubr.f32.gmra.mrb[38].mxu0 %v14847_v30 }
 0x273   : > { %18967 = vst [vmem:[#allocation38_spill] sm:$0xff] %v15132_v14  ;;  %v15141_v33 = vmul.f32 %v5887_v23, %v18971_v44  ;;  %v4878_v38 = vand.u32 2147483647, %v3099_v29  ;;  %v4877_v22 = vand.u32 2147483647, %v2988_v37  ;;  %v18974_v23 = vmax.f32 %v18973_v5, 0.0  ;;  %10726 = vmatprep.mubr.f32.mxu0 %v14699_v25 }
 0x274   : > { %v5452_v56 = vsub.f32 1.0, %v4876_v8  ;;  %v4879_v60 = vand.u32 2147483647, %v3101_v15  ;;  %v18975_v49 = vmax.f32 %v13236_v21, 0.0  ;;  %v5957_v61 = vmax.f32 %v5381_v39, 0.0  ;;  %v3105_v34 = vpop.f32.mrb[188].mxu1 }
 0x275   : > { %18972 = vst [vmem:[#allocation39_spill] sm:$0xff] %v15141_v33  ;;  %v15148_v19 = vmul.f32 %v5956_v9, %v18974_v23  ;;  %v5959_v13 = vmax.f32 %v5383_v11, 0.0  ;;  %v5454_v0 = vsub.f32 1.0, %v4878_v38  ;;  %v5453_v44 = vsub.f32 1.0, %v4877_v22  ;;  %v2994_v5 = vpop.f32.mrb[189].mxu0  ;;  %v3107_v21 = vpop.f32.mrb[189].mxu1 }
 0x276   : > { %v15152_v47 = vmul.f32 %v5958_v52, %v18975_v49  ;;  %v6028_v29 = vmax.f32 %v5452_v56, 0.0  ;;  %v5455_v28 = vsub.f32 1.0, %v4879_v60  ;;  %v4948_v8 = vand.u32 2147483647, %v2992_v20  ;;  %v18977_v52 = vld [vmem:[#allocation73_spill] sm:$0xff]  ;;  %v18979_v38 = vld [vmem:[#allocation75_spill] sm:$0xff]  ;;  %10727 = vmatmul.mubr.f32.gmra.mrb[40].mxu0 %v14721_v58 }
 0x277   : > { %v4950_v37 = vand.u32 2147483647, %v3105_v34  ;;  %v6030_v9 = vmax.f32 %v5454_v0, 0.0  ;;  %v6029_v15 = vmax.f32 %v5453_v44, 0.0  ;;  %v18978_v39 = vmax.f32 %v18977_v52, 0.0  ;;  %v18984_v44 = vld [vmem:[#allocation77_spill] sm:$0xff]  ;;  %10729 = vmatprep.mubr.f32.mxu0 %v14751_v54 }
 0x278   : > { %18976 = vst [vmem:[#allocation41_spill] sm:$0xff] %v15152_v47  ;;  %v18980_v22 = vmax.f32 %v18979_v38, 0.0  ;;  %v18983_v56 = vmax.f32 %v18982_v12, 0.0  ;;  %v6031_v49 = vmax.f32 %v5455_v28, 0.0  ;;  %v5524_v30 = vsub.f32 1.0, %v4948_v8  ;;  %v18987_v25 = vld [vmem:[#allocation76_spill] sm:$0xff] }
 0x279   : > { %v15159_v11 = vmul.f32 %v5957_v61, %v18978_v39  ;;  %v5526_v0 = vsub.f32 1.0, %v4950_v37  ;;  %v18985_v20 = vmax.f32 %v18984_v44, 0.0  ;;  %v18988_v33 = vmax.f32 %v18987_v25, 0.0  ;;  %v2998_v38 = vpop.f32.mrb[190].mxu0  ;;  %v19301_v14 = vld [vmem:[#allocation182_spill] sm:$0xff]  ;;  %v19310_v50 = vld [vmem:[#allocation4_spill] sm:$0xff] }
 0x27a   : > { %v15163_v23 = vmul.f32 %v5959_v13, %v18980_v22  ;;  %v15167_v60 = vmul.f32 %v6028_v29, %v18983_v56  ;;  %v4949_v61 = vand.u32 2147483647, %v2994_v5  ;;  %v4951_v39 = vand.u32 2147483647, %v3107_v21  ;;  %v3111_v13 = vpop.f32.mrb[190].mxu1  ;;  %v18989_v22 = vld [vmem:[#allocation78_spill] sm:$0xff]  ;;  %10730 = vmatmul.mubr.f32.gmra.mrb[42].mxu0 %v14767_v48 }
 0x27b   : > { %v15171_v34 = vmul.f32 %v6030_v9, %v18985_v20  ;;  %v15175_v52 = vmul.f32 %v6029_v15, %v18988_v33  ;;  %v6100_v29 = vmax.f32 %v5524_v30, 0.0  ;;  %v6102_v28 = vmax.f32 %v5526_v0, 0.0  ;;  %v3000_v37 = vpop.f32.mrb[191].mxu0  ;;  %v3113_v56 = vpop.f32.mrb[191].mxu1  ;;  %v18992_v21 = vld [vmem:[#allocation79_spill] sm:$0xff]  ;;  %10732 = vmatprep.mubr.f32.mxu0 %v14795_v7  ;;  %v19007_v7 = vld [vmem:[#allocation84_spill] sm:$0xff] }
 0x27c   : > { %18981 = vst [vmem:[#allocation40_spill] sm:$0xff] %v15163_v23  ;;  %v18990_v23 = vmax.f32 %v18989_v22, 0.0  ;;  %v5020_v8 = vand.u32 2147483647, %v2998_v38  ;;  %v5525_v9 = vsub.f32 1.0, %v4949_v61  ;;  %v5527_v44 = vsub.f32 1.0, %v4951_v39 }
 0x27d   : > { %18986 = vst [vmem:[#allocation42_spill] sm:$0xff] %v15171_v34  ;;  %v5022_v20 = vand.u32 2147483647, %v3111_v13  ;;  %v5021_v33 = vand.u32 2147483647, %v3000_v37  ;;  %v18993_v25 = vmax.f32 %v18992_v21, 0.0 }
 0x27e   : > { %v15179_v12 = vmul.f32 %v6031_v49, %v18990_v23  ;;  %v5596_v15 = vsub.f32 1.0, %v5020_v8  ;;  %v5023_v5 = vand.u32 2147483647, %v3113_v56  ;;  %v18994_v23 = vld [vmem:[#allocation81_spill] sm:$0xff]  ;;  %v6101_v0 = vmax.f32 %v5525_v9, 0.0  ;;  %v3182_v61 = vpop.f32.mrb[192].mxu0  ;;  %10733 = vmatmul.mubr.f32.gmra.mrb[44].mxu0 %v14811_v4 }
 0x27f   : > { %v15185_v22 = vmul.f32 %v6100_v29, %v18993_v25  ;;  %v18995_v49 = vmax.f32 %v18994_v23, 0.0  ;;  %v6103_v38 = vmax.f32 %v5527_v44, 0.0  ;;  %v5597_v58 = vsub.f32 1.0, %v5021_v33  ;;  %v3295_v39 = vpop.f32.mrb[192].mxu1  ;;  %v3184_v29 = vpop.f32.mrb[193].mxu0  ;;  %v18999_v44 = vld [vmem:[#allocation83_spill] sm:$0xff]  ;;  %10735 = vmatprep.mubr.f32.mxu0 %v14839_v43 }
 0x280   : > { %18991 = vst [vmem:[#allocation43_spill] sm:$0xff] %v15179_v12  ;;  %v5598_v12 = vsub.f32 1.0, %v5022_v20  ;;  %v6172_v13 = vmax.f32 %v5596_v15, 0.0  ;;  %v5599_v37 = vsub.f32 1.0, %v5023_v5  ;;  %v4520_v57 = vand.u32 2147483647, %v3182_v61 }
 0x281   : > { %v15189_v30 = vmul.f32 %v6102_v28, %v18995_v49  ;;  %v4522_v54 = vand.u32 2147483647, %v3295_v39  ;;  %v6173_v56 = vmax.f32 %v5597_v58, 0.0  ;;  %v3297_v21 = vpop.f32.mrb[193].mxu1  ;;  %v18997_v28 = vld [vmem:[#allocation80_spill] sm:$0xff]  ;;  %v19000_v20 = vmax.f32 %v18999_v44, 0.0 }
 0x282   : > { %v6174_v8 = vmax.f32 %v5598_v12, 0.0  ;;  %v18998_v25 = vmax.f32 %v18997_v28, 0.0  ;;  %v19002_v15 = vld [vmem:[#allocation82_spill] sm:$0xff]  ;;  %v6175_v49 = vmax.f32 %v5599_v37, 0.0  ;;  %v5096_v48 = vsub.f32 1.0, %v4520_v57  ;;  %v19004_v58 = vld [vmem:[#allocation85_spill] sm:$0xff] }
 0x283   : > { %18996 = vst [vmem:[#allocation45_spill] sm:$0xff] %v15189_v30  ;;  %v15199_v33 = vmul.f32 %v6103_v38, %v19000_v20  ;;  %v19003_v5 = vmax.f32 %v19002_v15, 0.0  ;;  %v5098_v12 = vsub.f32 1.0, %v4522_v54  ;;  %v19005_v61 = vmax.f32 %v19004_v58, 0.0  ;;  %v3188_v44 = vpop.f32.mrb[194].mxu0  ;;  %v3301_v38 = vpop.f32.mrb[194].mxu1 }
 0x284   : > { %v15195_v9 = vmul.f32 %v6101_v0, %v18998_v25  ;;  %v19008_v30 = vmax.f32 %v19007_v7, 0.0  ;;  %v4521_v0 = vand.u32 2147483647, %v3184_v29  ;;  %v4523_v25 = vand.u32 2147483647, %v3297_v21  ;;  %v19009_v20 = vld [vmem:[#allocation87_spill] sm:$0xff] }
 0x285   : > { %19001 = vst [vmem:[#allocation44_spill] sm:$0xff] %v15199_v33  ;;  %v15203_v23 = vmul.f32 %v6172_v13, %v19003_v5  ;;  %v15207_v39 = vmul.f32 %v6174_v8, %v19005_v61  ;;  %v19010_v33 = vmax.f32 %v19009_v20, 0.0  ;;  %v5672_v13 = vmax.f32 %v5096_v48, 0.0  ;;  %v3190_v54 = vpop.f32.mrb[195].mxu0  ;;  %v3303_v5 = vpop.f32.mrb[195].mxu1  ;;  %v19018_v34 = vld [vmem:[#allocation17_spill] sm:$0xff] }
 0x286   : > { %v15211_v28 = vmul.f32 %v6173_v56, %v19008_v30  ;;  %v5674_v37 = vmax.f32 %v5098_v12, 0.0  ;;  %v4592_v57 = vand.u32 2147483647, %v3188_v44  ;;  %v5097_v8 = vsub.f32 1.0, %v4521_v0  ;;  %v19012_v56 = vld [vmem:[#allocation89_spill] sm:$0xff]  ;;  %v3194_v0 = vpop.f32.mrb[196].mxu0  ;;  %10736 = vmatmul.mubr.f32.gmra.mrb[46].mxu0 %v19018_v34 }
 0x287   : > { %19006 = vst [vmem:[#allocation46_spill] sm:$0xff] %v15207_v39  ;;  %v15215_v15 = vmul.f32 %v6175_v49, %v19010_v33  ;;  %v5099_v58 = vsub.f32 1.0, %v4523_v25  ;;  %v4594_v61 = vand.u32 2147483647, %v3301_v38  ;;  %v4593_v30 = vand.u32 2147483647, %v3190_v54 }
 0x288   : > { %v19013_v29 = vmax.f32 %v19012_v56, 0.0  ;;  %v5168_v7 = vsub.f32 1.0, %v4592_v57  ;;  %v4595_v33 = vand.u32 2147483647, %v3303_v5  ;;  %v19015_v49 = vld [vmem:[#allocation86_spill] sm:$0xff]  ;;  %v5673_v44 = vmax.f32 %v5097_v8, 0.0 }
 0x289   : > { %19011 = vst [vmem:[#allocation47_spill] sm:$0xff] %v15215_v15  ;;  %v19016_v48 = vmax.f32 %v19015_v49, 0.0  ;;  %v5675_v20 = vmax.f32 %v5099_v58, 0.0  ;;  %v5170_v15 = vsub.f32 1.0, %v4594_v61  ;;  %v5169_v4 = vsub.f32 1.0, %v4593_v30  ;;  %v3307_v25 = vpop.f32.mrb[196].mxu1 }
 0x28a   : > { %v15221_v21 = vmul.f32 %v5674_v37, %v19013_v29  ;;  %v5744_v38 = vmax.f32 %v5168_v7, 0.0  ;;  %v5171_v54 = vsub.f32 1.0, %v4595_v33  ;;  %v4664_v39 = vand.u32 2147483647, %v3194_v0  ;;  %v19019_v37 = vld [vmem:[#allocation90_spill] sm:$0xff]  ;;  %v3309_v49 = vpop.f32.mrb[197].mxu1 }
 0x28b   : > { %v15225_v12 = vmul.f32 %v5672_v13, %v19016_v48  ;;  %v4666_v43 = vand.u32 2147483647, %v3307_v25  ;;  %v19020_v56 = vmax.f32 %v19019_v37, 0.0  ;;  %v5746_v5 = vmax.f32 %v5170_v15, 0.0  ;;  %v3196_v13 = vpop.f32.mrb[197].mxu0  ;;  %v19022_v8 = vld [vmem:[#allocation2_spill] sm:$0xff] }
 0x28c   : > { %19014 = vst [vmem:[#allocation50_spill] sm:$0xff] %v15221_v21  ;;  %v5745_v29 = vmax.f32 %v5169_v4, 0.0  ;;  %10738 = vmatprep.mubr.f32.mxu0 %v19022_v8  ;;  %v19023_v58 = vld [vmem:[#allocation88_spill] sm:$0xff]  ;;  %v19026_v7 = vld [vmem:[#allocation91_spill] sm:$0xff]  ;;  %v5747_v0 = vmax.f32 %v5171_v54, 0.0  ;;  %v5240_v34 = vsub.f32 1.0, %v4664_v39 }
 0x28d   : > { %19017 = vst [vmem:[#allocation48_spill] sm:$0xff] %v15225_v12  ;;  %v15230_v57 = vmul.f32 %v5675_v20, %v19020_v56  ;;  %v19024_v61 = vmax.f32 %v19023_v58, 0.0  ;;  %v19027_v33 = vmax.f32 %v19026_v7, 0.0  ;;  %v5242_v25 = vsub.f32 1.0, %v4666_v43  ;;  %v19029_v37 = vld [vmem:[#allocation93_spill] sm:$0xff]  ;;  %v19032_v15 = vld [vmem:[#allocation92_spill] sm:$0xff] }
 0x28e   : > { %v19030_v20 = vmax.f32 %v19029_v37, 0.0  ;;  %v19033_v4 = vmax.f32 %v19032_v15, 0.0  ;;  %v4665_v8 = vand.u32 2147483647, %v3196_v13  ;;  %v4667_v21 = vand.u32 2147483647, %v3309_v49 }
 0x28f   : > { %19021 = vst [vmem:[#allocation51_spill] sm:$0xff] %v15230_v57  ;;  %v15235_v30 = vmul.f32 %v5673_v44, %v19024_v61  ;;  %v15239_v48 = vmul.f32 %v5744_v38, %v19027_v33  ;;  %v3200_v58 = vpop.f32.mrb[198].mxu0  ;;  %v3313_v44 = vpop.f32.mrb[198].mxu1  ;;  %v19035_v61 = vld [vmem:[#allocation94_spill] sm:$0xff]  ;;  %v5816_v38 = vmax.f32 %v5240_v34, 0.0  ;;  %v5818_v54 = vmax.f32 %v5242_v25, 0.0 }
 0x290   : > { %v15243_v56 = vmul.f32 %v5746_v5, %v19030_v20  ;;  %v15247_v57 = vmul.f32 %v5745_v29, %v19033_v4  ;;  %v4736_v39 = vand.u32 2147483647, %v3200_v58  ;;  %v3202_v43 = vpop.f32.mrb[199].mxu0  ;;  %v3315_v33 = vpop.f32.mrb[199].mxu1  ;;  %v19038_v37 = vld [vmem:[#allocation279_spill] sm:$0xff]  ;;  %v5241_v5 = vsub.f32 1.0, %v4665_v8 }
 0x291   : > { %19025 = vst [vmem:[#allocation49_spill] sm:$0xff] %v15235_v30  ;;  %19028 = vst [vmem:[#allocation54_spill] sm:$0xff] %v15239_v48  ;;  %v19036_v30 = vmax.f32 %v19035_v61, 0.0  ;;  %10739 = vmatmul.mubr.f32.gmra.mrb[48].mxu0 %v19038_v37  ;;  %v5243_v20 = vsub.f32 1.0, %v4667_v21  ;;  %v4738_v15 = vand.u32 2147483647, %v3313_v44 }
 0x292   : > { %19031 = vst [vmem:[#allocation52_spill] sm:$0xff] %v15243_v56  ;;  %19034 = vst [vmem:[#allocation55_spill] sm:$0xff] %v15247_v57  ;;  %v4737_v29 = vand.u32 2147483647, %v3202_v43  ;;  %v19039_v4 = vld [vmem:[#allocation6_spill] sm:$0xff]  ;;  %v19040_v13 = vld [vmem:[#allocation95_spill] sm:$0xff] }
 0x293   : > { %v15251_v7 = vmul.f32 %v5747_v0, %v19036_v30  ;;  %10741 = vmatprep.mubr.f32.mxu0 %v19039_v4  ;;  %v19041_v49 = vmax.f32 %v19040_v13, 0.0  ;;  %v19043_v61 = vld [vmem:[#allocation97_spill] sm:$0xff]  ;;  %v5312_v34 = vsub.f32 1.0, %v4736_v39  ;;  %v4739_v25 = vand.u32 2147483647, %v3315_v33  ;;  %v3206_v8 = vpop.f32.mrb[200].mxu0 }
 0x294   : > { %v19044_v30 = vmax.f32 %v19043_v61, 0.0  ;;  %v5817_v58 = vmax.f32 %v5241_v5, 0.0  ;;  %v5314_v57 = vsub.f32 1.0, %v4738_v15  ;;  %v5313_v37 = vsub.f32 1.0, %v4737_v29  ;;  %v3319_v21 = vpop.f32.mrb[200].mxu1  ;;  %v19046_v12 = vld [vmem:[#allocation7_spill] sm:$0xff] }
 0x295   : > { %19037 = vst [vmem:[#allocation53_spill] sm:$0xff] %v15251_v7  ;;  %v15257_v56 = vmul.f32 %v5816_v38, %v19041_v49  ;;  %v5819_v7 = vmax.f32 %v5243_v20, 0.0  ;;  %v5888_v44 = vmax.f32 %v5312_v34, 0.0  ;;  %v5315_v43 = vsub.f32 1.0, %v4739_v25  ;;  %10742 = vmatmul.mubr.f32.gmra.mrb[50].mxu0 %v19046_v12  ;;  %v19047_v38 = vld [vmem:[#allocation96_spill] sm:$0xff]  ;;  %v3208_v20 = vpop.f32.mrb[201].mxu0 }
 0x296   : > { %v15261_v0 = vmul.f32 %v5818_v54, %v19044_v30  ;;  %v4808_v48 = vand.u32 2147483647, %v3206_v8  ;;  %v4810_v4 = vand.u32 2147483647, %v3319_v21  ;;  %v19048_v13 = vmax.f32 %v19047_v38, 0.0  ;;  %v19050_v54 = vld [vmem:[#allocation98_spill] sm:$0xff] }
 0x297   : > { %19042 = vst [vmem:[#allocation57_spill] sm:$0xff] %v15257_v56  ;;  %v19051_v61 = vmax.f32 %v19050_v54, 0.0  ;;  %v5890_v33 = vmax.f32 %v5314_v57, 0.0  ;;  %v5889_v5 = vmax.f32 %v5313_v37, 0.0  ;;  %v3321_v15 = vpop.f32.mrb[201].mxu1  ;;  %v19053_v29 = vld [vmem:[#allocation10_spill] sm:$0xff] }
 0x298   : > { %19045 = vst [vmem:[#allocation56_spill] sm:$0xff] %v15261_v0  ;;  %v15266_v49 = vmul.f32 %v5817_v58, %v19048_v13  ;;  %10744 = vmatprep.mubr.f32.mxu0 %v19053_v29  ;;  %v19054_v30 = vld [vmem:[#allocation99_spill] sm:$0xff]  ;;  %v5891_v8 = vmax.f32 %v5315_v43, 0.0  ;;  %v5384_v12 = vsub.f32 1.0, %v4808_v48  ;;  %v5386_v21 = vsub.f32 1.0, %v4810_v4  ;;  %v19057_v38 = vld [vmem:[#allocation101_spill] sm:$0xff] }
 0x299   : > { %v15270_v39 = vmul.f32 %v5819_v7, %v19051_v61  ;;  %v19055_v34 = vmax.f32 %v19054_v30, 0.0  ;;  %v19058_v58 = vmax.f32 %v19057_v38, 0.0  ;;  %v19060_v54 = vld [vmem:[#allocation100_spill] sm:$0xff]  ;;  %v4809_v57 = vand.u32 2147483647, %v3208_v20  ;;  %v3325_v0 = vpop.f32.mrb[202].mxu1 }
 0x29a   : > { %19049 = vst [vmem:[#allocation58_spill] sm:$0xff] %v15266_v49  ;;  %v19061_v7 = vmax.f32 %v19060_v54, 0.0  ;;  %v4811_v37 = vand.u32 2147483647, %v3321_v15  ;;  %v19063_v29 = vld [vmem:[#allocation103_spill] sm:$0xff]  ;;  %v5962_v43 = vmax.f32 %v5386_v21, 0.0 }
 0x29b   : > { %19052 = vst [vmem:[#allocation59_spill] sm:$0xff] %v15270_v39  ;;  %v15275_v25 = vmul.f32 %v5888_v44, %v19055_v34  ;;  %v15279_v13 = vmul.f32 %v5890_v33, %v19058_v58  ;;  %v3212_v39 = vpop.f32.mrb[202].mxu0  ;;  %v19064_v49 = vmax.f32 %v19063_v29, 0.0  ;;  %v5960_v44 = vmax.f32 %v5384_v12, 0.0  ;;  %v3327_v34 = vpop.f32.mrb[203].mxu1  ;;  %v19066_v38 = vld [vmem:[#allocation11_spill] sm:$0xff] }
 0x29c   : > { %v15283_v61 = vmul.f32 %v5889_v5, %v19061_v7  ;;  %v4880_v48 = vand.u32 2147483647, %v3212_v39  ;;  %v3214_v4 = vpop.f32.mrb[203].mxu0  ;;  %10745 = vmatmul.mubr.f32.gmra.mrb[52].mxu0 %v19066_v38  ;;  %v5385_v33 = vsub.f32 1.0, %v4809_v57  ;;  %v5387_v58 = vsub.f32 1.0, %v4811_v37  ;;  %v19067_v7 = vld [vmem:[#allocation14_spill] sm:$0xff] }
 0x29d   : > { %19056 = vst [vmem:[#allocation60_spill] sm:$0xff] %v15275_v25  ;;  %19059 = vst [vmem:[#allocation62_spill] sm:$0xff] %v15279_v13  ;;  %v15287_v30 = vmul.f32 %v5891_v8, %v19064_v49  ;;  %v4882_v54 = vand.u32 2147483647, %v3325_v0  ;;  %v4881_v5 = vand.u32 2147483647, %v3214_v4  ;;  %10747 = vmatprep.mubr.f32.mxu0 %v19067_v7 }
 0x29e   : > { %19062 = vst [vmem:[#allocation61_spill] sm:$0xff] %v15283_v61  ;;  %v19068_v20 = vld [vmem:[#allocation102_spill] sm:$0xff]  ;;  %v5456_v12 = vsub.f32 1.0, %v4880_v48  ;;  %v4883_v39 = vand.u32 2147483647, %v3327_v34  ;;  %v5961_v21 = vmax.f32 %v5385_v33, 0.0 }
 0x29f   : > { %19065 = vst [vmem:[#allocation63_spill] sm:$0xff] %v15287_v30  ;;  %v19069_v15 = vmax.f32 %v19068_v20, 0.0  ;;  %v19071_v29 = vld [vmem:[#allocation106_spill] sm:$0xff]  ;;  %v5963_v30 = vmax.f32 %v5387_v58, 0.0  ;;  %v5458_v61 = vsub.f32 1.0, %v4882_v54  ;;  %v5457_v38 = vsub.f32 1.0, %v4881_v5 }
 0x2a0   : > { %v19072_v49 = vmax.f32 %v19071_v29, 0.0  ;;  %v3218_v57 = vpop.f32.mrb[204].mxu0  ;;  %v3331_v37 = vpop.f32.mrb[204].mxu1  ;;  %v6032_v0 = vmax.f32 %v5456_v12, 0.0  ;;  %v5459_v4 = vsub.f32 1.0, %v4883_v39  ;;  %v19074_v56 = vld [vmem:[#allocation15_spill] sm:$0xff] }
 0x2a1   : > { %v15293_v13 = vmul.f32 %v5960_v44, %v19069_v15  ;;  %v4952_v25 = vand.u32 2147483647, %v3218_v57  ;;  %v4954_v7 = vand.u32 2147483647, %v3331_v37  ;;  %10748 = vmatmul.mubr.f32.gmra.mrb[54].mxu0 %v19074_v56  ;;  %v19075_v44 = vld [vmem:[#allocation104_spill] sm:$0xff]  ;;  %v6034_v34 = vmax.f32 %v5458_v61, 0.0 }
 0x2a2   : > { %v15297_v8 = vmul.f32 %v5962_v43, %v19072_v49  ;;  %v19076_v20 = vmax.f32 %v19075_v44, 0.0  ;;  %v19078_v43 = vld [vmem:[#allocation107_spill] sm:$0xff]  ;;  %v6033_v33 = vmax.f32 %v5457_v38, 0.0  ;;  %v3220_v58 = vpop.f32.mrb[205].mxu0  ;;  %v3333_v54 = vpop.f32.mrb[205].mxu1  ;;  %v19082_v49 = vld [vmem:[#allocation105_spill] sm:$0xff] }
 0x2a3   : > { %19070 = vst [vmem:[#allocation64_spill] sm:$0xff] %v15293_v13  ;;  %v19079_v29 = vmax.f32 %v19078_v43, 0.0  ;;  %v19081_v5 = vld [vmem:[#allocation3_spill] sm:$0xff]  ;;  %v19083_v12 = vmax.f32 %v19082_v49, 0.0  ;;  %v6035_v57 = vmax.f32 %v5459_v4, 0.0  ;;  %v5528_v56 = vsub.f32 1.0, %v4952_v25 }
 0x2a4   : > { %19073 = vst [vmem:[#allocation66_spill] sm:$0xff] %v15297_v8  ;;  %v15302_v15 = vmul.f32 %v5961_v21, %v19076_v20  ;;  %10750 = vmatprep.mubr.f32.mxu0 %v19081_v5  ;;  %v5530_v37 = vsub.f32 1.0, %v4954_v7  ;;  %v19085_v44 = vld [vmem:[#allocation110_spill] sm:$0xff]  ;;  %v19088_v43 = vld [vmem:[#allocation108_spill] sm:$0xff]  ;;  %v4953_v61 = vand.u32 2147483647, %v3220_v58 }
 0x2a5   : > { %v15306_v48 = vmul.f32 %v5963_v30, %v19079_v29  ;;  %v15311_v39 = vmul.f32 %v6032_v0, %v19083_v12  ;;  %v19086_v21 = vmax.f32 %v19085_v44, 0.0  ;;  %v19089_v30 = vmax.f32 %v19088_v43, 0.0  ;;  %v3337_v8 = vpop.f32.mrb[206].mxu1  ;;  %v19091_v5 = vld [vmem:[#allocation111_spill] sm:$0xff]  ;;  %v19094_v44 = vld [vmem:[#allocation5_spill] sm:$0xff] }
 0x2a6   : > { %19077 = vst [vmem:[#allocation65_spill] sm:$0xff] %v15302_v15  ;;  %v4955_v38 = vand.u32 2147483647, %v3333_v54  ;;  %v19092_v15 = vmax.f32 %v19091_v5, 0.0  ;;  %v6104_v0 = vmax.f32 %v5528_v56, 0.0  ;;  %v6106_v4 = vmax.f32 %v5530_v37, 0.0  ;;  %10751 = vmatmul.mubr.f32.gmra.mrb[56].mxu0 %v19094_v44 }
 0x2a7   : > { %19080 = vst [vmem:[#allocation67_spill] sm:$0xff] %v15306_v48  ;;  %19084 = vst [vmem:[#allocation68_spill] sm:$0xff] %v15311_v39  ;;  %v15315_v20 = vmul.f32 %v6034_v34, %v19086_v21  ;;  %v15319_v29 = vmul.f32 %v6033_v33, %v19089_v30  ;;  %v3224_v48 = vpop.f32.mrb[206].mxu0  ;;  %v3339_v12 = vpop.f32.mrb[207].mxu1  ;;  %v5529_v34 = vsub.f32 1.0, %v4953_v61  ;;  %v19095_v30 = vld [vmem:[#allocation8_spill] sm:$0xff] }
 0x2a8   : > { %v15323_v49 = vmul.f32 %v6035_v57, %v19092_v15  ;;  %v5024_v25 = vand.u32 2147483647, %v3224_v48  ;;  %v3226_v7 = vpop.f32.mrb[207].mxu0  ;;  %v5531_v21 = vsub.f32 1.0, %v4955_v38  ;;  %v5026_v43 = vand.u32 2147483647, %v3337_v8  ;;  %10753 = vmatprep.mubr.f32.mxu0 %v19095_v30 }
 0x2a9   : > { %19087 = vst [vmem:[#allocation70_spill] sm:$0xff] %v15315_v20  ;;  %19090 = vst [vmem:[#allocation69_spill] sm:$0xff] %v15319_v29  ;;  %v5025_v33 = vand.u32 2147483647, %v3226_v7  ;;  %v19096_v58 = vld [vmem:[#allocation109_spill] sm:$0xff]  ;;  %v6105_v37 = vmax.f32 %v5529_v34, 0.0 }
 0x2aa   : > { %19093 = vst [vmem:[#allocation71_spill] sm:$0xff] %v15323_v49  ;;  %v19097_v54 = vmax.f32 %v19096_v58, 0.0  ;;  %v19099_v5 = vld [vmem:[#allocation113_spill] sm:$0xff]  ;;  %v5600_v56 = vsub.f32 1.0, %v5024_v25  ;;  %v5027_v48 = vand.u32 2147483647, %v3339_v12 }
 0x2ab   : > { %v19100_v15 = vmax.f32 %v19099_v5, 0.0  ;;  %v6107_v49 = vmax.f32 %v5531_v21, 0.0  ;;  %v5602_v29 = vsub.f32 1.0, %v5026_v43  ;;  %v5601_v44 = vsub.f32 1.0, %v5025_v33  ;;  %v3408_v61 = vpop.f32.mrb[208].mxu0  ;;  %v3521_v38 = vpop.f32.mrb[208].mxu1 }
 0x2ac   : > { %v15329_v20 = vmul.f32 %v6104_v0, %v19097_v54  ;;  %v6176_v8 = vmax.f32 %v5600_v56, 0.0  ;;  %v5603_v7 = vsub.f32 1.0, %v5027_v48  ;;  %v4524_v39 = vand.u32 2147483647, %v3408_v61  ;;  %v19102_v13 = vld [vmem:[#allocation9_spill] sm:$0xff]  ;;  %v19103_v0 = vld [vmem:[#allocation112_spill] sm:$0xff] }
 0x2ad   : > { %v15333_v57 = vmul.f32 %v6106_v4, %v19100_v15  ;;  %v4526_v30 = vand.u32 2147483647, %v3521_v38  ;;  %10754 = vmatmul.mubr.f32.gmra.mrb[58].mxu0 %v19102_v13  ;;  %v19104_v58 = vmax.f32 %v19103_v0, 0.0  ;;  %v19106_v4 = vld [vmem:[#allocation114_spill] sm:$0xff]  ;;  %v6178_v12 = vmax.f32 %v5602_v29, 0.0  ;;  %v3410_v21 = vpop.f32.mrb[209].mxu0 }
 0x2ae   : > { %19098 = vst [vmem:[#allocation72_spill] sm:$0xff] %v15329_v20  ;;  %v19107_v5 = vmax.f32 %v19106_v4, 0.0  ;;  %v6177_v34 = vmax.f32 %v5601_v44, 0.0  ;;  %v3523_v43 = vpop.f32.mrb[209].mxu1  ;;  %v19109_v33 = vld [vmem:[#allocation12_spill] sm:$0xff]  ;;  %v19110_v15 = vld [vmem:[#allocation115_spill] sm:$0xff] }
 0x2af   : > { %19101 = vst [vmem:[#allocation73_spill] sm:$0xff] %v15333_v57  ;;  %v15338_v54 = vmul.f32 %v6105_v37, %v19104_v58  ;;  %10756 = vmatprep.mubr.f32.mxu0 %v19109_v33  ;;  %v19111_v56 = vmax.f32 %v19110_v15, 0.0  ;;  %v6179_v61 = vmax.f32 %v5603_v7, 0.0  ;;  %v5100_v13 = vsub.f32 1.0, %v4524_v39  ;;  %v19113_v0 = vld [vmem:[#allocation117_spill] sm:$0xff]  ;;  %v19116_v4 = vld [vmem:[#allocation116_spill] sm:$0xff] }
 0x2b0   : > { %v15342_v25 = vmul.f32 %v6107_v49, %v19107_v5  ;;  %v5102_v38 = vsub.f32 1.0, %v4526_v30  ;;  %v19114_v37 = vmax.f32 %v19113_v0, 0.0  ;;  %v19117_v49 = vmax.f32 %v19116_v4, 0.0  ;;  %v3527_v57 = vpop.f32.mrb[210].mxu1  ;;  %v19119_v33 = vld [vmem:[#allocation118_spill] sm:$0xff]  ;;  %v19122_v0 = vld [vmem:[#allocation13_spill] sm:$0xff] }
 0x2b1   : > { %19105 = vst [vmem:[#allocation75_spill] sm:$0xff] %v15338_v54  ;;  %v15347_v48 = vmul.f32 %v6176_v8, %v19111_v56  ;;  %v4525_v29 = vand.u32 2147483647, %v3410_v21  ;;  %v4527_v44 = vand.u32 2147483647, %v3523_v43  ;;  %v19120_v54 = vmax.f32 %v19119_v33, 0.0  ;;  %10757 = vmatmul.mubr.f32.gmra.mrb[60].mxu0 %v19122_v0 }
 0x2b2   : > { %19108 = vst [vmem:[#allocation74_spill] sm:$0xff] %v15342_v25  ;;  %v15351_v58 = vmul.f32 %v6178_v12, %v19114_v37  ;;  %v15355_v5 = vmul.f32 %v6177_v34, %v19117_v49  ;;  %v3414_v25 = vpop.f32.mrb[210].mxu0  ;;  %v5676_v8 = vmax.f32 %v5100_v13, 0.0  ;;  %v5678_v7 = vmax.f32 %v5102_v38, 0.0  ;;  %v3529_v56 = vpop.f32.mrb[211].mxu1  ;;  %v19123_v49 = vld [vmem:[#allocation16_spill] sm:$0xff] }
 0x2b3   : > { %19112 = vst [vmem:[#allocation77_spill] sm:$0xff] %v15347_v48  ;;  %v15359_v15 = vmul.f32 %v6179_v61, %v19120_v54  ;;  %v4596_v39 = vand.u32 2147483647, %v3414_v25  ;;  %v3416_v30 = vpop.f32.mrb[211].mxu0  ;;  %v5101_v12 = vsub.f32 1.0, %v4525_v29  ;;  %v5103_v37 = vsub.f32 1.0, %v4527_v44  ;;  %10759 = vmatprep.mubr.f32.mxu0 %v19123_v49 }
 0x2b4   : > { %19115 = vst [vmem:[#allocation76_spill] sm:$0xff] %v15351_v58  ;;  %19118 = vst [vmem:[#allocation78_spill] sm:$0xff] %v15355_v5  ;;  %v4598_v4 = vand.u32 2147483647, %v3527_v57  ;;  %v4597_v34 = vand.u32 2147483647, %v3416_v30 }
 0x2b5   : > { %19121 = vst [vmem:[#allocation79_spill] sm:$0xff] %v15359_v15  ;;  %v19124_v21 = vld [vmem:[#allocation119_spill] sm:$0xff]  ;;  %v19127_v33 = vld [vmem:[#allocation121_spill] sm:$0xff]  ;;  %v5172_v13 = vsub.f32 1.0, %v4596_v39  ;;  %v4599_v25 = vand.u32 2147483647, %v3529_v56 }
 0x2b6   : > { %v19125_v43 = vmax.f32 %v19124_v21, 0.0  ;;  %v19128_v54 = vmax.f32 %v19127_v33, 0.0  ;;  %v5677_v38 = vmax.f32 %v5101_v12, 0.0  ;;  %v5679_v15 = vmax.f32 %v5103_v37, 0.0  ;;  %v3420_v29 = vpop.f32.mrb[212].mxu0  ;;  %v3533_v44 = vpop.f32.mrb[212].mxu1 }
 0x2b7   : > { %v5174_v5 = vsub.f32 1.0, %v4598_v4  ;;  %v5173_v0 = vsub.f32 1.0, %v4597_v34  ;;  %v5748_v57 = vmax.f32 %v5172_v13, 0.0  ;;  %v5175_v30 = vsub.f32 1.0, %v4599_v25  ;;  %v19130_v20 = vld [vmem:[#allocation18_spill] sm:$0xff]  ;;  %v3422_v37 = vpop.f32.mrb[213].mxu0 }
 0x2b8   : > { %v15365_v58 = vmul.f32 %v5676_v8, %v19125_v43  ;;  %v15369_v61 = vmul.f32 %v5678_v7, %v19128_v54  ;;  %v4668_v48 = vand.u32 2147483647, %v3420_v29  ;;  %v4670_v49 = vand.u32 2147483647, %v3533_v44  ;;  %10760 = vmatmul.mubr.f32.gmra.mrb[62].mxu0 %v19130_v20  ;;  %v19131_v8 = vld [vmem:[#allocation120_spill] sm:$0xff]  ;;  %v19134_v7 = vld [vmem:[#allocation122_spill] sm:$0xff] }
 0x2b9   : > { %v19132_v21 = vmax.f32 %v19131_v8, 0.0  ;;  %v19135_v33 = vmax.f32 %v19134_v7, 0.0  ;;  %v5750_v56 = vmax.f32 %v5174_v5, 0.0  ;;  %v5749_v12 = vmax.f32 %v5173_v0, 0.0  ;;  %v3535_v4 = vpop.f32.mrb[213].mxu1  ;;  %10762 = vmatprep.mubr.f32.mxu0 %v14869_v3  ;;  %v19137_v34 = vld [vmem:[#allocation123_spill] sm:$0xff] }
 0x2ba   : > { %19126 = vst [vmem:[#allocation81_spill] sm:$0xff] %v15365_v58  ;;  %19129 = vst [vmem:[#allocation80_spill] sm:$0xff] %v15369_v61  ;;  %v19138_v54 = vmax.f32 %v19137_v34, 0.0  ;;  %v5751_v25 = vmax.f32 %v5175_v30, 0.0  ;;  %v5244_v20 = vsub.f32 1.0, %v4668_v48  ;;  %v5246_v29 = vsub.f32 1.0, %v4670_v49 }
 0x2bb   : > { %v15374_v43 = vmul.f32 %v5677_v38, %v19132_v21  ;;  %v15378_v39 = vmul.f32 %v5679_v15, %v19135_v33  ;;  %v19140_v44 = vld [vmem:[#allocation125_spill] sm:$0xff]  ;;  %v19143_v21 = vld [vmem:[#allocation124_spill] sm:$0xff]  ;;  %v4669_v5 = vand.u32 2147483647, %v3422_v37  ;;  %v4671_v0 = vand.u32 2147483647, %v3535_v4 }
 0x2bc   : > { %v15383_v13 = vmul.f32 %v5748_v57, %v19138_v54  ;;  %v19141_v38 = vmax.f32 %v19140_v44, 0.0  ;;  %v19144_v15 = vmax.f32 %v19143_v21, 0.0  ;;  %v3426_v33 = vpop.f32.mrb[214].mxu0  ;;  %v19146_v3 = vld [vmem:[#allocation126_spill] sm:$0xff]  ;;  %v5820_v57 = vmax.f32 %v5244_v20, 0.0  ;;  %10763 = vmatmul.mubr.f32.gmra.mrb[64].mxu0 %v14891_v17  ;;  %v19149_v37 = vld [vmem:[#allocation127_spill] sm:$0xff] }
 0x2bd   : > { %19133 = vst [vmem:[#allocation83_spill] sm:$0xff] %v15374_v43  ;;  %19136 = vst [vmem:[#allocation82_spill] sm:$0xff] %v15378_v39  ;;  %v3539_v39 = vpop.f32.mrb[214].mxu1  ;;  %v19147_v61 = vmax.f32 %v19146_v3, 0.0  ;;  %v5822_v30 = vmax.f32 %v5246_v29, 0.0  ;;  %v3428_v49 = vpop.f32.mrb[215].mxu0  ;;  %10765 = vmatprep.mubr.f32.mxu0 %v14915_v31 }
 0x2be   : > { %19139 = vst [vmem:[#allocation85_spill] sm:$0xff] %v15383_v13  ;;  %v15387_v8 = vmul.f32 %v5750_v56, %v19141_v38  ;;  %v15391_v7 = vmul.f32 %v5749_v12, %v19144_v15  ;;  %v4740_v48 = vand.u32 2147483647, %v3426_v33  ;;  %v3541_v54 = vpop.f32.mrb[215].mxu1  ;;  %v5245_v56 = vsub.f32 1.0, %v4669_v5  ;;  %v19152_v15 = vld [vmem:[#allocation129_spill] sm:$0xff] }
 0x2bf   : > { %v15395_v34 = vmul.f32 %v5751_v25, %v19147_v61  ;;  %v5247_v44 = vsub.f32 1.0, %v4671_v0  ;;  %v4742_v38 = vand.u32 2147483647, %v3539_v39  ;;  %v4741_v12 = vand.u32 2147483647, %v3428_v49  ;;  %v3432_v5 = vpop.f32.mrb[216].mxu0 }
 0x2c0   : > { %19142 = vst [vmem:[#allocation84_spill] sm:$0xff] %v15387_v8  ;;  %19145 = vst [vmem:[#allocation87_spill] sm:$0xff] %v15391_v7  ;;  %v19150_v4 = vmax.f32 %v19149_v37, 0.0  ;;  %v19153_v61 = vmax.f32 %v19152_v15, 0.0  ;;  %v5316_v20 = vsub.f32 1.0, %v4740_v48  ;;  %v5821_v33 = vmax.f32 %v5245_v56, 0.0  ;;  %10766 = vmatmul.mubr.f32.gmra.mrb[66].mxu0 %v14938_v59 }
 0x2c1   : > { %19148 = vst [vmem:[#allocation89_spill] sm:$0xff] %v15395_v34  ;;  %v4743_v29 = vand.u32 2147483647, %v3541_v54  ;;  %v5823_v3 = vmax.f32 %v5247_v44, 0.0  ;;  %v5318_v34 = vsub.f32 1.0, %v4742_v38  ;;  %v5317_v17 = vsub.f32 1.0, %v4741_v12  ;;  %10768 = vmatprep.mubr.f32.mxu0 %v14965_v26 }
 0x2c2   : > { %v15401_v21 = vmul.f32 %v5820_v57, %v19150_v4  ;;  %v15405_v25 = vmul.f32 %v5822_v30, %v19153_v61  ;;  %v3545_v0 = vpop.f32.mrb[216].mxu1  ;;  %v5892_v39 = vmax.f32 %v5316_v20, 0.0  ;;  %v4812_v8 = vand.u32 2147483647, %v3432_v5  ;;  %v19155_v57 = vld [vmem:[#allocation128_spill] sm:$0xff]  ;;  %v19158_v30 = vld [vmem:[#allocation130_spill] sm:$0xff] }
 0x2c3   : > { %v5319_v49 = vsub.f32 1.0, %v4743_v29  ;;  %v4814_v31 = vand.u32 2147483647, %v3545_v0  ;;  %v19156_v37 = vmax.f32 %v19155_v57, 0.0  ;;  %v19159_v15 = vmax.f32 %v19158_v30, 0.0  ;;  %v3434_v44 = vpop.f32.mrb[217].mxu0 }
 0x2c4   : > { %19151 = vst [vmem:[#allocation86_spill] sm:$0xff] %v15401_v21  ;;  %19154 = vst [vmem:[#allocation17_spill] sm:$0xff] %v15405_v25  ;;  %v5894_v54 = vmax.f32 %v5318_v34, 0.0  ;;  %v5893_v56 = vmax.f32 %v5317_v17, 0.0  ;;  %v3547_v38 = vpop.f32.mrb[217].mxu1  ;;  %v19161_v12 = vld [vmem:[#allocation131_spill] sm:$0xff]  ;;  %10769 = vmatmul.mubr.f32.gmra.mrb[68].mxu0 %v14988_v35 }
 0x2c5   : > { %v15410_v4 = vmul.f32 %v5821_v33, %v19156_v37  ;;  %v15414_v48 = vmul.f32 %v5823_v3, %v19159_v15  ;;  %v19162_v61 = vmax.f32 %v19161_v12, 0.0  ;;  %v5895_v29 = vmax.f32 %v5319_v49, 0.0  ;;  %v19164_v0 = vld [vmem:[#allocation133_spill] sm:$0xff]  ;;  %v19167_v37 = vld [vmem:[#allocation132_spill] sm:$0xff]  ;;  %v3438_v15 = vpop.f32.mrb[218].mxu0  ;;  %10771 = vmatprep.mubr.f32.mxu0 %v15015_v6  ;;  %v19258_v43 = vld [vmem:[#allocation166_spill] sm:$0xff] }
 0x2c6   : > { %v5388_v59 = vsub.f32 1.0, %v4812_v8  ;;  %v5390_v5 = vsub.f32 1.0, %v4814_v31  ;;  %v19165_v33 = vmax.f32 %v19164_v0, 0.0  ;;  %v19168_v3 = vmax.f32 %v19167_v37, 0.0  ;;  %v19170_v26 = vld [vmem:[#allocation136_spill] sm:$0xff]  ;;  %v3440_v31 = vpop.f32.mrb[219].mxu0 }
 0x2c7   : > { %19157 = vst [vmem:[#allocation90_spill] sm:$0xff] %v15410_v4  ;;  %19160 = vst [vmem:[#allocation2_spill] sm:$0xff] %v15414_v48  ;;  %v15419_v20 = vmul.f32 %v5892_v39, %v19162_v61  ;;  %v4813_v34 = vand.u32 2147483647, %v3434_v44  ;;  %v4815_v17 = vand.u32 2147483647, %v3547_v38 }
 0x2c8   : > { %v15423_v57 = vmul.f32 %v5894_v54, %v19165_v33  ;;  %v15427_v30 = vmul.f32 %v5893_v56, %v19168_v3  ;;  %v3551_v48 = vpop.f32.mrb[218].mxu1  ;;  %v19171_v25 = vmax.f32 %v19170_v26, 0.0  ;;  %v5964_v39 = vmax.f32 %v5388_v59, 0.0  ;;  %v19173_v44 = vld [vmem:[#allocation134_spill] sm:$0xff]  ;;  %v19176_v3 = vld [vmem:[#allocation137_spill] sm:$0xff]  ;;  %10772 = vmatmul.mubr.f32.gmra.mrb[70].mxu0 %v15038_v42 }
 0x2c9   : > { %19163 = vst [vmem:[#allocation88_spill] sm:$0xff] %v15419_v20  ;;  %v5966_v49 = vmax.f32 %v5390_v5, 0.0  ;;  %v4884_v8 = vand.u32 2147483647, %v3438_v15  ;;  %v3553_v61 = vpop.f32.mrb[219].mxu1  ;;  %v5389_v54 = vsub.f32 1.0, %v4813_v34  ;;  %10774 = vmatprep.mubr.f32.mxu0 %v14883_v24 }
 0x2ca   : > { %19166 = vst [vmem:[#allocation91_spill] sm:$0xff] %v15423_v57  ;;  %19169 = vst [vmem:[#allocation93_spill] sm:$0xff] %v15427_v30  ;;  %v15431_v12 = vmul.f32 %v5895_v29, %v19171_v25  ;;  %v5391_v0 = vsub.f32 1.0, %v4815_v17  ;;  %v4886_v33 = vand.u32 2147483647, %v3551_v48  ;;  %v19174_v38 = vmax.f32 %v19173_v44, 0.0 }
 0x2cb   : > { %v4885_v56 = vand.u32 2147483647, %v3440_v31  ;;  %v19177_v25 = vmax.f32 %v19176_v3, 0.0  ;;  %v5460_v59 = vsub.f32 1.0, %v4884_v8  ;;  %v4887_v5 = vand.u32 2147483647, %v3553_v61 }
 0x2cc   : > { %19172 = vst [vmem:[#allocation92_spill] sm:$0xff] %v15431_v12  ;;  %v15437_v37 = vmul.f32 %v5964_v39, %v19174_v38  ;;  %v5965_v15 = vmax.f32 %v5389_v54, 0.0  ;;  %v5967_v26 = vmax.f32 %v5391_v0, 0.0  ;;  %v5462_v12 = vsub.f32 1.0, %v4886_v33  ;;  %v3444_v34 = vpop.f32.mrb[220].mxu0  ;;  %v3557_v17 = vpop.f32.mrb[220].mxu1  ;;  %10775 = vmatmul.mubr.f32.gmra.mrb[72].mxu0 %v14899_v41 }
 0x2cd   : > { %v15441_v29 = vmul.f32 %v5966_v49, %v19177_v25  ;;  %v5461_v35 = vsub.f32 1.0, %v4885_v56  ;;  %v6036_v48 = vmax.f32 %v5460_v59, 0.0  ;;  %v5463_v31 = vsub.f32 1.0, %v4887_v5  ;;  %v19179_v39 = vld [vmem:[#allocation135_spill] sm:$0xff]  ;;  %v19182_v49 = vld [vmem:[#allocation140_spill] sm:$0xff]  ;;  %v3446_v0 = vpop.f32.mrb[221].mxu0  ;;  %10777 = vmatprep.mubr.f32.mxu0 %v14930_v16 }
 0x2ce   : > { %19175 = vst [vmem:[#allocation94_spill] sm:$0xff] %v15437_v37  ;;  %v4956_v57 = vand.u32 2147483647, %v3444_v34  ;;  %v4958_v6 = vand.u32 2147483647, %v3557_v17  ;;  %v19180_v44 = vmax.f32 %v19179_v39, 0.0 }
 0x2cf   : > { %19178 = vst [vmem:[#allocation279_spill] sm:$0xff] %v15441_v29  ;;  %v19183_v3 = vmax.f32 %v19182_v49, 0.0  ;;  %v6038_v61 = vmax.f32 %v5462_v12, 0.0  ;;  %v6037_v54 = vmax.f32 %v5461_v35, 0.0  ;;  %v3559_v33 = vpop.f32.mrb[221].mxu1  ;;  %v19185_v56 = vld [vmem:[#allocation138_spill] sm:$0xff] }
 0x2d0   : > { %v15446_v38 = vmul.f32 %v5965_v15, %v19180_v44  ;;  %v19186_v25 = vmax.f32 %v19185_v56, 0.0  ;;  %v6039_v5 = vmax.f32 %v5463_v31, 0.0  ;;  %v5532_v42 = vsub.f32 1.0, %v4956_v57  ;;  %v19188_v17 = vld [vmem:[#allocation141_spill] sm:$0xff]  ;;  %v19191_v44 = vld [vmem:[#allocation139_spill] sm:$0xff]  ;;  %v19194_v24 = vld [vmem:[#allocation142_spill] sm:$0xff]  ;;  %10778 = vmatmul.mubr.f32.gmra.mrb[74].mxu0 %v14948_v2 }
 0x2d1   : > { %v15450_v8 = vmul.f32 %v5967_v26, %v19183_v3  ;;  %v5534_v34 = vsub.f32 1.0, %v4958_v6  ;;  %v19189_v15 = vmax.f32 %v19188_v17, 0.0  ;;  %v19192_v26 = vmax.f32 %v19191_v44, 0.0  ;;  %v3450_v3 = vpop.f32.mrb[222].mxu0  ;;  %10780 = vmatprep.mubr.f32.mxu0 %v14980_v18  ;;  %v19218_v18 = vld [vmem:[#allocation152_spill] sm:$0xff]  ;;  %v19279_v21 = vld [vmem:[#allocation174_spill] sm:$0xff] }
 0x2d2   : > { %19181 = vst [vmem:[#allocation6_spill] sm:$0xff] %v15446_v38  ;;  %v15455_v59 = vmul.f32 %v6036_v48, %v19186_v25  ;;  %v4957_v12 = vand.u32 2147483647, %v3446_v0  ;;  %v4959_v35 = vand.u32 2147483647, %v3559_v33  ;;  %v19195_v29 = vmax.f32 %v19194_v24, 0.0 }
 0x2d3   : > { %19184 = vst [vmem:[#allocation95_spill] sm:$0xff] %v15450_v8  ;;  %v15459_v39 = vmul.f32 %v6038_v61, %v19189_v15  ;;  %v15463_v49 = vmul.f32 %v6037_v54, %v19192_v26  ;;  %v3563_v8 = vpop.f32.mrb[222].mxu1  ;;  %v6108_v48 = vmax.f32 %v5532_v42, 0.0  ;;  %v6110_v31 = vmax.f32 %v5534_v34, 0.0  ;;  %v3452_v6 = vpop.f32.mrb[223].mxu0  ;;  %v19197_v0 = vld [vmem:[#allocation143_spill] sm:$0xff] }
 0x2d4   : > { %19187 = vst [vmem:[#allocation97_spill] sm:$0xff] %v15455_v59  ;;  %v15467_v56 = vmul.f32 %v6039_v5, %v19195_v29  ;;  %v5028_v57 = vand.u32 2147483647, %v3450_v3  ;;  %v3565_v25 = vpop.f32.mrb[223].mxu1  ;;  %v5533_v61 = vsub.f32 1.0, %v4957_v12  ;;  %v5535_v17 = vsub.f32 1.0, %v4959_v35  ;;  %10781 = vmatmul.mubr.f32.gmra.mrb[76].mxu0 %v14998_v53 }
 0x2d5   : > { %19190 = vst [vmem:[#allocation7_spill] sm:$0xff] %v15459_v39  ;;  %19193 = vst [vmem:[#allocation96_spill] sm:$0xff] %v15463_v49  ;;  %v5030_v15 = vand.u32 2147483647, %v3563_v8  ;;  %v5029_v54 = vand.u32 2147483647, %v3452_v6  ;;  %10783 = vmatprep.mubr.f32.mxu0 %v15030_v40 }
 0x2d6   : > { %19196 = vst [vmem:[#allocation98_spill] sm:$0xff] %v15467_v56  ;;  %v19198_v33 = vmax.f32 %v19197_v0, 0.0  ;;  %v19200_v26 = vld [vmem:[#allocation145_spill] sm:$0xff]  ;;  %v5604_v42 = vsub.f32 1.0, %v5028_v57  ;;  %v5031_v34 = vand.u32 2147483647, %v3565_v25 }
 0x2d7   : > { %v19201_v29 = vmax.f32 %v19200_v26, 0.0  ;;  %v6109_v3 = vmax.f32 %v5533_v61, 0.0  ;;  %v6111_v24 = vmax.f32 %v5535_v17, 0.0  ;;  %v5606_v56 = vsub.f32 1.0, %v5030_v15  ;;  %v3634_v12 = vpop.f32.mrb[224].mxu0  ;;  %v3747_v35 = vpop.f32.mrb[224].mxu1 }
 0x2d8   : > { %v15473_v44 = vmul.f32 %v6108_v48, %v19198_v33  ;;  %v5605_v41 = vsub.f32 1.0, %v5029_v54  ;;  %v6180_v8 = vmax.f32 %v5604_v42, 0.0  ;;  %v5607_v6 = vsub.f32 1.0, %v5031_v34  ;;  %v19203_v48 = vld [vmem:[#allocation144_spill] sm:$0xff]  ;;  %v3636_v17 = vpop.f32.mrb[225].mxu0  ;;  %v3749_v15 = vpop.f32.mrb[225].mxu1  ;;  %10784 = vmatmul.mubr.f32.gmra.mrb[78].mxu0 %v15048_v62 }
 0x2d9   : > { %v15477_v5 = vmul.f32 %v6110_v31, %v19201_v29  ;;  %v4528_v39 = vand.u32 2147483647, %v3634_v12  ;;  %v4530_v16 = vand.u32 2147483647, %v3747_v35  ;;  %v19204_v0 = vmax.f32 %v19203_v48, 0.0  ;;  %v19206_v31 = vld [vmem:[#allocation146_spill] sm:$0xff] }
 0x2da   : > { %19199 = vst [vmem:[#allocation10_spill] sm:$0xff] %v15473_v44  ;;  %v19207_v26 = vmax.f32 %v19206_v31, 0.0  ;;  %v6182_v25 = vmax.f32 %v5606_v56, 0.0  ;;  %v6181_v61 = vmax.f32 %v5605_v41, 0.0  ;;  %v19209_v54 = vld [vmem:[#allocation147_spill] sm:$0xff]  ;;  %v6183_v34 = vmax.f32 %v5607_v6, 0.0 }
 0x2db   : > { %19202 = vst [vmem:[#allocation99_spill] sm:$0xff] %v15477_v5  ;;  %v15482_v33 = vmul.f32 %v6109_v3, %v19204_v0  ;;  %v19210_v29 = vmax.f32 %v19209_v54, 0.0  ;;  %v5104_v2 = vsub.f32 1.0, %v4528_v39  ;;  %v5106_v12 = vsub.f32 1.0, %v4530_v16  ;;  %v19212_v35 = vld [vmem:[#allocation149_spill] sm:$0xff]  ;;  %v19215_v0 = vld [vmem:[#allocation148_spill] sm:$0xff] }
 0x2dc   : > { %v15486_v57 = vmul.f32 %v6111_v24, %v19207_v26  ;;  %v19213_v3 = vmax.f32 %v19212_v35, 0.0  ;;  %v19216_v24 = vmax.f32 %v19215_v0, 0.0  ;;  %v4529_v56 = vand.u32 2147483647, %v3636_v17  ;;  %v3640_v26 = vpop.f32.mrb[226].mxu0  ;;  %v19221_v17 = vld [vmem:[#allocation150_spill] sm:$0xff] }
 0x2dd   : > { %19205 = vst [vmem:[#allocation101_spill] sm:$0xff] %v15482_v33  ;;  %v15491_v42 = vmul.f32 %v6180_v8, %v19210_v29  ;;  %v4531_v41 = vand.u32 2147483647, %v3749_v15  ;;  %v19219_v5 = vmax.f32 %v19218_v18, 0.0  ;;  %v5680_v8 = vmax.f32 %v5104_v2, 0.0  ;;  %v3642_v16 = vpop.f32.mrb[227].mxu0 }
 0x2de   : > { %19208 = vst [vmem:[#allocation100_spill] sm:$0xff] %v15486_v57  ;;  %v15495_v48 = vmul.f32 %v6182_v25, %v19213_v3  ;;  %v15499_v31 = vmul.f32 %v6181_v61, %v19216_v24  ;;  %v3753_v57 = vpop.f32.mrb[226].mxu1  ;;  %v5682_v6 = vmax.f32 %v5106_v12, 0.0  ;;  %v4600_v39 = vand.u32 2147483647, %v3640_v26  ;;  %v19224_v24 = vld [vmem:[#allocation153_spill] sm:$0xff] }
 0x2df   : > { %19211 = vst [vmem:[#allocation103_spill] sm:$0xff] %v15491_v42  ;;  %v15503_v54 = vmul.f32 %v6183_v34, %v19219_v5  ;;  %v3755_v29 = vpop.f32.mrb[227].mxu1  ;;  %v5105_v25 = vsub.f32 1.0, %v4529_v56  ;;  %v5107_v35 = vsub.f32 1.0, %v4531_v41  ;;  %v4602_v3 = vand.u32 2147483647, %v3753_v57 }
 0x2e0   : > { %19214 = vst [vmem:[#allocation11_spill] sm:$0xff] %v15495_v48  ;;  %19217 = vst [vmem:[#allocation14_spill] sm:$0xff] %v15499_v31  ;;  %v4601_v61 = vand.u32 2147483647, %v3642_v16  ;;  %v19222_v15 = vmax.f32 %v19221_v17, 0.0  ;;  %v19225_v5 = vmax.f32 %v19224_v24, 0.0 }
 0x2e1   : > { %19220 = vst [vmem:[#allocation102_spill] sm:$0xff] %v15503_v54  ;;  %v5176_v2 = vsub.f32 1.0, %v4600_v39  ;;  %v4603_v12 = vand.u32 2147483647, %v3755_v29  ;;  %v5681_v26 = vmax.f32 %v5105_v25, 0.0  ;;  %v5683_v18 = vmax.f32 %v5107_v35, 0.0 }
 0x2e2   : > { %v15509_v0 = vmul.f32 %v5680_v8, %v19222_v15  ;;  %v15513_v34 = vmul.f32 %v5682_v6, %v19225_v5  ;;  %v5178_v54 = vsub.f32 1.0, %v4602_v3  ;;  %v5177_v53 = vsub.f32 1.0, %v4601_v61  ;;  %v3646_v56 = vpop.f32.mrb[228].mxu0  ;;  %v3759_v41 = vpop.f32.mrb[228].mxu1  ;;  %v19226_v8 = vld [vmem:[#allocation151_spill] sm:$0xff]  ;;  %v19230_v61 = vld [vmem:[#allocation20_spill] sm:$0xff] }
 0x2e3   : > { %v5752_v57 = vmax.f32 %v5176_v2, 0.0  ;;  %v5179_v16 = vsub.f32 1.0, %v4603_v12  ;;  %v4672_v48 = vand.u32 2147483647, %v3646_v56  ;;  %v4674_v40 = vand.u32 2147483647, %v3759_v41  ;;  %10786 = vmatprep.mubr.f32.mxu0 %v19230_v61 }
 0x2e4   : > { %19223 = vst [vmem:[#allocation106_spill] sm:$0xff] %v15509_v0  ;;  %v19227_v17 = vmax.f32 %v19226_v8, 0.0  ;;  %v19228_v6 = vld [vmem:[#allocation155_spill] sm:$0xff]  ;;  %v5754_v29 = vmax.f32 %v5178_v54, 0.0  ;;  %v5753_v25 = vmax.f32 %v5177_v53, 0.0  ;;  %v3648_v35 = vpop.f32.mrb[229].mxu0 }
 0x2e5   : > { %v19229_v24 = vmax.f32 %v19228_v6, 0.0  ;;  %v3761_v3 = vpop.f32.mrb[229].mxu1  ;;  %v19231_v5 = vld [vmem:[#allocation154_spill] sm:$0xff]  ;;  %v5755_v56 = vmax.f32 %v5179_v16, 0.0  ;;  %v5248_v62 = vsub.f32 1.0, %v4672_v48  ;;  %v5250_v41 = vsub.f32 1.0, %v4674_v40 }
 0x2e6   : > { %v15518_v15 = vmul.f32 %v5681_v26, %v19227_v17  ;;  %v19232_v2 = vmax.f32 %v19231_v5, 0.0  ;;  %v19234_v8 = vld [vmem:[#allocation157_spill] sm:$0xff]  ;;  %v19236_v6 = vld [vmem:[#allocation156_spill] sm:$0xff]  ;;  %v4673_v54 = vand.u32 2147483647, %v3648_v35  ;;  %v3652_v0 = vpop.f32.mrb[230].mxu0 }
 0x2e7   : > { %v15522_v39 = vmul.f32 %v5683_v18, %v19229_v24  ;;  %v19235_v26 = vmax.f32 %v19234_v8, 0.0  ;;  %v19237_v18 = vmax.f32 %v19236_v6, 0.0  ;;  %v4675_v53 = vand.u32 2147483647, %v3761_v3  ;;  %v3765_v31 = vpop.f32.mrb[230].mxu1  ;;  %v19238_v61 = vld [vmem:[#allocation158_spill] sm:$0xff] }
 0x2e8   : > { %v15527_v12 = vmul.f32 %v5752_v57, %v19232_v2  ;;  %v19239_v33 = vmax.f32 %v19238_v61, 0.0  ;;  %v5824_v57 = vmax.f32 %v5248_v62, 0.0  ;;  %v5826_v16 = vmax.f32 %v5250_v41, 0.0  ;;  %v3654_v40 = vpop.f32.mrb[231].mxu0  ;;  %v3767_v2 = vpop.f32.mrb[231].mxu1  ;;  %v19240_v8 = vld [vmem:[#allocation23_spill] sm:$0xff] }
 0x2e9   : > { %v15531_v17 = vmul.f32 %v5754_v29, %v19235_v26  ;;  %v15535_v24 = vmul.f32 %v5753_v25, %v19237_v18  ;;  %v4744_v48 = vand.u32 2147483647, %v3652_v0  ;;  %10787 = vmatmul.mubr.f32.gmra.mrb[80].mxu0 %v19240_v8  ;;  %v5249_v29 = vsub.f32 1.0, %v4673_v54  ;;  %v19241_v18 = vld [vmem:[#allocation24_spill] sm:$0xff]  ;;  %v19242_v35 = vld [vmem:[#allocation159_spill] sm:$0xff]  ;;  %v19244_v49 = vld [vmem:[#allocation161_spill] sm:$0xff] }
 0x2ea   : > { %19233 = vst [vmem:[#allocation15_spill] sm:$0xff] %v15527_v12  ;;  %v15539_v5 = vmul.f32 %v5755_v56, %v19239_v33  ;;  %v5251_v26 = vsub.f32 1.0, %v4675_v53  ;;  %v4746_v6 = vand.u32 2147483647, %v3765_v31  ;;  %v4745_v25 = vand.u32 2147483647, %v3654_v40  ;;  %10789 = vmatprep.mubr.f32.mxu0 %v19241_v18 }
 0x2eb   : > { %v19243_v3 = vmax.f32 %v19242_v35, 0.0  ;;  %v19245_v61 = vmax.f32 %v19244_v49, 0.0  ;;  %v5320_v56 = vsub.f32 1.0, %v4744_v48  ;;  %v4747_v62 = vand.u32 2147483647, %v3767_v2  ;;  %v3658_v8 = vpop.f32.mrb[232].mxu0 }
 0x2ec   : > { %v5825_v0 = vmax.f32 %v5249_v29, 0.0  ;;  %v5827_v41 = vmax.f32 %v5251_v26, 0.0  ;;  %v5322_v38 = vsub.f32 1.0, %v4746_v6  ;;  %v5321_v30 = vsub.f32 1.0, %v4745_v25  ;;  %v3771_v54 = vpop.f32.mrb[232].mxu1  ;;  %v19246_v18 = vld [vmem:[#allocation27_spill] sm:$0xff] }
 0x2ed   : > { %v6292_v12 = vmul.f32 %v5824_v57, %v19243_v3  ;;  %v15547_v33 = vmul.f32 %v5826_v16, %v19245_v61  ;;  %v5896_v53 = vmax.f32 %v5320_v56, 0.0  ;;  %v5323_v31 = vsub.f32 1.0, %v4747_v62  ;;  %10790 = vmatmul.mubr.f32.gmra.mrb[82].mxu0 %v19246_v18  ;;  %v19247_v57 = vld [vmem:[#allocation160_spill] sm:$0xff]  ;;  %v19249_v16 = vld [vmem:[#allocation162_spill] sm:$0xff]  ;;  %v3660_v6 = vpop.f32.mrb[233].mxu0  ;;  %v3773_v25 = vpop.f32.mrb[233].mxu1 }
 0x2ee   : > { %v4816_v40 = vand.u32 2147483647, %v3658_v8  ;;  %v4818_v4 = vand.u32 2147483647, %v3771_v54  ;;  %v19248_v35 = vmax.f32 %v19247_v57, 0.0  ;;  %v19250_v48 = vmax.f32 %v19249_v16, 0.0 }
 0x2ef   : > { %10957 = vmatprep.mubr.f32.mxu1 %v6292_v12  ;;  %v5898_v29 = vmax.f32 %v5322_v38, 0.0  ;;  %v5897_v26 = vmax.f32 %v5321_v30, 0.0  ;;  %v19251_v3 = vld [vmem:[#allocation28_spill] sm:$0xff]  ;;  %v19252_v61 = vld [vmem:[#allocation163_spill] sm:$0xff]  ;;  %v5899_v8 = vmax.f32 %v5323_v31, 0.0  ;;  %v19254_v18 = vld [vmem:[#allocation165_spill] sm:$0xff] }
 0x2f0   : > { %v15552_v49 = vmul.f32 %v5825_v0, %v19248_v35  ;;  %v15556_v2 = vmul.f32 %v5827_v41, %v19250_v48  ;;  %10792 = vmatprep.mubr.f32.mxu0 %v19251_v3  ;;  %v19253_v56 = vmax.f32 %v19252_v61, 0.0  ;;  %v5392_v54 = vsub.f32 1.0, %v4816_v40  ;;  %v19256_v35 = vld [vmem:[#allocation164_spill] sm:$0xff]  ;;  %v3664_v48 = vpop.f32.mrb[234].mxu0  ;;  %v3777_v7 = vpop.f32.mrb[234].mxu1 }
 0x2f1   : > { %v5394_v12 = vsub.f32 1.0, %v4818_v4  ;;  %v19255_v57 = vmax.f32 %v19254_v18, 0.0  ;;  %v19257_v16 = vmax.f32 %v19256_v35, 0.0  ;;  %v4817_v38 = vand.u32 2147483647, %v3660_v6  ;;  %v3666_v4 = vpop.f32.mrb[235].mxu0 }
 0x2f2   : > { %v6328_v62 = vmul.f32 %v5896_v53, %v19253_v56  ;;  %v4819_v30 = vand.u32 2147483647, %v3773_v25  ;;  %v19259_v3 = vmax.f32 %v19258_v43, 0.0  ;;  %v5968_v53 = vmax.f32 %v5392_v54, 0.0  ;;  %v3779_v61 = vpop.f32.mrb[235].mxu1  ;;  %v19260_v56 = vld [vmem:[#allocation29_spill] sm:$0xff] }
 0x2f3   : > { %v15563_v0 = vmul.f32 %v5898_v29, %v19255_v57  ;;  %v15567_v41 = vmul.f32 %v5897_v26, %v19257_v16  ;;  %v5970_v31 = vmax.f32 %v5394_v12, 0.0  ;;  %v4888_v40 = vand.u32 2147483647, %v3664_v48  ;;  %10793 = vmatmul.mubr.f32.gmra.mrb[84].mxu0 %v19260_v56  ;;  %v19261_v6 = vld [vmem:[#allocation32_spill] sm:$0xff]  ;;  %v19262_v25 = vld [vmem:[#allocation167_spill] sm:$0xff]  ;;  %v19264_v43 = vld [vmem:[#allocation169_spill] sm:$0xff] }
 0x2f4   : > { %v15571_v42 = vmul.f32 %v5899_v8, %v19259_v3  ;;  %10958 = vmatmul.mubr.f32.vlgmr.msra.gmra.mrb[32].mxu1 %v6328_v62  ;;  %v5393_v29 = vsub.f32 1.0, %v4817_v38  ;;  %v5395_v18 = vsub.f32 1.0, %v4819_v30  ;;  %v4890_v26 = vand.u32 2147483647, %v3777_v7  ;;  %10795 = vmatprep.mubr.f32.mxu0 %v19261_v6  ;;  %v3670_v62 = vpop.f32.mrb[236].mxu0  ;;  %v3783_v38 = vpop.f32.mrb[236].mxu1 }
 0x2f5   : > { %v4889_v57 = vand.u32 2147483647, %v3666_v4  ;;  %v19263_v35 = vmax.f32 %v19262_v25, 0.0  ;;  %v19265_v8 = vmax.f32 %v19264_v43, 0.0  ;;  %v5464_v54 = vsub.f32 1.0, %v4888_v40  ;;  %v19266_v6 = vld [vmem:[#allocation33_spill] sm:$0xff] }
 0x2f6   : > { %v4891_v12 = vand.u32 2147483647, %v3779_v61  ;;  %v5969_v48 = vmax.f32 %v5393_v29, 0.0  ;;  %v5971_v44 = vmax.f32 %v5395_v18, 0.0  ;;  %v5466_v59 = vsub.f32 1.0, %v4890_v26  ;;  %v3672_v26 = vpop.f32.mrb[237].mxu0 }
 0x2f7   : > { %v6364_v16 = vmul.f32 %v5968_v53, %v19263_v35  ;;  %v15579_v3 = vmul.f32 %v5970_v31, %v19265_v8  ;;  %v5465_v56 = vsub.f32 1.0, %v4889_v57  ;;  %v6040_v30 = vmax.f32 %v5464_v54, 0.0  ;;  %10796 = vmatmul.mubr.f32.gmra.mrb[86].mxu0 %v19266_v6  ;;  %v19267_v53 = vld [vmem:[#allocation168_spill] sm:$0xff]  ;;  %v19269_v31 = vld [vmem:[#allocation170_spill] sm:$0xff]  ;;  %v3785_v57 = vpop.f32.mrb[237].mxu1  ;;  %v19272_v43 = vld [vmem:[#allocation19_spill] sm:$0xff] }
 0x2f8   : > { %v5467_v7 = vsub.f32 1.0, %v4891_v12  ;;  %v4960_v4 = vand.u32 2147483647, %v3670_v62  ;;  %v4962_v37 = vand.u32 2147483647, %v3783_v38  ;;  %v19268_v25 = vmax.f32 %v19267_v53, 0.0  ;;  %10798 = vmatprep.mubr.f32.mxu0 %v19272_v43 }
 0x2f9   : > { %10960 = vmatprep.mubr.f32.mxu1 %v6364_v16  ;;  %v19270_v40 = vmax.f32 %v19269_v31, 0.0  ;;  %v6042_v29 = vmax.f32 %v5466_v59, 0.0  ;;  %v6041_v18 = vmax.f32 %v5465_v56, 0.0  ;;  %v19273_v8 = vld [vmem:[#allocation171_spill] sm:$0xff]  ;;  %v19275_v6 = vld [vmem:[#allocation173_spill] sm:$0xff]  ;;  %v3789_v20 = vpop.f32.mrb[238].mxu1 }
 0x2fa   : > { %v15584_v35 = vmul.f32 %v5969_v48, %v19268_v25  ;;  %v19274_v54 = vmax.f32 %v19273_v8, 0.0  ;;  %v6043_v62 = vmax.f32 %v5467_v7, 0.0  ;;  %v5536_v38 = vsub.f32 1.0, %v4960_v4  ;;  %v19277_v25 = vld [vmem:[#allocation172_spill] sm:$0xff]  ;;  %v3791_v8 = vpop.f32.mrb[239].mxu1 }
 0x2fb   : > { %v15588_v61 = vmul.f32 %v5971_v44, %v19270_v40  ;;  %v5538_v16 = vsub.f32 1.0, %v4962_v37  ;;  %v19276_v53 = vmax.f32 %v19275_v6, 0.0  ;;  %v19278_v31 = vmax.f32 %v19277_v25, 0.0  ;;  %v3676_v40 = vpop.f32.mrb[238].mxu0 }
 0x2fc   : > { %v6400_v12 = vmul.f32 %v6040_v30, %v19274_v54  ;;  %v4961_v59 = vand.u32 2147483647, %v3672_v26  ;;  %v4963_v56 = vand.u32 2147483647, %v3785_v57  ;;  %v19280_v43 = vmax.f32 %v19279_v21, 0.0  ;;  %v3678_v37 = vpop.f32.mrb[239].mxu0 }
 0x2fd   : > { %19271 = vst [vmem:[#allocation104_spill] sm:$0xff] %v15588_v61  ;;  %v15595_v48 = vmul.f32 %v6042_v29, %v19276_v53  ;;  %v15599_v44 = vmul.f32 %v6041_v18, %v19278_v31  ;;  %v6112_v30 = vmax.f32 %v5536_v38, 0.0  ;;  %v6114_v7 = vmax.f32 %v5538_v16, 0.0  ;;  %v19282_v54 = vld [vmem:[#allocation21_spill] sm:$0xff]  ;;  %v19283_v26 = vld [vmem:[#allocation22_spill] sm:$0xff]  ;;  %v19284_v57 = vld [vmem:[#allocation175_spill] sm:$0xff] }
 0x2fe   : > { %v15603_v13 = vmul.f32 %v6043_v62, %v19280_v43  ;;  %v5032_v4 = vand.u32 2147483647, %v3676_v40  ;;  %10799 = vmatmul.mubr.f32.gmra.mrb[88].mxu0 %v19282_v54  ;;  %10961 = vmatmul.mubr.f32.gmra.mrb[34].mxu1 %v6400_v12  ;;  %v5537_v29 = vsub.f32 1.0, %v4961_v59  ;;  %v5539_v6 = vsub.f32 1.0, %v4963_v56  ;;  %v19286_v21 = vld [vmem:[#allocation178_spill] sm:$0xff]  ;;  %v3860_v12 = vpop.f32.mrb[240].mxu0 }
 0x2ff   : > { %v5034_v18 = vand.u32 2147483647, %v3789_v20  ;;  %v5033_v53 = vand.u32 2147483647, %v3678_v37  ;;  %10801 = vmatprep.mubr.f32.mxu0 %v19283_v26  ;;  %v19285_v25 = vmax.f32 %v19284_v57, 0.0  ;;  %v19287_v62 = vmax.f32 %v19286_v21, 0.0 }
 0x300   : > { %19281 = vst [vmem:[#allocation107_spill] sm:$0xff] %v15603_v13  ;;  %v5608_v38 = vsub.f32 1.0, %v5032_v4  ;;  %v5035_v16 = vand.u32 2147483647, %v3791_v8  ;;  %v6113_v40 = vmax.f32 %v5537_v29, 0.0  ;;  %v6115_v58 = vmax.f32 %v5539_v6, 0.0 }
 0x301   : > { %v6436_v31 = vmul.f32 %v6112_v30, %v19285_v25  ;;  %v15611_v43 = vmul.f32 %v6114_v7, %v19287_v62  ;;  %v5610_v47 = vsub.f32 1.0, %v5034_v18  ;;  %v5609_v54 = vsub.f32 1.0, %v5033_v53  ;;  %v3973_v59 = vpop.f32.mrb[240].mxu1  ;;  %v19288_v26 = vld [vmem:[#allocation25_spill] sm:$0xff]  ;;  %v19289_v30 = vld [vmem:[#allocation176_spill] sm:$0xff]  ;;  %v19291_v7 = vld [vmem:[#allocation179_spill] sm:$0xff] }
 0x302   : > { %v6184_v56 = vmax.f32 %v5608_v38, 0.0  ;;  %v5611_v20 = vsub.f32 1.0, %v5035_v16  ;;  %v4532_v37 = vand.u32 2147483647, %v3860_v12  ;;  %v4534_v13 = vand.u32 2147483647, %v3973_v59  ;;  %10802 = vmatmul.mubr.f32.gmra.mrb[90].mxu0 %v19288_v26 }
 0x303   : > { %10963 = vmatprep.mubr.f32.mxu1 %v6436_v31  ;;  %v19290_v57 = vmax.f32 %v19289_v30, 0.0  ;;  %v19292_v4 = vmax.f32 %v19291_v7, 0.0  ;;  %v6186_v29 = vmax.f32 %v5610_v47, 0.0  ;;  %v6185_v6 = vmax.f32 %v5609_v54, 0.0  ;;  %v3862_v18 = vpop.f32.mrb[241].mxu0  ;;  %v3975_v53 = vpop.f32.mrb[241].mxu1 }
 0x304   : > { %v19294_v21 = vld [vmem:[#allocation26_spill] sm:$0xff]  ;;  %v19295_v62 = vld [vmem:[#allocation177_spill] sm:$0xff]  ;;  %v6187_v12 = vmax.f32 %v5611_v20, 0.0  ;;  %v5108_v59 = vsub.f32 1.0, %v4532_v37  ;;  %v5110_v31 = vsub.f32 1.0, %v4534_v13 }
 0x305   : > { %v15616_v25 = vmul.f32 %v6113_v40, %v19290_v57  ;;  %v15620_v8 = vmul.f32 %v6115_v58, %v19292_v4  ;;  %10804 = vmatprep.mubr.f32.mxu0 %v19294_v21  ;;  %v19296_v38 = vmax.f32 %v19295_v62, 0.0  ;;  %v19297_v26 = vld [vmem:[#allocation181_spill] sm:$0xff]  ;;  %v19299_v57 = vld [vmem:[#allocation180_spill] sm:$0xff]  ;;  %v4533_v47 = vand.u32 2147483647, %v3862_v18  ;;  %v3866_v4 = vpop.f32.mrb[242].mxu0 }
 0x306   : > { %v19298_v30 = vmax.f32 %v19297_v26, 0.0  ;;  %v19300_v7 = vmax.f32 %v19299_v57, 0.0  ;;  %v4535_v54 = vand.u32 2147483647, %v3975_v53  ;;  %v19302_v21 = vmax.f32 %v19301_v14, 0.0  ;;  %v3868_v13 = vpop.f32.mrb[243].mxu0 }
 0x307   : > { %19293 = vst [vmem:[#allocation3_spill] sm:$0xff] %v15620_v8  ;;  %v6472_v16 = vmul.f32 %v6184_v56, %v19296_v38  ;;  %v3979_v8 = vpop.f32.mrb[242].mxu1  ;;  %v5684_v56 = vmax.f32 %v5108_v59, 0.0  ;;  %v5686_v20 = vmax.f32 %v5110_v31, 0.0  ;;  %v4604_v37 = vand.u32 2147483647, %v3866_v4 }
 0x308   : > { %v15627_v40 = vmul.f32 %v6186_v29, %v19298_v30  ;;  %v15631_v58 = vmul.f32 %v6185_v6, %v19300_v7  ;;  %v15635_v61 = vmul.f32 %v6187_v12, %v19302_v21  ;;  %v3981_v62 = vpop.f32.mrb[243].mxu1  ;;  %v19304_v38 = vld [vmem:[#allocation30_spill] sm:$0xff]  ;;  %v5109_v29 = vsub.f32 1.0, %v4533_v47  ;;  %v19305_v18 = vld [vmem:[#allocation31_spill] sm:$0xff] }
 0x309   : > { %10805 = vmatmul.mubr.f32.gmra.mrb[92].mxu0 %v19304_v38  ;;  %10964 = vmatmul.mubr.f32.gmra.mrb[36].mxu1 %v6472_v16  ;;  %v5111_v26 = vsub.f32 1.0, %v4535_v54  ;;  %v4606_v6 = vand.u32 2147483647, %v3979_v8  ;;  %v4605_v30 = vand.u32 2147483647, %v3868_v13  ;;  %v19306_v53 = vld [vmem:[#allocation183_spill] sm:$0xff] }
 0x30a   : > { %19303 = vst [vmem:[#allocation105_spill] sm:$0xff] %v15635_v61  ;;  %10807 = vmatprep.mubr.f32.mxu0 %v19305_v18  ;;  %10966 = vmatprep.mubr.f32.mxu1 %v15518_v15  ;;  %v19307_v14 = vmax.f32 %v19306_v53, 0.0  ;;  %v19308_v59 = vld [vmem:[#allocation186_spill] sm:$0xff]  ;;  %v5180_v7 = vsub.f32 1.0, %v4604_v37  ;;  %v4607_v4 = vand.u32 2147483647, %v3981_v62 }
 0x30b   : > { %v19309_v31 = vmax.f32 %v19308_v59, 0.0  ;;  %v5685_v21 = vmax.f32 %v5109_v29, 0.0  ;;  %v5687_v16 = vmax.f32 %v5111_v26, 0.0  ;;  %v5182_v47 = vsub.f32 1.0, %v4606_v6  ;;  %v3872_v8 = vpop.f32.mrb[244].mxu0  ;;  %v3985_v13 = vpop.f32.mrb[244].mxu1 }
 0x30c   : > { %v15642_v12 = vmul.f32 %v5684_v56, %v19307_v14  ;;  %v5181_v54 = vsub.f32 1.0, %v4605_v30  ;;  %v5756_v38 = vmax.f32 %v5180_v7, 0.0  ;;  %v5183_v18 = vsub.f32 1.0, %v4607_v4  ;;  %v19311_v56 = vld [vmem:[#allocation184_spill] sm:$0xff]  ;;  %v19313_v37 = vld [vmem:[#allocation187_spill] sm:$0xff]  ;;  %v3874_v30 = vpop.f32.mrb[245].mxu0 }
 0x30d   : > { %v15646_v57 = vmul.f32 %v5686_v20, %v19309_v31  ;;  %v4676_v61 = vand.u32 2147483647, %v3872_v8  ;;  %v4678_v15 = vand.u32 2147483647, %v3985_v13  ;;  %10808 = vmatmul.mubr.f32.gmra.mrb[94].mxu0 %v19310_v50  ;;  %10967 = vmatmul.mubr.f32.gmra.mrb[38].mxu1 %v15535_v24  ;;  %v19312_v53 = vmax.f32 %v19311_v56, 0.0  ;;  %v3987_v14 = vpop.f32.mrb[245].mxu1 }
 0x30e   : > { %v19314_v62 = vmax.f32 %v19313_v37, 0.0  ;;  %v5758_v26 = vmax.f32 %v5182_v47, 0.0  ;;  %v5757_v6 = vmax.f32 %v5181_v54, 0.0  ;;  %10810 = vmatprep.mubr.f32.mxu0 %v15065_v51  ;;  %10969 = vmatprep.mubr.f32.mxu1 %v15552_v49  ;;  %v19315_v59 = vld [vmem:[#allocation185_spill] sm:$0xff]  ;;  %v5759_v24 = vmax.f32 %v5183_v18, 0.0  ;;  %v3878_v51 = vpop.f32.mrb[246].mxu0 }
 0x30f   : > { %v15652_v20 = vmul.f32 %v5685_v21, %v19312_v53  ;;  %v19316_v50 = vmax.f32 %v19315_v59, 0.0  ;;  %v5252_v7 = vsub.f32 1.0, %v4676_v61  ;;  %v5254_v4 = vsub.f32 1.0, %v4678_v15  ;;  %v19317_v21 = vld [vmem:[#allocation189_spill] sm:$0xff]  ;;  %v3991_v37 = vpop.f32.mrb[246].mxu1  ;;  %v19321_v49 = vld [vmem:[#allocation190_spill] sm:$0xff] }
 0x310   : > { %v15656_v29 = vmul.f32 %v5687_v16, %v19314_v62  ;;  %v19318_v8 = vmax.f32 %v19317_v21, 0.0  ;;  %v19319_v16 = vld [vmem:[#allocation188_spill] sm:$0xff]  ;;  %v4677_v56 = vand.u32 2147483647, %v3874_v30  ;;  %v4679_v53 = vand.u32 2147483647, %v3987_v14 }
 0x311   : > { %v15662_v31 = vmul.f32 %v5756_v38, %v19316_v50  ;;  %v19320_v47 = vmax.f32 %v19319_v16, 0.0  ;;  %v19322_v62 = vmax.f32 %v19321_v49, 0.0  ;;  %v5828_v38 = vmax.f32 %v5252_v7, 0.0  ;;  %v3880_v15 = vpop.f32.mrb[247].mxu0  ;;  %v3993_v50 = vpop.f32.mrb[247].mxu1  ;;  %10811 = vmatmul.mubr.f32.gmra.mrb[96].mxu0 %v15087_v45  ;;  %10970 = vmatmul.mubr.f32.gmra.mrb[40].mxu1 %v15567_v41  ;;  %v19323_v14 = vld [vmem:[#allocation191_spill] sm:$0xff] }
 0x312   : > { %v15666_v13 = vmul.f32 %v5758_v26, %v19318_v8  ;;  %v5830_v18 = vmax.f32 %v5254_v4, 0.0  ;;  %v4748_v61 = vand.u32 2147483647, %v3878_v51  ;;  %v5253_v26 = vsub.f32 1.0, %v4677_v56  ;;  %10813 = vmatprep.mubr.f32.mxu0 %v15108_v63  ;;  %10972 = vmatprep.mubr.f32.mxu1 %v15584_v35  ;;  %v19325_v7 = vld [vmem:[#allocation193_spill] sm:$0xff]  ;;  %v3997_v49 = vpop.f32.mrb[248].mxu1 }
 0x313   : > { %v15670_v54 = vmul.f32 %v5757_v6, %v19320_v47  ;;  %v15674_v59 = vmul.f32 %v5759_v24, %v19322_v62  ;;  %v5255_v6 = vsub.f32 1.0, %v4679_v53  ;;  %v4750_v21 = vand.u32 2147483647, %v3991_v37  ;;  %v3884_v37 = vpop.f32.mrb[248].mxu0 }
 0x314   : > { %v4749_v30 = vand.u32 2147483647, %v3880_v15  ;;  %v19324_v24 = vmax.f32 %v19323_v14, 0.0  ;;  %v19326_v4 = vmax.f32 %v19325_v7, 0.0  ;;  %v5324_v47 = vsub.f32 1.0, %v4748_v61  ;;  %v19329_v61 = vld [vmem:[#allocation194_spill] sm:$0xff] }
 0x315   : > { %v4751_v45 = vand.u32 2147483647, %v3993_v50  ;;  %v5829_v51 = vmax.f32 %v5253_v26, 0.0  ;;  %v5831_v41 = vmax.f32 %v5255_v6, 0.0  ;;  %v5326_v56 = vsub.f32 1.0, %v4750_v21  ;;  %10814 = vmatmul.mubr.f32.gmra.mrb[98].mxu0 %v15128_v55  ;;  %10973 = vmatmul.mubr.f32.gmra.mrb[42].mxu1 %v15599_v44  ;;  %v19331_v7 = vld [vmem:[#allocation195_spill] sm:$0xff] }
 0x316   : > { %v15682_v8 = vmul.f32 %v5828_v38, %v19324_v24  ;;  %v15686_v16 = vmul.f32 %v5830_v18, %v19326_v4  ;;  %v5325_v53 = vsub.f32 1.0, %v4749_v30  ;;  %v5900_v62 = vmax.f32 %v5324_v47, 0.0  ;;  %v19327_v38 = vld [vmem:[#allocation192_spill] sm:$0xff]  ;;  %v3886_v30 = vpop.f32.mrb[249].mxu0  ;;  %v3999_v24 = vpop.f32.mrb[249].mxu1  ;;  %10816 = vmatprep.mubr.f32.mxu0 %v15148_v19  ;;  %10975 = vmatprep.mubr.f32.mxu1 %v15616_v25 }
 0x317   : > { %v5327_v63 = vsub.f32 1.0, %v4751_v45  ;;  %v4820_v15 = vand.u32 2147483647, %v3884_v37  ;;  %v4822_v35 = vand.u32 2147483647, %v3997_v49  ;;  %v19328_v14 = vmax.f32 %v19327_v38, 0.0 }
 0x318   : > { %v19330_v50 = vmax.f32 %v19329_v61, 0.0  ;;  %v5902_v6 = vmax.f32 %v5326_v56, 0.0  ;;  %v5901_v21 = vmax.f32 %v5325_v53, 0.0  ;;  %v19332_v55 = vmax.f32 %v19331_v7, 0.0  ;;  %v3890_v19 = vpop.f32.mrb[250].mxu0  ;;  %v4003_v61 = vpop.f32.mrb[250].mxu1 }
 0x319   : > { %v15692_v18 = vmul.f32 %v5829_v51, %v19328_v14  ;;  %v5903_v44 = vmax.f32 %v5327_v63, 0.0  ;;  %v5396_v47 = vsub.f32 1.0, %v4820_v15  ;;  %v5398_v45 = vsub.f32 1.0, %v4822_v35  ;;  %v19333_v51 = vld [vmem:[#allocation197_spill] sm:$0xff]  ;;  %v19337_v25 = vld [vmem:[#allocation200_spill] sm:$0xff]  ;;  %v3892_v35 = vpop.f32.mrb[251].mxu0  ;;  %10817 = vmatmul.mubr.f32.gmra.mrb[100].mxu0 %v15167_v60  ;;  %10976 = vmatmul.mubr.f32.gmra.mrb[44].mxu1 %v15631_v58 }
 0x31a   : > { %v15696_v26 = vmul.f32 %v5831_v41, %v19330_v50  ;;  %v15702_v4 = vmul.f32 %v5900_v62, %v19332_v55  ;;  %v19334_v37 = vmax.f32 %v19333_v51, 0.0  ;;  %v19335_v41 = vld [vmem:[#allocation196_spill] sm:$0xff]  ;;  %v4821_v38 = vand.u32 2147483647, %v3886_v30  ;;  %v4005_v55 = vpop.f32.mrb[251].mxu1  ;;  %10819 = vmatprep.mubr.f32.mxu0 %v15185_v22  ;;  %10978 = vmatprep.mubr.f32.mxu1 %v15513_v34 }
 0x31b   : > { %v19336_v56 = vmax.f32 %v19335_v41, 0.0  ;;  %v4823_v14 = vand.u32 2147483647, %v3999_v24  ;;  %v19338_v50 = vmax.f32 %v19337_v25, 0.0  ;;  %v5972_v62 = vmax.f32 %v5396_v47, 0.0  ;;  %v19339_v24 = vld [vmem:[#allocation198_spill] sm:$0xff] }
 0x31c   : > { %v15706_v49 = vmul.f32 %v5902_v6, %v19334_v37  ;;  %v5974_v63 = vmax.f32 %v5398_v45, 0.0  ;;  %v4892_v15 = vand.u32 2147483647, %v3890_v19  ;;  %v5397_v6 = vsub.f32 1.0, %v4821_v38  ;;  %v19341_v47 = vld [vmem:[#allocation202_spill] sm:$0xff]  ;;  %v4009_v25 = vpop.f32.mrb[252].mxu1 }
 0x31d   : > { %v15710_v53 = vmul.f32 %v5901_v21, %v19336_v56  ;;  %v15714_v7 = vmul.f32 %v5903_v44, %v19338_v50  ;;  %v5399_v21 = vsub.f32 1.0, %v4823_v14  ;;  %v4894_v51 = vand.u32 2147483647, %v4003_v61  ;;  %v3896_v61 = vpop.f32.mrb[252].mxu0  ;;  %10820 = vmatmul.mubr.f32.gmra.mrb[102].mxu0 %v15203_v23  ;;  %10979 = vmatmul.mubr.f32.gmra.mrb[46].mxu1 %v15531_v17 }
 0x31e   : > { %v4893_v30 = vand.u32 2147483647, %v3892_v35  ;;  %v19340_v44 = vmax.f32 %v19339_v24, 0.0  ;;  %v19342_v45 = vmax.f32 %v19341_v47, 0.0  ;;  %v5468_v56 = vsub.f32 1.0, %v4892_v15  ;;  %v19345_v15 = vld [vmem:[#allocation203_spill] sm:$0xff]  ;;  %10822 = vmatprep.mubr.f32.mxu0 %v15079_v36  ;;  %10981 = vmatprep.mubr.f32.mxu1 %v15547_v33 }
 0x31f   : > { %v4895_v60 = vand.u32 2147483647, %v4005_v55  ;;  %v5973_v19 = vmax.f32 %v5397_v6, 0.0  ;;  %v5975_v58 = vmax.f32 %v5399_v21, 0.0  ;;  %v5470_v38 = vsub.f32 1.0, %v4894_v51  ;;  %v19347_v47 = vld [vmem:[#allocation201_spill] sm:$0xff] }
 0x320   : > { %v15722_v37 = vmul.f32 %v5972_v62, %v19340_v44  ;;  %v15726_v41 = vmul.f32 %v5974_v63, %v19342_v45  ;;  %v5469_v14 = vsub.f32 1.0, %v4893_v30  ;;  %v6044_v50 = vmax.f32 %v5468_v56, 0.0  ;;  %v19343_v62 = vld [vmem:[#allocation199_spill] sm:$0xff]  ;;  %v3898_v30 = vpop.f32.mrb[253].mxu0  ;;  %v4011_v44 = vpop.f32.mrb[253].mxu1 }
 0x321   : > { %v5471_v22 = vsub.f32 1.0, %v4895_v60  ;;  %v4964_v35 = vand.u32 2147483647, %v3896_v61  ;;  %v4966_v34 = vand.u32 2147483647, %v4009_v25  ;;  %v19344_v24 = vmax.f32 %v19343_v62, 0.0  ;;  %10823 = vmatmul.mubr.f32.gmra.mrb[104].mxu0 %v15096_v32  ;;  %10982 = vmatmul.mubr.f32.gmra.mrb[48].mxu1 %v15563_v0 }
 0x322   : > { %v19346_v55 = vmax.f32 %v19345_v15, 0.0  ;;  %v6046_v21 = vmax.f32 %v5470_v38, 0.0  ;;  %v6045_v51 = vmax.f32 %v5469_v14, 0.0  ;;  %v19348_v23 = vmax.f32 %v19347_v47, 0.0  ;;  %v3902_v36 = vpop.f32.mrb[254].mxu0  ;;  %v4015_v15 = vpop.f32.mrb[254].mxu1  ;;  %10825 = vmatprep.mubr.f32.mxu0 %v15120_v1  ;;  %10984 = vmatprep.mubr.f32.mxu1 %v15579_v3 }
 0x323   : > { %v15732_v63 = vmul.f32 %v5973_v19, %v19344_v24  ;;  %v6047_v17 = vmax.f32 %v5471_v22, 0.0  ;;  %v5540_v56 = vsub.f32 1.0, %v4964_v35  ;;  %v5542_v60 = vsub.f32 1.0, %v4966_v34  ;;  %v19349_v19 = vld [vmem:[#allocation205_spill] sm:$0xff]  ;;  %v19353_v33 = vld [vmem:[#allocation207_spill] sm:$0xff]  ;;  %v3904_v34 = vpop.f32.mrb[255].mxu0 }
 0x324   : > { %v15736_v6 = vmul.f32 %v5975_v58, %v19346_v55  ;;  %v15742_v45 = vmul.f32 %v6044_v50, %v19348_v23  ;;  %v19350_v61 = vmax.f32 %v19349_v19, 0.0  ;;  %v19351_v58 = vld [vmem:[#allocation204_spill] sm:$0xff]  ;;  %v4965_v62 = vand.u32 2147483647, %v3898_v30  ;;  %v4017_v23 = vpop.f32.mrb[255].mxu1 }
 0x325   : > { %v19352_v38 = vmax.f32 %v19351_v58, 0.0  ;;  %v4967_v24 = vand.u32 2147483647, %v4011_v44  ;;  %v19354_v55 = vmax.f32 %v19353_v33, 0.0  ;;  %v6116_v50 = vmax.f32 %v5540_v56, 0.0  ;;  %v19355_v44 = vld [vmem:[#allocation206_spill] sm:$0xff]  ;;  %10826 = vmatmul.mubr.f32.gmra.mrb[106].mxu0 %v15136_v27  ;;  %10985 = vmatmul.mubr.f32.gmra.mrb[50].mxu1 %v15595_v48 }
 0x326   : > { %v15746_v25 = vmul.f32 %v6046_v21, %v19350_v61  ;;  %v6118_v22 = vmax.f32 %v5542_v60, 0.0  ;;  %v5036_v35 = vand.u32 2147483647, %v3902_v36  ;;  %v5541_v21 = vsub.f32 1.0, %v4965_v62  ;;  %v19357_v56 = vld [vmem:[#allocation209_spill] sm:$0xff]  ;;  %v4199_v33 = vpop.f32.mrb[0].mxu1  ;;  %10828 = vmatprep.mubr.f32.mxu0 %v15159_v11  ;;  %10987 = vmatprep.mubr.f32.mxu1 %v15611_v43 }
 0x327   : > { %v15750_v14 = vmul.f32 %v6045_v51, %v19352_v38  ;;  %v15754_v47 = vmul.f32 %v6047_v17, %v19354_v55  ;;  %v5543_v51 = vsub.f32 1.0, %v4967_v24  ;;  %v5038_v19 = vand.u32 2147483647, %v4015_v15  ;;  %v4086_v15 = vpop.f32.mrb[0].mxu0  ;;  %v19369_v43 = vld [vmem:[#allocation216_spill] sm:$0xff] }
 0x328   : > { %v5037_v30 = vand.u32 2147483647, %v3904_v34  ;;  %v19356_v17 = vmax.f32 %v19355_v44, 0.0  ;;  %v19358_v60 = vmax.f32 %v19357_v56, 0.0  ;;  %v5612_v38 = vsub.f32 1.0, %v5036_v35  ;;  %v19361_v35 = vld [vmem:[#allocation212_spill] sm:$0xff] }
 0x329   : > { %v5039_v32 = vand.u32 2147483647, %v4017_v23  ;;  %v6117_v36 = vmax.f32 %v5541_v21, 0.0  ;;  %v6119_v0 = vmax.f32 %v5543_v51, 0.0  ;;  %v5614_v62 = vsub.f32 1.0, %v5038_v19  ;;  %v19363_v56 = vld [vmem:[#allocation210_spill] sm:$0xff]  ;;  %10829 = vmatmul.mubr.f32.gmra.mrb[108].mxu0 %v15175_v52  ;;  %10988 = vmatmul.mubr.f32.gmra.mrb[52].mxu1 %v15627_v40 }
 0x32a   : > { %v15762_v61 = vmul.f32 %v6116_v50, %v19356_v17  ;;  %v15766_v58 = vmul.f32 %v6118_v22, %v19358_v60  ;;  %v5613_v24 = vsub.f32 1.0, %v5037_v30  ;;  %v6188_v55 = vmax.f32 %v5612_v38, 0.0  ;;  %v19359_v50 = vld [vmem:[#allocation208_spill] sm:$0xff]  ;;  %v4088_v30 = vpop.f32.mrb[1].mxu0  ;;  %v4201_v17 = vpop.f32.mrb[1].mxu1  ;;  %10831 = vmatprep.mubr.f32.mxu0 %v15195_v9  ;;  %10990 = vmatprep.mubr.f32.mxu1 %v15522_v39 }
 0x32b   : > { %v5615_v1 = vsub.f32 1.0, %v5039_v32  ;;  %v4536_v34 = vand.u32 2147483647, %v4086_v15  ;;  %v4538_v3 = vand.u32 2147483647, %v4199_v33  ;;  %v19360_v44 = vmax.f32 %v19359_v50, 0.0 }
 0x32c   : > { %v19362_v23 = vmax.f32 %v19361_v35, 0.0  ;;  %v6190_v51 = vmax.f32 %v5614_v62, 0.0  ;;  %v6189_v19 = vmax.f32 %v5613_v24, 0.0  ;;  %v19364_v27 = vmax.f32 %v19363_v56, 0.0  ;;  %v4092_v11 = vpop.f32.mrb[2].mxu0  ;;  %v4205_v35 = vpop.f32.mrb[2].mxu1 }
 0x32d   : > { %v15772_v22 = vmul.f32 %v6117_v36, %v19360_v44  ;;  %v6191_v48 = vmax.f32 %v5615_v1, 0.0  ;;  %v5112_v38 = vsub.f32 1.0, %v4536_v34  ;;  %v5114_v32 = vsub.f32 1.0, %v4538_v3  ;;  %v19365_v36 = vld [vmem:[#allocation215_spill] sm:$0xff]  ;;  %v4094_v3 = vpop.f32.mrb[3].mxu0  ;;  %10832 = vmatmul.mubr.f32.gmra.mrb[110].mxu0 %v15211_v28  ;;  %10991 = vmatmul.mubr.f32.gmra.mrb[54].mxu1 %v15539_v5 }
 0x32e   : > { %v15776_v21 = vmul.f32 %v6119_v0, %v19362_v23  ;;  %v15782_v60 = vmul.f32 %v6188_v55, %v19364_v27  ;;  %v19366_v15 = vmax.f32 %v19365_v36, 0.0  ;;  %v19367_v0 = vld [vmem:[#allocation211_spill] sm:$0xff]  ;;  %v4537_v50 = vand.u32 2147483647, %v4088_v30  ;;  %v4207_v27 = vpop.f32.mrb[3].mxu1  ;;  %10834 = vmatprep.mubr.f32.mxu0 %v15069_v46  ;;  %10993 = vmatprep.mubr.f32.mxu1 %v15556_v2 }
 0x32f   : > { %v19368_v62 = vmax.f32 %v19367_v0, 0.0  ;;  %v4539_v44 = vand.u32 2147483647, %v4201_v17  ;;  %v19370_v23 = vmax.f32 %v19369_v43, 0.0  ;;  %v5688_v55 = vmax.f32 %v5112_v38, 0.0  ;;  %v19371_v17 = vld [vmem:[#allocation213_spill] sm:$0xff] }
 0x330   : > { %v15786_v33 = vmul.f32 %v6190_v51, %v19366_v15  ;;  %v5690_v1 = vmax.f32 %v5114_v32, 0.0  ;;  %v4608_v34 = vand.u32 2147483647, %v4092_v11  ;;  %v5113_v51 = vsub.f32 1.0, %v4537_v50  ;;  %v19373_v38 = vld [vmem:[#allocation217_spill] sm:$0xff]  ;;  %v4211_v43 = vpop.f32.mrb[4].mxu1 }
 0x331   : > { %v15790_v24 = vmul.f32 %v6189_v19, %v19368_v62  ;;  %v15794_v56 = vmul.f32 %v6191_v48, %v19370_v23  ;;  %v5115_v19 = vsub.f32 1.0, %v4539_v44  ;;  %v4610_v36 = vand.u32 2147483647, %v4205_v35  ;;  %v4098_v35 = vpop.f32.mrb[4].mxu0  ;;  %v19388_v2 = vld [vmem:[#allocation223_spill] sm:$0xff]  ;;  %10835 = vmatmul.mubr.f32.gmra.mrb[112].mxu0 %v15092_v10  ;;  %10994 = vmatmul.mubr.f32.gmra.mrb[56].mxu1 %v15571_v42 }
 0x332   : > { %v4609_v30 = vand.u32 2147483647, %v4094_v3  ;;  %v19372_v48 = vmax.f32 %v19371_v17, 0.0  ;;  %v19374_v32 = vmax.f32 %v19373_v38, 0.0  ;;  %v5184_v62 = vsub.f32 1.0, %v4608_v34  ;;  %v19378_v34 = vld [vmem:[#allocation218_spill] sm:$0xff] }
 0x333   : > { %v4611_v52 = vand.u32 2147483647, %v4207_v27  ;;  %v5689_v11 = vmax.f32 %v5113_v51, 0.0  ;;  %v5691_v40 = vmax.f32 %v5115_v19, 0.0  ;;  %v5186_v50 = vsub.f32 1.0, %v4610_v36  ;;  %v19381_v38 = vld [vmem:[#allocation219_spill] sm:$0xff] }
 0x334   : > { %v15802_v15 = vmul.f32 %v5688_v55, %v19372_v48  ;;  %v15806_v0 = vmul.f32 %v5690_v1, %v19374_v32  ;;  %v5185_v44 = vsub.f32 1.0, %v4609_v30  ;;  %v5760_v23 = vmax.f32 %v5184_v62, 0.0  ;;  %v19376_v55 = vld [vmem:[#allocation214_spill] sm:$0xff]  ;;  %v4100_v30 = vpop.f32.mrb[5].mxu0  ;;  %v4213_v48 = vpop.f32.mrb[5].mxu1 }
 0x335   : > { %v5187_v9 = vsub.f32 1.0, %v4611_v52  ;;  %v4680_v3 = vand.u32 2147483647, %v4098_v35  ;;  %v4682_v39 = vand.u32 2147483647, %v4211_v43  ;;  %v19377_v17 = vmax.f32 %v19376_v55, 0.0 }
 0x336   : > { %19375 = vst [vmem:[#allocation110_spill] sm:$0xff] %v15806_v0  ;;  %v19379_v27 = vmax.f32 %v19378_v34, 0.0  ;;  %v5762_v19 = vmax.f32 %v5186_v50, 0.0  ;;  %v5761_v36 = vmax.f32 %v5185_v44, 0.0  ;;  %v19382_v28 = vmax.f32 %v19381_v38, 0.0  ;;  %v4104_v46 = vpop.f32.mrb[6].mxu0 }
 0x337   : > { %v15812_v1 = vmul.f32 %v5689_v11, %v19377_v17  ;;  %v5763_v5 = vmax.f32 %v5187_v9, 0.0  ;;  %v5256_v62 = vsub.f32 1.0, %v4680_v3  ;;  %v5258_v52 = vsub.f32 1.0, %v4682_v39  ;;  %v19383_v11 = vld [vmem:[#allocation221_spill] sm:$0xff]  ;;  %v4217_v34 = vpop.f32.mrb[6].mxu1  ;;  %v4106_v39 = vpop.f32.mrb[7].mxu0 }
 0x338   : > { %v15816_v51 = vmul.f32 %v5691_v40, %v19379_v27  ;;  %v15822_v32 = vmul.f32 %v5760_v23, %v19382_v28  ;;  %v19384_v35 = vmax.f32 %v19383_v11, 0.0  ;;  %v19386_v40 = vld [vmem:[#allocation220_spill] sm:$0xff]  ;;  %v4681_v55 = vand.u32 2147483647, %v4100_v30  ;;  %v4219_v28 = vpop.f32.mrb[7].mxu1 }
 0x339   : > { %v19387_v50 = vmax.f32 %v19386_v40, 0.0  ;;  %v4683_v17 = vand.u32 2147483647, %v4213_v48  ;;  %v19389_v27 = vmax.f32 %v19388_v2, 0.0  ;;  %v5832_v23 = vmax.f32 %v5256_v62, 0.0  ;;  %v19391_v48 = vld [vmem:[#allocation37_spill] sm:$0xff] }
 0x33a   : > { %19380 = vst [vmem:[#allocation108_spill] sm:$0xff] %v15816_v51  ;;  %v15826_v43 = vmul.f32 %v5762_v19, %v19384_v35  ;;  %v5834_v9 = vmax.f32 %v5258_v52, 0.0  ;;  %v4752_v3 = vand.u32 2147483647, %v4104_v46  ;;  %v5257_v19 = vsub.f32 1.0, %v4681_v55  ;;  %10837 = vmatprep.mubr.f32.mxu0 %v19391_v48  ;;  %v19392_v35 = vld [vmem:[#allocation104_spill] sm:$0xff] }
 0x33b   : > { %v15830_v44 = vmul.f32 %v5761_v36, %v19387_v50  ;;  %v15834_v38 = vmul.f32 %v5763_v5, %v19389_v27  ;;  %v5259_v36 = vsub.f32 1.0, %v4683_v17  ;;  %v4754_v11 = vand.u32 2147483647, %v4217_v34  ;;  %10996 = vmatprep.mubr.f32.mxu1 %v19392_v35  ;;  %v19393_v40 = vld [vmem:[#allocation222_spill] sm:$0xff]  ;;  %v19395_v62 = vld [vmem:[#allocation225_spill] sm:$0xff]  ;;  %v4110_v34 = vpop.f32.mrb[8].mxu0 }
 0x33c   : > { %19385 = vst [vmem:[#allocation111_spill] sm:$0xff] %v15826_v43  ;;  %v4753_v30 = vand.u32 2147483647, %v4106_v39  ;;  %v19394_v5 = vmax.f32 %v19393_v40, 0.0  ;;  %v19396_v52 = vmax.f32 %v19395_v62, 0.0  ;;  %v5328_v2 = vsub.f32 1.0, %v4752_v3 }
 0x33d   : > { %19390 = vst [vmem:[#allocation5_spill] sm:$0xff] %v15834_v38  ;;  %v4755_v10 = vand.u32 2147483647, %v4219_v28  ;;  %v5833_v27 = vmax.f32 %v5257_v19, 0.0  ;;  %v5835_v42 = vmax.f32 %v5259_v36, 0.0  ;;  %v5330_v55 = vsub.f32 1.0, %v4754_v11 }
 0x33e   : > { %v15842_v50 = vmul.f32 %v5832_v23, %v19394_v5  ;;  %v15846_v46 = vmul.f32 %v5834_v9, %v19396_v52  ;;  %v5329_v17 = vsub.f32 1.0, %v4753_v30  ;;  %v4223_v39 = vpop.f32.mrb[8].mxu1  ;;  %v5904_v38 = vmax.f32 %v5328_v2, 0.0  ;;  %v19398_v43 = vld [vmem:[#allocation38_spill] sm:$0xff]  ;;  %v19399_v23 = vld [vmem:[#allocation107_spill] sm:$0xff]  ;;  %v19400_v40 = vld [vmem:[#allocation224_spill] sm:$0xff] }
 0x33f   : > { %v5331_v48 = vsub.f32 1.0, %v4755_v10  ;;  %v4824_v51 = vand.u32 2147483647, %v4110_v34  ;;  %v4826_v35 = vand.u32 2147483647, %v4223_v39  ;;  %10838 = vmatmul.mubr.f32.gmra.mrb[114].mxu0 %v19398_v43  ;;  %10997 = vmatmul.mubr.f32.gmra.mrb[58].mxu1 %v19399_v23  ;;  %v19401_v5 = vmax.f32 %v19400_v40, 0.0 }
 0x340   : > { %19397 = vst [vmem:[#allocation8_spill] sm:$0xff] %v15846_v46  ;;  %v19403_v3 = vld [vmem:[#allocation228_spill] sm:$0xff]  ;;  %v5906_v36 = vmax.f32 %v5330_v55, 0.0  ;;  %v5905_v11 = vmax.f32 %v5329_v17, 0.0  ;;  %v4112_v30 = vpop.f32.mrb[9].mxu0  ;;  %v4225_v62 = vpop.f32.mrb[9].mxu1 }
 0x341   : > { %v15852_v9 = vmul.f32 %v5833_v27, %v19401_v5  ;;  %v19404_v28 = vmax.f32 %v19403_v3, 0.0  ;;  %v19406_v52 = vld [vmem:[#allocation41_spill] sm:$0xff]  ;;  %v19407_v2 = vld [vmem:[#allocation3_spill] sm:$0xff]  ;;  %v19408_v10 = vld [vmem:[#allocation226_spill] sm:$0xff]  ;;  %v5907_v39 = vmax.f32 %v5331_v48, 0.0  ;;  %v5400_v23 = vsub.f32 1.0, %v4824_v51 }
 0x342   : > { %10840 = vmatprep.mubr.f32.mxu0 %v19406_v52  ;;  %10999 = vmatprep.mubr.f32.mxu1 %v19407_v2  ;;  %v19409_v43 = vmax.f32 %v19408_v10, 0.0  ;;  %v5402_v27 = vsub.f32 1.0, %v4826_v35  ;;  %v19410_v40 = vld [vmem:[#allocation229_spill] sm:$0xff]  ;;  %v4116_v52 = vpop.f32.mrb[10].mxu0  ;;  %v4229_v46 = vpop.f32.mrb[10].mxu1  ;;  %v19416_v2 = vld [vmem:[#allocation231_spill] sm:$0xff] }
 0x343   : > { %19402 = vst [vmem:[#allocation109_spill] sm:$0xff] %v15852_v9  ;;  %v15856_v19 = vmul.f32 %v5835_v42, %v19404_v28  ;;  %v19411_v5 = vmax.f32 %v19410_v40, 0.0  ;;  %v19413_v42 = vld [vmem:[#allocation227_spill] sm:$0xff]  ;;  %v4825_v28 = vand.u32 2147483647, %v4112_v30  ;;  %v19417_v0 = vmax.f32 %v19416_v2, 0.0 }
 0x344   : > { %v15862_v34 = vmul.f32 %v5904_v38, %v19409_v43  ;;  %v19414_v55 = vmax.f32 %v19413_v42, 0.0  ;;  %v5976_v38 = vmax.f32 %v5400_v23, 0.0  ;;  %v5978_v48 = vmax.f32 %v5402_v27, 0.0  ;;  %v4118_v35 = vpop.f32.mrb[11].mxu0  ;;  %v4231_v43 = vpop.f32.mrb[11].mxu1  ;;  %v19419_v40 = vld [vmem:[#allocation42_spill] sm:$0xff] }
 0x345   : > { %19405 = vst [vmem:[#allocation113_spill] sm:$0xff] %v15856_v19  ;;  %v15866_v3 = vmul.f32 %v5906_v36, %v19411_v5  ;;  %v4827_v19 = vand.u32 2147483647, %v4225_v62  ;;  %v15874_v10 = vmul.f32 %v5907_v39, %v19417_v0  ;;  %v4896_v51 = vand.u32 2147483647, %v4116_v52  ;;  %10841 = vmatmul.mubr.f32.gmra.mrb[116].mxu0 %v19419_v40  ;;  %v19420_v36 = vld [vmem:[#allocation105_spill] sm:$0xff] }
 0x346   : > { %v15870_v17 = vmul.f32 %v5905_v11, %v19414_v55  ;;  %11000 = vmatmul.mubr.f32.gmra.mrb[60].mxu1 %v19420_v36  ;;  %v5401_v5 = vsub.f32 1.0, %v4825_v28  ;;  %v4898_v42 = vand.u32 2147483647, %v4229_v46  ;;  %v4897_v30 = vand.u32 2147483647, %v4118_v35  ;;  %v19421_v62 = vld [vmem:[#allocation45_spill] sm:$0xff] }
 0x347   : > { %19412 = vst [vmem:[#allocation9_spill] sm:$0xff] %v15866_v3  ;;  %19418 = vst [vmem:[#allocation114_spill] sm:$0xff] %v15874_v10  ;;  %v5403_v11 = vsub.f32 1.0, %v4827_v19  ;;  %10843 = vmatprep.mubr.f32.mxu0 %v19421_v62  ;;  %11002 = vmatprep.mubr.f32.mxu1 %v15642_v12  ;;  %v19422_v55 = vld [vmem:[#allocation230_spill] sm:$0xff]  ;;  %v19424_v23 = vld [vmem:[#allocation233_spill] sm:$0xff]  ;;  %v5472_v2 = vsub.f32 1.0, %v4896_v51 }
 0x348   : > { %19415 = vst [vmem:[#allocation112_spill] sm:$0xff] %v15870_v17  ;;  %v19423_v0 = vmax.f32 %v19422_v55, 0.0  ;;  %v19425_v27 = vmax.f32 %v19424_v23, 0.0  ;;  %v4899_v40 = vand.u32 2147483647, %v4231_v43  ;;  %v5977_v10 = vmax.f32 %v5401_v5, 0.0 }
 0x349   : > { %v5979_v36 = vmax.f32 %v5403_v11, 0.0  ;;  %v5474_v28 = vsub.f32 1.0, %v4898_v42  ;;  %v5473_v19 = vsub.f32 1.0, %v4897_v30  ;;  %v4122_v46 = vpop.f32.mrb[12].mxu0  ;;  %v4235_v35 = vpop.f32.mrb[12].mxu1  ;;  %v6048_v3 = vmax.f32 %v5472_v2, 0.0 }
 0x34a   : > { %v15882_v39 = vmul.f32 %v5976_v38, %v19423_v0  ;;  %v15886_v52 = vmul.f32 %v5978_v48, %v19425_v27  ;;  %v5475_v62 = vsub.f32 1.0, %v4899_v40  ;;  %v4968_v17 = vand.u32 2147483647, %v4122_v46  ;;  %v19427_v9 = vld [vmem:[#allocation46_spill] sm:$0xff]  ;;  %11003 = vmatmul.mubr.f32.gmra.mrb[62].mxu1 %v15662_v31  ;;  %v19428_v38 = vld [vmem:[#allocation232_spill] sm:$0xff]  ;;  %v4124_v30 = vpop.f32.mrb[13].mxu0 }
 0x34b   : > { %v4970_v12 = vand.u32 2147483647, %v4235_v35  ;;  %10844 = vmatmul.mubr.f32.gmra.mrb[118].mxu0 %v19427_v9  ;;  %v19429_v55 = vmax.f32 %v19428_v38, 0.0  ;;  %v19430_v51 = vld [vmem:[#allocation234_spill] sm:$0xff]  ;;  %v6050_v11 = vmax.f32 %v5474_v28, 0.0  ;;  %v6049_v42 = vmax.f32 %v5473_v19, 0.0  ;;  %11005 = vmatprep.mubr.f32.mxu1 %v15682_v8 }
 0x34c   : > { %19426 = vst [vmem:[#allocation12_spill] sm:$0xff] %v15886_v52  ;;  %v19431_v43 = vmax.f32 %v19430_v51, 0.0  ;;  %v4237_v0 = vpop.f32.mrb[13].mxu1  ;;  %v19433_v23 = vld [vmem:[#allocation34_spill] sm:$0xff]  ;;  %v19434_v27 = vld [vmem:[#allocation235_spill] sm:$0xff]  ;;  %v6051_v31 = vmax.f32 %v5475_v62, 0.0 }
 0x34d   : > { %v15892_v48 = vmul.f32 %v5977_v10, %v19429_v55  ;;  %10846 = vmatprep.mubr.f32.mxu0 %v19433_v23  ;;  %v19435_v9 = vmax.f32 %v19434_v27, 0.0  ;;  %v5544_v40 = vsub.f32 1.0, %v4968_v17  ;;  %v5546_v10 = vsub.f32 1.0, %v4970_v12  ;;  %v19436_v46 = vld [vmem:[#allocation237_spill] sm:$0xff]  ;;  %v4241_v23 = vpop.f32.mrb[14].mxu1  ;;  %v19441_v8 = vld [vmem:[#allocation238_spill] sm:$0xff] }
 0x34e   : > { %v15896_v5 = vmul.f32 %v5979_v36, %v19431_v43  ;;  %v19437_v35 = vmax.f32 %v19436_v46, 0.0  ;;  %v19439_v36 = vld [vmem:[#allocation236_spill] sm:$0xff]  ;;  %v4969_v55 = vand.u32 2147483647, %v4124_v30  ;;  %v4971_v51 = vand.u32 2147483647, %v4237_v0  ;;  %11006 = vmatmul.mubr.f32.gmra.mrb[64].mxu1 %v15702_v4 }
 0x34f   : > { %v15902_v2 = vmul.f32 %v6048_v3, %v19435_v9  ;;  %v19440_v28 = vmax.f32 %v19439_v36, 0.0  ;;  %v4128_v43 = vpop.f32.mrb[14].mxu0  ;;  %v6120_v3 = vmax.f32 %v5544_v40, 0.0  ;;  %v6122_v62 = vmax.f32 %v5546_v10, 0.0  ;;  %v4243_v9 = vpop.f32.mrb[15].mxu1  ;;  %v19444_v46 = vld [vmem:[#allocation35_spill] sm:$0xff]  ;;  %11008 = vmatprep.mubr.f32.mxu1 %v15722_v37 }
 0x350   : > { %19432 = vst [vmem:[#allocation115_spill] sm:$0xff] %v15896_v5  ;;  %v15906_v38 = vmul.f32 %v6050_v11, %v19437_v35  ;;  %v19442_v5 = vmax.f32 %v19441_v8, 0.0  ;;  %v5040_v17 = vand.u32 2147483647, %v4128_v43  ;;  %v4130_v12 = vpop.f32.mrb[15].mxu0  ;;  %10847 = vmatmul.mubr.f32.gmra.mrb[120].mxu0 %v19444_v46  ;;  %v5545_v11 = vsub.f32 1.0, %v4969_v55 }
 0x351   : > { %v15910_v19 = vmul.f32 %v6049_v42, %v19440_v28  ;;  %v5547_v42 = vsub.f32 1.0, %v4971_v51  ;;  %v5042_v35 = vand.u32 2147483647, %v4241_v23  ;;  %v5041_v30 = vand.u32 2147483647, %v4130_v12  ;;  %v19445_v0 = vld [vmem:[#allocation36_spill] sm:$0xff] }
 0x352   : > { %19438 = vst [vmem:[#allocation117_spill] sm:$0xff] %v15906_v38  ;;  %v15914_v27 = vmul.f32 %v6051_v31, %v19442_v5  ;;  %10849 = vmatprep.mubr.f32.mxu0 %v19445_v0  ;;  %v19446_v36 = vld [vmem:[#allocation239_spill] sm:$0xff]  ;;  %v19448_v40 = vld [vmem:[#allocation241_spill] sm:$0xff]  ;;  %v5616_v43 = vsub.f32 1.0, %v5040_v17  ;;  %v5043_v8 = vand.u32 2147483647, %v4243_v9  ;;  %11009 = vmatmul.mubr.f32.gmra.mrb[66].mxu1 %v15742_v45 }
 0x353   : > { %v19447_v5 = vmax.f32 %v19446_v36, 0.0  ;;  %v19449_v10 = vmax.f32 %v19448_v40, 0.0  ;;  %v6121_v46 = vmax.f32 %v5545_v11, 0.0  ;;  %v6123_v4 = vmax.f32 %v5547_v42, 0.0  ;;  %v4312_v23 = vpop.f32.mrb[16].mxu0  ;;  %v4425_v12 = vpop.f32.mrb[16].mxu1  ;;  %11011 = vmatprep.mubr.f32.mxu1 %v15762_v61 }
 0x354   : > { %19443 = vst [vmem:[#allocation116_spill] sm:$0xff] %v15914_v27  ;;  %v5618_v55 = vsub.f32 1.0, %v5042_v35  ;;  %v5617_v51 = vsub.f32 1.0, %v5041_v30  ;;  %v6192_v27 = vmax.f32 %v5616_v43, 0.0  ;;  %v5619_v0 = vsub.f32 1.0, %v5043_v8  ;;  %v19451_v52 = vld [vmem:[#allocation39_spill] sm:$0xff] }
 0x355   : > { %v15922_v31 = vmul.f32 %v6120_v3, %v19447_v5  ;;  %v15926_v28 = vmul.f32 %v6122_v62, %v19449_v10  ;;  %v4540_v38 = vand.u32 2147483647, %v4312_v23  ;;  %v4542_v37 = vand.u32 2147483647, %v4425_v12  ;;  %10850 = vmatmul.mubr.f32.gmra.mrb[122].mxu0 %v19451_v52  ;;  %v19452_v3 = vld [vmem:[#allocation240_spill] sm:$0xff]  ;;  %v19454_v17 = vld [vmem:[#allocation242_spill] sm:$0xff] }
 0x356   : > { %v19453_v36 = vmax.f32 %v19452_v3, 0.0  ;;  %v19455_v9 = vmax.f32 %v19454_v17, 0.0  ;;  %v6194_v42 = vmax.f32 %v5618_v55, 0.0  ;;  %v6193_v35 = vmax.f32 %v5617_v51, 0.0  ;;  %v4314_v30 = vpop.f32.mrb[17].mxu0  ;;  %v4427_v5 = vpop.f32.mrb[17].mxu1  ;;  %11012 = vmatmul.mubr.f32.gmra.mrb[68].mxu1 %v15782_v60 }
 0x357   : > { %19450 = vst [vmem:[#allocation118_spill] sm:$0xff] %v15926_v28  ;;  %v19457_v40 = vld [vmem:[#allocation40_spill] sm:$0xff]  ;;  %v19458_v10 = vld [vmem:[#allocation243_spill] sm:$0xff]  ;;  %v6195_v45 = vmax.f32 %v5619_v0, 0.0  ;;  %v5116_v8 = vsub.f32 1.0, %v4540_v38  ;;  %v19460_v23 = vld [vmem:[#allocation245_spill] sm:$0xff]  ;;  %11014 = vmatprep.mubr.f32.mxu1 %v15652_v20 }
 0x358   : > { %v15932_v62 = vmul.f32 %v6121_v46, %v19453_v36  ;;  %v15936_v11 = vmul.f32 %v6123_v4, %v19455_v9  ;;  %10852 = vmatprep.mubr.f32.mxu0 %v19457_v40  ;;  %v19459_v52 = vmax.f32 %v19458_v10, 0.0  ;;  %v5118_v46 = vsub.f32 1.0, %v4542_v37  ;;  %v19463_v4 = vld [vmem:[#allocation244_spill] sm:$0xff]  ;;  %v4318_v9 = vpop.f32.mrb[18].mxu0  ;;  %v4431_v40 = vpop.f32.mrb[18].mxu1  ;;  %v19465_v61 = vld [vmem:[#allocation246_spill] sm:$0xff] }
 0x359   : > { %v19461_v12 = vmax.f32 %v19460_v23, 0.0  ;;  %v19464_v55 = vmax.f32 %v19463_v4, 0.0  ;;  %v4541_v36 = vand.u32 2147483647, %v4314_v30  ;;  %v4543_v17 = vand.u32 2147483647, %v4427_v5 }
 0x35a   : > { %19456 = vst [vmem:[#allocation13_spill] sm:$0xff] %v15936_v11  ;;  %v15942_v43 = vmul.f32 %v6192_v27, %v19459_v52  ;;  %v19466_v11 = vmax.f32 %v19465_v61, 0.0  ;;  %v5692_v27 = vmax.f32 %v5116_v8, 0.0  ;;  %v5694_v0 = vmax.f32 %v5118_v46, 0.0  ;;  %v4320_v37 = vpop.f32.mrb[19].mxu0  ;;  %v4433_v52 = vpop.f32.mrb[19].mxu1  ;;  %11015 = vmatmul.mubr.f32.gmra.mrb[70].mxu1 %v15670_v54 }
 0x35b   : > { %v15946_v3 = vmul.f32 %v6194_v42, %v19461_v12  ;;  %v15950_v51 = vmul.f32 %v6193_v35, %v19464_v55  ;;  %v4612_v38 = vand.u32 2147483647, %v4318_v9  ;;  %v19468_v23 = vld [vmem:[#allocation43_spill] sm:$0xff]  ;;  %v5117_v42 = vsub.f32 1.0, %v4541_v36  ;;  %v19469_v5 = vld [vmem:[#allocation44_spill] sm:$0xff]  ;;  %v19472_v8 = vld [vmem:[#allocation249_spill] sm:$0xff]  ;;  %11017 = vmatprep.mubr.f32.mxu1 %v15692_v18 }
 0x35c   : > { %v15954_v10 = vmul.f32 %v6195_v45, %v19466_v11  ;;  %10853 = vmatmul.mubr.f32.gmra.mrb[124].mxu0 %v19468_v23  ;;  %v5119_v35 = vsub.f32 1.0, %v4543_v17  ;;  %v4614_v12 = vand.u32 2147483647, %v4431_v40  ;;  %v4613_v30 = vand.u32 2147483647, %v4320_v37  ;;  %v19470_v4 = vld [vmem:[#allocation247_spill] sm:$0xff] }
 0x35d   : > { %19462 = vst [vmem:[#allocation16_spill] sm:$0xff] %v15946_v3  ;;  %10855 = vmatprep.mubr.f32.mxu0 %v19469_v5  ;;  %v19471_v11 = vmax.f32 %v19470_v4, 0.0  ;;  %v19473_v46 = vmax.f32 %v19472_v8, 0.0  ;;  %v5188_v9 = vsub.f32 1.0, %v4612_v38  ;;  %v4615_v61 = vand.u32 2147483647, %v4433_v52 }
 0x35e   : > { %19467 = vst [vmem:[#allocation119_spill] sm:$0xff] %v15954_v10  ;;  %v5693_v23 = vmax.f32 %v5117_v42, 0.0  ;;  %v5695_v60 = vmax.f32 %v5119_v35, 0.0  ;;  %v5190_v36 = vsub.f32 1.0, %v4614_v12  ;;  %v5189_v17 = vsub.f32 1.0, %v4613_v30  ;;  %v4324_v40 = vpop.f32.mrb[20].mxu0  ;;  %11018 = vmatmul.mubr.f32.gmra.mrb[72].mxu1 %v15710_v53 }
 0x35f   : > { %v15962_v45 = vmul.f32 %v5692_v27, %v19471_v11  ;;  %v15966_v55 = vmul.f32 %v5694_v0, %v19473_v46  ;;  %v4437_v37 = vpop.f32.mrb[20].mxu1  ;;  %v5764_v10 = vmax.f32 %v5188_v9, 0.0  ;;  %v5191_v5 = vsub.f32 1.0, %v4615_v61  ;;  %v19475_v28 = vld [vmem:[#allocation47_spill] sm:$0xff]  ;;  %v19476_v27 = vld [vmem:[#allocation248_spill] sm:$0xff]  ;;  %v4326_v30 = vpop.f32.mrb[21].mxu0  ;;  %11020 = vmatprep.mubr.f32.mxu1 %v15732_v63 }
 0x360   : > { %v4684_v3 = vand.u32 2147483647, %v4324_v40  ;;  %v4686_v20 = vand.u32 2147483647, %v4437_v37  ;;  %10856 = vmatmul.mubr.f32.gmra.mrb[126].mxu0 %v19475_v28  ;;  %v19477_v4 = vmax.f32 %v19476_v27, 0.0  ;;  %v19478_v38 = vld [vmem:[#allocation251_spill] sm:$0xff] }
 0x361   : > { %19474 = vst [vmem:[#allocation121_spill] sm:$0xff] %v15966_v55  ;;  %v19479_v52 = vmax.f32 %v19478_v38, 0.0  ;;  %v5766_v35 = vmax.f32 %v5190_v36, 0.0  ;;  %v5765_v12 = vmax.f32 %v5189_v17, 0.0  ;;  %v4439_v11 = vpop.f32.mrb[21].mxu1  ;;  %v19481_v8 = vld [vmem:[#allocation48_spill] sm:$0xff] }
 0x362   : > { %v15972_v0 = vmul.f32 %v5693_v23, %v19477_v4  ;;  %10858 = vmatprep.mubr.f32.mxu0 %v19481_v8  ;;  %v19482_v46 = vld [vmem:[#allocation250_spill] sm:$0xff]  ;;  %v5767_v54 = vmax.f32 %v5191_v5, 0.0  ;;  %v5260_v61 = vsub.f32 1.0, %v4684_v3  ;;  %v5262_v23 = vsub.f32 1.0, %v4686_v20  ;;  %v4443_v8 = vpop.f32.mrb[22].mxu1  ;;  %v19489_v18 = vld [vmem:[#allocation255_spill] sm:$0xff]  ;;  %11021 = vmatmul.mubr.f32.gmra.mrb[74].mxu1 %v15750_v14 }
 0x363   : > { %v15976_v42 = vmul.f32 %v5695_v60, %v19479_v52  ;;  %v19483_v28 = vmax.f32 %v19482_v46, 0.0  ;;  %v19484_v40 = vld [vmem:[#allocation254_spill] sm:$0xff]  ;;  %v19487_v60 = vld [vmem:[#allocation252_spill] sm:$0xff]  ;;  %v4685_v4 = vand.u32 2147483647, %v4326_v30  ;;  %v4330_v52 = vpop.f32.mrb[22].mxu0  ;;  %11023 = vmatprep.mubr.f32.mxu1 %v15772_v22 }
 0x364   : > { %v19485_v37 = vmax.f32 %v19484_v40, 0.0  ;;  %v19488_v36 = vmax.f32 %v19487_v60, 0.0  ;;  %v4687_v38 = vand.u32 2147483647, %v4439_v11  ;;  %v5838_v5 = vmax.f32 %v5262_v23, 0.0  ;;  %v4332_v20 = vpop.f32.mrb[23].mxu0 }
 0x365   : > { %19480 = vst [vmem:[#allocation18_spill] sm:$0xff] %v15976_v42  ;;  %v15982_v9 = vmul.f32 %v5764_v10, %v19483_v28  ;;  %v19490_v42 = vmax.f32 %v19489_v18, 0.0  ;;  %v5836_v10 = vmax.f32 %v5260_v61, 0.0  ;;  %v4756_v3 = vand.u32 2147483647, %v4330_v52  ;;  %v4445_v28 = vpop.f32.mrb[23].mxu1 }
 0x366   : > { %v15986_v27 = vmul.f32 %v5766_v35, %v19485_v37  ;;  %v15990_v17 = vmul.f32 %v5765_v12, %v19488_v36  ;;  %v19492_v40 = vld [vmem:[#allocation54_spill] sm:$0xff]  ;;  %v5261_v35 = vsub.f32 1.0, %v4685_v4  ;;  %v5263_v12 = vsub.f32 1.0, %v4687_v38  ;;  %v19493_v11 = vld [vmem:[#allocation57_spill] sm:$0xff]  ;;  %v19499_v55 = vld [vmem:[#allocation60_spill] sm:$0xff]  ;;  %11024 = vmatmul.mubr.f32.gmra.mrb[76].mxu1 %v15790_v24 }
 0x367   : > { %v15994_v46 = vmul.f32 %v5767_v54, %v19490_v42  ;;  %10859 = vmatmul.mubr.f32.gmra.mrb[128].mxu0 %v19492_v40  ;;  %v4758_v37 = vand.u32 2147483647, %v4443_v8  ;;  %v4757_v30 = vand.u32 2147483647, %v4332_v20  ;;  %v19494_v60 = vld [vmem:[#allocation253_spill] sm:$0xff]  ;;  %v5332_v52 = vsub.f32 1.0, %v4756_v3  ;;  %11026 = vmatprep.mubr.f32.mxu1 %v15646_v57 }
 0x368   : > { %19486 = vst [vmem:[#allocation120_spill] sm:$0xff] %v15986_v27  ;;  %10861 = vmatprep.mubr.f32.mxu0 %v19493_v11  ;;  %v19495_v42 = vmax.f32 %v19494_v60, 0.0  ;;  %v19496_v61 = vld [vmem:[#allocation257_spill] sm:$0xff]  ;;  %v4759_v18 = vand.u32 2147483647, %v4445_v28  ;;  %v5837_v40 = vmax.f32 %v5261_v35, 0.0 }
 0x369   : > { %19491 = vst [vmem:[#allocation122_spill] sm:$0xff] %v15994_v46  ;;  %v19497_v23 = vmax.f32 %v19496_v61, 0.0  ;;  %v5839_v53 = vmax.f32 %v5263_v12, 0.0  ;;  %v5334_v4 = vsub.f32 1.0, %v4758_v37  ;;  %v5333_v38 = vsub.f32 1.0, %v4757_v30  ;;  %v4336_v8 = vpop.f32.mrb[24].mxu0 }
 0x36a   : > { %v16002_v54 = vmul.f32 %v5836_v10, %v19495_v42  ;;  %v4449_v20 = vpop.f32.mrb[24].mxu1  ;;  %v5908_v46 = vmax.f32 %v5332_v52, 0.0  ;;  %v5335_v11 = vsub.f32 1.0, %v4759_v18  ;;  %v4828_v27 = vand.u32 2147483647, %v4336_v8  ;;  %v19500_v10 = vld [vmem:[#allocation256_spill] sm:$0xff]  ;;  %11027 = vmatmul.mubr.f32.gmra.mrb[78].mxu1 %v15666_v13 }
 0x36b   : > { %v16006_v36 = vmul.f32 %v5838_v5, %v19497_v23  ;;  %v4830_v63 = vand.u32 2147483647, %v4449_v20  ;;  %10862 = vmatmul.mubr.f32.gmra.mrb[130].mxu0 %v19499_v55  ;;  %v19501_v60 = vmax.f32 %v19500_v10, 0.0  ;;  %v19502_v3 = vld [vmem:[#allocation258_spill] sm:$0xff]  ;;  %v5910_v12 = vmax.f32 %v5334_v4, 0.0  ;;  %v4338_v30 = vpop.f32.mrb[25].mxu0  ;;  %11029 = vmatprep.mubr.f32.mxu1 %v15686_v16 }
 0x36c   : > { %v19503_v28 = vmax.f32 %v19502_v3, 0.0  ;;  %v5909_v37 = vmax.f32 %v5333_v38, 0.0  ;;  %v4451_v42 = vpop.f32.mrb[25].mxu1  ;;  %v19505_v61 = vld [vmem:[#allocation64_spill] sm:$0xff]  ;;  %v19506_v23 = vld [vmem:[#allocation259_spill] sm:$0xff]  ;;  %v5911_v14 = vmax.f32 %v5335_v11, 0.0 }
 0x36d   : > { %19498 = vst [vmem:[#allocation123_spill] sm:$0xff] %v16006_v36  ;;  %v16012_v5 = vmul.f32 %v5837_v40, %v19501_v60  ;;  %10864 = vmatprep.mubr.f32.mxu0 %v19505_v61  ;;  %v19507_v55 = vmax.f32 %v19506_v23, 0.0  ;;  %v5404_v18 = vsub.f32 1.0, %v4828_v27  ;;  %v5406_v40 = vsub.f32 1.0, %v4830_v63  ;;  %v19508_v8 = vld [vmem:[#allocation261_spill] sm:$0xff]  ;;  %v4455_v61 = vpop.f32.mrb[26].mxu1 }
 0x36e   : > { %v16016_v35 = vmul.f32 %v5839_v53, %v19503_v28  ;;  %v19509_v20 = vmax.f32 %v19508_v8, 0.0  ;;  %v19511_v53 = vld [vmem:[#allocation260_spill] sm:$0xff]  ;;  %v4829_v60 = vand.u32 2147483647, %v4338_v30  ;;  %v4831_v3 = vand.u32 2147483647, %v4451_v42  ;;  %11030 = vmatmul.mubr.f32.gmra.mrb[80].mxu1 %v15706_v49 }
 0x36f   : > { %v16022_v52 = vmul.f32 %v5908_v46, %v19507_v55  ;;  %v19512_v4 = vmax.f32 %v19511_v53, 0.0  ;;  %v4342_v28 = vpop.f32.mrb[26].mxu0  ;;  %v19513_v22 = vld [vmem:[#allocation263_spill] sm:$0xff]  ;;  %v5980_v46 = vmax.f32 %v5404_v18, 0.0  ;;  %v5982_v11 = vmax.f32 %v5406_v40, 0.0  ;;  %v4457_v55 = vpop.f32.mrb[27].mxu1  ;;  %11032 = vmatprep.mubr.f32.mxu1 %v15726_v41 }
 0x370   : > { %19504 = vst [vmem:[#allocation125_spill] sm:$0xff] %v16016_v35  ;;  %v16026_v10 = vmul.f32 %v5910_v12, %v19509_v20  ;;  %v19514_v35 = vmax.f32 %v19513_v22, 0.0  ;;  %v4900_v27 = vand.u32 2147483647, %v4342_v28  ;;  %v4344_v63 = vpop.f32.mrb[27].mxu0  ;;  %v19516_v8 = vld [vmem:[#allocation68_spill] sm:$0xff] }
 0x371   : > { %v16030_v38 = vmul.f32 %v5909_v37, %v19512_v4  ;;  %10865 = vmatmul.mubr.f32.gmra.mrb[132].mxu0 %v19516_v8  ;;  %v5405_v12 = vsub.f32 1.0, %v4829_v60  ;;  %v5407_v37 = vsub.f32 1.0, %v4831_v3  ;;  %v4902_v20 = vand.u32 2147483647, %v4455_v61  ;;  %v19517_v42 = vld [vmem:[#allocation72_spill] sm:$0xff]  ;;  %v19518_v53 = vld [vmem:[#allocation262_spill] sm:$0xff] }
 0x372   : > { %19510 = vst [vmem:[#allocation124_spill] sm:$0xff] %v16026_v10  ;;  %v16034_v23 = vmul.f32 %v5911_v14, %v19514_v35  ;;  %v4901_v30 = vand.u32 2147483647, %v4344_v63  ;;  %10867 = vmatprep.mubr.f32.mxu0 %v19517_v42  ;;  %v19519_v35 = vmax.f32 %v19518_v53, 0.0  ;;  %v19520_v18 = vld [vmem:[#allocation265_spill] sm:$0xff]  ;;  %v5476_v28 = vsub.f32 1.0, %v4900_v27  ;;  %11033 = vmatmul.mubr.f32.gmra.mrb[82].mxu1 %v15746_v25 }
 0x373   : > { %v19521_v40 = vmax.f32 %v19520_v18, 0.0  ;;  %v4903_v22 = vand.u32 2147483647, %v4457_v55  ;;  %v5981_v8 = vmax.f32 %v5405_v12, 0.0  ;;  %v5983_v24 = vmax.f32 %v5407_v37, 0.0  ;;  %v4348_v61 = vpop.f32.mrb[28].mxu0  ;;  %11035 = vmatprep.mubr.f32.mxu1 %v15766_v58 }
 0x374   : > { %19515 = vst [vmem:[#allocation126_spill] sm:$0xff] %v16034_v23  ;;  %v16042_v14 = vmul.f32 %v5980_v46, %v19519_v35  ;;  %v5478_v60 = vsub.f32 1.0, %v4902_v20  ;;  %v5477_v3 = vsub.f32 1.0, %v4901_v30  ;;  %v4461_v63 = vpop.f32.mrb[28].mxu1  ;;  %v6052_v23 = vmax.f32 %v5476_v28, 0.0  ;;  %v19522_v36 = vld [vmem:[#allocation77_spill] sm:$0xff] }
 0x375   : > { %v16046_v4 = vmul.f32 %v5982_v11, %v19521_v40  ;;  %v5479_v42 = vsub.f32 1.0, %v4903_v22  ;;  %v4972_v10 = vand.u32 2147483647, %v4348_v61  ;;  %v4974_v57 = vand.u32 2147483647, %v4461_v63  ;;  %10868 = vmatmul.mubr.f32.gmra.mrb[134].mxu0 %v19522_v36  ;;  %v19523_v46 = vld [vmem:[#allocation264_spill] sm:$0xff] }
 0x376   : > { %v19524_v53 = vmax.f32 %v19523_v46, 0.0  ;;  %v19525_v27 = vld [vmem:[#allocation268_spill] sm:$0xff]  ;;  %v6054_v37 = vmax.f32 %v5478_v60, 0.0  ;;  %v6053_v20 = vmax.f32 %v5477_v3, 0.0  ;;  %v4350_v30 = vpop.f32.mrb[29].mxu0  ;;  %v4463_v35 = vpop.f32.mrb[29].mxu1  ;;  %11036 = vmatmul.mubr.f32.gmra.mrb[84].mxu1 %v15786_v33 }
 0x377   : > { %v19526_v55 = vmax.f32 %v19525_v27, 0.0  ;;  %v19528_v18 = vld [vmem:[#allocation49_spill] sm:$0xff]  ;;  %v19529_v40 = vld [vmem:[#allocation266_spill] sm:$0xff]  ;;  %v6055_v13 = vmax.f32 %v5479_v42, 0.0  ;;  %v5548_v22 = vsub.f32 1.0, %v4972_v10  ;;  %v19536_v16 = vld [vmem:[#allocation271_spill] sm:$0xff]  ;;  %11038 = vmatprep.mubr.f32.mxu1 %v15656_v29 }
 0x378   : > { %v16052_v11 = vmul.f32 %v5981_v8, %v19524_v53  ;;  %10870 = vmatprep.mubr.f32.mxu0 %v19528_v18  ;;  %v19530_v36 = vmax.f32 %v19529_v40, 0.0  ;;  %v5550_v8 = vsub.f32 1.0, %v4974_v57  ;;  %v19531_v61 = vld [vmem:[#allocation269_spill] sm:$0xff]  ;;  %v4973_v53 = vand.u32 2147483647, %v4350_v30  ;;  %v4467_v18 = vpop.f32.mrb[30].mxu1 }
 0x379   : > { %v16056_v12 = vmul.f32 %v5983_v24, %v19526_v55  ;;  %v19532_v63 = vmax.f32 %v19531_v61, 0.0  ;;  %v19534_v24 = vld [vmem:[#allocation267_spill] sm:$0xff]  ;;  %v4975_v27 = vand.u32 2147483647, %v4463_v35  ;;  %v4354_v55 = vpop.f32.mrb[30].mxu0  ;;  %v19540_v35 = vld [vmem:[#allocation58_spill] sm:$0xff] }
 0x37a   : > { %v16062_v28 = vmul.f32 %v6052_v23, %v19530_v36  ;;  %v19535_v60 = vmax.f32 %v19534_v24, 0.0  ;;  %v6124_v23 = vmax.f32 %v5548_v22, 0.0  ;;  %v6126_v42 = vmax.f32 %v5550_v8, 0.0  ;;  %v4356_v57 = vpop.f32.mrb[31].mxu0  ;;  %v4469_v36 = vpop.f32.mrb[31].mxu1  ;;  %v19539_v61 = vld [vmem:[#allocation55_spill] sm:$0xff]  ;;  %11039 = vmatmul.mubr.f32.gmra.mrb[86].mxu1 %v15674_v59 }
 0x37b   : > { %19527 = vst [vmem:[#allocation127_spill] sm:$0xff] %v16056_v12  ;;  %v16066_v46 = vmul.f32 %v6054_v37, %v19532_v63  ;;  %v19537_v12 = vmax.f32 %v19536_v16, 0.0  ;;  %v5044_v10 = vand.u32 2147483647, %v4354_v55  ;;  %10871 = vmatmul.mubr.f32.gmra.mrb[136].mxu0 %v19539_v61  ;;  %v5549_v37 = vsub.f32 1.0, %v4973_v53  ;;  %v19541_v24 = vld [vmem:[#allocation270_spill] sm:$0xff]  ;;  %11041 = vmatprep.mubr.f32.mxu1 %v15696_v26 }
 0x37c   : > { %v16070_v3 = vmul.f32 %v6053_v20, %v19535_v60  ;;  %v5551_v20 = vsub.f32 1.0, %v4975_v27  ;;  %v5046_v63 = vand.u32 2147483647, %v4467_v18  ;;  %v5045_v30 = vand.u32 2147483647, %v4356_v57  ;;  %10873 = vmatprep.mubr.f32.mxu0 %v19540_v35  ;;  %v19543_v22 = vld [vmem:[#allocation273_spill] sm:$0xff] }
 0x37d   : > { %19533 = vst [vmem:[#allocation129_spill] sm:$0xff] %v16066_v46  ;;  %v16074_v40 = vmul.f32 %v6055_v13, %v19537_v12  ;;  %v19542_v12 = vmax.f32 %v19541_v24, 0.0  ;;  %v19544_v8 = vmax.f32 %v19543_v22, 0.0  ;;  %v5620_v55 = vsub.f32 1.0, %v5044_v10  ;;  %v16088_v18 = vpop.f32.mrb[32].mxu0  ;;  %v19546_v57 = vld [vmem:[#allocation276_spill] sm:$0xff] }
 0x37e   : > { %v5047_v16 = vand.u32 2147483647, %v4469_v36  ;;  %v6125_v61 = vmax.f32 %v5549_v37, 0.0  ;;  %v6127_v49 = vmax.f32 %v5551_v20, 0.0  ;;  %v5622_v53 = vsub.f32 1.0, %v5046_v63  ;;  %19545 = vst [vmem:[#allocation130_spill] sm:$0xff] %v16088_v18  ;;  %11042 = vmatmul.mubr.f32.gmra.mrb[88].mxu1 %v15714_v7 }
 0x37f   : > { %19538 = vst [vmem:[#allocation128_spill] sm:$0xff] %v16074_v40  ;;  %v16082_v13 = vmul.f32 %v6124_v23, %v19542_v12  ;;  %v16086_v60 = vmul.f32 %v6126_v42, %v19544_v8  ;;  %v5621_v27 = vsub.f32 1.0, %v5045_v30  ;;  %v6161_v35 = vmax.f32 %v19546_v57, 0.0  ;;  %v19547_v40 = vld [vmem:[#allocation277_spill] sm:$0xff]  ;;  %v16092_v23 = vpop.f32.mrb[33].mxu0  ;;  %v19550_v42 = vld [vmem:[#allocation272_spill] sm:$0xff]  ;;  %11044 = vmatprep.mubr.f32.mxu1 %v15736_v6 }
 0x380   : > { %v6162_v41 = vmax.f32 %v19547_v40, 0.0  ;;  %v6196_v46 = vmax.f32 %v5620_v55, 0.0  ;;  %v5623_v24 = vsub.f32 1.0, %v5047_v16  ;;  %19548 = vst [vmem:[#allocation131_spill] sm:$0xff] %v16092_v23  ;;  %v19549_v12 = vld [vmem:[#allocation61_spill] sm:$0xff]  ;;  %v19551_v10 = vmax.f32 %v19550_v42, 0.0 }
 0x381   : > { %10874 = vmatmul.mubr.f32.gmra.mrb[138].mxu0 %v19549_v12  ;;  %v19552_v37 = vld [vmem:[#allocation274_spill] sm:$0xff]  ;;  %v6198_v30 = vmax.f32 %v5622_v53, 0.0  ;;  %v6197_v22 = vmax.f32 %v5621_v27, 0.0  ;;  %v19554_v8 = vld [vmem:[#allocation65_spill] sm:$0xff]  ;;  %v19556_v16 = vld [vmem:[#allocation275_spill] sm:$0xff] }
 0x382   : > { %v16098_v36 = vmul.f32 %v6125_v61, %v19551_v10  ;;  %v19553_v20 = vmax.f32 %v19552_v37, 0.0  ;;  %10876 = vmatprep.mubr.f32.mxu0 %v19554_v8  ;;  %v19555_v40 = vld [vmem:[#allocation278_spill] sm:$0xff]  ;;  %v19557_v57 = vmax.f32 %v19556_v16, 0.0  ;;  %v6199_v25 = vmax.f32 %v5623_v24, 0.0  ;;  %v16115_v10 = vpop.f32.mrb[34].mxu0  ;;  %v19560_v27 = vld [vmem:[#allocation69_spill] sm:$0xff]  ;;  %11045 = vmatmul.mubr.f32.gmra.mrb[90].mxu1 %v15754_v47 }
 0x383   : > { %v6163_v55 = vmax.f32 %v19555_v40, 0.0  ;;  %v16111_v42 = vmul.f32 %v6198_v30, %v6162_v41  ;;  %v16113_v61 = vmul.f32 %v6197_v22, %v6161_v35  ;;  %19558 = vst [vmem:[#allocation133_spill] sm:$0xff] %v16115_v10  ;;  %v16119_v53 = vpop.f32.mrb[35].mxu0  ;;  %v19561_v58 = vld [vmem:[#allocation75_spill] sm:$0xff]  ;;  %v19564_v35 = vld [vmem:[#allocation78_spill] sm:$0xff]  ;;  %v19568_v33 = vld [vmem:[#allocation52_spill] sm:$0xff]  ;;  %11047 = vmatprep.mubr.f32.mxu1 %v15776_v21 }
 0x384   : > { %v16102_v63 = vmul.f32 %v6127_v49, %v19553_v20  ;;  %v16109_v12 = vmul.f32 %v6196_v46, %v19557_v57  ;;  %19559 = vst [vmem:[#allocation132_spill] sm:$0xff] %v16119_v53  ;;  %v16125_v46 = vpop.f32.mrb[36].mxu0  ;;  %v19565_v24 = vld [vmem:[#allocation50_spill] sm:$0xff]  ;;  %v19569_v29 = vld [vmem:[#allocation56_spill] sm:$0xff]  ;;  %v19573_v16 = vld [vmem:[#allocation73_spill] sm:$0xff] }
 0x385   : > { %v16117_v49 = vmul.f32 %v6199_v25, %v6163_v55  ;;  %10877 = vmatmul.mubr.f32.gmra.mrb[140].mxu0 %v19560_v27  ;;  %19562 = vst [vmem:[#allocation136_spill] sm:$0xff] %v16125_v46  ;;  %v16127_v41 = vpop.f32.mrb[37].mxu0  ;;  %v19570_v8 = vld [vmem:[#allocation62_spill] sm:$0xff]  ;;  %v19574_v25 = vld [vmem:[#allocation76_spill] sm:$0xff]  ;;  %v19575_v27 = vld [vmem:[#allocation51_spill] sm:$0xff] }
 0x386   : > { %10879 = vmatprep.mubr.f32.mxu0 %v19561_v58  ;;  %19563 = vst [vmem:[#allocation134_spill] sm:$0xff] %v16127_v41  ;;  %v16133_v37 = vpop.f32.mrb[38].mxu0  ;;  %v19571_v26 = vld [vmem:[#allocation66_spill] sm:$0xff]  ;;  %11048 = vmatmul.mubr.f32.gmra.mrb[92].mxu1 %v15794_v56 }
 0x387   : > { %19566 = vst [vmem:[#allocation137_spill] sm:$0xff] %v16133_v37  ;;  %v16135_v20 = vpop.f32.mrb[39].mxu0  ;;  %v19572_v55 = vld [vmem:[#allocation70_spill] sm:$0xff]  ;;  %11050 = vmatprep.mubr.f32.mxu1 %v15802_v15  ;;  %v19576_v15 = vld [vmem:[#allocation53_spill] sm:$0xff] }
 0x388   : > { %19567 = vst [vmem:[#allocation135_spill] sm:$0xff] %v16135_v20  ;;  %v10728_v30 = vpop.f32.mrb[40].mxu0 }
 0x389   : > { %10880 = vmatmul.mubr.f32.gmra.mrb[142].mxu0 %v19564_v35  ;;  %v6610_v22 = vpop.f32.mrb[41].mxu0 }
 0x38a   : > { %10882 = vmatprep.mubr.f32.mxu0 %v19565_v24  ;;  %v11279_v59 = vpack.i.bf16 %v10728_v30, %v6610_v22  ;;  %v10731_v40 = vpop.f32.mrb[42].mxu0  ;;  %11051 = vmatmul.mubr.f32.gmra.mrb[94].mxu1 %v15822_v32  ;;  %v19577_v24 = vld [vmem:[#allocation59_spill] sm:$0xff] }
 0x38b   : > { %v6620_v7 = vpop.f32.mrb[43].mxu0  ;;  %11053 = vmatprep.mubr.f32.mxu1 %v15842_v50  ;;  %v19578_v50 = vld [vmem:[#allocation63_spill] sm:$0xff] }
 0x38c   : > { %11280 = vrot.lane.b32.xlu0 %v11279_v59, %s11903_s18  ;;  %v11284_v6 = vpack.i.bf16 %v10731_v40, %v6620_v7  ;;  %v10734_v47 = vpop.f32.mrb[44].mxu0  ;;  %v19579_v30 = vld [vmem:[#allocation67_spill] sm:$0xff]  ;;  %v19581_v59 = vld [vmem:[#allocation74_spill] sm:$0xff]  ;;  %v19583_v7 = vld [vmem:[#allocation81_spill] sm:$0xff] }
 0x38d   : > { %10883 = vmatmul.mubr.f32.gmra.mrb[144].mxu0 %v19568_v33  ;;  %v6630_v57 = vpop.f32.mrb[45].mxu0  ;;  %v19582_v40 = vld [vmem:[#allocation79_spill] sm:$0xff] }
 0x38e   : > { %10885 = vmatprep.mubr.f32.mxu0 %v19569_v29  ;;  %v11289_v21 = vpack.i.bf16 %v10734_v47, %v6630_v57  ;;  %v16156_v56 = vpop.f32.mrb[46].mxu0  ;;  %11054 = vmatmul.mubr.f32.gmra.mrb[96].mxu1 %v15862_v34  ;;  %v19587_v57 = vld [vmem:[#allocation86_spill] sm:$0xff] }
 0x38f   : > { %v16158_v58 = vpop.f32.mrb[47].mxu0  ;;  %11056 = vmatprep.mubr.f32.mxu1 %v15882_v39 }
 0x390   : > { %11285 = vrot.lane.b32.xlu0 %v11284_v6, %s11903_s18  ;;  %11290 = vrot.lane.b32.xlu1 %v11289_v21, %s11903_s18  ;;  %v10740_v32 = vpop.f32.mrb[48].mxu0  ;;  %v19588_v21 = vld [vmem:[#allocation88_spill] sm:$0xff] }
 0x391   : > { %10886 = vmatmul.mubr.f32.gmra.mrb[146].mxu0 %v19570_v8  ;;  %v6650_v33 = vpop.f32.mrb[49].mxu0  ;;  %v19580_v8 = vld [vmem:[#allocation71_spill] sm:$0xff] }
 0x392   : > { %10888 = vmatprep.mubr.f32.mxu0 %v19571_v26  ;;  %11057 = vmatmul.mubr.f32.gmra.mrb[98].mxu1 %v15902_v2  ;;  %v11294_v29 = vpack.i.bf16 %v10740_v32, %v6650_v33  ;;  %v10743_v34 = vpop.f32.mrb[50].mxu0  ;;  %v19590_v33 = vld [vmem:[#allocation97_spill] sm:$0xff] }
 0x393   : > { %11059 = vmatprep.mubr.f32.mxu1 %v15922_v31  ;;  %v6660_v22 = vpop.f32.mrb[51].mxu0 }
 0x394   : > { %11295 = vrot.lane.b32.xlu1 %v11294_v29, %s11904_s22  ;;  %v11299_v39 = vpack.i.bf16 %v10743_v34, %v6660_v22  ;;  %v10746_v2 = vpop.f32.mrb[52].mxu0  ;;  %v19592_v29 = vld [vmem:[#allocation110_spill] sm:$0xff]  ;;  %v19593_v34 = vld [vmem:[#allocation103_spill] sm:$0xff] }
 0x395   : > { %10889 = vmatmul.mubr.f32.gmra.mrb[148].mxu0 %v19572_v55  ;;  %v6670_v26 = vpop.f32.mrb[53].mxu0  ;;  %v19584_v55 = vld [vmem:[#allocation109_spill] sm:$0xff] }
 0x396   : > { %10891 = vmatprep.mubr.f32.mxu0 %v19573_v16  ;;  %11060 = vmatmul.mubr.f32.gmra.mrb[100].mxu1 %v15942_v43  ;;  %v11304_v31 = vpack.i.bf16 %v10746_v2, %v6670_v26  ;;  %v16181_v43 = vpop.f32.mrb[54].mxu0  ;;  %v19586_v16 = vld [vmem:[#allocation112_spill] sm:$0xff]  ;;  %v19597_v2 = vld [vmem:[#allocation87_spill] sm:$0xff]  ;;  %v19598_v26 = vld [vmem:[#allocation9_spill] sm:$0xff] }
 0x397   : > { %11062 = vmatprep.mubr.f32.mxu1 %v15812_v1  ;;  %v16183_v6 = vpop.f32.mrb[55].mxu0  ;;  %v19585_v1 = vld [vmem:[#allocation85_spill] sm:$0xff] }
 0x398   : > { %11300 = vrot.lane.b32.xlu1 %v11299_v39, %s11904_s22  ;;  %11305 = vrot.lane.b32.xlu0 %v11304_v31, %s11904_s22  ;;  %v19596_v39 = vld [vmem:[#allocation8_spill] sm:$0xff]  ;;  %v19599_v31 = vld [vmem:[#allocation90_spill] sm:$0xff] }
 0x399   : > { %10892 = vmatmul.mubr.f32.gmra.mrb[150].mxu0 %v19574_v25 }
 0x39a   : > { %10894 = vmatprep.mubr.f32.mxu0 %v19575_v27  ;;  %11063 = vmatmul.mubr.f32.gmra.mrb[102].mxu1 %v15830_v44  ;;  %v10752_v44 = vpop.f32.mrb[56].mxu0 }
 0x39b   : > { %11065 = vmatprep.mubr.f32.mxu1 %v19584_v55  ;;  %v6690_v25 = vpop.f32.mrb[57].mxu0 }
 0x39c   : > { %v11309_v27 = vpack.i.bf16 %v10752_v44, %v6690_v25  ;;  %v19603_v25 = vld [vmem:[#allocation6_spill] sm:$0xff] }
 0x39d   : > { %10895 = vmatmul.mubr.f32.gmra.mrb[152].mxu0 %v19576_v15  ;;  %v19589_v15 = vld [vmem:[#allocation94_spill] sm:$0xff] }
 0x39e   : > { %10897 = vmatprep.mubr.f32.mxu0 %v19577_v24  ;;  %11066 = vmatmul.mubr.f32.gmra.mrb[104].mxu1 %v19586_v16  ;;  %v10755_v24 = vpop.f32.mrb[58].mxu0  ;;  %v19601_v16 = vld [vmem:[#allocation93_spill] sm:$0xff] }
 0x39f   : > { %11068 = vmatprep.mubr.f32.mxu1 %v15892_v48  ;;  %11310 = vrot.lane.b32.xlu0 %v11309_v27, %s11905_s23  ;;  %v6700_v32 = vpop.f32.mrb[59].mxu0 }
 0x3a0   : > { %v11314_v48 = vpack.i.bf16 %v10755_v24, %v6700_v32  ;;  %v19605_v24 = vld [vmem:[#allocation96_spill] sm:$0xff] }
 0x3a1   : > { %10898 = vmatmul.mubr.f32.gmra.mrb[154].mxu0 %v19578_v50  ;;  %v19591_v50 = vld [vmem:[#allocation10_spill] sm:$0xff]  ;;  %v19606_v32 = vld [vmem:[#allocation16_spill] sm:$0xff] }
 0x3a2   : > { %10900 = vmatprep.mubr.f32.mxu0 %v19579_v30  ;;  %11069 = vmatmul.mubr.f32.gmra.mrb[106].mxu1 %v15910_v19  ;;  %v10758_v19 = vpop.f32.mrb[60].mxu0 }
 0x3a3   : > { %11071 = vmatprep.mubr.f32.mxu1 %v15932_v62  ;;  %11315 = vrot.lane.b32.xlu1 %v11314_v48, %s11905_s23  ;;  %v6710_v30 = vpop.f32.mrb[61].mxu0  ;;  %v19594_v62 = vld [vmem:[#allocation111_spill] sm:$0xff]  ;;  %v19607_v48 = vld [vmem:[#allocation101_spill] sm:$0xff] }
 0x3a4   : > { %v11319_v22 = vpack.i.bf16 %v10758_v19, %v6710_v30  ;;  %v19609_v30 = vld [vmem:[#allocation14_spill] sm:$0xff] }
 0x3a5   : > { %10901 = vmatmul.mubr.f32.gmra.mrb[156].mxu0 %v19580_v8  ;;  %v19595_v8 = vld [vmem:[#allocation83_spill] sm:$0xff] }
 0x3a6   : > { %10903 = vmatprep.mubr.f32.mxu0 %v19581_v59  ;;  %11072 = vmatmul.mubr.f32.gmra.mrb[108].mxu1 %v15950_v51  ;;  %v16206_v51 = vpop.f32.mrb[62].mxu0 }
 0x3a7   : > { %11074 = vmatprep.mubr.f32.mxu1 %v19592_v29  ;;  %11320 = vrot.lane.b32.xlu1 %v11319_v22, %s11905_s23  ;;  %v16208_v59 = vpop.f32.mrb[63].mxu0  ;;  %v19611_v22 = vld [vmem:[#allocation80_spill] sm:$0xff] }
 0x3a8   : > { %v10764_v55 = vpop.f32.mrb[64].mxu0 }
 0x3a9   : > { %10904 = vmatmul.mubr.f32.gmra.mrb[158].mxu0 %v19582_v40 }
 0x3aa   : > { %10906 = vmatprep.mubr.f32.mxu0 %v19583_v7  ;;  %11075 = vmatmul.mubr.f32.gmra.mrb[110].mxu1 %v19594_v62  ;;  %v19600_v7 = vld [vmem:[#allocation12_spill] sm:$0xff] }
 0x3ab   : > { %11077 = vmatprep.mubr.f32.mxu1 %v19596_v39 }
 0x3ad   : > { %10907 = vmatmul.mubr.f32.gmra.mrb[160].mxu0 %v19585_v1  ;;  %v6730_v1 = vpop.f32.mrb[65].mxu0 }
 0x3ae   : > { %10909 = vmatprep.mubr.f32.mxu0 %v19587_v57  ;;  %11078 = vmatmul.mubr.f32.gmra.mrb[112].mxu1 %v19598_v26  ;;  %v19602_v57 = vld [vmem:[#allocation117_spill] sm:$0xff]  ;;  %v11324_v44 = vpack.i.bf16 %v10764_v55, %v6730_v1  ;;  %v10767_v27 = vpop.f32.mrb[66].mxu0  ;;  %v19613_v26 = vld [vmem:[#allocation84_spill] sm:$0xff]  ;;  %v19616_v1 = vld [vmem:[#allocation115_spill] sm:$0xff] }
 0x3af   : > { %11080 = vmatprep.mubr.f32.mxu1 %v19600_v7  ;;  %v19615_v55 = vld [vmem:[#allocation17_spill] sm:$0xff] }
 0x3b0   : > { %11325 = vrot.lane.b32.xlu1 %v11324_v44, %s11906_s26  ;;  %v19617_v44 = vld [vmem:[#allocation91_spill] sm:$0xff] }
 0x3b1   : > { %10910 = vmatmul.mubr.f32.gmra.mrb[162].mxu0 %v19588_v21  ;;  %v19604_v21 = vld [vmem:[#allocation118_spill] sm:$0xff] }
 0x3b2   : > { %10912 = vmatprep.mubr.f32.mxu0 %v19589_v15  ;;  %11081 = vmatmul.mubr.f32.gmra.mrb[114].mxu1 %v19602_v57  ;;  %v6740_v15 = vpop.f32.mrb[67].mxu0 }
 0x3b3   : > { %11083 = vmatprep.mubr.f32.mxu1 %v19604_v21  ;;  %v10770_v29 = vpop.f32.mrb[68].mxu0 }
 0x3b4   : > { %v6750_v19 = vpop.f32.mrb[69].mxu0 }
 0x3b5   : > { %10913 = vmatmul.mubr.f32.gmra.mrb[164].mxu0 %v19590_v33  ;;  %v11329_v33 = vpack.i.bf16 %v10767_v27, %v6740_v15  ;;  %v11334_v62 = vpack.i.bf16 %v10770_v29, %v6750_v19  ;;  %v16231_v39 = vpop.f32.mrb[70].mxu0  ;;  %v19619_v27 = vld [vmem:[#allocation279_spill] sm:$0xff]  ;;  %v19620_v15 = vld [vmem:[#allocation13_spill] sm:$0xff] }
 0x3b6   : > { %10915 = vmatprep.mubr.f32.mxu0 %v19591_v50  ;;  %11084 = vmatmul.mubr.f32.gmra.mrb[116].mxu1 %v19606_v32  ;;  %v19608_v50 = vld [vmem:[#allocation108_spill] sm:$0xff]  ;;  %v19623_v29 = vld [vmem:[#allocation99_spill] sm:$0xff] }
 0x3b7   : > { %11086 = vmatprep.mubr.f32.mxu1 %v19608_v50  ;;  %11330 = vrot.lane.b32.xlu1 %v11329_v33, %s11906_s26  ;;  %v19621_v33 = vld [vmem:[#allocation7_spill] sm:$0xff] }
 0x3b9   : > { %10916 = vmatmul.mubr.f32.gmra.mrb[166].mxu0 %v19593_v34  ;;  %v19610_v34 = vld [vmem:[#allocation5_spill] sm:$0xff] }
 0x3ba   : > { %10918 = vmatprep.mubr.f32.mxu0 %v19595_v8  ;;  %11087 = vmatmul.mubr.f32.gmra.mrb[118].mxu1 %v19610_v34  ;;  %v19612_v8 = vld [vmem:[#allocation113_spill] sm:$0xff]  ;;  %v19624_v34 = vld [vmem:[#allocation11_spill] sm:$0xff] }
 0x3bb   : > { %11089 = vmatprep.mubr.f32.mxu1 %v19612_v8  ;;  %11335 = vrot.lane.b32.xlu1 %v11334_v62, %s11906_s26 }
 0x3bd   : > { %10919 = vmatmul.mubr.f32.gmra.mrb[168].mxu0 %v19597_v2  ;;  %v16233_v2 = vpop.f32.mrb[71].mxu0 }
 0x3be   : > { %10921 = vmatprep.mubr.f32.mxu0 %v19599_v31  ;;  %v19614_v31 = vld [vmem:[#allocation114_spill] sm:$0xff] }
 0x3bf   : > { %11090 = vmatmul.mubr.f32.gmra.mrb[120].mxu1 %v19614_v31 }
 0x3c0   : > { %11092 = vmatprep.mubr.f32.mxu1 %v19616_v1 }
 0x3c1   : > { %10922 = vmatmul.mubr.f32.gmra.mrb[170].mxu0 %v19601_v16  ;;  %v10776_v16 = vpop.f32.mrb[72].mxu0 }
 0x3c2   : > { %10924 = vmatprep.mubr.f32.mxu0 %v19603_v25  ;;  %v6770_v57 = vpop.f32.mrb[73].mxu0  ;;  %v19618_v25 = vld [vmem:[#allocation116_spill] sm:$0xff] }
 0x3c3   : > { %11093 = vmatmul.mubr.f32.gmra.mrb[122].mxu1 %v19618_v25  ;;  %v11339_v21 = vpack.i.bf16 %v10776_v16, %v6770_v57  ;;  %v19629_v57 = vld [vmem:[#allocation95_spill] sm:$0xff]  ;;  %v19630_v25 = vld [vmem:[#allocation98_spill] sm:$0xff] }
 0x3c4   : > { %11095 = vmatprep.mubr.f32.mxu1 %v19620_v15 }
 0x3c5   : > { %10925 = vmatmul.mubr.f32.gmra.mrb[172].mxu0 %v19605_v24  ;;  %11340 = vrot.lane.b32.xlu0 %v11339_v21, %s11907_s27  ;;  %v10779_v24 = vpop.f32.mrb[74].mxu0  ;;  %v19631_v21 = vld [vmem:[#allocation100_spill] sm:$0xff] }
 0x3c6   : > { %10927 = vmatprep.mubr.f32.mxu0 %v19607_v48  ;;  %v6780_v32 = vpop.f32.mrb[75].mxu0  ;;  %v19622_v48 = vld [vmem:[#allocation119_spill] sm:$0xff] }
 0x3c7   : > { %11096 = vmatmul.mubr.f32.gmra.mrb[124].mxu1 %v19622_v48  ;;  %v11344_v50 = vpack.i.bf16 %v10779_v24, %v6780_v32  ;;  %v10782_v19 = vpop.f32.mrb[76].mxu0  ;;  %v19633_v48 = vld [vmem:[#allocation106_spill] sm:$0xff] }
 0x3c8   : > { %11098 = vmatprep.mubr.f32.mxu1 %v15962_v45  ;;  %v19626_v45 = vld [vmem:[#allocation89_spill] sm:$0xff] }
 0x3c9   : > { %10928 = vmatmul.mubr.f32.gmra.mrb[174].mxu0 %v19609_v30  ;;  %11345 = vrot.lane.b32.xlu0 %v11344_v50, %s11907_s27  ;;  %v6790_v30 = vpop.f32.mrb[77].mxu0  ;;  %v19634_v50 = vld [vmem:[#allocation15_spill] sm:$0xff] }
 0x3ca   : > { %10930 = vmatprep.mubr.f32.mxu0 %v19611_v22  ;;  %v11349_v62 = vpack.i.bf16 %v10782_v19, %v6790_v30  ;;  %v19625_v22 = vld [vmem:[#allocation82_spill] sm:$0xff]  ;;  %v16256_v8 = vpop.f32.mrb[78].mxu0 }
 0x3cb   : > { %11099 = vmatmul.mubr.f32.gmra.mrb[126].mxu1 %v15982_v9 }
 0x3cc   : > { %11101 = vmatprep.mubr.f32.mxu1 %v16002_v54  ;;  %v19628_v54 = vld [vmem:[#allocation92_spill] sm:$0xff] }
 0x3cd   : > { %10931 = vmatmul.mubr.f32.gmra.mrb[176].mxu0 %v19613_v26  ;;  %11350 = vrot.lane.b32.xlu0 %v11349_v62, %s11907_s27  ;;  %v16258_v26 = vpop.f32.mrb[79].mxu0 }
 0x3ce   : > { %10933 = vmatprep.mubr.f32.mxu0 %v19615_v55  ;;  %v19627_v55 = vld [vmem:[#allocation2_spill] sm:$0xff]  ;;  %v10788_v9 = vpop.f32.mrb[80].mxu0 }
 0x3cf   : > { %11102 = vmatmul.mubr.f32.gmra.mrb[128].mxu1 %v16022_v52  ;;  %v6810_v1 = vpop.f32.mrb[81].mxu0 }
 0x3d0   : > { %11104 = vmatprep.mubr.f32.mxu1 %v16042_v14  ;;  %v11354_v16 = vpack.i.bf16 %v10788_v9, %v6810_v1  ;;  %v10791_v52 = vpop.f32.mrb[82].mxu0  ;;  %v19636_v1 = vld [vmem:[#allocation120_spill] sm:$0xff] }
 0x3d1   : > { %10934 = vmatmul.mubr.f32.gmra.mrb[178].mxu0 %v19617_v44  ;;  %v6820_v44 = vpop.f32.mrb[83].mxu0 }
 0x3d2   : > { %10936 = vmatprep.mubr.f32.mxu0 %v19619_v27  ;;  %11355 = vrot.lane.b32.xlu1 %v11354_v16, %s11908_s28  ;;  %v11359_v14 = vpack.i.bf16 %v10791_v52, %v6820_v44  ;;  %v10794_v27 = vpop.f32.mrb[84].mxu0 }
 0x3d3   : > { %11105 = vmatmul.mubr.f32.gmra.mrb[130].mxu1 %v16062_v28  ;;  %v10959_v28 = vpop.f32.mrb[32].mxu1  ;;  %v6830_v15 = vpop.f32.mrb[85].mxu0 }
 0x3d4   : > { %11107 = vmatprep.mubr.f32.mxu1 %v16082_v13  ;;  %11360 = vrot.lane.b32.xlu0 %v11359_v14, %s11908_s28  ;;  %v19632_v13 = vld [vmem:[#allocation102_spill] sm:$0xff]  ;;  %v7380_v24 = vpop.f32.mrb[33].mxu1  ;;  %v11369_v32 = vpack.i.bf16 %v10794_v27, %v6830_v15  ;;  %v19638_v14 = vld [vmem:[#allocation124_spill] sm:$0xff] }
 0x3d5   : > { %10937 = vmatmul.mubr.f32.gmra.mrb[180].mxu0 %v19621_v33  ;;  %v11364_v33 = vpack.i.bf16 %v10959_v28, %v7380_v24  ;;  %v10962_v19 = vpop.f32.mrb[34].mxu1 }
 0x3d6   : > { %10939 = vmatprep.mubr.f32.mxu0 %v19623_v29  ;;  %v7390_v30 = vpop.f32.mrb[35].mxu1 }
 0x3d7   : > { %11108 = vmatmul.mubr.f32.gmra.mrb[132].mxu1 %v16109_v12  ;;  %11365 = vrot.lane.b32.xlu1 %v11364_v33, %s11904_s22  ;;  %v11374_v62 = vpack.i.bf16 %v10962_v19, %v7390_v30 }
 0x3d8   : > { %11110 = vmatprep.mubr.f32.mxu1 %v15972_v0  ;;  %11370 = vrot.lane.b32.xlu0 %v11369_v32, %s11908_s28  ;;  %v16282_v0 = vpop.f32.mrb[86].mxu0  ;;  %v19639_v32 = vld [vmem:[#allocation129_spill] sm:$0xff] }
 0x3d9   : > { %10940 = vmatmul.mubr.f32.gmra.mrb[182].mxu0 %v19624_v34  ;;  %v16284_v12 = vpop.f32.mrb[87].mxu0 }
 0x3da   : > { %10942 = vmatprep.mubr.f32.mxu0 %v19625_v22  ;;  %v10800_v29 = vpop.f32.mrb[88].mxu0 }
 0x3db   : > { %11111 = vmatmul.mubr.f32.gmra.mrb[134].mxu1 %v15990_v17  ;;  %11375 = vrot.lane.b32.xlu1 %v11374_v62, %s11904_s22 }
 0x3dc   : > { %11113 = vmatprep.mubr.f32.mxu1 %v16012_v5  ;;  %v6850_v5 = vpop.f32.mrb[89].mxu0 }
 0x3dd   : > { %10943 = vmatmul.mubr.f32.gmra.mrb[184].mxu0 %v19626_v45  ;;  %v11379_v34 = vpack.i.bf16 %v10800_v29, %v6850_v5  ;;  %v19635_v45 = vld [vmem:[#allocation121_spill] sm:$0xff]  ;;  %v19640_v5 = vld [vmem:[#allocation18_spill] sm:$0xff] }
 0x3de   : > { %10945 = vmatprep.mubr.f32.mxu0 %v19627_v55  ;;  %v10965_v55 = vpop.f32.mrb[36].mxu1 }
 0x3df   : > { %11114 = vmatmul.mubr.f32.gmra.mrb[136].mxu1 %v16030_v38  ;;  %11380 = vrot.lane.b32.xlu0 %v11379_v34, %s11909_s29  ;;  %v10803_v38 = vpop.f32.mrb[90].mxu0 }
 0x3e0   : > { %11116 = vmatprep.mubr.f32.mxu1 %v16052_v11  ;;  %v6860_v22 = vpop.f32.mrb[91].mxu0 }
 0x3e1   : > { %10946 = vmatmul.mubr.f32.gmra.mrb[186].mxu0 %v19628_v54  ;;  %v11384_v11 = vpack.i.bf16 %v10803_v38, %v6860_v22 }
 0x3e2   : > { %10948 = vmatprep.mubr.f32.mxu0 %v19629_v57  ;;  %v19637_v57 = vld [vmem:[#allocation123_spill] sm:$0xff] }
 0x3e3   : > { %11117 = vmatmul.mubr.f32.gmra.mrb[138].mxu1 %v16070_v3  ;;  %11385 = vrot.lane.b32.xlu1 %v11384_v11, %s11909_s29  ;;  %v16298_v3 = vpop.f32.mrb[92].mxu0  ;;  %v19642_v11 = vld [vmem:[#allocation125_spill] sm:$0xff] }
 0x3e4   : > { %11119 = vmatprep.mubr.f32.mxu1 %v16098_v36  ;;  %v16300_v9 = vpop.f32.mrb[93].mxu0  ;;  %v7400_v36 = vpop.f32.mrb[37].mxu1 }
 0x3e5   : > { %10949 = vmatmul.mubr.f32.gmra.mrb[188].mxu0 %v19630_v25  ;;  %v11389_v16 = vpack.i.bf16 %v10965_v55, %v7400_v36  ;;  %v16307_v52 = vpop.f32.mrb[94].mxu0 }
 0x3e6   : > { %10951 = vmatprep.mubr.f32.mxu0 %v19631_v21  ;;  %v16309_v44 = vpop.f32.mrb[95].mxu0 }
 0x3e7   : > { %11120 = vmatmul.mubr.f32.gmra.mrb[140].mxu1 %v16113_v61  ;;  %v10968_v61 = vpop.f32.mrb[38].mxu1  ;;  %11390 = vrot.lane.b32.xlu1 %v11389_v16, %s11904_s22  ;;  %v10812_v15 = vpop.f32.mrb[96].mxu0 }
 0x3e8   : > { %11122 = vmatprep.mubr.f32.mxu1 %v19635_v45  ;;  %v7410_v25 = vpop.f32.mrb[39].mxu1 }
 0x3e9   : > { %10952 = vmatmul.mubr.f32.gmra.mrb[190].mxu0 %v19632_v13  ;;  %v11394_v28 = vpack.i.bf16 %v10968_v61, %v7410_v25  ;;  %v10971_v27 = vpop.f32.mrb[40].mxu1  ;;  %v6890_v13 = vpop.f32.mrb[97].mxu0 }
 0x3ea   : > { %10954 = vmatprep.mubr.f32.mxu0 %v19633_v48  ;;  %v7420_v24 = vpop.f32.mrb[41].mxu1 }
 0x3eb   : > { %11123 = vmatmul.mubr.f32.gmra.mrb[142].mxu1 %v19636_v1  ;;  %11395 = vrot.lane.b32.xlu1 %v11394_v28, %s11905_s23  ;;  %v11399_v33 = vpack.i.bf16 %v10971_v27, %v7420_v24  ;;  %v10974_v48 = vpop.f32.mrb[42].mxu1  ;;  %v19644_v1 = vld [vmem:[#allocation126_spill] sm:$0xff]  ;;  %v19646_v24 = vld [vmem:[#allocation128_spill] sm:$0xff] }
 0x3ec   : > { %11125 = vmatprep.mubr.f32.mxu1 %v19637_v57  ;;  %v7430_v19 = vpop.f32.mrb[43].mxu1  ;;  %v19645_v57 = vld [vmem:[#allocation127_spill] sm:$0xff] }
 0x3ed   : > { %10955 = vmatmul.mubr.f32.gmra.mrb[192].mxu0 %v19634_v50  ;;  %v10815_v50 = vpop.f32.mrb[98].mxu0  ;;  %v10977_v30 = vpop.f32.mrb[44].mxu1 }
 0x3ee   : > { %v6900_v29 = vpop.f32.mrb[99].mxu0  ;;  %v7440_v38 = vpop.f32.mrb[45].mxu1 }
 0x3ef   : > { %11126 = vmatmul.mubr.f32.gmra.mrb[144].mxu1 %v19638_v14  ;;  %11400 = vrot.lane.b32.xlu1 %v11399_v33, %s11905_s23  ;;  %v16322_v34 = vpop.f32.mrb[100].mxu0  ;;  %v11409_v22 = vpack.i.bf16 %v10977_v30, %v7440_v38 }
 0x3f0   : > { %11128 = vmatprep.mubr.f32.mxu1 %v16046_v4  ;;  %v11404_v4 = vpack.i.bf16 %v10974_v48, %v7430_v19  ;;  %v16324_v62 = vpop.f32.mrb[101].mxu0  ;;  %v10980_v45 = vpop.f32.mrb[46].mxu1 }
 0x3f1   : > { %v7450_v36 = vpop.f32.mrb[47].mxu1 }
 0x3f2   : > { %v11414_v16 = vpack.i.bf16 %v10980_v45, %v7450_v36 }
 0x3f3   : > { %11129 = vmatmul.mubr.f32.gmra.mrb[146].mxu1 %v19639_v32  ;;  %11405 = vrot.lane.b32.xlu1 %v11404_v4, %s11905_s23 }
 0x3f4   : > { %11131 = vmatprep.mubr.f32.mxu1 %v16086_v60  ;;  %v19641_v60 = vld [vmem:[#allocation122_spill] sm:$0xff]  ;;  %v10983_v61 = vpop.f32.mrb[48].mxu1  ;;  %11415 = vrot.lane.b32.xlu0 %v11414_v16, %s11906_s26 }
 0x3f5   : > { %v7460_v27 = vpop.f32.mrb[49].mxu1 }
 0x3f6   : > { %v11424_v33 = vpack.i.bf16 %v10983_v61, %v7460_v27 }
 0x3f7   : > { %11132 = vmatmul.mubr.f32.gmra.mrb[148].mxu1 %v16111_v42  ;;  %11410 = vrot.lane.b32.xlu1 %v11409_v22, %s11905_s23  ;;  %v16329_v42 = vpop.f32.mrb[102].mxu0 }
 0x3f8   : > { %11134 = vmatprep.mubr.f32.mxu1 %v19640_v5  ;;  %19643 = vst [vmem:[#allocation140_spill] sm:$0xff] %v16329_v42  ;;  %v16331_v55 = vpop.f32.mrb[103].mxu0  ;;  %v10986_v48 = vpop.f32.mrb[50].mxu1 }
 0x3f9   : > { %v10824_v25 = vpop.f32.mrb[104].mxu0  ;;  %v7470_v30 = vpop.f32.mrb[51].mxu1 }
 0x3fa   : > { %v11419_v14 = vpack.i.bf16 %v10824_v25, %v10812_v15  ;;  %v6930_v28 = vpop.f32.mrb[105].mxu0  ;;  %v11439_v38 = vpack.i.bf16 %v10986_v48, %v7470_v30 }
 0x3fb   : > { %11135 = vmatmul.mubr.f32.gmra.mrb[150].mxu1 %v19641_v60  ;;  %v11429_v32 = vpack.i.bf16 %v6930_v28, %v6890_v13  ;;  %11425 = vrot.lane.b32.xlu1 %v11424_v33, %s11906_s26  ;;  %v10827_v19 = vpop.f32.mrb[106].mxu0  ;;  %v9352_v13 = vld [vmem:[%s18150_s3] sm:$0xff] }
 0x3fc   : > { %11137 = vmatprep.mubr.f32.mxu1 %v19642_v11  ;;  %11420 = vrot.lane.b32.xlu0 %v11419_v14, %s11910_s30  ;;  %v11434_v4 = vpack.i.bf16 %v10827_v19, %v10815_v50  ;;  %v6940_v5 = vpop.f32.mrb[107].mxu0  ;;  %v10989_v60 = vpop.f32.mrb[52].mxu1 }
 0x3fd   : > { %v11444_v15 = vpack.i.bf16 %v6940_v5, %v6900_v29  ;;  %v7480_v11 = vpop.f32.mrb[53].mxu1 }
 0x3fe   : > { %v11449_v45 = vpack.i.bf16 %v10989_v60, %v7480_v11 }
 0x3ff   : > { %11138 = vmatmul.mubr.f32.gmra.mrb[152].mxu1 %v19644_v1  ;;  %11430 = vrot.lane.b32.xlu1 %v11429_v32, %s11910_s30 }
 0x400   : > { %11140 = vmatprep.mubr.f32.mxu1 %v19645_v57  ;;  %11435 = vrot.lane.b32.xlu0 %v11434_v4, %s11910_s30 }
 0x403   : > { %11141 = vmatmul.mubr.f32.gmra.mrb[154].mxu1 %v19646_v24  ;;  %11440 = vrot.lane.b32.xlu1 %v11439_v38, %s11906_s26 }
 0x404   : > { %11143 = vmatprep.mubr.f32.mxu1 %v16102_v63  ;;  %v16343_v63 = vpop.f32.mrb[108].mxu0 }
 0x405   : > { %v16347_v22 = vpop.f32.mrb[109].mxu0 }
 0x406   : > { %v16352_v29 = vpop.f32.mrb[110].mxu0 }
 0x407   : > { %11144 = vmatmul.mubr.f32.gmra.mrb[156].mxu1 %v16117_v49  ;;  %v10992_v49 = vpop.f32.mrb[54].mxu1  ;;  %19647 = vst [vmem:[#allocation138_spill] sm:$0xff] %v16352_v29  ;;  %v16356_v1 = vpop.f32.mrb[111].mxu0  ;;  %11445 = vrot.lane.b32.xlu1 %v11444_v15, %s11910_s30 }
 0x408   : > { %v7490_v16 = vpop.f32.mrb[55].mxu1  ;;  %v10836_v14 = vpop.f32.mrb[112].mxu0 }
 0x409   : > { %v11454_v61 = vpack.i.bf16 %v10992_v49, %v7490_v16  ;;  %v10995_v25 = vpop.f32.mrb[56].mxu1  ;;  %v6970_v28 = vpop.f32.mrb[113].mxu0 }
 0x40a   : > { %v7500_v27 = vpop.f32.mrb[57].mxu1  ;;  %v11464_v24 = vpack.i.bf16 %v10836_v14, %v6970_v28 }
 0x40b   : > { %v11459_v32 = vpack.i.bf16 %v10995_v25, %v7500_v27  ;;  %11450 = vrot.lane.b32.xlu1 %v11449_v45, %s11906_s26 }
 0x40d   : > { %11460 = vrot.lane.b32.xlu0 %v11459_v32, %s11907_s27 }
 0x40f   : > { %11455 = vrot.lane.b32.xlu1 %v11454_v61, %s11907_s27 }
 0x411   : > { %11465 = vrot.lane.b32.xlu0 %v11464_v24, %s11911_s8  ;;  %v16379_v24 = vpop.permute.xlu1 %11290 }
 0x412   : > { %v10998_v33 = vpop.f32.mrb[58].mxu1  ;;  %v10839_v48 = vpop.f32.mrb[114].mxu0  ;;  %19650 = vst [vmem:[#allocation142_spill] sm:$0xff] %v16379_v24 }
 0x413   : > { %v6980_v19 = vpop.f32.mrb[115].mxu0  ;;  %v7510_v4 = vpop.f32.mrb[59].mxu1 }
 0x414   : > { %v11474_v5 = vpack.i.bf16 %v10839_v48, %v6980_v19  ;;  %v11469_v30 = vpack.i.bf16 %v10998_v33, %v7510_v4 }
 0x416   : > { %11470 = vrot.lane.b32.xlu0 %v11469_v30, %s11907_s27  ;;  %11475 = vrot.lane.b32.xlu1 %v11474_v5, %s11911_s8  ;;  %v16382_v5 = vpop.permute.xlu1 %11295 }
 0x417   : > { %19651 = vst [vmem:[#allocation143_spill] sm:$0xff] %v16382_v5 }
 0x418   : > { %v16365_v15 = vpop.f32.mrb[116].mxu0 }
 0x419   : > { %v11001_v38 = vpop.f32.mrb[60].mxu1  ;;  %v16367_v60 = vpop.f32.mrb[117].mxu0 }
 0x41a   : > { %v7520_v11 = vpop.f32.mrb[61].mxu1 }
 0x41b   : > { %v11479_v45 = vpack.i.bf16 %v11001_v38, %v7520_v11 }
 0x41d   : > { %v11004_v16 = vpop.f32.mrb[62].mxu1  ;;  %11480 = vrot.lane.b32.xlu0 %v11479_v45, %s11907_s27 }
 0x41e   : > { %v16373_v25 = vpop.f32.mrb[118].mxu0  ;;  %v7530_v14 = vpop.f32.mrb[63].mxu1 }
 0x41f   : > { %19648 = vst [vmem:[#allocation141_spill] sm:$0xff] %v16373_v25  ;;  %v16375_v61 = vpop.f32.mrb[119].mxu0  ;;  %v11484_v27 = vpack.i.bf16 %v11004_v16, %v7530_v14 }
 0x420   : > { %19649 = vst [vmem:[#allocation139_spill] sm:$0xff] %v16375_v61 }
 0x421   : > { %v11007_v32 = vpop.f32.mrb[64].mxu1  ;;  %11485 = vrot.lane.b32.xlu0 %v11484_v27, %s11908_s28 }
 0x422   : > { %v7540_v19 = vpop.f32.mrb[65].mxu1 }
 0x423   : > { %v10848_v33 = vpop.f32.mrb[120].mxu0  ;;  %v11489_v30 = vpack.i.bf16 %v11007_v32, %v7540_v19 }
 0x424   : > { %v7010_v48 = vpop.f32.mrb[121].mxu0 }
 0x425   : > { %v11494_v4 = vpack.i.bf16 %v10848_v33, %v7010_v48  ;;  %v11010_v38 = vpop.f32.mrb[66].mxu1  ;;  %11490 = vrot.lane.b32.xlu0 %v11489_v30, %s11908_s28  ;;  %v16392_v48 = vpop.permute.xlu1 %11300 }
 0x426   : > { %v7550_v57 = vpop.f32.mrb[67].mxu1  ;;  %19652 = vst [vmem:[#allocation145_spill] sm:$0xff] %v16392_v48 }
 0x427   : > { %v11499_v16 = vpack.i.bf16 %v11010_v38, %v7550_v57 }
 0x428   : > { %v10851_v11 = vpop.f32.mrb[122].mxu0 }
 0x429   : > { %v7020_v36 = vpop.f32.mrb[123].mxu0  ;;  %v11013_v14 = vpop.f32.mrb[68].mxu1  ;;  %11495 = vrot.lane.b32.xlu0 %v11494_v4, %s11912_s9  ;;  %v18431_v4 = vmov 0.0|0.0  }
 0x42a   : > { %v11504_v28 = vpack.i.bf16 %v10851_v11, %v7020_v36  ;;  %v7560_v7 = vpop.f32.mrb[69].mxu1  ;;  %v16401_v11 = vpop.permute.xlu1 %11315  ;;  %11178 = vmatprep.subr.bf16.mxu1 %v18431_v4 }
 0x42b   : > { %v11509_v33 = vpack.i.bf16 %v11013_v14, %v7560_v7  ;;  %19655 = vst [vmem:[#allocation147_spill] sm:$0xff] %v16401_v11 }
 0x42d   : > { %v11016_v27 = vpop.f32.mrb[70].mxu1  ;;  %11500 = vrot.lane.b32.xlu0 %v11499_v16, %s11908_s28 }
 0x42e   : > { %v7570_v19 = vpop.f32.mrb[71].mxu1  ;;  %v16413_v35 = vpop.permute.xlu1 %11320 }
 0x42f   : > { %v16386_v21 = vpop.f32.mrb[124].mxu0  ;;  %v11514_v38 = vpack.i.bf16 %v11016_v27, %v7570_v19  ;;  %v9353_v27 = vld [vmem:[%s18150_s3 + $0x8] sm:$0xff]  ;;  %19656 = vst [vmem:[#allocation149_spill] sm:$0xff] %v16413_v35 }
 0x430   : > { %v16388_v45 = vpop.f32.mrb[125].mxu0 }
 0x431   : > { %v11019_v17 = vpop.f32.mrb[72].mxu1  ;;  %11505 = vrot.lane.b32.xlu0 %v11504_v28, %s11912_s9 }
 0x432   : > { %v7580_v40 = vpop.f32.mrb[73].mxu1 }
 0x433   : > { %v16395_v36 = vpop.f32.mrb[126].mxu0  ;;  %v11519_v31 = vpack.i.bf16 %v11019_v17, %v7580_v40 }
 0x434   : > { %19653 = vst [vmem:[#allocation144_spill] sm:$0xff] %v16395_v36  ;;  %v16397_v57 = vpop.f32.mrb[127].mxu0 }
 0x435   : > { %19654 = vst [vmem:[#allocation146_spill] sm:$0xff] %v16397_v57  ;;  %v11022_v19 = vpop.f32.mrb[74].mxu1  ;;  %11510 = vrot.lane.b32.xlu0 %v11509_v33, %s11908_s28 }
 0x436   : > { %v7590_v17 = vpop.f32.mrb[75].mxu1 }
 0x437   : > { %v11529_v30 = vpack.i.bf16 %v11022_v19, %v7590_v17  ;;  %v16424_v19 = vpop.permute.xlu0 %11280 }
 0x438   : > { %19657 = vst [vmem:[#allocation148_spill] sm:$0xff] %v16424_v19 }
 0x439   : > { %v11025_v32 = vpop.f32.mrb[76].mxu1  ;;  %11515 = vrot.lane.b32.xlu0 %v11514_v38, %s11909_s29 }
 0x43a   : > { %v10860_v7 = vpop.f32.mrb[128].mxu0 }
 0x43b   : > { %v7050_v14 = vpop.f32.mrb[129].mxu0 }
 0x43c   : > { %v11524_v49 = vpack.i.bf16 %v10860_v7, %v7050_v14  ;;  %v11179_v7 = vpack.c.bf16 %v9353_v27, %v9352_v13 }
 0x43d   : > { %11520 = vrot.lane.b32.xlu0 %v11519_v31, %s11909_s29 }
 0x43e   : > { %11525 = vrot.lane.b32.xlu1 %v11524_v49, %s11914_s14  ;;  %v10863_v16 = vpop.f32.mrb[130].mxu0  ;;  %11180 = vmatpush1.bf16.msra.mxu1 %v11179_v7  ;;  %v7600_v49 = vpop.f32.mrb[77].mxu1 }
 0x43f   : > { %v7060_v40 = vpop.f32.mrb[131].mxu0  ;;  %11181 = vmatprep.subr.bf16.mxu1 %v18431_v4  ;;  %v11539_v27 = vpack.i.bf16 %v11025_v32, %v7600_v49  ;;  %v11028_v7 = vpop.f32.mrb[78].mxu1 }
 0x440   : > { %v11534_v14 = vpack.i.bf16 %v10863_v16, %v7060_v40  ;;  %v16426_v16 = vpop.permute.xlu1 %11325  ;;  %v7610_v17 = vpop.f32.mrb[79].mxu1 }
 0x441   : > { %19658 = vst [vmem:[#allocation152_spill] sm:$0xff] %v16426_v16  ;;  %v11031_v47 = vpop.f32.mrb[80].mxu1  ;;  %v16437_v4 = vpop.permute.xlu0 %11285  ;;  %11530 = vrot.lane.b32.xlu0 %v11529_v30, %s11909_s29 }
 0x442   : > { %11535 = vrot.lane.b32.xlu1 %v11534_v14, %s11914_s14  ;;  %v7620_v13 = vpop.f32.mrb[81].mxu1  ;;  %19661 = vst [vmem:[#allocation151_spill] sm:$0xff] %v16437_v4 }
 0x444   : > { %v16418_v28 = vpop.f32.mrb[132].mxu0  ;;  %v16439_v38 = vpop.permute.xlu1 %11330 }
 0x445   : > { %v16420_v50 = vpop.f32.mrb[133].mxu0  ;;  %19662 = vst [vmem:[#allocation155_spill] sm:$0xff] %v16439_v38  ;;  %v16443_v23 = vpop.permute.xlu0 %11305 }
 0x446   : > { %11540 = vrot.lane.b32.xlu1 %v11539_v27, %s11909_s29  ;;  %v11034_v27 = vpop.f32.mrb[82].mxu1  ;;  %19663 = vst [vmem:[#allocation20_spill] sm:$0xff] %v16443_v23 }
 0x447   : > { %v7630_v14 = vpop.f32.mrb[83].mxu1 }
 0x448   : > { %v16430_v33 = vpop.f32.mrb[134].mxu0  ;;  %v16452_v11 = vpop.permute.xlu1 %11335 }
 0x449   : > { %19659 = vst [vmem:[#allocation150_spill] sm:$0xff] %v16430_v33  ;;  %v16432_v40 = vpop.f32.mrb[135].mxu0  ;;  %v16445_v31 = vpop.f32.mrb[84].mxu1  ;;  %19664 = vst [vmem:[#allocation154_spill] sm:$0xff] %v16452_v11 }
 0x44a   : > { %19660 = vst [vmem:[#allocation153_spill] sm:$0xff] %v16432_v40  ;;  %v7640_v38 = vpop.f32.mrb[85].mxu1  ;;  %v16456_v30 = vpop.permute.xlu0 %11310 }
 0x44b   : > { %19665 = vst [vmem:[#allocation157_spill] sm:$0xff] %v16456_v30 }
 0x44e   : > { %v10872_v32 = vpop.f32.mrb[136].mxu0  ;;  %v16466_v42 = vpop.permute.xlu0 %11340 }
 0x44f   : > { %v7090_v49 = vpop.f32.mrb[137].mxu0  ;;  %19669 = vst [vmem:[#allocation24_spill] sm:$0xff] %v16466_v42 }
 0x450   : > { %v11544_v54 = vpack.i.bf16 %v10872_v32, %v7090_v49 }
 0x452   : > { %11545 = vrot.lane.b32.xlu1 %v11544_v54, %s11915_s16  ;;  %v9354_v54 = vld [vmem:[%s18150_s3 + $0x10] sm:$0xff] }
 0x454   : > { %v10875_v53 = vpop.f32.mrb[138].mxu0 }
 0x455   : > { %v7100_v16 = vpop.f32.mrb[139].mxu0 }
 0x456   : > { %v11549_v10 = vpack.i.bf16 %v10875_v53, %v7100_v16  ;;  %v11040_v53 = vpop.f32.mrb[86].mxu1 }
 0x457   : > { %v11554_v16 = vpack.i.bf16 %v11040_v53, %v11028_v7  ;;  %v7650_v5 = vpop.f32.mrb[87].mxu1  ;;  %v9355_v7 = vld [vmem:[%s18150_s3 + $0x18] sm:$0xff] }
 0x458   : > { %11550 = vrot.lane.b32.xlu1 %v11549_v10, %s11915_s16  ;;  %v16448_v32 = vpop.f32.mrb[140].mxu0  ;;  %v16462_v10 = vpop.permute.xlu1 %11355  ;;  %v11559_v19 = vpack.i.bf16 %v7650_v5, %v7610_v17  ;;  %v11182_v30 = vpack.c.bf16 %v9355_v7, %v9354_v54 }
 0x459   : > { %v16450_v49 = vpop.f32.mrb[141].mxu0  ;;  %19668 = vst [vmem:[#allocation23_spill] sm:$0xff] %v16462_v10  ;;  %11555 = vrot.lane.b32.xlu0 %v11554_v16, %s11910_s30  ;;  %v11043_v53 = vpop.f32.mrb[88].mxu1 }
 0x45a   : > { %v11564_v29 = vpack.i.bf16 %v11043_v53, %v11031_v47  ;;  %v7660_v5 = vpop.f32.mrb[89].mxu1  ;;  %11183 = vmatpush1.bf16.msra.mxu1 %v11182_v30 }
 0x45b   : > { %v11569_v16 = vpack.i.bf16 %v7660_v5, %v7620_v13  ;;  %v16489_v13 = vpop.permute.xlu0 %11345 }
 0x45c   : > { %v16458_v18 = vpop.f32.mrb[142].mxu0  ;;  %11560 = vrot.lane.b32.xlu1 %v11559_v19, %s11910_s30  ;;  %v16476_v17 = vpop.permute.xlu1 %11365  ;;  %19673 = vst [vmem:[#allocation27_spill] sm:$0xff] %v16489_v13 }
 0x45d   : > { %19666 = vst [vmem:[#allocation156_spill] sm:$0xff] %v16458_v18  ;;  %v16460_v48 = vpop.f32.mrb[143].mxu0  ;;  %19670 = vst [vmem:[#allocation159_spill] sm:$0xff] %v16476_v17  ;;  %11565 = vrot.lane.b32.xlu0 %v11564_v29, %s11910_s30  ;;  %v11046_v18 = vpop.f32.mrb[90].mxu1 }
 0x45e   : > { %19667 = vst [vmem:[#allocation158_spill] sm:$0xff] %v16460_v48  ;;  %v19671_v48 = vmov 0.0|0.0   ;;  %v11579_v19 = vpack.i.bf16 %v11046_v18, %v11034_v27  ;;  %v7670_v47 = vpop.f32.mrb[91].mxu1 }
 0x45f   : > { %11184 = vmatprep.subr.bf16.mxu1 %v19671_v48  ;;  %v11584_v7 = vpack.i.bf16 %v7670_v47, %v7630_v14  ;;  %v11049_v29 = vpop.f32.mrb[92].mxu1  ;;  %v16512_v14 = vpop.permute.xlu0 %11350 }
 0x460   : > { %v10884_v10 = vpop.f32.mrb[144].mxu0  ;;  %11570 = vrot.lane.b32.xlu1 %v11569_v16, %s11910_s30  ;;  %v11589_v18 = vpack.i.bf16 %v11049_v29, %v16445_v31  ;;  %19678 = vst [vmem:[#allocation165_spill] sm:$0xff] %v16512_v14 }
 0x461   : > { %v7130_v4 = vpop.f32.mrb[145].mxu0  ;;  %11580 = vrot.lane.b32.xlu0 %v11579_v19, %s11910_s30 }
 0x462   : > { %v11574_v42 = vpack.i.bf16 %v10884_v10, %v7130_v4  ;;  %v16487_v4 = vpop.permute.xlu1 %11375  ;;  %v7680_v10 = vpop.f32.mrb[93].mxu1 }
 0x463   : > { %19672 = vst [vmem:[#allocation161_spill] sm:$0xff] %v16487_v4  ;;  %v11594_v53 = vpack.i.bf16 %v7680_v10, %v7640_v38  ;;  %v11052_v16 = vpop.f32.mrb[94].mxu1  ;;  %v16518_v17 = vpop.permute.xlu0 %11360 }
 0x464   : > { %v16481_v20 = vpop.f32.mrb[146].mxu0  ;;  %11575 = vrot.lane.b32.xlu1 %v11574_v42, %s11916_s10  ;;  %v7690_v47 = vpop.f32.mrb[95].mxu1  ;;  %19680 = vst [vmem:[#allocation166_spill] sm:$0xff] %v16518_v17 }
 0x465   : > { %v16483_v37 = vpop.f32.mrb[147].mxu0  ;;  %11595 = vrot.lane.b32.xlu0 %v11594_v53, %s11910_s30  ;;  %v11599_v29 = vpack.i.bf16 %v11052_v16, %v7690_v47  ;;  %v11055_v38 = vpop.f32.mrb[96].mxu1 }
 0x466   : > { %v16500_v5 = vpop.permute.xlu1 %11385  ;;  %v7700_v53 = vpop.f32.mrb[97].mxu1 }
 0x467   : > { %19674 = vst [vmem:[#allocation160_spill] sm:$0xff] %v16500_v5  ;;  %v11604_v13 = vpack.i.bf16 %v11055_v38, %v7700_v53  ;;  %v11058_v31 = vpop.f32.mrb[98].mxu1 }
 0x468   : > { %v16493_v30 = vpop.f32.mrb[148].mxu0  ;;  %11585 = vrot.lane.b32.xlu1 %v11584_v7, %s11910_s30 }
 0x469   : > { %v16496_v27 = vpop.f32.mrb[149].mxu0  ;;  %11600 = vrot.lane.b32.xlu0 %v11599_v29, %s11911_s8 }
 0x46a   : > { %v16510_v54 = vpop.permute.xlu1 %11390 }
 0x46b   : > { %19677 = vst [vmem:[#allocation163_spill] sm:$0xff] %v16510_v54  ;;  %v7710_v54 = vpop.f32.mrb[99].mxu1 }
 0x46c   : > { %v16504_v19 = vpop.f32.mrb[150].mxu0  ;;  %11590 = vrot.lane.b32.xlu1 %v11589_v18, %s11910_s30  ;;  %v11614_v29 = vpack.i.bf16 %v11058_v31, %v7710_v54  ;;  %v9356_v18 = vld [vmem:[%s18150_s3 + $0x20] sm:$0xff] }
 0x46d   : > { %19675 = vst [vmem:[#allocation162_spill] sm:$0xff] %v16504_v19  ;;  %v16506_v42 = vpop.f32.mrb[151].mxu0  ;;  %11605 = vrot.lane.b32.xlu0 %v11604_v13, %s11911_s8 }
 0x46e   : > { %19676 = vst [vmem:[#allocation28_spill] sm:$0xff] %v16506_v42  ;;  %v16516_v4 = vpop.permute.xlu1 %11395 }
 0x46f   : > { %19679 = vst [vmem:[#allocation164_spill] sm:$0xff] %v16516_v4  ;;  %v16536_v4 = vpop.permute.xlu0 %11370 }
 0x470   : > { %v10896_v10 = vpop.f32.mrb[152].mxu0  ;;  %19682 = vst [vmem:[#allocation32_spill] sm:$0xff] %v16536_v4 }
 0x471   : > { %v7170_v7 = vpop.f32.mrb[153].mxu0 }
 0x472   : > { %v11609_v5 = vpack.i.bf16 %v10896_v10, %v7170_v7  ;;  %v16527_v14 = vpop.permute.xlu1 %11400  ;;  %v11061_v10 = vpop.f32.mrb[100].mxu1 }
 0x473   : > { %19681 = vst [vmem:[#allocation29_spill] sm:$0xff] %v16527_v14  ;;  %v7720_v13 = vpop.f32.mrb[101].mxu1  ;;  %v16550_v14 = vpop.permute.xlu0 %11380 }
 0x474   : > { %v16521_v16 = vpop.f32.mrb[154].mxu0  ;;  %11610 = vrot.lane.b32.xlu0 %v11609_v5, %s11917_s11  ;;  %v11619_v17 = vpack.i.bf16 %v11061_v10, %v7720_v13  ;;  %v11064_v41 = vpop.f32.mrb[102].mxu1  ;;  %v9357_v10 = vld [vmem:[%s18150_s3 + $0x28] sm:$0xff]  ;;  %19685 = vst [vmem:[#allocation33_spill] sm:$0xff] %v16550_v14 }
 0x475   : > { %v16523_v47 = vpop.f32.mrb[155].mxu0  ;;  %v7730_v5 = vpop.f32.mrb[103].mxu1  ;;  %v11185_v53 = vpack.c.bf16 %v9357_v10, %v9356_v18 }
 0x476   : > { %11620 = vrot.lane.b32.xlu1 %v11619_v17, %s11911_s8  ;;  %v11624_v13 = vpack.i.bf16 %v11064_v41, %v7730_v5  ;;  %v16552_v17 = vpop.permute.xlu1 %11405 }
 0x477   : > { %19686 = vst [vmem:[#allocation168_spill] sm:$0xff] %v16552_v17  ;;  %11186 = vmatpush1.bf16.msra.mxu1 %v11185_v53  ;;  %v16556_v35 = vpop.permute.xlu0 %11415 }
 0x478   : > { %v16530_v38 = vpop.f32.mrb[156].mxu0  ;;  %11615 = vrot.lane.b32.xlu0 %v11614_v29, %s11911_s8  ;;  %v11067_v29 = vpop.f32.mrb[104].mxu1  ;;  %11187 = vmatprep.subr.bf16.mxu1 %v19671_v48  ;;  %19687 = vst [vmem:[#allocation170_spill] sm:$0xff] %v16556_v35 }
 0x479   : > { %v16532_v7 = vpop.f32.mrb[157].mxu0  ;;  %v7740_v4 = vpop.f32.mrb[105].mxu1 }
 0x47a   : > { %v11634_v11 = vpack.i.bf16 %v11067_v29, %v7740_v4  ;;  %v11070_v42 = vpop.f32.mrb[106].mxu1 }
 0x47b   : > { %v7750_v5 = vpop.f32.mrb[107].mxu1 }
 0x47c   : > { %v16540_v54 = vpop.f32.mrb[158].mxu0  ;;  %11625 = vrot.lane.b32.xlu0 %v11624_v13, %s11912_s9  ;;  %v11644_v14 = vpack.i.bf16 %v11070_v42, %v7750_v5  ;;  %v16559_v13 = vpop.permute.xlu1 %11410 }
 0x47d   : > { %19683 = vst [vmem:[#allocation167_spill] sm:$0xff] %v16540_v54  ;;  %v16542_v31 = vpop.f32.mrb[159].mxu0  ;;  %19688 = vst [vmem:[#allocation19_spill] sm:$0xff] %v16559_v13  ;;  %v11073_v53 = vpop.f32.mrb[108].mxu1 }
 0x47e   : > { %19684 = vst [vmem:[#allocation169_spill] sm:$0xff] %v16542_v31 }
 0x480   : > { %v10908_v54 = vpop.f32.mrb[160].mxu0  ;;  %v16563_v17 = vpop.permute.xlu1 %11425 }
 0x481   : > { %v7210_v31 = vpop.f32.mrb[161].mxu0  ;;  %19689 = vst [vmem:[#allocation171_spill] sm:$0xff] %v16563_v17 }
 0x482   : > { %v11629_v46 = vpack.i.bf16 %v10908_v54, %v7210_v31  ;;  %v7760_v31 = vpop.f32.mrb[109].mxu1 }
 0x483   : > { %v11654_v35 = vpack.i.bf16 %v11073_v53, %v7760_v31  ;;  %v11076_v19 = vpop.f32.mrb[110].mxu1 }
 0x484   : > { %11630 = vrot.lane.b32.xlu0 %v11629_v46, %s11918_s20  ;;  %v10911_v41 = vpop.f32.mrb[162].mxu0  ;;  %v16565_v46 = vpop.permute.xlu0 %11420 }
 0x485   : > { %v7220_v18 = vpop.f32.mrb[163].mxu0  ;;  %19690 = vst [vmem:[#allocation173_spill] sm:$0xff] %v16565_v46  ;;  %v16577_v46 = vpop.permute.xlu1 %11430 }
 0x486   : > { %v11639_v10 = vpack.i.bf16 %v10911_v41, %v7220_v18  ;;  %v7770_v18 = vpop.f32.mrb[111].mxu1  ;;  %19692 = vst [vmem:[#allocation174_spill] sm:$0xff] %v16577_v46 }
 0x487   : > { %v11659_v5 = vpack.i.bf16 %v11076_v19, %v7770_v18 }
 0x488   : > { %11635 = vrot.lane.b32.xlu0 %v11634_v11, %s11912_s9  ;;  %11640 = vrot.lane.b32.xlu1 %v11639_v10, %s11918_s20  ;;  %v10914_v54 = vpop.f32.mrb[164].mxu0  ;;  %v11079_v10 = vpop.f32.mrb[112].mxu1 }
 0x489   : > { %v7230_v4 = vpop.f32.mrb[165].mxu0  ;;  %v16575_v31 = vpop.permute.xlu0 %11435 }
 0x48a   : > { %v11649_v29 = vpack.i.bf16 %v10914_v54, %v7230_v4  ;;  %v7780_v4 = vpop.f32.mrb[113].mxu1  ;;  %19691 = vst [vmem:[#allocation172_spill] sm:$0xff] %v16575_v31 }
 0x48c   : > { %11645 = vrot.lane.b32.xlu0 %v11644_v14, %s11912_s9  ;;  %11650 = vrot.lane.b32.xlu1 %v11649_v29, %s11918_s20  ;;  %v10917_v42 = vpop.f32.mrb[166].mxu0  ;;  %v11669_v14 = vpack.i.bf16 %v11079_v10, %v7780_v4  ;;  %v11082_v29 = vpop.f32.mrb[114].mxu1  ;;  %v9359_v10 = vld [vmem:[%s18150_s3 + $0x38] sm:$0xff] }
 0x48d   : > { %v7240_v41 = vpop.f32.mrb[167].mxu0  ;;  %v16584_v18 = vpop.permute.xlu0 %11460 }
 0x48e   : > { %v11664_v11 = vpack.i.bf16 %v10917_v42, %v7240_v41  ;;  %19693 = vst [vmem:[#allocation21_spill] sm:$0xff] %v16584_v18  ;;  %v16599_v18 = vpop.permute.xlu1 %11440 }
 0x48f   : > { %19697 = vst [vmem:[#allocation25_spill] sm:$0xff] %v16599_v18 }
 0x490   : > { %11655 = vrot.lane.b32.xlu0 %v11654_v35, %s11912_s9  ;;  %11660 = vrot.lane.b32.xlu1 %v11659_v5, %s11914_s14  ;;  %v16571_v53 = vpop.f32.mrb[168].mxu0  ;;  %v7790_v35 = vpop.f32.mrb[115].mxu1  ;;  %v9358_v5 = vld [vmem:[%s18150_s3 + $0x30] sm:$0xff] }
 0x491   : > { %v16573_v54 = vpop.f32.mrb[169].mxu0  ;;  %v11674_v41 = vpack.i.bf16 %v11082_v29, %v7790_v35  ;;  %v11085_v4 = vpop.f32.mrb[116].mxu1  ;;  %v11188_v31 = vpack.c.bf16 %v9359_v10, %v9358_v5 }
 0x492   : > { %v7800_v17 = vpop.f32.mrb[117].mxu1  ;;  %v16597_v35 = vpop.permute.xlu0 %11465 }
 0x493   : > { %v11679_v29 = vpack.i.bf16 %v11085_v4, %v7800_v17  ;;  %19696 = vst [vmem:[#allocation178_spill] sm:$0xff] %v16597_v35  ;;  %11189 = vmatpush1.bf16.msra.mxu1 %v11188_v31  ;;  %v11088_v13 = vpop.f32.mrb[118].mxu1 }
 0x494   : > { %11665 = vrot.lane.b32.xlu1 %v11664_v11, %s11918_s20  ;;  %v16580_v42 = vpop.f32.mrb[170].mxu0  ;;  %11190 = vmatprep.subr.bf16.mxu1 %v19671_v48  ;;  %v7810_v5 = vpop.f32.mrb[119].mxu1 }
 0x495   : > { %v16582_v19 = vpop.f32.mrb[171].mxu0  ;;  %11680 = vrot.lane.b32.xlu0 %v11679_v29, %s11914_s14  ;;  %v11684_v10 = vpack.i.bf16 %v11088_v13, %v7810_v5  ;;  %v11091_v17 = vpop.f32.mrb[120].mxu1 }
 0x496   : > { %v16608_v24 = vpop.permute.xlu0 %11470  ;;  %v7820_v35 = vpop.f32.mrb[121].mxu1 }
 0x497   : > { %19700 = vst [vmem:[#allocation26_spill] sm:$0xff] %v16608_v24  ;;  %v11689_v18 = vpack.i.bf16 %v11091_v17, %v7820_v35  ;;  %v11094_v40 = vpop.f32.mrb[122].mxu1 }
 0x498   : > { %11670 = vrot.lane.b32.xlu1 %v11669_v14, %s11914_s14  ;;  %v16593_v11 = vpop.f32.mrb[172].mxu0  ;;  %v7830_v5 = vpop.f32.mrb[123].mxu1 }
 0x499   : > { %19694 = vst [vmem:[#allocation22_spill] sm:$0xff] %v16593_v11  ;;  %v16595_v46 = vpop.f32.mrb[173].mxu0  ;;  %v11694_v24 = vpack.i.bf16 %v11094_v40, %v7830_v5 }
 0x49a   : > { %19695 = vst [vmem:[#allocation175_spill] sm:$0xff] %v16595_v46  ;;  %v16615_v29 = vpop.permute.xlu0 %11480 }
 0x49b   : > { %19701 = vst [vmem:[#allocation177_spill] sm:$0xff] %v16615_v29 }
 0x49c   : > { %11675 = vrot.lane.b32.xlu1 %v11674_v41, %s11914_s14  ;;  %v16604_v14 = vpop.f32.mrb[174].mxu0  ;;  %v16617_v41 = vpop.permute.xlu1 %11445 }
 0x49d   : > { %19698 = vst [vmem:[#allocation176_spill] sm:$0xff] %v16604_v14  ;;  %v16606_v23 = vpop.f32.mrb[175].mxu0  ;;  %19702 = vst [vmem:[#allocation181_spill] sm:$0xff] %v16617_v41  ;;  %v11097_v14 = vpop.f32.mrb[124].mxu1 }
 0x49e   : > { %19699 = vst [vmem:[#allocation179_spill] sm:$0xff] %v16606_v23  ;;  %v7840_v17 = vpop.f32.mrb[125].mxu1 }
 0x49f   : > { %v11699_v41 = vpack.i.bf16 %v11097_v14, %v7840_v17  ;;  %v11100_v57 = vpop.f32.mrb[126].mxu1 }
 0x4a0   : > { %11685 = vrot.lane.b32.xlu1 %v11684_v10, %s11915_s16  ;;  %v16611_v31 = vpop.f32.mrb[176].mxu0  ;;  %v16624_v10 = vpop.permute.xlu0 %11485  ;;  %9201 = vrot.lane.b32.xlu0 %v11100_v57, %s11919_s19 }
 0x4a1   : > { %v16613_v4 = vpop.f32.mrb[177].mxu0  ;;  %19704 = vst [vmem:[#allocation182_spill] sm:$0xff] %v16624_v10  ;;  %v7850_v40 = vpop.f32.mrb[127].mxu1 }
 0x4a4   : > { %11690 = vrot.lane.b32.xlu1 %v11689_v18, %s11915_s16  ;;  %v16620_v33 = vpop.f32.mrb[178].mxu0  ;;  %v16631_v29 = vpop.permute.xlu0 %11490  ;;  %9199 = vrot.lane.b32.xlu0 %v7850_v40, %s11919_s19  ;;  %v9361_v40 = vld [vmem:[%s18150_s3 + $0x48] sm:$0xff] }
 0x4a5   : > { %19703 = vst [vmem:[#allocation180_spill] sm:$0xff] %v16620_v33  ;;  %v16622_v13 = vpop.f32.mrb[179].mxu0  ;;  %19707 = vst [vmem:[#allocation183_spill] sm:$0xff] %v16631_v29  ;;  %v16633_v18 = vpop.permute.xlu1 %11450 }
 0x4a6   : > { %19708 = vst [vmem:[#allocation186_spill] sm:$0xff] %v16633_v18 }
 0x4a8   : > { %11695 = vrot.lane.b32.xlu1 %v11694_v24, %s11915_s16  ;;  %v16627_v23 = vpop.f32.mrb[180].mxu0  ;;  %v16641_v5 = vpop.permute.xlu0 %11495 }
 0x4a9   : > { %19705 = vst [vmem:[#allocation30_spill] sm:$0xff] %v16627_v23  ;;  %v16629_v35 = vpop.f32.mrb[181].mxu0  ;;  %19711 = vst [vmem:[#allocation187_spill] sm:$0xff] %v16641_v5  ;;  %v11103_v23 = vpop.f32.mrb[128].mxu1 }
 0x4aa   : > { %19706 = vst [vmem:[#allocation31_spill] sm:$0xff] %v16629_v35  ;;  %v7860_v14 = vpop.f32.mrb[129].mxu1 }
 0x4ab   : > { %v16648_v35 = vpop.f32.mrb[130].mxu1 }
 0x4ac   : > { %11700 = vrot.lane.b32.xlu1 %v11699_v41, %s11915_s16  ;;  %v16636_v36 = vpop.f32.mrb[182].mxu0  ;;  %v16644_v18 = vpop.permute.xlu0 %11500 }
 0x4ad   : > { %19709 = vst [vmem:[#allocation4_spill] sm:$0xff] %v16636_v36  ;;  %v16639_v24 = vpop.f32.mrb[183].mxu0  ;;  %19712 = vst [vmem:[#allocation185_spill] sm:$0xff] %v16644_v18  ;;  %v16646_v41 = vpop.permute.xlu1 %11455 }
 0x4ae   : > { %19710 = vst [vmem:[#allocation184_spill] sm:$0xff] %v16639_v24  ;;  %19713 = vst [vmem:[#allocation189_spill] sm:$0xff] %v16646_v41  ;;  %v16650_v61 = vpop.f32.mrb[131].mxu1 }
 0x4af   : > { %v16655_v11 = vpop.f32.mrb[132].mxu1 }
 0x4b0   : > { %v10944_v10 = vpop.f32.mrb[184].mxu0  ;;  %v16653_v24 = vpop.permute.xlu0 %11505  ;;  %19715 = vst [vmem:[#allocation190_spill] sm:$0xff] %v16655_v11 }
 0x4b1   : > { %v7330_v17 = vpop.f32.mrb[185].mxu0  ;;  %19714 = vst [vmem:[#allocation188_spill] sm:$0xff] %v16653_v24  ;;  %v16668_v24 = vpop.permute.xlu1 %11475 }
 0x4b2   : > { %v11704_v29 = vpack.i.bf16 %v10944_v10, %v7330_v17  ;;  %v9360_v10 = vld [vmem:[%s18150_s3 + $0x40] sm:$0xff]  ;;  %v16663_v17 = vpop.f32.mrb[133].mxu1  ;;  %19717 = vst [vmem:[#allocation193_spill] sm:$0xff] %v16668_v24 }
 0x4b3   : > { %19716 = vst [vmem:[#allocation191_spill] sm:$0xff] %v16663_v17  ;;  %v11112_v11 = vpop.f32.mrb[134].mxu1 }
 0x4b4   : > { %v10947_v36 = vpop.f32.mrb[186].mxu0  ;;  %11705 = vrot.lane.b32.xlu0 %v11704_v29, %s11903_s18  ;;  %v7890_v46 = vpop.f32.mrb[135].mxu1  ;;  %9233 = vrot.lane.b32.xlu1 %v11112_v11, %s11920_s21 }
 0x4b5   : > { %v7340_v57 = vpop.f32.mrb[187].mxu0 }
 0x4b6   : > { %v11709_v5 = vpack.i.bf16 %v10947_v36, %v7340_v57  ;;  %v16666_v36 = vpop.permute.xlu0 %11510  ;;  %v11191_v57 = vpack.c.bf16 %v9361_v40, %v9360_v10  ;;  %v11115_v40 = vpop.f32.mrb[136].mxu1 }
 0x4b8   : > { %v10950_v25 = vpop.f32.mrb[188].mxu0  ;;  %9203 = vrot.lane.b32.xlu0 %v7860_v14, %s11919_s19  ;;  %11192 = vmatpush1.bf16.msra.mxu1 %v11191_v57  ;;  %v16673_v14 = vpop.permute.xlu1 %11525 }
 0x4b9   : > { %v7350_v29 = vpop.f32.mrb[189].mxu0  ;;  %11193 = vmatprep.subr.bf16.mxu1 %v19671_v48  ;;  %19718 = vst [vmem:[#allocation192_spill] sm:$0xff] %v16673_v14  ;;  %9231 = vrot.lane.b32.xlu1 %v7890_v46, %s11920_s21  ;;  %v19721_v46 = vpack.i.bf16 %v16521_v16, %v16523_v47 }
 0x4ba   : > { %v11714_v18 = vpack.i.bf16 %v10950_v25, %v7350_v29  ;;  %v16675_v25 = vpop.permute.xlu0 %11515  ;;  %v16677_v29 = vpop.f32.mrb[137].mxu1 }
 0x4bb   : > { %v11118_v24 = vpop.f32.mrb[138].mxu1 }
 0x4bc   : > { %v10953_v41 = vpop.f32.mrb[190].mxu0  ;;  %11710 = vrot.lane.b32.xlu0 %v11709_v5, %s11903_s18  ;;  %v16681_v5 = vpop.f32.mrb[139].mxu1 }
 0x4bd   : > { %v7360_v33 = vpop.f32.mrb[191].mxu0  ;;  %v16689_v14 = vpop.f32.mrb[140].mxu1 }
 0x4be   : > { %v11719_v17 = vpack.i.bf16 %v10953_v41, %v7360_v33  ;;  %v16685_v33 = vpop.permute.xlu1 %11535  ;;  %v16687_v41 = vpop.permute.xlu0 %11520  ;;  %19720 = vst [vmem:[#allocation195_spill] sm:$0xff] %v16689_v14 }
 0x4bf   : > { %19719 = vst [vmem:[#allocation194_spill] sm:$0xff] %v16685_v33  ;;  %v19724_v33 = vpack.i.bf16 %v16298_v3, %v16300_v9 }
 0x4c0   : > { %v10956_v10 = vpop.f32.mrb[192].mxu0  ;;  %11715 = vrot.lane.b32.xlu0 %v11714_v18, %s11903_s18  ;;  %v19722_v18 = vpack.i.bf16 %v16481_v20, %v16483_v37  ;;  %v19727_v20 = vpack.i.bf16 %v16181_v43, %v16183_v6  ;;  %v19730_v43 = vpack.i.bf16 %v16156_v56, %v16158_v58  ;;  %v9362_v56 = vld [vmem:[%s18150_s3 + $0x50] sm:$0xff]  ;;  %v9363_v58 = vld [vmem:[%s18150_s3 + $0x58] sm:$0xff] }
 0x4c1   : > { %v7370_v57 = vpop.f32.mrb[193].mxu0 }
 0x4c2   : > { %v11724_v11 = vpack.i.bf16 %v10956_v10, %v7370_v57  ;;  %v16699_v10 = vpop.f32.mrb[141].mxu1 }
 0x4c3   : > { %19723 = vst [vmem:[#allocation197_spill] sm:$0xff] %v16699_v10  ;;  %v11124_v57 = vpop.f32.mrb[142].mxu1 }
 0x4c4   : > { %11720 = vrot.lane.b32.xlu0 %v11719_v17, %s11903_s18  ;;  %11725 = vrot.lane.b32.xlu1 %v11724_v11, %s11904_s22  ;;  %v16701_v17 = vpop.permute.xlu1 %11540  ;;  %v16703_v11 = vpop.permute.xlu0 %11530 }
 0x4c5   : > { %v7930_v16 = vpop.f32.mrb[143].mxu1 }
 0x4c8   : > { %11740 = vrot.lane.b32.xlu0 %v19721_v46, %s11917_s11  ;;  %11730 = vrot.lane.b32.xlu1 %v19722_v18, %s11916_s10  ;;  %v16710_v47 = vpop.permute.xlu1 %11545  ;;  %v16712_v46 = vpop.f32.mrb[144].mxu1 }
 0x4c9   : > { %19725 = vst [vmem:[#allocation196_spill] sm:$0xff] %v16710_v47  ;;  %v16724_v18 = vpop.f32.mrb[145].mxu1  ;;  %v19799_v47 = vld [vmem:[#allocation170_spill] sm:$0xff] }
 0x4ca   : > { %v16726_v3 = vpop.f32.mrb[146].mxu1 }
 0x4cb   : > { %v16714_v37 = vpop.permute.xlu0 %11555  ;;  %v16738_v6 = vpop.f32.mrb[147].mxu1 }
 0x4cc   : > { %9205 = vrot.lane.b32.xlu0 %v11103_v23, %s11919_s19  ;;  %11735 = vrot.lane.b32.xlu1 %v19724_v33, %s11909_s29  ;;  %19726 = vst [vmem:[#allocation200_spill] sm:$0xff] %v16714_v37  ;;  %v19728_v23 = vpack.i.bf16 %v16347_v22, %v16324_v62  ;;  %v19729_v33 = vpack.i.bf16 %v16386_v21, %v16388_v45  ;;  %v16740_v62 = vpop.permute.xlu1 %11550  ;;  %v16742_v22 = vpop.f32.mrb[148].mxu1 }
 0x4cd   : > { %19731 = vst [vmem:[#allocation198_spill] sm:$0xff] %v16740_v62  ;;  %v16751_v21 = vpop.f32.mrb[149].mxu1 }
 0x4ce   : > { %19733 = vst [vmem:[#allocation202_spill] sm:$0xff] %v16751_v21 }
 0x4cf   : > { %v16728_v9 = vpop.permute.xlu0 %11565 }
 0x4d0   : > { %11755 = vrot.lane.b32.xlu0 %v19727_v20, %s11904_s22  ;;  %11745 = vrot.lane.b32.xlu1 %v19728_v23, %s11910_s30  ;;  %v19732_v23 = vpack.i.bf16 %v16343_v63, %v16322_v34  ;;  %v16753_v45 = vpop.permute.xlu1 %11560  ;;  %v19736_v34 = vpack.i.bf16 %v16256_v8, %v16258_v26  ;;  %v19737_v63 = vpack.i.bf16 %v16365_v15, %v16367_v60 }
 0x4d1   : > { %19734 = vst [vmem:[#allocation199_spill] sm:$0xff] %v16753_v45  ;;  %v19740_v8 = vpack.i.bf16 %v16206_v51, %v16208_v59 }
 0x4d3   : > { %v16744_v20 = vpop.permute.xlu0 %11580 }
 0x4d4   : > { %11770 = vrot.lane.b32.xlu0 %v19729_v33, %s11912_s9  ;;  %11750 = vrot.lane.b32.xlu1 %v19730_v43, %s11903_s18  ;;  %v11194_v33 = vpack.c.bf16 %v9363_v58, %v9362_v56  ;;  %v16761_v43 = vpop.f32.mrb[150].mxu1  ;;  %v16776_v56 = vpop.permute.xlu1 %11570 }
 0x4d5   : > { %19735 = vst [vmem:[#allocation203_spill] sm:$0xff] %v16761_v43  ;;  %v19805_v43 = vld [vmem:[#allocation26_spill] sm:$0xff] }
 0x4d6   : > { %11195 = vmatpush1.bf16.msra.mxu1 %v11194_v33  ;;  %v19743_v33 = vpack.i.bf16 %v16282_v0, %v16284_v12  ;;  %v19749_v0 = vpack.i.bf16 %v16418_v28, %v16420_v50  ;;  %v19753_v50 = vpack.i.bf16 %v16493_v30, %v16496_v27  ;;  %v19754_v30 = vpack.i.bf16 %v16307_v52, %v16309_v44 }
 0x4d7   : > { %11196 = vmatprep.subr.bf16.mxu1 %v19671_v48  ;;  %v19755_v52 = vpack.i.bf16 %v16356_v1, %v16331_v55 }
 0x4d8   : > { %11780 = vrot.lane.b32.xlu0 %v19732_v23, %s11910_s30  ;;  %9237 = vrot.lane.b32.xlu1 %v11115_v40, %s11920_s21  ;;  %v16771_v40 = vpop.f32.mrb[151].mxu1  ;;  %v16773_v23 = vpop.permute.xlu0 %11595 }
 0x4d9   : > { %19738 = vst [vmem:[#allocation201_spill] sm:$0xff] %v16771_v40  ;;  %v16778_v58 = vpop.f32.mrb[152].mxu1  ;;  %v16802_v51 = vpop.permute.xlu1 %11575 }
 0x4da   : > { %19739 = vst [vmem:[#allocation205_spill] sm:$0xff] %v16778_v58  ;;  %v16786_v26 = vpop.f32.mrb[153].mxu1  ;;  %19746 = vst [vmem:[#allocation209_spill] sm:$0xff] %v16802_v51 }
 0x4db   : > { %19741 = vst [vmem:[#allocation204_spill] sm:$0xff] %v16786_v26  ;;  %v16790_v60 = vpop.f32.mrb[154].mxu1  ;;  %v19783_v26 = vld [vmem:[#allocation134_spill] sm:$0xff] }
 0x4dc   : > { %11790 = vrot.lane.b32.xlu0 %v19736_v34, %s11907_s27  ;;  %11760 = vrot.lane.b32.xlu1 %v19737_v63, %s11911_s8  ;;  %v16788_v15 = vpop.permute.xlu0 %11600  ;;  %19742 = vst [vmem:[#allocation207_spill] sm:$0xff] %v16790_v60  ;;  %v16800_v34 = vpop.f32.mrb[155].mxu1 }
 0x4dd   : > { %19745 = vst [vmem:[#allocation206_spill] sm:$0xff] %v16800_v34  ;;  %v16806_v63 = vpop.f32.mrb[156].mxu1  ;;  %v16820_v12 = vpop.permute.xlu1 %11585  ;;  %v19800_v34 = vld [vmem:[#allocation171_spill] sm:$0xff] }
 0x4de   : > { %19747 = vst [vmem:[#allocation208_spill] sm:$0xff] %v16806_v63 }
 0x4e0   : > { %9207 = vrot.lane.b32.xlu0 %v16650_v61, %s11919_s19  ;;  %11765 = vrot.lane.b32.xlu1 %v19740_v8, %s11905_s23  ;;  %v19744_v61 = vpack.i.bf16 %v16231_v39, %v16233_v2  ;;  %v16804_v59 = vpop.permute.xlu0 %11605  ;;  %v19748_v8 = vpack.i.bf16 %v16530_v38, %v16532_v7  ;;  %v16816_v39 = vpop.f32.mrb[157].mxu1 }
 0x4e1   : > { %19750 = vst [vmem:[#allocation212_spill] sm:$0xff] %v16816_v39  ;;  %v16834_v28 = vpop.permute.xlu1 %11590  ;;  %v19781_v39 = vld [vmem:[#allocation154_spill] sm:$0xff] }
 0x4e4   : > { %11800 = vrot.lane.b32.xlu0 %v19743_v33, %s11908_s28  ;;  %11775 = vrot.lane.b32.xlu1 %v19744_v61, %s11906_s26  ;;  %v19752_v33 = vpack.i.bf16 %v16448_v32, %v16450_v49  ;;  %v9365_v32 = vld [vmem:[%s18150_s3 + $0x68] sm:$0xff] }
 0x4e6   : > { %v16818_v2 = vpop.permute.xlu0 %11610 }
 0x4e7   : > { %19751 = vst [vmem:[#allocation210_spill] sm:$0xff] %v16818_v2  ;;  %v19785_v2 = vld [vmem:[#allocation32_spill] sm:$0xff] }
 0x4e8   : > { %11815 = vrot.lane.b32.xlu0 %v19748_v8, %s11917_s11  ;;  %11785 = vrot.lane.b32.xlu1 %v19749_v0, %s11914_s14  ;;  %v16849_v27 = vpop.permute.xlu1 %11620  ;;  %v11372_v51 = vunpack.i.l.bf16 %v19785_v2 }
 0x4ea   : > { %v16827_v38 = vpop.permute.xlu0 %11615 }
 0x4ec   : > { %9241 = vrot.lane.b32.xlu0 %v11118_v24, %s11920_s21  ;;  %11795 = vrot.lane.b32.xlu1 %v19752_v33, %s11915_s16  ;;  %v9364_v24 = vld [vmem:[%s18150_s3 + $0x60] sm:$0xff] }
 0x4ed   : > { %v11197_v49 = vpack.c.bf16 %v9365_v32, %v9364_v24 }
 0x4ee   : > { %v16836_v7 = vpop.permute.xlu0 %11625 }
 0x4ef   : > { %11198 = vmatpush1.bf16.msra.mxu1 %v11197_v49  ;;  %v19757_v49 = vld [vmem:[#allocation175_spill] sm:$0xff] }
 0x4f0   : > { %11805 = vrot.lane.b32.xlu1 %v19753_v50, %s11916_s10  ;;  %9265 = vrot.lane.b32.xlu0 %v11124_v57, %s11918_s20 }
 0x4f1   : > { %11199 = vmatprep.subr.bf16.mxu1 %v19671_v48 }
 0x4f4   : > { %11810 = vrot.lane.b32.xlu1 %v19754_v30, %s11909_s29  ;;  %9263 = vrot.lane.b32.xlu0 %v7930_v16, %s11918_s20  ;;  %v19758_v30 = vld [vmem:[#allocation22_spill] sm:$0xff] }
 0x4f6   : > { %v11631_v57 = vpop.permute.xlu0 %11630 }
 0x4f7   : > { %v11633_v61 = vunpack.i.h.bf16 %v11631_v57  ;;  %v11632_v8 = vunpack.i.l.bf16 %v11631_v57  ;;  %v19759_v57 = vld [vmem:[#allocation141_spill] sm:$0xff] }
 0x4f8   : > { %11820 = vrot.lane.b32.xlu1 %v19755_v52, %s11910_s30  ;;  %9269 = vrot.lane.b32.xlu0 %v16712_v46, %s11918_s20 }
 0x4f9   : > { %v9071_v0 = vsel %vm8489_vm1, %v11632_v8, %v16573_v54  ;;  %v9072_v33 = vsel %vm8489_vm1, %v11633_v61, %v16571_v53  ;;  %v19762_v8 = vld [vmem:[#allocation31_spill] sm:$0xff] }
 0x4fa   : > { %v11641_v44 = vpop.permute.xlu1 %11640  ;;  %v16864_v16 = vsel %vm379_vm0, %v9071_v0, %v16613_v4  ;;  %v16868_v50 = vsel %vm379_vm0, %v9072_v33, %v16611_v31  ;;  %v19756_v31 = vld [vmem:[#allocation180_spill] sm:$0xff]  ;;  %v19763_v33 = vld [vmem:[#allocation30_spill] sm:$0xff] }
 0x4fb   : > { %v11643_v54 = vunpack.i.h.bf16 %v11641_v44  ;;  %v11642_v24 = vunpack.i.l.bf16 %v11641_v44  ;;  %v19764_v44 = vld [vmem:[#allocation144_spill] sm:$0xff] }
 0x4fc   : > { %9209 = vrot.lane.b32.xlu1 %v16648_v35, %s11919_s19  ;;  %9267 = vrot.lane.b32.xlu0 %v16724_v18, %s11918_s20  ;;  %v19760_v18 = vld [vmem:[#allocation139_spill] sm:$0xff] }
 0x4fd   : > { %v9073_v53 = vsel %vm8489_vm1, %v11642_v24, %v16582_v19  ;;  %v9074_v55 = vsel %vm8489_vm1, %v11643_v54, %v16580_v42  ;;  %v19761_v61 = vpack.i.bf16 %v19759_v57, %v19760_v18  ;;  %v19765_v54 = vld [vmem:[#allocation146_spill] sm:$0xff]  ;;  %v19770_v57 = vld [vmem:[#allocation4_spill] sm:$0xff] }
 0x4fe   : > { %v11651_v1 = vpop.permute.xlu1 %11650  ;;  %v16880_v4 = vsel %vm379_vm0, %v9073_v53, %v16622_v13  ;;  %v16884_v46 = vsel %vm379_vm0, %v9074_v55, %v19756_v31  ;;  %v19766_v24 = vpack.i.bf16 %v19764_v44, %v19765_v54  ;;  %v9367_v55 = vld [vmem:[%s18150_s3 + $0x78] sm:$0xff]  ;;  %v19772_v44 = vld [vmem:[#allocation153_spill] sm:$0xff] }
 0x4ff   : > { %v11653_v32 = vunpack.i.h.bf16 %v11651_v1  ;;  %v11652_v19 = vunpack.i.l.bf16 %v11651_v1 }
 0x500   : > { %11825 = vrot.lane.b32.xlu1 %v19761_v61, %s11911_s8  ;;  %9273 = vrot.lane.b32.xlu0 %v16726_v3, %s11918_s20  ;;  %v9366_v3 = vld [vmem:[%s18150_s3 + $0x70] sm:$0xff]  ;;  %v16933_v61 = vpop.permute.xlu0 %11635  ;;  %s18126_s8 = scalar_lea.vmem %s18154_s7, %s10375_s15 }
 0x501   : > { %v9075_v42 = vsel %vm8489_vm1, %v11652_v19, %v19757_v49  ;;  %v9076_v35 = vsel %vm8489_vm1, %v11653_v32, %v19758_v30  ;;  %v11200_v32 = vpack.c.bf16 %v9367_v55, %v9366_v3  ;;  %v19767_v19 = vld [vmem:[#allocation179_spill] sm:$0xff]  ;;  %v9368_v55 = vld [vmem:[%s18150_s3 + $0x80] sm:$0xff] }
 0x502   : > { %v16896_v13 = vpop.permute.xlu1 %11660  ;;  %v16900_v0 = vsel %vm379_vm0, %v9075_v42, %v19762_v8  ;;  %v16904_v52 = vsel %vm379_vm0, %v9076_v35, %v19763_v33  ;;  %v19768_v42 = vld [vmem:[#allocation176_spill] sm:$0xff] }
 0x503   : > { %11201 = vmatpush1.bf16.msra.mxu1 %v11200_v32 }
 0x504   : > { %11830 = vrot.lane.b32.xlu1 %v19766_v24, %s11912_s9  ;;  %9271 = vrot.lane.b32.xlu0 %v16738_v6, %s11918_s20  ;;  %v19769_v6 = vld [vmem:[#allocation184_spill] sm:$0xff]  ;;  %v16939_v33 = vpop.permute.xlu0 %11645 }
 0x505   : > { %11202 = vmatprep.subr.bf16.mxu1 %v19671_v48 }
 0x506   : > { %v11666_v53 = vpop.permute.xlu1 %11665 }
 0x507   : > { %v11668_v1 = vunpack.i.h.bf16 %v11666_v53  ;;  %v11667_v31 = vunpack.i.l.bf16 %v11666_v53  ;;  %v19774_v53 = vld [vmem:[#allocation191_spill] sm:$0xff] }
 0x508   : > { %9235 = vrot.lane.b32.xlu1 %v16677_v29, %s11920_s21  ;;  %v19771_v29 = vld [vmem:[#allocation150_spill] sm:$0xff]  ;;  %v16949_v3 = vpop.permute.xlu0 %11655 }
 0x509   : > { %v9077_v49 = vsel %vm8489_vm1, %v11667_v31, %v19767_v19  ;;  %v9078_v30 = vsel %vm8489_vm1, %v11668_v1, %v19768_v42  ;;  %v19773_v54 = vpack.i.bf16 %v19771_v29, %v19772_v44  ;;  %v19775_v1 = vld [vmem:[#allocation142_spill] sm:$0xff]  ;;  %v19778_v29 = vld [vmem:[#allocation28_spill] sm:$0xff] }
 0x50a   : > { %v16926_v35 = vsel %vm379_vm0, %v9077_v49, %v19769_v6  ;;  %v16930_v18 = vsel %vm379_vm0, %v9078_v30, %v19770_v57  ;;  %v16935_v8 = vpop.permute.xlu1 %11670  ;;  %v11293_v31 = vunpack.i.h.bf16 %v19775_v1  ;;  %v11292_v32 = vunpack.i.l.bf16 %v19775_v1  ;;  %v19776_v49 = vld [vmem:[#allocation20_spill] sm:$0xff]  ;;  %v19777_v57 = vld [vmem:[#allocation162_spill] sm:$0xff] }
 0x50b   : > { %v11308_v42 = vunpack.i.h.bf16 %v19776_v49  ;;  %v11307_v30 = vunpack.i.l.bf16 %v19776_v49  ;;  %v19779_v44 = vpack.i.bf16 %v19777_v57, %v19778_v29  ;;  %v11338_v1 = vunpack.i.h.bf16 %v19781_v39  ;;  %v19782_v49 = vld [vmem:[#allocation136_spill] sm:$0xff]  ;;  %v19784_v29 = vld [vmem:[#allocation165_spill] sm:$0xff] }
 0x50c   : > { %9239 = vrot.lane.b32.xlu1 %v16681_v5, %s11920_s21  ;;  %v9369_v5 = vld [vmem:[%s18150_s3 + $0x88] sm:$0xff]  ;;  %v8495_v58 = vsel %vm8489_vm1, %v19782_v49, %v11293_v31  ;;  %v8494_v57 = vsel %vm8489_vm1, %v19783_v26, %v11292_v32 }
 0x50d   : > { %v11203_v19 = vpack.c.bf16 %v9369_v5, %v9368_v55  ;;  %v11337_v55 = vunpack.i.l.bf16 %v19781_v39  ;;  %v16971_v5 = vpop.permute.xlu0 %11680  ;;  %v8502_v62 = vsel %vm379_vm0, %v8494_v57, %v11307_v30  ;;  %v11373_v39 = vunpack.i.h.bf16 %v19785_v2  ;;  %v19798_v57 = vld [vmem:[#allocation19_spill] sm:$0xff] }
 0x50e   : > { %v16945_v24 = vpop.permute.xlu1 %11675 }
 0x50f   : > { %11204 = vmatpush1.bf16.msra.mxu1 %v11203_v19  ;;  %v8503_v19 = vsel %vm379_vm0, %v8495_v58, %v11308_v42 }
 0x510   : > { %11855 = vrot.lane.b32.xlu1 %v19773_v54, %s11914_s14  ;;  %v19780_v54 = vld [vmem:[#allocation149_spill] sm:$0xff]  ;;  %11205 = vmatprep.subr.bf16.mxu1 %v19671_v48  ;;  %s11921_s14 = smov 64  }
 0x511   : > { %v11322_v63 = vunpack.i.l.bf16 %v19780_v54  ;;  %v19786_v48 = vld [vmem:[#allocation169_spill] sm:$0xff] }
 0x512   : > { %v16961_v6 = vpop.permute.xlu1 %11685  ;;  %v16992_v42 = vpop.permute.xlu0 %9201 }
 0x513   : > { %v8511_v49 = vsel %vm8506_vm2, %v8502_v62, %v11322_v63  ;;  %19787 = vst [vmem:[#allocation215_spill] sm:$0xff] %v16992_v42  ;;  %v19807_v42 = vld [vmem:[#allocation182_spill] sm:$0xff] }
 0x514   : > { %9211 = vrot.lane.b32.xlu1 %v19774_v53, %s11919_s19  ;;  %v11323_v53 = vunpack.i.h.bf16 %v19780_v54  ;;  %v11352_v54 = vunpack.i.l.bf16 %v19784_v29  ;;  %v8520_v32 = vsel %vm8515_vm3, %v8511_v49, %v11337_v55  ;;  %v19792_v55 = vld [vmem:[#allocation161_spill] sm:$0xff]  ;;  %v19794_v49 = vld [vmem:[#allocation164_spill] sm:$0xff] }
 0x516   : > { %v8512_v31 = vsel %vm8506_vm2, %v8503_v19, %v11323_v53  ;;  %v16990_v58 = vpop.permute.xlu1 %11690  ;;  %v8529_v2 = vsel %vm8524_vm4, %v8520_v32, %v11352_v54  ;;  %v19793_v19 = vld [vmem:[#allocation163_spill] sm:$0xff]  ;;  %v19797_v53 = vld [vmem:[#allocation168_spill] sm:$0xff]  ;;  %v19804_v32 = vld [vmem:[#allocation189_spill] sm:$0xff] }
 0x517   : > { %v8521_v26 = vsel %vm8515_vm3, %v8512_v31, %v11338_v1  ;;  %v17002_v63 = vsel %vm8533_vm5, %v8529_v2, %v11372_v51  ;;  %v19791_v1 = vld [vmem:[#allocation190_spill] sm:$0xff]  ;;  %v17014_v2 = vpop.permute.xlu0 %9199 }
 0x518   : > { %11865 = vrot.lane.b32.xlu1 %v19779_v44, %s11916_s10  ;;  %v11353_v44 = vunpack.i.h.bf16 %v19784_v29  ;;  %19790 = vst [vmem:[#allocation216_spill] sm:$0xff] %v17002_v63  ;;  %19796 = vst [vmem:[#allocation213_spill] sm:$0xff] %v17014_v2  ;;  %v19808_v63 = vld [vmem:[#allocation183_spill] sm:$0xff]  ;;  %s11922_s10 = smov 112  }
 0x51a   : > { %v8530_v30 = vsel %vm8524_vm4, %v8521_v26, %v11353_v44  ;;  %v17024_v60 = vpop.permute.xlu1 %11695  ;;  %v19802_v44 = vld [vmem:[#allocation21_spill] sm:$0xff] }
 0x51b   : > { %v16999_v62 = vsel %vm8533_vm5, %v8530_v30, %v11373_v39  ;;  %v19795_v39 = vld [vmem:[#allocation29_spill] sm:$0xff] }
 0x51c   : > { %8477 = vrot.lane.b32.xlu1 %v19786_v48, %s11917_s11  ;;  %v19788_v48 = vld [vmem:[#allocation159_spill] sm:$0xff]  ;;  %19789 = vst [vmem:[#allocation211_spill] sm:$0xff] %v16999_v62  ;;  %v19809_v62 = vld [vmem:[#allocation185_spill] sm:$0xff] }
 0x51d   : > { %v19813_v29 = vunpack.i.l.bf16 %v19788_v48 }
 0x51e   : > { %v17054_v10 = vpop.permute.xlu1 %11700 }
 0x520   : > { %9213 = vrot.lane.b32.xlu1 %v19791_v1, %s11919_s19  ;;  %v19801_v1 = vld [vmem:[#allocation25_spill] sm:$0xff]  ;;  %s11923_s19 = smov 80  }
 0x524   : > { %9277 = vrot.lane.b32.xlu1 %v16742_v22, %s11918_s20  ;;  %v19812_v22 = vunpack.i.h.bf16 %v19788_v48  ;;  %v19816_v48 = vunpack.i.h.bf16 %v19795_v39 }
 0x526   : > { %v17036_v21 = vpop.permute.xlu0 %11705  ;;  %v17074_v37 = vpop.permute.xlu1 %9233 }
 0x527   : > { %19811 = vst [vmem:[#allocation214_spill] sm:$0xff] %v17074_v37 }
 0x52a   : > { %v17056_v26 = vpop.permute.xlu0 %9203 }
 0x52b   : > { %19810 = vst [vmem:[#allocation217_spill] sm:$0xff] %v17056_v26  ;;  %v17096_v37 = vpop.permute.xlu1 %9231 }
 0x52c   : > { %19814 = vst [vmem:[#allocation218_spill] sm:$0xff] %v17096_v37 }
 0x52e   : > { %v11711_v54 = vpop.permute.xlu0 %11710 }
 0x52f   : > { %v11713_v26 = vunpack.i.h.bf16 %v11711_v54  ;;  %v11712_v45 = vunpack.i.l.bf16 %v11711_v54 }
 0x531   : > { %v9090_v40 = vsel %vm8506_vm2, %v16884_v46, %v11713_v26  ;;  %v9089_v2 = vsel %vm8506_vm2, %v16880_v4, %v11712_v45  ;;  %v19815_v4 = vunpack.i.l.bf16 %v19795_v39  ;;  %v19818_v39 = vunpack.i.h.bf16 %v19792_v55 }
 0x532   : > { %v9098_v51 = vsel %vm8515_vm3, %v9090_v40, %v19812_v22  ;;  %v9097_v14 = vsel %vm8515_vm3, %v9089_v2, %v19813_v29  ;;  %v11716_v31 = vpop.permute.xlu0 %11715  ;;  %v11708_v45 = vunpack.i.h.bf16 %v17036_v21 }
 0x533   : > { %v9105_v26 = vsel %vm8524_vm4, %v9097_v14, %v19815_v4  ;;  %v11718_v54 = vunpack.i.h.bf16 %v11716_v31  ;;  %v9106_v29 = vsel %vm8524_vm4, %v9098_v51, %v19816_v48  ;;  %v11717_v2 = vunpack.i.l.bf16 %v11716_v31 }
 0x534   : > { %v19817_v4 = vunpack.i.l.bf16 %v19800_v34  ;;  %v19820_v14 = vunpack.i.h.bf16 %v19797_v53 }
 0x535   : > { %v9092_v37 = vsel %vm8506_vm2, %v16904_v52, %v11718_v54  ;;  %v9091_v51 = vsel %vm8506_vm2, %v16900_v0, %v11717_v2  ;;  %v19819_v52 = vunpack.i.h.bf16 %v19800_v34  ;;  %v11707_v0 = vunpack.i.l.bf16 %v17036_v21 }
 0x536   : > { %v9113_v30 = vsel %vm8533_vm5, %v9105_v26, %v19817_v4  ;;  %v9100_v31 = vsel %vm8515_vm3, %v9092_v37, %v19818_v39  ;;  %v11721_v48 = vpop.permute.xlu0 %11720  ;;  %v11726_v22 = vpop.permute.xlu1 %11725  ;;  %v19821_v26 = vunpack.i.l.bf16 %v19792_v55  ;;  %v19822_v2 = vunpack.i.l.bf16 %v19797_v53 }
 0x537   : > { %v9114_v54 = vsel %vm8533_vm5, %v9106_v29, %v19819_v52  ;;  %v9108_v46 = vsel %vm8524_vm4, %v9100_v31, %v19820_v14  ;;  %v11723_v40 = vunpack.i.h.bf16 %v11721_v48  ;;  %v19823_v29 = vunpack.i.l.bf16 %v19802_v44 }
 0x538   : > { %v9099_v4 = vsel %vm8515_vm3, %v9091_v51, %v19821_v26  ;;  %v11728_v31 = vunpack.i.h.bf16 %v11726_v22  ;;  %v11727_v55 = vunpack.i.l.bf16 %v11726_v22  ;;  %v19824_v51 = vunpack.i.h.bf16 %v19802_v44 }
 0x539   : > { %v9107_v39 = vsel %vm8524_vm4, %v9099_v4, %v19822_v2  ;;  %v9121_v14 = vsel %vm8542_vm6, %v9113_v30, %v19823_v29  ;;  %v19825_v21 = vunpack.i.h.bf16 %v19801_v1  ;;  %v19826_v26 = vunpack.i.l.bf16 %v19801_v1 }
 0x53a   : > { %v9122_v52 = vsel %vm8542_vm6, %v9114_v54, %v19824_v51  ;;  %v11722_v2 = vunpack.i.l.bf16 %v11721_v48  ;;  %v17150_v37 = vpop.permute.xlu0 %11740  ;;  %v17152_v34 = vpop.permute.xlu1 %11730  ;;  %v11672_v30 = vunpack.i.l.bf16 %v16935_v8  ;;  %v11683_v44 = vunpack.i.h.bf16 %v16971_v5 }
 0x53b   : > { %v9116_v53 = vsel %vm8533_vm5, %v9108_v46, %v19825_v21  ;;  %v9115_v4 = vsel %vm8533_vm5, %v9107_v39, %v19826_v26  ;;  %v11678_v22 = vunpack.i.h.bf16 %v16945_v24  ;;  %v9088_v54 = vsel %vm8506_vm2, %v16868_v50, %v11708_v45 }
 0x53c   : > { %v9087_v1 = vsel %vm8506_vm2, %v16864_v16, %v11707_v0  ;;  %v19827_v46 = vunpack.i.l.bf16 %v19808_v63  ;;  %v9094_v39 = vsel %vm8506_vm2, %v16930_v18, %v11723_v40  ;;  %v9096_v29 = vsel %vm8515_vm3, %v9088_v54, %v11728_v31 }
 0x53d   : > { %v19828_v51 = vunpack.i.h.bf16 %v19808_v63  ;;  %v19829_v50 = vunpack.i.h.bf16 %v19805_v43  ;;  %v19830_v16 = vunpack.i.l.bf16 %v19805_v43  ;;  %v11677_v18 = vunpack.i.l.bf16 %v16945_v24 }
 0x53e   : > { %v9129_v48 = vsel %vm8551_vm7, %v9121_v14, %v19827_v46  ;;  %v9095_v14 = vsel %vm8515_vm3, %v9087_v1, %v11727_v55  ;;  %v9093_v40 = vsel %vm8506_vm2, %v16926_v35, %v11722_v2  ;;  %v19831_v63 = vunpack.i.h.bf16 %v19794_v49  ;;  %v17186_v26 = vpop.permute.xlu0 %9205  ;;  %v17188_v43 = vpop.permute.xlu1 %11735 }
 0x53f   : > { %v9130_v21 = vsel %vm8551_vm7, %v9122_v52, %v19828_v51  ;;  %v9124_v45 = vsel %vm8542_vm6, %v9116_v53, %v19829_v50  ;;  %v9123_v0 = vsel %vm8542_vm6, %v9115_v4, %v19830_v16  ;;  %v19832_v52 = vunpack.i.l.bf16 %v19794_v49 }
 0x540   : > { %v9104_v31 = vsel %vm8524_vm4, %v9096_v29, %v19831_v63  ;;  %v11688_v55 = vunpack.i.h.bf16 %v16961_v6  ;;  %v19833_v4 = vunpack.i.l.bf16 %v16687_v41  ;;  %v19834_v35 = vunpack.i.h.bf16 %v19793_v19 }
 0x541   : > { %v9103_v53 = vsel %vm8524_vm4, %v9095_v14, %v19832_v52  ;;  %v19835_v1 = vunpack.i.l.bf16 %v19799_v47  ;;  %v11687_v46 = vunpack.i.l.bf16 %v16961_v6  ;;  %v19836_v29 = vunpack.i.h.bf16 %v16687_v41  ;;  %v19895_v6 = vld [vmem:[#allocation135_spill] sm:$0xff] }
 0x542   : > { %v9137_v54 = vsel %vm8560_vm8, %v9129_v48, %v19833_v4  ;;  %v9102_v2 = vsel %vm8515_vm3, %v9094_v39, %v19834_v35  ;;  %v19837_v50 = vunpack.i.h.bf16 %v19809_v62  ;;  %v19838_v48 = vunpack.i.l.bf16 %v19809_v62 }
 0x543   : > { %v9111_v49 = vsel %vm8533_vm5, %v9103_v53, %v19835_v1  ;;  %v9138_v51 = vsel %vm8560_vm8, %v9130_v21, %v19836_v29  ;;  %v11693_v39 = vunpack.i.h.bf16 %v16990_v58  ;;  %v11692_v63 = vunpack.i.l.bf16 %v16990_v58  ;;  %v17228_v1 = vpop.permute.xlu0 %11755 }
 0x544   : > { %v9132_v16 = vsel %vm8551_vm7, %v9124_v45, %v19837_v50  ;;  %v9131_v14 = vsel %vm8551_vm7, %v9123_v0, %v19838_v48  ;;  %v19839_v52 = vunpack.i.l.bf16 %v19793_v19  ;;  %v19840_v41 = vunpack.i.h.bf16 %v19799_v47 }
 0x545   : > { %v11697_v4 = vunpack.i.l.bf16 %v17024_v60  ;;  %v19841_v45 = vunpack.i.h.bf16 %v19798_v57  ;;  %v19842_v0 = vunpack.i.l.bf16 %v19804_v32  ;;  %v19843_v58 = vunpack.i.l.bf16 %v16776_v56 }
 0x546   : > { %v9101_v53 = vsel %vm8515_vm3, %v9093_v40, %v19839_v52  ;;  %v9112_v21 = vsel %vm8533_vm5, %v9104_v31, %v19840_v41  ;;  %v17230_v40 = vpop.permute.xlu1 %11745  ;;  %v19844_v47 = vunpack.i.h.bf16 %v16703_v11  ;;  %v19845_v29 = vunpack.i.l.bf16 %v16703_v11 }
 0x547   : > { %v9110_v62 = vsel %vm8524_vm4, %v9102_v2, %v19841_v45  ;;  %v9119_v35 = vsel %vm8542_vm6, %v9111_v49, %v19842_v0  ;;  %v9145_v19 = vsel %vm8569_vm9, %v9137_v54, %v19843_v58  ;;  %v19846_v50 = vunpack.i.l.bf16 %v16728_v9  ;;  %v19852_v58 = vld [vmem:[#allocation186_spill] sm:$0xff] }
 0x548   : > { %v9140_v31 = vsel %vm8560_vm8, %v9132_v16, %v19844_v47  ;;  %v9139_v2 = vsel %vm8560_vm8, %v9131_v14, %v19845_v29  ;;  %v19847_v48 = vunpack.i.h.bf16 %v16776_v56  ;;  %v19848_v52 = vunpack.i.l.bf16 %v19798_v57 }
 0x549   : > { %v9146_v49 = vsel %vm8569_vm9, %v9138_v51, %v19846_v50  ;;  %v19849_v45 = vunpack.i.h.bf16 %v19804_v32  ;;  %v19850_v11 = vunpack.i.h.bf16 %v16728_v9  ;;  %v19851_v0 = vunpack.i.l.bf16 %v16804_v59 }
 0x54a   : > { %v9153_v54 = vsel %vm8578_vm10, %v9145_v19, %v19847_v48  ;;  %v9109_v41 = vsel %vm8524_vm4, %v9101_v53, %v19848_v52  ;;  %v19853_v56 = vunpack.i.h.bf16 %v19852_v58  ;;  %v19854_v57 = vunpack.i.l.bf16 %v19807_v42  ;;  %v17280_v52 = vpop.permute.xlu1 %11750 }
 0x54b   : > { %v9120_v16 = vsel %vm8542_vm6, %v9112_v21, %v19849_v45  ;;  %v9154_v14 = vsel %vm8578_vm10, %v9146_v49, %v19850_v11  ;;  %v9161_v51 = vsel %vm8587_vm11, %v9153_v54, %v19851_v0  ;;  %v19855_v32 = vunpack.i.h.bf16 %v16804_v59  ;;  %v17278_v54 = vpop.permute.xlu0 %11770 }
 0x54c   : > { %v9118_v19 = vsel %vm8533_vm5, %v9110_v62, %v19853_v56  ;;  %v9127_v53 = vsel %vm8551_vm7, %v9119_v35, %v19854_v57  ;;  %v19856_v9 = vunpack.i.l.bf16 %v16933_v61  ;;  %v19857_v29 = vunpack.i.h.bf16 %v16933_v61 }
 0x54d   : > { %v9162_v21 = vsel %vm8587_vm11, %v9154_v14, %v19855_v32  ;;  %v19858_v62 = vunpack.i.l.bf16 %v16820_v12  ;;  %v19859_v35 = vunpack.i.l.bf16 %v16744_v20  ;;  %v19860_v45 = vunpack.i.h.bf16 %v19807_v42 }
 0x54e   : > { %v9169_v47 = vsel %vm8596_vm12, %v9161_v51, %v19856_v9  ;;  %v9170_v50 = vsel %vm8596_vm12, %v9162_v21, %v19857_v29  ;;  %v19861_v11 = vunpack.i.h.bf16 %v16935_v8  ;;  %v19863_v51 = vld [vmem:[#allocation177_spill] sm:$0xff]  ;;  %v19865_v42 = vunpack.i.h.bf16 %v16744_v20 }
 0x54f   : > { %v9177_v49 = vsel %vm8605_vm13, %v9169_v47, %v11672_v30  ;;  %v9147_v48 = vsel %vm8569_vm9, %v9139_v2, %v19858_v62  ;;  %v9148_v59 = vsel %vm8569_vm9, %v9140_v31, %v19859_v35  ;;  %v9128_v61 = vsel %vm8551_vm7, %v9120_v16, %v19860_v45 }
 0x550   : > { %v9178_v30 = vsel %vm8605_vm13, %v9170_v50, %v19861_v11  ;;  %v9185_v14 = vsel %vm8614_vm14, %v9177_v49, %v11692_v63  ;;  %v19862_v2 = vunpack.i.h.bf16 %v16820_v12  ;;  %v19864_v31 = vunpack.i.h.bf16 %v19863_v51 }
 0x551   : > { %v9186_v57 = vsel %vm8614_vm14, %v9178_v30, %v11693_v39  ;;  %v9156_v16 = vsel %vm8578_vm10, %v9148_v59, %v19865_v42  ;;  %v19866_v8 = vunpack.i.l.bf16 %v16827_v38  ;;  %v19867_v63 = vunpack.i.l.bf16 %v16675_v25 }
 0x552   : > { %v9155_v0 = vsel %vm8578_vm10, %v9147_v48, %v19862_v2  ;;  %v9126_v56 = vsel %vm8542_vm6, %v9118_v19, %v19864_v31  ;;  %v11834_v21 = vpack.i.bf16 %v9186_v57, %v9185_v14  ;;  %v19868_v9 = vunpack.i.h.bf16 %v16827_v38  ;;  %v17319_v48 = vpop.permute.xlu0 %11780  ;;  %v17321_v38 = vpop.permute.xlu1 %9237  ;;  %v19875_v14 = vld [vmem:[#allocation199_spill] sm:$0xff] }
 0x553   : > { %v9163_v32 = vsel %vm8587_vm11, %v9155_v0, %v19866_v8  ;;  %v9135_v12 = vsel %vm8560_vm8, %v9127_v53, %v19867_v63  ;;  %v19869_v19 = vunpack.i.l.bf16 %v16939_v33  ;;  %v11698_v20 = vunpack.i.h.bf16 %v17024_v60 }
 0x554   : > { %v9164_v47 = vsel %vm8587_vm11, %v9156_v16, %v19868_v9  ;;  %v19870_v29 = vunpack.i.h.bf16 %v16675_v25  ;;  %v19871_v49 = vunpack.i.h.bf16 %v16939_v33  ;;  %v11703_v35 = vunpack.i.h.bf16 %v17054_v10  ;;  %11835 = vrot.lane.b32.xlu0 %v11834_v21, %s11921_s14 }
 0x555   : > { %v9171_v39 = vsel %vm8596_vm12, %v9163_v32, %v19869_v19  ;;  %v19872_v33 = vunpack.i.h.bf16 %v16666_v36  ;;  %v19874_v11 = vunpack.i.h.bf16 %v16701_v17  ;;  %v19876_v24 = vunpack.i.l.bf16 %v19875_v14 }
 0x556   : > { %v9136_v50 = vsel %vm8560_vm8, %v9128_v61, %v19870_v29  ;;  %v9172_v62 = vsel %vm8596_vm12, %v9164_v47, %v19871_v49  ;;  %v9179_v53 = vsel %vm8605_vm13, %v9171_v39, %v11677_v18  ;;  %v19873_v18 = vunpack.i.l.bf16 %v19852_v58  ;;  %v19878_v58 = vld [vmem:[#allocation200_spill] sm:$0xff]  ;;  %v11791_v21 = vpop.permute.xlu0 %11790  ;;  %v17359_v9 = vpop.permute.xlu1 %11760 }
 0x557   : > { %v9180_v25 = vsel %vm8605_vm13, %v9172_v62, %v11678_v22  ;;  %v9187_v60 = vsel %vm8614_vm14, %v9179_v53, %v11697_v4  ;;  %v9134_v59 = vsel %vm8551_vm7, %v9126_v56, %v19872_v33  ;;  %v9143_v22 = vsel %vm8569_vm9, %v9135_v12, %v19876_v24 }
 0x558   : > { %v9117_v45 = vsel %vm8533_vm5, %v9109_v41, %v19873_v18  ;;  %v9188_v61 = vsel %vm8614_vm14, %v9180_v25, %v11698_v20  ;;  %v9142_v30 = vsel %vm8560_vm8, %v9134_v59, %v19874_v11  ;;  %v11738_v4 = vunpack.i.h.bf16 %v17188_v43 }
 0x559   : > { %v11839_v2 = vpack.i.bf16 %v9188_v61, %v9187_v60  ;;  %v19877_v0 = vunpack.i.l.bf16 %v16834_v28  ;;  %v19879_v56 = vunpack.i.l.bf16 %v19878_v58  ;;  %v11737_v57 = vunpack.i.l.bf16 %v17188_v43 }
 0x55a   : > { %v19880_v42 = vunpack.i.h.bf16 %v16834_v28  ;;  %v19881_v8 = vunpack.i.h.bf16 %v19875_v14  ;;  %v19882_v63 = vunpack.i.h.bf16 %v19878_v58  ;;  %v11753_v47 = vunpack.i.h.bf16 %v17280_v52  ;;  %v11766_v24 = vpop.permute.xlu1 %11765  ;;  %v19894_v58 = vld [vmem:[#allocation137_spill] sm:$0xff] }
 0x55b   : > { %v9150_v31 = vsel %vm8569_vm9, %v9142_v30, %v19877_v0  ;;  %v9144_v41 = vsel %vm8569_vm9, %v9136_v50, %v19879_v56  ;;  %11840 = vrot.lane.b32.xlu0 %v11839_v2, %s11921_s14  ;;  %v19883_v43 = vunpack.i.h.bf16 %v16849_v27  ;;  %v19884_v19 = vunpack.i.l.bf16 %v16788_v15  ;;  %v19893_v0 = vld [vmem:[#allocation216_spill] sm:$0xff] }
 0x55c   : > { %v9158_v16 = vsel %vm8578_vm10, %v9150_v31, %v19880_v42  ;;  %v9151_v32 = vsel %vm8578_vm10, %v9143_v22, %v19881_v8  ;;  %v9152_v12 = vsel %vm8578_vm10, %v9144_v41, %v19882_v63  ;;  %v19885_v20 = vunpack.i.h.bf16 %v16788_v15 }
 0x55d   : > { %v9166_v28 = vsel %vm8587_vm11, %v9158_v16, %v19883_v43  ;;  %v9159_v39 = vsel %vm8587_vm11, %v9151_v32, %v19884_v19  ;;  %v11752_v50 = vunpack.i.l.bf16 %v17280_v52  ;;  %v19886_v49 = vunpack.i.h.bf16 %v16949_v3 }
 0x55e   : > { %v9160_v29 = vsel %vm8587_vm11, %v9152_v12, %v19885_v20  ;;  %v19887_v53 = vunpack.i.l.bf16 %v16836_v7  ;;  %v19888_v60 = vunpack.i.h.bf16 %v16836_v7  ;;  %v19889_v59 = vunpack.i.l.bf16 %v19863_v51 }
 0x55f   : > { %v9174_v62 = vsel %vm8596_vm12, %v9166_v28, %v19886_v49  ;;  %v19890_v18 = vunpack.i.l.bf16 %v16896_v13  ;;  %v19891_v11 = vunpack.i.h.bf16 %v16896_v13  ;;  %v11747_v7 = vunpack.i.l.bf16 %v17230_v40  ;;  %v19892_v13 = vld [vmem:[#allocation211_spill] sm:$0xff]  ;;  %v11776_v28 = vpop.permute.xlu1 %11775 }
 0x560   : > { %v9167_v25 = vsel %vm8596_vm12, %v9159_v39, %v19887_v53  ;;  %v9168_v33 = vsel %vm8596_vm12, %v9160_v29, %v19888_v60  ;;  %v9125_v15 = vsel %vm8542_vm6, %v9117_v45, %v19889_v59  ;;  %v9182_v52 = vsel %vm8605_vm13, %v9174_v62, %v11683_v44  ;;  %v17402_v45 = vpop.permute.xlu0 %9207  ;;  %v19899_v62 = vld [vmem:[#allocation140_spill] sm:$0xff] }
 0x561   : > { %v9175_v61 = vsel %vm8605_vm13, %v9167_v25, %v19890_v18  ;;  %v9176_v30 = vsel %vm8605_vm13, %v9168_v33, %v19891_v11  ;;  %v9190_v14 = vsel %vm8614_vm14, %v9182_v52, %v11703_v35  ;;  %v11597_v22 = vunpack.i.l.bf16 %v16773_v23 }
 0x562   : > { %v9183_v51 = vsel %vm8614_vm14, %v9175_v61, %v11687_v46  ;;  %v9184_v44 = vsel %vm8614_vm14, %v9176_v30, %v11688_v55  ;;  %v8548_v2 = vsel %vm8542_vm6, %v19892_v13, %v11738_v4  ;;  %v8547_v31 = vsel %vm8542_vm6, %v19893_v0, %v11737_v57  ;;  %9333 = vrot.lane.b32.xlu1 %v9190_v14, %s11921_s14  ;;  %v19902_v13 = vld [vmem:[#allocation156_spill] sm:$0xff]  ;;  %v19903_v0 = vld [vmem:[#allocation158_spill] sm:$0xff] }
 0x563   : > { %v11844_v35 = vpack.i.bf16 %v9184_v44, %v9183_v51  ;;  %v8497_v46 = vsel %vm8489_vm1, %v19894_v58, %v11753_v47  ;;  %v8496_v55 = vsel %vm8489_vm1, %v19895_v6, %v11752_v50  ;;  %v11768_v56 = vunpack.i.h.bf16 %v11766_v24  ;;  %v11786_v61 = vpop.permute.xlu1 %11785 }
 0x564   : > { %v11767_v41 = vunpack.i.l.bf16 %v11766_v24  ;;  %v11758_v42 = vunpack.i.h.bf16 %v17228_v1  ;;  %v11757_v16 = vunpack.i.l.bf16 %v17228_v1  ;;  %v11748_v4 = vunpack.i.h.bf16 %v17230_v40  ;;  %v11801_v43 = vpop.permute.xlu0 %11800 }
 0x565   : > { %11845 = vrot.lane.b32.xlu0 %v11844_v35, %s11921_s14  ;;  %v19896_v57 = vunpack.i.l.bf16 %v16666_v36  ;;  %v8556_v32 = vsel %vm8551_vm7, %v8547_v31, %v11747_v7  ;;  %v11783_v63 = vunpack.i.h.bf16 %v17319_v48  ;;  %v11782_v12 = vunpack.i.l.bf16 %v17319_v48  ;;  %v19898_v48 = vld [vmem:[#allocation138_spill] sm:$0xff] }
 0x566   : > { %v11793_v47 = vunpack.i.h.bf16 %v11791_v21  ;;  %v8504_v19 = vsel %vm379_vm0, %v8496_v55, %v11757_v16  ;;  %v8505_v1 = vsel %vm379_vm0, %v8497_v46, %v11758_v42  ;;  %v11778_v40 = vunpack.i.h.bf16 %v11776_v28 }
 0x567   : > { %v9133_v8 = vsel %vm8551_vm7, %v9125_v15, %v19896_v57  ;;  %v11777_v39 = vunpack.i.l.bf16 %v11776_v28  ;;  %v11792_v20 = vunpack.i.l.bf16 %v11791_v21  ;;  %v8513_v36 = vsel %vm8506_vm2, %v8504_v19, %v11767_v41  ;;  %v11796_v58 = vpop.permute.xlu1 %11795  ;;  %v19905_v57 = vld [vmem:[#allocation214_spill] sm:$0xff] }
 0x568   : > { %v8514_v29 = vsel %vm8506_vm2, %v8505_v1, %v11768_v56  ;;  %v19897_v50 = vunpack.i.l.bf16 %v16701_v17  ;;  %v19900_v53 = vpack.i.bf16 %v19898_v48, %v19899_v62  ;;  %v11762_v25 = vunpack.i.l.bf16 %v17359_v9  ;;  %v11816_v18 = vpop.permute.xlu0 %11815  ;;  %v19909_v48 = vld [vmem:[#allocation202_spill] sm:$0xff] }
 0x569   : > { %v8522_v60 = vsel %vm8515_vm3, %v8513_v36, %v11777_v39  ;;  %v8523_v33 = vsel %vm8515_vm3, %v8514_v29, %v11778_v40  ;;  %v11803_v59 = vunpack.i.h.bf16 %v11801_v43  ;;  %v11802_v15 = vunpack.i.l.bf16 %v11801_v43 }
 0x56a   : > { %v9141_v49 = vsel %vm8560_vm8, %v9133_v8, %v19897_v50  ;;  %11850 = vrot.lane.b32.xlu0 %v19900_v53, %s11910_s30  ;;  %v8531_v52 = vsel %vm8524_vm4, %v8522_v60, %v11792_v20  ;;  %v8532_v17 = vsel %vm8524_vm4, %v8523_v33, %v11793_v47  ;;  %v8557_v11 = vsel %vm8551_vm7, %v8548_v2, %v11782_v12  ;;  %v19906_v8 = vld [vmem:[#allocation215_spill] sm:$0xff]  ;;  %v19910_v33 = vld [vmem:[#allocation218_spill] sm:$0xff] }
 0x56b   : > { %v9149_v21 = vsel %vm8569_vm9, %v9141_v49, %v11597_v22  ;;  %v11763_v30 = vunpack.i.h.bf16 %v17359_v9  ;;  %v19901_v7 = vunpack.i.h.bf16 %v16773_v23  ;;  %v17447_v51 = vsel %vm8533_vm5, %v8531_v52, %v11802_v15  ;;  %v11806_v28 = vpop.permute.xlu1 %11805  ;;  %v19908_v50 = vld [vmem:[#allocation203_spill] sm:$0xff] }
 0x56c   : > { %v17450_v44 = vsel %vm8533_vm5, %v8532_v17, %v11803_v59  ;;  %v11622_v24 = vunpack.i.l.bf16 %v16849_v27  ;;  %v8565_v22 = vsel %vm8560_vm8, %v8556_v32, %v11748_v4  ;;  %v19904_v2 = vpack.i.bf16 %v19902_v13, %v19903_v0  ;;  %v9242_v35 = vpop.permute.xlu0 %9241  ;;  %v19914_v0 = vld [vmem:[#allocation167_spill] sm:$0xff] }
 0x56d   : > { %v9157_v14 = vsel %vm8578_vm10, %v9149_v21, %v19901_v7  ;;  %v8566_v9 = vsel %vm8560_vm8, %v8557_v11, %v11783_v63  ;;  %v8574_v23 = vsel %vm8569_vm9, %v8565_v22, %v11762_v25  ;;  %v11787_v31 = vunpack.i.l.bf16 %v11786_v61  ;;  %v19907_v63 = vld [vmem:[#allocation197_spill] sm:$0xff] }
 0x56e   : > { %11860 = vrot.lane.b32.xlu0 %v19904_v2, %s11915_s16  ;;  %v11772_v46 = vunpack.i.l.bf16 %v17278_v54  ;;  %v8575_v6 = vsel %vm8569_vm9, %v8566_v9, %v11763_v30  ;;  %v11788_v55 = vunpack.i.h.bf16 %v11786_v61  ;;  %v9165_v27 = vsel %vm8587_vm11, %v9157_v14, %v11622_v24  ;;  %v19911_v21 = vld [vmem:[#allocation213_spill] sm:$0xff]  ;;  %v19913_v24 = vld [vmem:[#allocation195_spill] sm:$0xff] }
 0x56f   : > { %v11657_v56 = vunpack.i.l.bf16 %v16949_v3  ;;  %v11773_v41 = vunpack.i.h.bf16 %v17278_v54  ;;  %v11798_v42 = vunpack.i.h.bf16 %v11796_v58  ;;  %v11797_v16 = vunpack.i.l.bf16 %v11796_v58  ;;  %v17492_v15 = vpop.permute.xlu1 %11810  ;;  %v19912_v30 = vld [vmem:[#allocation201_spill] sm:$0xff]  ;;  %v19915_v58 = vld [vmem:[#allocation207_spill] sm:$0xff] }
 0x570   : > { %v11682_v4 = vunpack.i.l.bf16 %v16971_v5  ;;  %v9288_v32 = vsel %vm8489_vm1, %v19906_v8, %v19905_v57  ;;  %v8583_v12 = vsel %vm8578_vm10, %v8574_v23, %v11772_v46  ;;  %v11818_v47 = vunpack.i.h.bf16 %v11816_v18  ;;  %v9266_v19 = vpop.permute.xlu0 %9265 }
 0x571   : > { %v8584_v43 = vsel %vm8578_vm10, %v8575_v6, %v11773_v41  ;;  %v8592_v3 = vsel %vm8587_vm11, %v8583_v12, %v11787_v31  ;;  %v9173_v54 = vsel %vm8596_vm12, %v9165_v27, %v11657_v56  ;;  %v11808_v1 = vunpack.i.h.bf16 %v11806_v28 }
 0x572   : > { %9243 = vrot.lane.b32.xlu0 %v19907_v63, %s11920_s21  ;;  %v8593_v5 = vsel %vm8587_vm11, %v8584_v43, %v11788_v55  ;;  %v11807_v40 = vunpack.i.l.bf16 %v11806_v28  ;;  %v9296_v39 = vsel %vm379_vm0, %v9288_v32, %v9266_v19  ;;  %v11817_v20 = vunpack.i.l.bf16 %v11816_v18  ;;  %v19918_v32 = vld [vmem:[#allocation151_spill] sm:$0xff]  ;;  %v19921_v19 = vld [vmem:[#allocation157_spill] sm:$0xff] }
 0x573   : > { %v8601_v36 = vsel %vm8596_vm12, %v8592_v3, %v11797_v16  ;;  %v8602_v29 = vsel %vm8596_vm12, %v8593_v5, %v11798_v42  ;;  %v17481_v49 = vsel %vm8506_vm2, %v9296_v39, %v19908_v50  ;;  %v9181_v62 = vsel %vm8605_vm13, %v9173_v54, %v11682_v4  ;;  %v17506_v7 = vpop.permute.xlu1 %11820  ;;  %v19916_v42 = vld [vmem:[#allocation206_spill] sm:$0xff]  ;;  %v19917_v4 = vld [vmem:[#allocation148_spill] sm:$0xff]  ;;  %v19920_v54 = vld [vmem:[#allocation145_spill] sm:$0xff] }
 0x574   : > { %v8610_v53 = vsel %vm8605_vm13, %v8601_v36, %v11807_v40  ;;  %v8611_v25 = vsel %vm8605_vm13, %v8602_v29, %v11808_v1  ;;  %v11702_v60 = vunpack.i.l.bf16 %v17054_v10  ;;  %v9287_v59 = vsel %vm8489_vm1, %v19911_v21, %v19910_v33  ;;  %v9264_v52 = vpop.permute.xlu0 %9263  ;;  %v19922_v1 = vld [vmem:[#allocation130_spill] sm:$0xff]  ;;  %v19924_v50 = vld [vmem:[#allocation131_spill] sm:$0xff]  ;;  %v19927_v21 = vld [vmem:[#allocation132_spill] sm:$0xff] }
 0x575   : > { %v17495_v17 = vsel %vm8614_vm14, %v8610_v53, %v11817_v20  ;;  %v17498_v18 = vsel %vm8614_vm14, %v8611_v25, %v11818_v47  ;;  %v9295_v61 = vsel %vm379_vm0, %v9287_v59, %v9264_v52  ;;  %v11283_v57 = vunpack.i.h.bf16 %v19917_v4  ;;  %v19919_v47 = vld [vmem:[#allocation143_spill] sm:$0xff]  ;;  %v19926_v25 = vld [vmem:[#allocation152_spill] sm:$0xff] }
 0x576   : > { %9275 = vrot.lane.b32.xlu0 %v19909_v48, %s11918_s20  ;;  %v9189_v11 = vsel %vm8614_vm14, %v9181_v62, %v11702_v60  ;;  %v9303_v10 = vsel %vm8506_vm2, %v9295_v61, %v19912_v30  ;;  %v11282_v8 = vunpack.i.l.bf16 %v19917_v4  ;;  %v11288_v63 = vunpack.i.h.bf16 %v19918_v32  ;;  %v19923_v20 = vld [vmem:[#allocation147_spill] sm:$0xff]  ;;  %v19925_v62 = vld [vmem:[#allocation133_spill] sm:$0xff] }
 0x577   : > { %10356 = vmatprep.mubr.msk.f32.mxu1 %vm8515_vm3, %v9303_v10  ;;  %v9210_v22 = vpop.permute.xlu1 %9209  ;;  %v11287_v12 = vunpack.i.l.bf16 %v19918_v32  ;;  %v11298_v43 = vunpack.i.h.bf16 %v19919_v47  ;;  %v11297_v3 = vunpack.i.l.bf16 %v19919_v47  ;;  %v11302_v28 = vunpack.i.l.bf16 %v19920_v54  ;;  %v19931_v32 = vld [vmem:[#allocation23_spill] sm:$0xff] }
 0x578   : > { %v17508_v14 = vpop.permute.xlu0 %9269  ;;  %v9292_v2 = vsel %vm8489_vm1, %v9210_v22, %v9242_v35  ;;  %v11313_v5 = vunpack.i.h.bf16 %v19921_v19  ;;  %v8491_v40 = vsel %vm8489_vm1, %v19922_v1, %v11283_v57  ;;  %v11312_v39 = vunpack.i.l.bf16 %v19921_v19  ;;  %v19934_v1 = vld [vmem:[#allocation160_spill] sm:$0xff] }
 0x579   : > { %v11318_v36 = vunpack.i.h.bf16 %v19923_v20  ;;  %v11317_v29 = vunpack.i.l.bf16 %v19923_v20  ;;  %v8490_v48 = vsel %vm8489_vm1, %v19924_v50, %v11282_v8  ;;  %v8493_v53 = vsel %vm8489_vm1, %v19925_v62, %v11288_v63 }
 0x57a   : > { %9331 = vrot.lane.b32.xlu0 %v9189_v11, %s11921_s14  ;;  %v11328_v60 = vunpack.i.h.bf16 %v19926_v25  ;;  %v11327_v33 = vunpack.i.l.bf16 %v19926_v25  ;;  %v8492_v59 = vsel %vm8489_vm1, %v19927_v21, %v11287_v12  ;;  %v8499_v52 = vsel %vm379_vm0, %v8491_v40, %v11298_v43  ;;  %v19928_v11 = vld [vmem:[#allocation155_spill] sm:$0xff]  ;;  %v19932_v43 = vld [vmem:[#allocation166_spill] sm:$0xff] }
 0x57b   : > { %v17517_v9 = vpop.permute.xlu1 %11825  ;;  %v8498_v61 = vsel %vm379_vm0, %v8490_v48, %v11297_v3  ;;  %v11333_v30 = vunpack.i.h.bf16 %v19928_v11  ;;  %v8508_v22 = vsel %vm8506_vm2, %v8499_v52, %v11313_v5  ;;  %v11358_v63 = vunpack.i.h.bf16 %v19931_v32  ;;  %v19936_v48 = vld [vmem:[#allocation174_spill] sm:$0xff] }
 0x57c   : > { %v17512_v13 = vpop.permute.xlu0 %9267  ;;  %v11357_v12 = vunpack.i.l.bf16 %v19931_v32  ;;  %v11363_v3 = vunpack.i.h.bf16 %v19932_v43  ;;  %v11388_v40 = vunpack.i.h.bf16 %v19934_v1  ;;  %v11432_v62 = vunpack.i.l.bf16 %v19936_v48 }
 0x57e   : > { %9245 = vrot.lane.b32.xlu0 %v19913_v24, %s11920_s21  ;;  %v8500_v24 = vsel %vm379_vm0, %v8492_v59, %v11302_v28  ;;  %s11924_s21 = smov 96  }
 0x57f   : > { %v17524_v6 = vpop.permute.xlu1 %11830 }
 0x580   : > { %v9274_v23 = vpop.permute.xlu0 %9273 }
 0x581   : > { %v9300_v31 = vsel %vm379_vm0, %v9292_v2, %v9274_v23  ;;  %v8507_v2 = vsel %vm8506_vm2, %v8498_v61, %v11312_v39  ;;  %v11387_v39 = vunpack.i.l.bf16 %v19934_v1 }
 0x582   : > { %8479 = vrot.lane.b32.xlu0 %v19914_v0, %s11917_s11  ;;  %v17522_v46 = vsel %vm8506_vm2, %v9300_v31, %v19915_v58  ;;  %v11332_v0 = vunpack.i.l.bf16 %v19928_v11  ;;  %v8509_v31 = vsel %vm8506_vm2, %v8500_v24, %v11317_v29  ;;  %v19929_v58 = vld [vmem:[#allocation24_spill] sm:$0xff]  ;;  %v19935_v29 = vld [vmem:[#allocation173_spill] sm:$0xff] }
 0x583   : > { %v17526_v55 = vpop.permute.xlu1 %9235  ;;  %v11422_v50 = vunpack.i.l.bf16 %v19935_v29  ;;  %v19938_v11 = vld [vmem:[#allocation181_spill] sm:$0xff] }
 0x584   : > { %v9272_v56 = vpop.permute.xlu0 %9271  ;;  %v8518_v47 = vsel %vm8515_vm3, %v8509_v31, %v11332_v0  ;;  %v11433_v31 = vunpack.i.h.bf16 %v19936_v48 }
 0x587   : > { %v9240_v27 = vpop.permute.xlu1 %9239 }
 0x588   : > { %v9291_v41 = vsel %vm8489_vm1, %v17402_v45, %v9240_v27  ;;  %v11303_v45 = vunpack.i.h.bf16 %v19920_v54  ;;  %v11343_v27 = vunpack.i.h.bf16 %v19929_v58  ;;  %v11362_v54 = vunpack.i.l.bf16 %v19932_v43 }
 0x589   : > { %v9299_v35 = vsel %vm379_vm0, %v9291_v41, %v9272_v56  ;;  %v8517_v56 = vsel %vm8515_vm3, %v8508_v22, %v11328_v60  ;;  %v8516_v41 = vsel %vm8515_vm3, %v8507_v2, %v11327_v33  ;;  %v19937_v33 = vld [vmem:[#allocation172_spill] sm:$0xff]  ;;  %v11423_v2 = vunpack.i.h.bf16 %v19935_v29 }
 0x58a   : > { %v17533_v16 = vsel %vm8506_vm2, %v9299_v35, %v19916_v42  ;;  %v8501_v10 = vsel %vm379_vm0, %v8493_v53, %v11303_v45  ;;  %v11342_v35 = vunpack.i.l.bf16 %v19929_v58  ;;  %v19930_v42 = vld [vmem:[#allocation27_spill] sm:$0xff]  ;;  %v19933_v45 = vld [vmem:[#allocation33_spill] sm:$0xff]  ;;  %v8526_v19 = vsel %vm8524_vm4, %v8517_v56, %v11343_v27 }
 0x58b   : > { %v8510_v23 = vsel %vm8506_vm2, %v8501_v10, %v11318_v36  ;;  %v11348_v4 = vunpack.i.h.bf16 %v19930_v42  ;;  %v11347_v8 = vunpack.i.l.bf16 %v19930_v42  ;;  %v11383_v28 = vunpack.i.h.bf16 %v19933_v45 }
 0x58c   : > { %v8519_v57 = vsel %vm8515_vm3, %v8510_v23, %v11333_v30  ;;  %v11382_v5 = vunpack.i.l.bf16 %v19933_v45  ;;  %v8525_v20 = vsel %vm8524_vm4, %v8516_v41, %v11342_v35  ;;  %v8535_v25 = vsel %vm8533_vm5, %v8526_v19, %v11358_v63  ;;  %v19939_v35 = vld [vmem:[#allocation178_spill] sm:$0xff]  ;;  %v19942_v45 = vld [vmem:[#allocation192_spill] sm:$0xff]  ;;  %v17619_v19 = vpop.permute.xlu1 %11855 }
 0x58d   : > { %v8528_v36 = vsel %vm8524_vm4, %v8519_v57, %v11348_v4  ;;  %v8527_v53 = vsel %vm8524_vm4, %v8518_v47, %v11347_v8  ;;  %v8534_v60 = vsel %vm8533_vm5, %v8525_v20, %v11357_v12  ;;  %v11437_v21 = vunpack.i.l.bf16 %v19937_v33  ;;  %v19940_v8 = vld [vmem:[#allocation193_spill] sm:$0xff]  ;;  %v19941_v12 = vld [vmem:[#allocation187_spill] sm:$0xff]  ;;  %v19944_v20 = vld [vmem:[#allocation196_spill] sm:$0xff] }
 0x58e   : > { %v8537_v59 = vsel %vm8533_vm5, %v8528_v36, %v11363_v3  ;;  %v8536_v52 = vsel %vm8533_vm5, %v8527_v53, %v11362_v54  ;;  %v8544_v61 = vsel %vm8542_vm6, %v8535_v25, %v11383_v28  ;;  %v11447_v30 = vunpack.i.l.bf16 %v19938_v11 }
 0x58f   : > { %v8543_v24 = vsel %vm8542_vm6, %v8534_v60, %v11382_v5  ;;  %v8546_v22 = vsel %vm8542_vm6, %v8537_v59, %v11388_v40  ;;  %v8545_v0 = vsel %vm8542_vm6, %v8536_v52, %v11387_v39  ;;  %v8553_v23 = vsel %vm8551_vm7, %v8544_v61, %v11422_v50  ;;  %v19943_v40 = vld [vmem:[#allocation188_spill] sm:$0xff] }
 0x590   : > { %v8552_v58 = vsel %vm8551_vm7, %v8543_v24, %v11432_v62  ;;  %v11438_v27 = vunpack.i.h.bf16 %v19937_v33  ;;  %v8555_v56 = vsel %vm8551_vm7, %v8546_v22, %v11437_v21  ;;  %v11448_v41 = vunpack.i.h.bf16 %v19938_v11  ;;  %v19945_v62 = vld [vmem:[#allocation209_spill] sm:$0xff]  ;;  %v19946_v21 = vld [vmem:[#allocation210_spill] sm:$0xff] }
 0x591   : > { %v11468_v42 = vunpack.i.h.bf16 %v19939_v35  ;;  %v11467_v4 = vunpack.i.l.bf16 %v19939_v35  ;;  %v8554_v57 = vsel %vm8551_vm7, %v8545_v0, %v11447_v30  ;;  %v11478_v32 = vunpack.i.h.bf16 %v19940_v8  ;;  %v19947_v22 = vld [vmem:[#allocation194_spill] sm:$0xff]  ;;  %v17644_v35 = vpop.permute.xlu1 %9211 }
 0x592   : > { %v11477_v63 = vunpack.i.l.bf16 %v19940_v8  ;;  %v11497_v47 = vunpack.i.l.bf16 %v19941_v12  ;;  %v8562_v3 = vsel %vm8560_vm8, %v8553_v23, %v11423_v2  ;;  %v11498_v54 = vunpack.i.h.bf16 %v19941_v12  ;;  %v19949_v8 = vld [vmem:[#allocation217_spill] sm:$0xff] }
 0x593   : > { %v11527_v28 = vunpack.i.l.bf16 %v19942_v45  ;;  %v8561_v5 = vsel %vm8560_vm8, %v8552_v58, %v11433_v31  ;;  %v8564_v1 = vsel %vm8560_vm8, %v8555_v56, %v11438_v27  ;;  %v11507_v39 = vunpack.i.l.bf16 %v19943_v40  ;;  %v19948_v58 = vld [vmem:[#allocation198_spill] sm:$0xff] }
 0x594   : > { %v11547_v36 = vunpack.i.l.bf16 %v19944_v20  ;;  %v8563_v29 = vsel %vm8560_vm8, %v8554_v57, %v11448_v41  ;;  %v8571_v50 = vsel %vm8569_vm9, %v8562_v3, %v11468_v42  ;;  %v8570_v48 = vsel %vm8569_vm9, %v8561_v5, %v11467_v4 }
 0x595   : > { %v11577_v53 = vunpack.i.l.bf16 %v19945_v62  ;;  %v8573_v25 = vsel %vm8569_vm9, %v8564_v1, %v11478_v32  ;;  %v8572_v60 = vsel %vm8569_vm9, %v8563_v29, %v11477_v63  ;;  %v8579_v33 = vsel %vm8578_vm10, %v8570_v48, %v11497_v47 }
 0x596   : > { %v11612_v59 = vunpack.i.l.bf16 %v19946_v21  ;;  %v8580_v52 = vsel %vm8578_vm10, %v8571_v50, %v11498_v54  ;;  %v11508_v61 = vunpack.i.h.bf16 %v19943_v40  ;;  %v11528_v11 = vunpack.i.h.bf16 %v19942_v45 }
 0x597   : > { %v8588_v30 = vsel %vm8587_vm11, %v8579_v33, %v11527_v28  ;;  %v8581_v24 = vsel %vm8578_vm10, %v8572_v60, %v11507_v39  ;;  %v11537_v0 = vunpack.i.l.bf16 %v19947_v22  ;;  %v11548_v2 = vunpack.i.h.bf16 %v19944_v20 }
 0x598   : > { %v8597_v23 = vsel %vm8596_vm12, %v8588_v30, %v11547_v36  ;;  %v11552_v27 = vunpack.i.l.bf16 %v19948_v58  ;;  %v11578_v56 = vunpack.i.h.bf16 %v19945_v62  ;;  %v11613_v4 = vunpack.i.h.bf16 %v19946_v21 }
 0x599   : > { %v8606_v41 = vsel %vm8605_vm13, %v8597_v23, %v11577_v53  ;;  %v9289_v32 = vsel %vm8489_vm1, %v19949_v8, %v17526_v55  ;;  %v8589_v63 = vsel %vm8587_vm11, %v8580_v52, %v11528_v11  ;;  %v11732_v12 = vunpack.i.l.bf16 %v17152_v34 }
 0x59a   : > { %v8615_v57 = vsel %vm8614_vm14, %v8606_v41, %v11612_v59  ;;  %v8582_v54 = vsel %vm8578_vm10, %v8573_v25, %v11508_v61  ;;  %v11538_v45 = vunpack.i.h.bf16 %v19947_v22  ;;  %v8590_v28 = vsel %vm8587_vm11, %v8581_v24, %v11537_v0  ;;  %v17670_v25 = vpop.permute.xlu1 %11865 }
 0x59b   : > { %v8598_v5 = vsel %vm8596_vm12, %v8589_v63, %v11548_v2  ;;  %v11553_v55 = vunpack.i.h.bf16 %v19948_v58  ;;  %v11813_v39 = vunpack.i.h.bf16 %v17492_v15  ;;  %v9297_v20 = vsel %vm379_vm0, %v9289_v32, %v17512_v13  ;;  %v19951_v58 = vld [vmem:[#allocation205_spill] sm:$0xff] }
 0x59c   : > { %v8607_v40 = vsel %vm8605_vm13, %v8598_v5, %v11578_v56  ;;  %v8599_v36 = vsel %vm8596_vm12, %v8590_v28, %v11552_v27  ;;  %v11742_v29 = vunpack.i.l.bf16 %v17150_v37  ;;  %v11733_v62 = vunpack.i.h.bf16 %v17152_v34  ;;  %v19950_v34 = vld [vmem:[#allocation204_spill] sm:$0xff] }
 0x59d   : > { %v8616_v48 = vsel %vm8614_vm14, %v8607_v40, %v11613_v4  ;;  %v8608_v53 = vsel %vm8605_vm13, %v8599_v36, %v11732_v12  ;;  %v8591_v33 = vsel %vm8587_vm11, %v8582_v54, %v11538_v45  ;;  %v11812_v21 = vunpack.i.l.bf16 %v17492_v15 }
 0x59e   : > { %v9305_v52 = vsel %vm8506_vm2, %v9297_v20, %v19950_v34  ;;  %v8550_v61 = vsel %vm8542_vm6, %v17450_v44, %v11813_v39  ;;  %v11822_v11 = vunpack.i.l.bf16 %v17506_v7  ;;  %v8617_v22 = vsel %vm8614_vm14, %v8608_v53, %v11742_v29  ;;  %v8478_v41 = vpop.permute.xlu1 %8477 }
 0x59f   : > { %v11823_v23 = vunpack.i.h.bf16 %v17506_v7  ;;  %v11827_v56 = vunpack.i.l.bf16 %v17517_v9  ;;  %v11857_v4 = vunpack.i.l.bf16 %v17619_v19  ;;  %v11858_v40 = vunpack.i.h.bf16 %v17619_v19 }
 0x5a0   : > { %v11867_v20 = vunpack.i.l.bf16 %v17670_v25  ;;  %vm9778_vm4 = vcmask 785408   ;;  %vm9787_vm5 = vcmask 916480  }
 0x5a2   : > { %v9214_v28 = vpop.permute.xlu1 %9213 }
 0x5c6   : > { %v17596_v10 = vpop.permute.xlu0 %11835 }
 0x5c7   : > { %v11837_v60 = vunpack.i.l.bf16 %v17596_v10  ;;  %v11838_v44 = vunpack.i.h.bf16 %v17596_v10  ;;  %v11828_v10 = vunpack.i.h.bf16 %v17517_v9 }
 0x5c9   : > { %v9346_v2 = vsel %vm9343_vm15, %v8617_v22, %v11837_v60 }
 0x5cd   : > { %v17614_v43 = vpop.permute.xlu0 %11840 }
 0x5ce   : > { %v11843_v5 = vunpack.i.h.bf16 %v17614_v43 }
 0x5d0   : > { %v9349_v29 = vsel %vm9343_vm15, %v17498_v18, %v11843_v5 }
 0x5d7   : > { %v11846_v31 = vpop.permute.xlu0 %11845 }
 0x5d8   : > { %v11847_v42 = vunpack.i.l.bf16 %v11846_v31  ;;  %v11848_v47 = vunpack.i.h.bf16 %v11846_v31 }
 0x5da   : > { %v9344_v3 = vsel %vm9343_vm15, %v8615_v57, %v11847_v42  ;;  %v9345_v13 = vsel %vm9343_vm15, %v8616_v48, %v11848_v47  ;;  %v11842_v57 = vunpack.i.l.bf16 %v17614_v43 }
 0x5db   : > { %9459 = vmatmul.mubr.f32.vlgmr.msra.gmra.mrb[158].mxu1 %v9344_v3  ;;  %v11833_v3 = vunpack.i.h.bf16 %v17524_v6 }
 0x5dc   : > { %v11851_v1 = vpop.permute.xlu0 %11850  ;;  %10357 = vmatprep.mubr.msk.f32.mxu1 %vm8515_vm3, %v17481_v49  ;;  %v9290_v49 = vsel %vm8489_vm1, %v17186_v26, %v17321_v38  ;;  %v8600_v26 = vsel %vm8596_vm12, %v8591_v33, %v11553_v55  ;;  %v11743_v38 = vunpack.i.h.bf16 %v17150_v37 }
 0x5dd   : > { %v11852_v50 = vunpack.i.l.bf16 %v11851_v1  ;;  %v9298_v30 = vsel %vm379_vm0, %v9290_v49, %v17508_v14  ;;  %v11853_v24 = vunpack.i.h.bf16 %v11851_v1  ;;  %v8609_v0 = vsel %vm8605_vm13, %v8600_v26, %v11733_v62  ;;  %v9278_v62 = vpop.permute.xlu1 %9277  ;;  %v19953_v49 = vld [vmem:[#allocation208_spill] sm:$0xff] }
 0x5de   : > { %v8549_v14 = vsel %vm8542_vm6, %v17447_v51, %v11812_v21  ;;  %v9306_v37 = vsel %vm8506_vm2, %v9298_v30, %v19951_v58  ;;  %v11832_v51 = vunpack.i.l.bf16 %v17524_v6  ;;  %v8618_v7 = vsel %vm8614_vm14, %v8609_v0, %v11743_v38 }
 0x5df   : > { %9464 = vmatmul.mubr.f32.gmra.mrb[160].mxu1 %v9345_v13  ;;  %v8559_v15 = vsel %vm8551_vm7, %v8550_v61, %v11852_v50  ;;  %v8558_v27 = vsel %vm8551_vm7, %v8549_v14, %v11822_v11  ;;  %v9347_v8 = vsel %vm9343_vm15, %v8618_v7, %v11838_v44  ;;  %v9348_v1 = vsel %vm9343_vm15, %v17495_v17, %v11842_v57 }
 0x5e0   : > { %v17679_v59 = vpop.permute.xlu0 %11860  ;;  %10358 = vmatprep.mubr.msk.f32.mxu1 %vm8515_vm3, %v9305_v52  ;;  %v8568_v42 = vsel %vm8560_vm8, %v8559_v15, %v11853_v24  ;;  %v8567_v32 = vsel %vm8560_vm8, %v8558_v27, %v11823_v23 }
 0x5e1   : > { %v8577_v63 = vsel %vm8569_vm9, %v8568_v42, %v11828_v10  ;;  %v11862_v12 = vunpack.i.l.bf16 %v17679_v59  ;;  %v8576_v9 = vsel %vm8569_vm9, %v8567_v32, %v11827_v56  ;;  %v11863_v36 = vunpack.i.h.bf16 %v17679_v59  ;;  %v9334_v52 = vpop.permute.xlu1 %9333 }
 0x5e2   : > { %v8585_v54 = vsel %vm8578_vm10, %v8576_v9, %v11832_v51  ;;  %v8586_v55 = vsel %vm8578_vm10, %v8577_v63, %v11833_v3 }
 0x5e3   : > { %9469 = vmatmul.mubr.f32.gmra.mrb[162].mxu1 %v9346_v2  ;;  %v8594_v45 = vsel %vm8587_vm11, %v8585_v54, %v11857_v4  ;;  %v8595_v17 = vsel %vm8587_vm11, %v8586_v55, %v11858_v40 }
 0x5e4   : > { %v9244_v31 = vpop.permute.xlu0 %9243  ;;  %10359 = vmatprep.mubr.msk.f32.mxu1 %vm8515_vm3, %v9306_v37  ;;  %v8603_v39 = vsel %vm8596_vm12, %v8594_v45, %v11862_v12  ;;  %v8604_v60 = vsel %vm8596_vm12, %v8595_v17, %v11863_v36  ;;  %v9797_v37 = vld [vmem:[%s18152_s5 + $0x8] sm:$0xff] }
 0x5e5   : > { %v9293_v6 = vsel %vm8489_vm1, %v17644_v35, %v9244_v31  ;;  %v8612_v19 = vsel %vm8605_vm13, %v8603_v39, %v11867_v20  ;;  %v19952_v35 = vld [vmem:[#allocation212_spill] sm:$0xff] }
 0x5e6   : > { %v8621_v13 = vsel %vm8614_vm14, %v8612_v19, %v8478_v41 }
 0x5e7   : > { %9474 = vmatmul.mubr.f32.gmra.mrb[164].mxu1 %v9347_v8 }
 0x5e8   : > { %v9276_v47 = vpop.permute.xlu0 %9275  ;;  %10360 = vmatprep.mubr.msk.f32.mxu1 %vm8515_vm3, %v17533_v16 }
 0x5e9   : > { %v9301_v43 = vsel %vm379_vm0, %v9293_v6, %v9276_v47 }
 0x5ea   : > { %v9309_v48 = vsel %vm8506_vm2, %v9301_v43, %v19952_v35 }
 0x5eb   : > { %9479 = vmatmul.mubr.f32.gmra.mrb[166].mxu1 %v9348_v1 }
 0x5ec   : > { %v9332_v16 = vpop.permute.xlu0 %9331  ;;  %10361 = vmatprep.mubr.msk.f32.mxu1 %vm8515_vm3, %v17522_v46  ;;  %v11868_v46 = vunpack.i.h.bf16 %v17670_v25 }
 0x5ed   : > { %v9350_v18 = vsel %vm9343_vm15, %v8621_v13, %v9332_v16 }
 0x5ee   : > { %v8613_v59 = vsel %vm8605_vm13, %v8604_v60, %v11868_v46 }
 0x5ef   : > { %9484 = vmatmul.mubr.f32.gmra.mrb[168].mxu1 %v9349_v29 }
 0x5f0   : > { %v9246_v50 = vpop.permute.xlu0 %9245  ;;  %10362 = vmatprep.mubr.msk.f32.mxu1 %vm8515_vm3, %v9309_v48 }
 0x5f1   : > { %v9294_v53 = vsel %vm8489_vm1, %v9214_v28, %v9246_v50  ;;  %vm9509_vm1 = vcmask 1040384  }
 0x5f2   : > { %v9302_v33 = vsel %vm379_vm0, %v9294_v53, %v9278_v62  ;;  %vm9543_vm0 = vcmask 1046528  }
 0x5f3   : > { %v9310_v21 = vsel %vm8506_vm2, %v9302_v33, %v19953_v49  ;;  %9489 = vmatmul.mubr.f32.gmra.mrb[170].mxu1 %v9350_v18  ;;  %vm9769_vm2 = vcmask 654336  }
 0x5f4   : > { %v8480_v34 = vpop.permute.xlu0 %8479  ;;  %10363 = vmatprep.mubr.msk.f32.mxu1 %vm8515_vm3, %v9310_v21  ;;  %v9828_v21 = vld [vmem:[%s18151_s4] sm:$0xff] }
 0x5f5   : > { %v8622_v61 = vsel %vm8614_vm14, %v8613_v59, %v8480_v34  ;;  %v9829_v59 = vld [vmem:[%s18151_s4 + $0x8] sm:$0xff] }
 0x5f6   : > { %v9351_v25 = vsel %vm9343_vm15, %v8622_v61, %v9334_v52  ;;  %v11206_v34 = vpack.c.bf16 %v9829_v59, %v9828_v21  ;;  %v19954_v52 = vmov 0.0|0.0   ;;  %v9830_v61 = vld [vmem:[%s18151_s4 + $0x10] sm:$0xff] }
 0x5f7   : > { %9494 = vmatmul.mubr.f32.gmra.mrb[172].mxu1 %v9351_v25  ;;  %v9831_v25 = vld [vmem:[%s18151_s4 + $0x18] sm:$0xff] }
 0x5f8   : > { %11207 = vmatpush1.bf16.msra.mxu1 %v11206_v34 }
 0x5f9   : > { %11208 = vmatprep.subr.bf16.mxu1 %v19954_v52 }
 0x6ae   : > { %v9460_v11 = vpop.f32.mrb[158].mxu1 }
 0x6af   : > { %v17752_v30 = vmax.f32 %v9460_v11, 0.0  ;;  %v9462_v24 = vpop.f32.mrb[159].mxu1  ;;  %v11209_v11 = vpack.c.bf16 %v9831_v25, %v9830_v61 }
 0x6b0   : > { %v9832_v24 = vld [vmem:[%s18151_s4 + $0x20] sm:$0xff] }
 0x6b1   : > { %9569 = vrot.lane.b32.xlu0 %v17752_v30, %s11906_s26  ;;  %9641 = vrot.lane.b32.xlu1 %v17752_v30, %s11921_s14  ;;  %v9544_v22 = vrot.slane %v17752_v30, 1  ;;  %v9521_v41 = vrot.slane %v17752_v30, 7 }
 0x6b2   : > { %v9465_v26 = vpop.f32.mrb[160].mxu1  ;;  %11210 = vmatpush1.bf16.msra.mxu1 %v11209_v11 }
 0x6b3   : > { %v9500_v38 = vmax.f32 %v9465_v26, 0.0  ;;  %v9467_v15 = vpop.f32.mrb[161].mxu1  ;;  %11211 = vmatprep.subr.bf16.mxu1 %v19954_v52  ;;  %v9833_v26 = vld [vmem:[%s18151_s4 + $0x28] sm:$0xff] }
 0x6b4   : > { %v9834_v15 = vld [vmem:[%s18151_s4 + $0x30] sm:$0xff] }
 0x6b5   : > { %9643 = vrot.lane.b32.xlu0 %v9500_v38, %s11921_s14  ;;  %9713 = vrot.lane.b32.xlu1 %v9500_v38, %s11922_s10  ;;  %v9545_v0 = vrot.slane %v9500_v38, 1  ;;  %v9522_v31 = vrot.slane %v9500_v38, 7 }
 0x6b6   : > { %v9470_v44 = vpop.f32.mrb[162].mxu1 }
 0x6b7   : > { %v9501_v2 = vmax.f32 %v9470_v44, 0.0  ;;  %v9472_v14 = vpop.f32.mrb[163].mxu1  ;;  %v17764_v23 = vsel %vm9543_vm0, %v9544_v22, %v9545_v0  ;;  %v17778_v4 = vsel %vm9509_vm1, %v9521_v41, %v9522_v31  ;;  %v9836_v44 = vld [vmem:[%s18151_s4 + $0x40] sm:$0xff] }
 0x6b9   : > { %v9547_v58 = vrot.slane %v9501_v2, 1  ;;  %9571 = vrot.lane.b32.xlu1 %v9500_v38, %s11906_s26  ;;  %9594 = vrot.lane.b32.xlu0 %v17764_v23, %s11910_s30  ;;  %v9524_v27 = vrot.slane %v9501_v2, 7  ;;  %v11212_v38 = vpack.c.bf16 %v9833_v26, %v9832_v24 }
 0x6ba   : > { %v9475_v56 = vpop.f32.mrb[164].mxu1 }
 0x6bb   : > { %v9502_v42 = vmax.f32 %v9475_v56, 0.0  ;;  %v9477_v10 = vpop.f32.mrb[165].mxu1  ;;  %v9548_v51 = vsel %vm9543_vm0, %v9545_v0, %v9547_v58  ;;  %v17775_v7 = vsel %vm9509_vm1, %v9522_v31, %v9524_v27  ;;  %11213 = vmatpush1.bf16.msra.mxu1 %v11212_v38  ;;  %v9838_v31 = vld [vmem:[%s18151_s4 + $0x50] sm:$0xff]  ;;  %v9841_v56 = vld [vmem:[%s18151_s4 + $0x68] sm:$0xff] }
 0x6bc   : > { %v9813_v57 = vmul.f32 %v9797_v37, %v9548_v51  ;;  %11214 = vmatprep.subr.bf16.mxu1 %v19954_v52  ;;  %v9843_v10 = vld [vmem:[%s18151_s4 + $0x78] sm:$0xff] }
 0x6bd   : > { %9665 = vrot.lane.b32.xlu1 %v17764_v23, %s11923_s19  ;;  %9619 = vrot.lane.b32.xlu0 %v17778_v4, %s11915_s16  ;;  %v9549_v8 = vrot.slane %v9502_v42, 1  ;;  %v9526_v32 = vrot.slane %v9502_v42, 7 }
 0x6be   : > { %v9480_v63 = vpop.f32.mrb[166].mxu1  ;;  %10365 = vmatprep.mubr.msk.f32.mxu1 %vm8515_vm3, %v9813_v57  ;;  %v9844_v57 = vld [vmem:[%s18151_s4 + $0x80] sm:$0xff] }
 0x6bf   : > { %v17785_v12 = vmax.f32 %v9480_v63, 0.0  ;;  %v9482_v47 = vpop.f32.mrb[167].mxu1  ;;  %v17788_v9 = vsel %vm9543_vm0, %v9547_v58, %v9549_v8  ;;  %v17791_v3 = vsel %vm9509_vm1, %v9524_v27, %v9526_v32  ;;  %v9839_v58 = vld [vmem:[%s18151_s4 + $0x58] sm:$0xff]  ;;  %v9840_v27 = vld [vmem:[%s18151_s4 + $0x60] sm:$0xff] }
 0x6c0   : > { %v11221_v37 = vpack.c.bf16 %v9839_v58, %v9838_v31 }
 0x6c1   : > { %9689 = vrot.lane.b32.xlu1 %v17778_v4, %s11924_s21  ;;  %9715 = vrot.lane.b32.xlu0 %v9501_v2, %s11922_s10  ;;  %v9551_v54 = vrot.slane %v17785_v12, 1  ;;  %v9528_v45 = vrot.slane %v17785_v12, 7 }
 0x6c2   : > { %v9485_v28 = vpop.f32.mrb[168].mxu1 }
 0x6c3   : > { %v17798_v5 = vmax.f32 %v9485_v28, 0.0  ;;  %v9487_v1 = vpop.f32.mrb[169].mxu1  ;;  %v17801_v55 = vsel %vm9543_vm0, %v9549_v8, %v9551_v54  ;;  %v17804_v40 = vsel %vm9509_vm1, %v9526_v32, %v9528_v45  ;;  %v9845_v8 = vld [vmem:[%s18151_s4 + $0x88] sm:$0xff] }
 0x6c4   : > { %v11230_v32 = vpack.c.bf16 %v9845_v8, %v9844_v57 }
 0x6c5   : > { %9645 = vrot.lane.b32.xlu1 %v9501_v2, %s11921_s14  ;;  %9573 = vrot.lane.b32.xlu0 %v9501_v2, %s11906_s26  ;;  %v9553_v39 = vrot.slane %v17798_v5, 1  ;;  %v9530_v6 = vrot.slane %v17798_v5, 7  ;;  %v9837_v2 = vld [vmem:[%s18151_s4 + $0x48] sm:$0xff] }
 0x6c6   : > { %v9490_v16 = vpop.f32.mrb[170].mxu1  ;;  %v11218_v14 = vpack.c.bf16 %v9837_v2, %v9836_v44 }
 0x6c7   : > { %v17810_v20 = vmax.f32 %v9490_v16, 0.0  ;;  %v9492_v36 = vpop.f32.mrb[171].mxu1  ;;  %v17813_v43 = vsel %vm9543_vm0, %v9551_v54, %v9553_v39  ;;  %v17816_v17 = vsel %vm9509_vm1, %v9528_v45, %v9530_v6 }
 0x6c9   : > { %9596 = vrot.lane.b32.xlu1 %v9548_v51, %s11910_s30  ;;  %9667 = vrot.lane.b32.xlu0 %v9548_v51, %s11923_s19  ;;  %v9555_v19 = vrot.slane %v17810_v20, 1  ;;  %v9510_v29 = vrot.slane %v17810_v20, 7 }
 0x6ca   : > { %v9495_v50 = vpop.f32.mrb[172].mxu1 }
 0x6cb   : > { %v17822_v35 = vmax.f32 %v9495_v50, 0.0  ;;  %v9497_v48 = vpop.f32.mrb[173].mxu1  ;;  %v17825_v62 = vsel %vm9543_vm0, %v9553_v39, %v9555_v19  ;;  %v17828_v53 = vsel %vm9509_vm1, %v9530_v6, %v9510_v29 }
 0x6cd   : > { %9621 = vrot.lane.b32.xlu1 %v17775_v7, %s11915_s16  ;;  %9691 = vrot.lane.b32.xlu0 %v17775_v7, %s11924_s21  ;;  %v9541_v60 = vrot.slane %v17822_v35, 1  ;;  %v9511_v46 = vrot.slane %v17822_v35, 7 }
 0x6cf   : > { %v17839_v13 = vsel %vm9543_vm0, %v9541_v60, %v9544_v22  ;;  %v17842_v33 = vsel %vm9509_vm1, %v9511_v46, %v9521_v41  ;;  %v17845_v18 = vsel %vm9543_vm0, %v9555_v19, %v9541_v60  ;;  %v17848_v49 = vsel %vm9509_vm1, %v9510_v29, %v9511_v46  ;;  %v9835_v22 = vld [vmem:[%s18151_s4 + $0x38] sm:$0xff] }
 0x6d0   : > { %v11215_v0 = vpack.c.bf16 %v9835_v22, %v9834_v15  ;;  %v11224_v41 = vpack.c.bf16 %v9841_v56, %v9840_v27 }
 0x6d1   : > { %9647 = vrot.lane.b32.xlu0 %v9502_v42, %s11921_s14  ;;  %9717 = vrot.lane.b32.xlu1 %v9502_v42, %s11922_s10 }
 0x6d2   : > { %11216 = vmatpush1.bf16.msra.mxu1 %v11215_v0 }
 0x6d3   : > { %11217 = vmatprep.subr.bf16.mxu1 %v19954_v52 }
 0x6d5   : > { %9575 = vrot.lane.b32.xlu1 %v9502_v42, %s11906_s26  ;;  %9598 = vrot.lane.b32.xlu0 %v17788_v9, %s11910_s30  ;;  %v9842_v42 = vld [vmem:[%s18151_s4 + $0x70] sm:$0xff] }
 0x6d6   : > { %11219 = vmatpush1.bf16.msra.mxu1 %v11218_v14  ;;  %v11227_v51 = vpack.c.bf16 %v9843_v10, %v9842_v42 }
 0x6d7   : > { %11220 = vmatprep.subr.bf16.mxu1 %v19954_v52 }
 0x6d9   : > { %9669 = vrot.lane.b32.xlu1 %v17788_v9, %s11923_s19  ;;  %9623 = vrot.lane.b32.xlu0 %v17791_v3, %s11915_s16 }
 0x6da   : > { %11222 = vmatpush1.bf16.msra.mxu1 %v11221_v37 }
 0x6db   : > { %11223 = vmatprep.subr.bf16.mxu1 %v19954_v52 }
 0x6dd   : > { %9693 = vrot.lane.b32.xlu1 %v17791_v3, %s11924_s21  ;;  %9719 = vrot.lane.b32.xlu0 %v17785_v12, %s11922_s10 }
 0x6de   : > { %11225 = vmatpush1.bf16.msra.mxu1 %v11224_v41 }
 0x6df   : > { %11226 = vmatprep.subr.bf16.mxu1 %v19954_v52 }
 0x6e1   : > { %9649 = vrot.lane.b32.xlu1 %v17785_v12, %s11921_s14  ;;  %9577 = vrot.lane.b32.xlu0 %v17785_v12, %s11906_s26 }
 0x6e2   : > { %11228 = vmatpush1.bf16.msra.mxu1 %v11227_v51 }
 0x6e3   : > { %11229 = vmatprep.subr.bf16.mxu1 %v19954_v52 }
 0x6e5   : > { %9600 = vrot.lane.b32.xlu1 %v17801_v55, %s11910_s30  ;;  %9671 = vrot.lane.b32.xlu0 %v17801_v55, %s11923_s19 }
 0x6e6   : > { %11231 = vmatpush1.bf16.msra.mxu1 %v11230_v32 }
 0x6e9   : > { %9625 = vrot.lane.b32.xlu1 %v17804_v40, %s11915_s16  ;;  %9695 = vrot.lane.b32.xlu0 %v17804_v40, %s11924_s21 }
 0x6ed   : > { %9651 = vrot.lane.b32.xlu0 %v17798_v5, %s11921_s14  ;;  %9721 = vrot.lane.b32.xlu1 %v17798_v5, %s11922_s10 }
 0x6f1   : > { %9602 = vrot.lane.b32.xlu0 %v17813_v43, %s11910_s30  ;;  %9673 = vrot.lane.b32.xlu1 %v17813_v43, %s11923_s19 }
 0x6f5   : > { %9627 = vrot.lane.b32.xlu0 %v17816_v17, %s11915_s16  ;;  %9697 = vrot.lane.b32.xlu1 %v17816_v17, %s11924_s21 }
 0x6f9   : > { %9567 = vrot.lane.b32.xlu0 %v17822_v35, %s11906_s26  ;;  %9592 = vrot.lane.b32.xlu1 %v17839_v13, %s11910_s30 }
 0x6fd   : > { %9579 = vrot.lane.b32.xlu1 %v17798_v5, %s11906_s26  ;;  %9617 = vrot.lane.b32.xlu0 %v17842_v33, %s11915_s16 }
 0x701   : > { %9604 = vrot.lane.b32.xlu1 %v17825_v62, %s11910_s30  ;;  %9675 = vrot.lane.b32.xlu0 %v17825_v62, %s11923_s19 }
 0x705   : > { %9629 = vrot.lane.b32.xlu1 %v17828_v53, %s11915_s16  ;;  %9699 = vrot.lane.b32.xlu0 %v17828_v53, %s11924_s21 }
 0x709   : > { %9653 = vrot.lane.b32.xlu1 %v17810_v20, %s11921_s14  ;;  %9723 = vrot.lane.b32.xlu0 %v17810_v20, %s11922_s10 }
 0x70d   : > { %9725 = vrot.lane.b32.xlu1 %v17822_v35, %s11922_s10  ;;  %9581 = vrot.lane.b32.xlu0 %v17810_v20, %s11906_s26 }
 0x711   : > { %9677 = vrot.lane.b32.xlu1 %v17845_v18, %s11923_s19  ;;  %9655 = vrot.lane.b32.xlu0 %v17822_v35, %s11921_s14 }
 0x715   : > { %9606 = vrot.lane.b32.xlu0 %v17845_v18, %s11910_s30  ;;  %9701 = vrot.lane.b32.xlu1 %v17848_v49, %s11924_s21 }
 0x719   : > { %9631 = vrot.lane.b32.xlu0 %v17848_v49, %s11915_s16  ;;  %9679 = vrot.lane.b32.xlu1 %v17839_v13, %s11923_s19 }
 0x71d   : > { %9703 = vrot.lane.b32.xlu0 %v17842_v33, %s11924_s21  ;;  %9727 = vrot.lane.b32.xlu1 %v17752_v30, %s11922_s10 }
 0x723   : > { %v9570_v63 = vpop.permute.xlu0 %9569  ;;  %v9642_v12 = vpop.permute.xlu1 %9641 }
 0x724   : > { %v9738_v47 = vsel %vm8515_vm3, %v17842_v33, %v9570_v63 }
 0x727   : > { %v9644_v54 = vpop.permute.xlu0 %9643  ;;  %v9714_v45 = vpop.permute.xlu1 %9713 }
 0x72b   : > { %v9572_v28 = vpop.permute.xlu1 %9571  ;;  %v9595_v5 = vpop.permute.xlu0 %9594 }
 0x72c   : > { %v9746_v1 = vsel %vm8551_vm7, %v9738_v47, %v9595_v5  ;;  %v9739_v48 = vsel %vm8515_vm3, %v17778_v4, %v9572_v28  ;;  %v9796_v5 = vld [vmem:[%s18152_s5] sm:$0xff] }
 0x72f   : > { %v9666_v39 = vpop.permute.xlu1 %9665  ;;  %v9620_v6 = vpop.permute.xlu0 %9619 }
 0x730   : > { %v9754_v16 = vsel %vm8587_vm11, %v9746_v1, %v9620_v6  ;;  %v9799_v6 = vld [vmem:[%s18152_s5 + $0x18] sm:$0xff] }
 0x731   : > { %v9762_v20 = vsel %vm9343_vm15, %v9754_v16, %v9644_v54 }
 0x733   : > { %v9690_v36 = vpop.permute.xlu1 %9689  ;;  %v9716_v19 = vpop.permute.xlu0 %9715 }
 0x737   : > { %v9646_v30 = vpop.permute.xlu1 %9645  ;;  %v9574_v29 = vpop.permute.xlu0 %9573 }
 0x73b   : > { %v9597_v50 = vpop.permute.xlu1 %9596  ;;  %v9668_v35 = vpop.permute.xlu0 %9667 }
 0x73c   : > { %v9747_v60 = vsel %vm8551_vm7, %v9739_v48, %v9597_v50  ;;  %v9771_v46 = vsel %vm9769_vm2, %v9762_v20, %v9668_v35  ;;  %v9815_v35 = vmul.f32 %v9799_v6, %v17788_v9  ;;  %v9809_v6 = vld [vmem:[%s18152_s5 + $0x68] sm:$0xff] }
 0x73f   : > { %v9622_v33 = vpop.permute.xlu1 %9621  ;;  %v9692_v21 = vpop.permute.xlu0 %9691 }
 0x740   : > { %v9755_v59 = vsel %vm8587_vm11, %v9747_v60, %v9622_v33  ;;  %v9780_v34 = vsel %vm9778_vm4, %v9771_v46, %v9692_v21  ;;  %v9801_v60 = vld [vmem:[%s18152_s5 + $0x28] sm:$0xff] }
 0x741   : > { %v9789_v52 = vsel %vm9787_vm5, %v9780_v34, %v9716_v19  ;;  %v9763_v61 = vsel %vm9343_vm15, %v9755_v59, %v9646_v30  ;;  %v9740_v19 = vsel %vm8515_vm3, %v17775_v7, %v9574_v29  ;;  %v9817_v59 = vmul.f32 %v9801_v60, %v17801_v55  ;;  %v9800_v34 = vld [vmem:[%s18152_s5 + $0x20] sm:$0xff] }
 0x743   : > { %v9648_v25 = vpop.permute.xlu0 %9647  ;;  %v9718_v11 = vpop.permute.xlu1 %9717 }
 0x747   : > { %v9576_v24 = vpop.permute.xlu1 %9575  ;;  %v9599_v26 = vpop.permute.xlu0 %9598 }
 0x748   : > { %v9741_v9 = vsel %vm8515_vm3, %v17791_v3, %v9576_v24  ;;  %v9803_v3 = vld [vmem:[%s18152_s5 + $0x38] sm:$0xff] }
 0x74b   : > { %v9670_v4 = vpop.permute.xlu1 %9669  ;;  %v9624_v38 = vpop.permute.xlu0 %9623 }
 0x74c   : > { %v9772_v48 = vsel %vm9769_vm2, %v9763_v61, %v9670_v4 }
 0x74f   : > { %v9694_v15 = vpop.permute.xlu1 %9693  ;;  %v9720_v22 = vpop.permute.xlu0 %9719 }
 0x750   : > { %v9781_v7 = vsel %vm9778_vm4, %v9772_v48, %v9694_v15 }
 0x751   : > { %v9790_v61 = vsel %vm9787_vm5, %v9781_v7, %v9718_v11  ;;  %v9819_v11 = vmul.f32 %v9803_v3, %v17813_v43 }
 0x752   : > { %v9816_v55 = vmul.f32 %v9800_v34, %v9790_v61 }
 0x753   : > { %v9650_v0 = vpop.permute.xlu1 %9649  ;;  %v9578_v44 = vpop.permute.xlu0 %9577 }
 0x754   : > { %v9742_v15 = vsel %vm8515_vm3, %v17804_v40, %v9578_v44 }
 0x757   : > { %v9601_v2 = vpop.permute.xlu1 %9600  ;;  %v9672_v14 = vpop.permute.xlu0 %9671 }
 0x758   : > { %v9749_v33 = vsel %vm8551_vm7, %v9741_v9, %v9601_v2  ;;  %v9802_v2 = vld [vmem:[%s18152_s5 + $0x30] sm:$0xff] }
 0x75b   : > { %v9626_v31 = vpop.permute.xlu1 %9625  ;;  %v9696_v58 = vpop.permute.xlu0 %9695 }
 0x75c   : > { %v9757_v4 = vsel %vm8587_vm11, %v9749_v33, %v9626_v31 }
 0x75f   : > { %v18002_v37 = vpop.permute.xlu0 %9651  ;;  %v18004_v27 = vpop.permute.xlu1 %9721 }
 0x763   : > { %v9603_v56 = vpop.permute.xlu0 %9602  ;;  %v9674_v41 = vpop.permute.xlu1 %9673 }
 0x767   : > { %v9628_v42 = vpop.permute.xlu0 %9627  ;;  %v9698_v10 = vpop.permute.xlu1 %9697 }
 0x76b   : > { %v9568_v51 = vpop.permute.xlu0 %9567  ;;  %v9593_v57 = vpop.permute.xlu1 %9592 }
 0x76c   : > { %v9737_v8 = vsel %vm8515_vm3, %v17848_v49, %v9568_v51  ;;  %v9750_v51 = vsel %vm8551_vm7, %v9742_v15, %v9603_v56  ;;  %v9807_v56 = vld [vmem:[%s18152_s5 + $0x58] sm:$0xff] }
 0x76d   : > { %v9745_v32 = vsel %vm8551_vm7, %v9737_v8, %v9593_v57  ;;  %v9758_v40 = vsel %vm8587_vm11, %v9750_v51, %v9628_v42 }
 0x76e   : > { %v9766_v42 = vsel %vm9343_vm15, %v9758_v40, %v18002_v37  ;;  %v9806_v37 = vld [vmem:[%s18152_s5 + $0x50] sm:$0xff] }
 0x76f   : > { %v9580_v63 = vpop.permute.xlu1 %9579  ;;  %v9618_v47 = vpop.permute.xlu0 %9617 }
 0x770   : > { %v9753_v54 = vsel %vm8587_vm11, %v9745_v32, %v9618_v47 }
 0x771   : > { %v9761_v28 = vsel %vm9343_vm15, %v9753_v54, %v9642_v12  ;;  %v9748_v12 = vsel %vm8551_vm7, %v9740_v19, %v9599_v26 }
 0x772   : > { %v9770_v1 = vsel %vm9769_vm2, %v9761_v28, %v9666_v39  ;;  %v9798_v39 = vld [vmem:[%s18152_s5 + $0x10] sm:$0xff] }
 0x773   : > { %v9779_v49 = vsel %vm9778_vm4, %v9770_v1, %v9690_v36  ;;  %v9605_v16 = vpop.permute.xlu1 %9604  ;;  %v9676_v20 = vpop.permute.xlu0 %9675  ;;  %v9756_v36 = vsel %vm8587_vm11, %v9748_v12, %v9624_v38  ;;  %v9814_v46 = vmul.f32 %v9798_v39, %v9789_v52  ;;  %v9765_v38 = vsel %vm9343_vm15, %v9757_v4, %v9650_v0  ;;  %v9811_v39 = vld [vmem:[%s18152_s5 + $0x78] sm:$0xff] }
 0x774   : > { %v9788_v30 = vsel %vm9787_vm5, %v9779_v49, %v9714_v45  ;;  %v9764_v21 = vsel %vm9343_vm15, %v9756_v36, %v9648_v25  ;;  %v9774_v31 = vsel %vm9769_vm2, %v9765_v38, %v9674_v41  ;;  %v9804_v41 = vld [vmem:[%s18152_s5 + $0x40] sm:$0xff]  ;;  %v9775_v54 = vsel %vm9769_vm2, %v9766_v42, %v9676_v20 }
 0x775   : > { %v9812_v50 = vmul.f32 %v9796_v5, %v9788_v30  ;;  %v9773_v26 = vsel %vm9769_vm2, %v9764_v21, %v9672_v14  ;;  %v9783_v0 = vsel %vm9778_vm4, %v9774_v31, %v9698_v10  ;;  %v9743_v10 = vsel %vm8515_vm3, %v17816_v17, %v9580_v63 }
 0x776   : > { %v9782_v52 = vsel %vm9778_vm4, %v9773_v26, %v9696_v58  ;;  %v9805_v58 = vld [vmem:[%s18152_s5 + $0x48] sm:$0xff]  ;;  %v9792_v8 = vsel %vm9787_vm5, %v9783_v0, %v18004_v27  ;;  %v9823_v1 = vmul.f32 %v9807_v56, %v17845_v18  ;;  %v9825_v30 = vmul.f32 %v9809_v6, %v17839_v13 }
 0x777   : > { %v9630_v45 = vpop.permute.xlu1 %9629  ;;  %v9700_v29 = vpop.permute.xlu0 %9699  ;;  %9942 = vmatmul.mubr.f32.vlgmr.msra.gmra.mrb[174].mxu1 %v9812_v50  ;;  %v9791_v14 = vsel %vm9787_vm5, %v9782_v52, %v9720_v22  ;;  %v9821_v22 = vmul.f32 %v9805_v58, %v17825_v62  ;;  %v9751_v62 = vsel %vm8551_vm7, %v9743_v10, %v9605_v16  ;;  %v9820_v27 = vmul.f32 %v9804_v41, %v9792_v8  ;;  %v9808_v50 = vld [vmem:[%s18152_s5 + $0x60] sm:$0xff] }
 0x778   : > { %10366 = vmatprep.mubr.msk.f32.mxu1 %vm8515_vm3, %v9815_v35  ;;  %v9818_v44 = vmul.f32 %v9802_v2, %v9791_v14  ;;  %v9759_v28 = vsel %vm8587_vm11, %v9751_v62, %v9630_v45  ;;  %v9784_v5 = vsel %vm9778_vm4, %v9775_v54, %v9700_v29  ;;  %v9827_v45 = vmul.f32 %v9811_v39, %v17764_v23  ;;  %v10364_v23 = vld [vmem:[%s18153_s6] ss:$0 sm:$0xff] }
 0x77b   : > { %v9654_v24 = vpop.permute.xlu1 %9653  ;;  %v9724_v25 = vpop.permute.xlu0 %9723  ;;  %9947 = vmatmul.mubr.f32.gmra.mrb[176].mxu1 %v9814_v46  ;;  %v9810_v46 = vld [vmem:[%s18152_s5 + $0x70] sm:$0xff] }
 0x77c   : > { %10367 = vmatprep.mubr.msk.f32.mxu1 %vm8515_vm3, %v9817_v59  ;;  %v9767_v17 = vsel %vm9343_vm15, %v9759_v28, %v9654_v24  ;;  %v9793_v63 = vsel %vm9787_vm5, %v9784_v5, %v9724_v25 }
 0x77d   : > { %v9822_v18 = vmul.f32 %v9806_v37, %v9793_v63 }
 0x77f   : > { %v9726_v43 = vpop.permute.xlu1 %9725  ;;  %v9582_v57 = vpop.permute.xlu0 %9581  ;;  %9952 = vmatmul.mubr.f32.gmra.mrb[178].mxu1 %v9816_v55 }
 0x780   : > { %10368 = vmatprep.mubr.msk.f32.mxu1 %vm8515_vm3, %v9819_v11  ;;  %v9744_v12 = vsel %vm8515_vm3, %v17828_v53, %v9582_v57 }
 0x783   : > { %v9678_v32 = vpop.permute.xlu1 %9677  ;;  %v9656_v47 = vpop.permute.xlu0 %9655  ;;  %9957 = vmatmul.mubr.f32.gmra.mrb[180].mxu1 %v9818_v44 }
 0x784   : > { %10369 = vmatprep.mubr.msk.f32.mxu1 %vm8515_vm3, %v9821_v22  ;;  %v9776_v49 = vsel %vm9769_vm2, %v9767_v17, %v9678_v32 }
 0x787   : > { %v9607_v16 = vpop.permute.xlu0 %9606  ;;  %v9702_v20 = vpop.permute.xlu1 %9701  ;;  %9962 = vmatmul.mubr.f32.gmra.mrb[182].mxu1 %v9820_v27 }
 0x788   : > { %v9785_v19 = vsel %vm9778_vm4, %v9776_v49, %v9702_v20  ;;  %10370 = vmatprep.mubr.msk.f32.mxu1 %vm8515_vm3, %v9823_v1  ;;  %v9752_v48 = vsel %vm8551_vm7, %v9744_v12, %v9607_v16 }
 0x789   : > { %v9794_v35 = vsel %vm9787_vm5, %v9785_v19, %v9726_v43 }
 0x78a   : > { %v9824_v53 = vmul.f32 %v9808_v50, %v9794_v35 }
 0x78b   : > { %v9632_v36 = vpop.permute.xlu0 %9631  ;;  %v9680_v60 = vpop.permute.xlu1 %9679  ;;  %9967 = vmatmul.mubr.f32.gmra.mrb[184].mxu1 %v9822_v18 }
 0x78c   : > { %v9760_v13 = vsel %vm8587_vm11, %v9752_v48, %v9632_v36  ;;  %10371 = vmatprep.mubr.msk.f32.mxu1 %vm8515_vm3, %v9825_v30 }
 0x78d   : > { %v9768_v7 = vsel %vm9343_vm15, %v9760_v13, %v9656_v47 }
 0x78e   : > { %v9777_v29 = vsel %vm9769_vm2, %v9768_v7, %v9680_v60 }
 0x78f   : > { %v9704_v9 = vpop.permute.xlu0 %9703  ;;  %v9728_v33 = vpop.permute.xlu1 %9727  ;;  %9972 = vmatmul.mubr.f32.gmra.mrb[186].mxu1 %v9824_v53 }
 0x790   : > { %v9786_v21 = vsel %vm9778_vm4, %v9777_v29, %v9704_v9  ;;  %10372 = vmatprep.mubr.msk.f32.mxu1 %vm8515_vm3, %v9827_v45 }
 0x791   : > { %v9795_v59 = vsel %vm9787_vm5, %v9786_v21, %v9728_v33 }
 0x792   : > { %v9826_v34 = vmul.f32 %v9810_v46, %v9795_v59 }
 0x794   : > { %9977 = vmatmul.mubr.f32.gmra.mrb[188].mxu1 %v9826_v34 }
 0x84a   : > { %v9943_v61 = vpop.f32.mrb[174].mxu1 }
 0x84b   : > { %v9944_v26 = vadd.f32 %v10364_v23, %v9943_v61  ;;  %v9945_v4 = vpop.f32.mrb[175].mxu1 }
 0x84d   : > { %9982 = vst.msk [vmem:[%s18126_s8] sm:$0xff] %vm8551_vm7, %v9944_v26 }
 0x84e   : > { %v9948_v3 = vpop.f32.mrb[176].mxu1 }
 0x84f   : > { %v9949_v52 = vadd.f32 %v10364_v23, %v9948_v3  ;;  %v9950_v24 = vpop.f32.mrb[177].mxu1 }
 0x851   : > { %9983 = vst.msk [vmem:[%s18126_s8 + $0x8] sm:$0xff] %vm8551_vm7, %v9949_v52 }
 0x852   : > { %v9953_v25 = vpop.f32.mrb[178].mxu1 }
 0x853   : > { %v9954_v55 = vadd.f32 %v10364_v23, %v9953_v25  ;;  %v9955_v38 = vpop.f32.mrb[179].mxu1 }
 0x855   : > { %9984 = vst.msk [vmem:[%s18126_s8 + $0x10] sm:$0xff] %vm8551_vm7, %v9954_v55 }
 0x856   : > { %v9958_v11 = vpop.f32.mrb[180].mxu1 }
 0x857   : > { %v9959_v15 = vadd.f32 %v10364_v23, %v9958_v11  ;;  %v9960_v2 = vpop.f32.mrb[181].mxu1 }
 0x859   : > { %9985 = vst.msk [vmem:[%s18126_s8 + $0x18] sm:$0xff] %vm8551_vm7, %v9959_v15 }
 0x85a   : > { %v9963_v14 = vpop.f32.mrb[182].mxu1 }
 0x85b   : > { %v9964_v31 = vadd.f32 %v10364_v23, %v9963_v14  ;;  %v9965_v58 = vpop.f32.mrb[183].mxu1 }
 0x85d   : > { %9986 = vst.msk [vmem:[%s18126_s8 + $0x20] sm:$0xff] %vm8551_vm7, %v9964_v31 }
 0x85e   : > { %v9968_v51 = vpop.f32.mrb[184].mxu1 }
 0x85f   : > { %v9969_v0 = vadd.f32 %v10364_v23, %v9968_v51  ;;  %v9970_v43 = vpop.f32.mrb[185].mxu1 }
 0x861   : > { %9987 = vst.msk [vmem:[%s18126_s8 + $0x28] sm:$0xff] %vm8551_vm7, %v9969_v0 }
 0x862   : > { %v9973_v57 = vpop.f32.mrb[186].mxu1 }
 0x863   : > { %v9974_v40 = vadd.f32 %v10364_v23, %v9973_v57  ;;  %v9975_v44 = vpop.f32.mrb[187].mxu1 }
 0x865   : > { %9988 = vst.msk [vmem:[%s18126_s8 + $0x30] sm:$0xff] %vm8551_vm7, %v9974_v40 }
 0x867   : > { %v9978_v22 = vpop.f32.mrb[188].mxu1 }
 0x868   : > { %v9979_v41 = vadd.f32 %v10364_v23, %v9978_v22  ;;  %v9980_v8 = vpop.f32.mrb[189].mxu1 }
 0x86a   : > { %9989 = vst.msk [vmem:[%s18126_s8 + $0x38] sm:$0xff] %vm8551_vm7, %v9979_v41 }
 0x86b PF: > { %s17_s24 = sadd.s32 1, %s11900_s24  }
 0x86c   : > { %p14_p4 = scmp.ge.s32.totalorder %s17_s24, 4  }
 0x86e   :  { %16 = sbr.rel (!%p14_p4) target bundleno = 1 (0x1), region = 81 }

</bundles_post_ra>
